<compile_context>
chip_gen: v7x
topology: tpu7x:2x2x1
jax: 0.10.0
libtpu: 0.0.40
codegen_flags: <defaults>
</compile_context>

<pallas_src>
import functools

import jax
import jax.numpy as jnp
from jax import lax
from jax.experimental import pallas as pl
from jax.experimental.pallas import tpu as pltpu


def _round_up(x, m):
    return ((x + m - 1) // m) * m


_MAX_TILE = 1024  # rows; working set stays a few MiB even at hidden_dim=256


def actor_kernel(s_ref, w1_ref, b1_ref, w2_ref, b2_ref, w2b_ref, b2b_ref,
                 w3_ref, b3_ref, out_ref, *, max_action, precision):
    """Fused 4-matmul MLP forward, entirely from VMEM.

    All matmuls run on the MXU with f32 accumulation; each hidden layer's
    elementwise epilogue is one pass in the compute dtype (cast + bias + relu);
    tanh goes to the EUP slot; max_action is a single VPU multiply.
    """
    cdt = w1_ref.dtype

    def hidden(x, w_ref, b_ref):
        h = jnp.dot(x, w_ref[...], preferred_element_type=jnp.float32,
                    precision=precision)
        # Single narrow-dtype elementwise pass: cast accum -> add bias -> relu.
        # (For the exact f32 path the cast is a no-op.)
        return jnp.maximum(h.astype(cdt) + b_ref[...], 0)

    a = hidden(s_ref[...].astype(cdt), w1_ref, b1_ref)
    a = hidden(a, w2_ref, b2_ref)
    a = hidden(a, w2b_ref, b2b_ref)

    z = jnp.dot(a, w3_ref[...], preferred_element_type=jnp.float32,
                precision=precision)
    z = z + b3_ref[...].astype(jnp.float32)
    out_ref[...] = (max_action * jnp.tanh(z)).astype(out_ref.dtype)


def _num_tensorcores():
    """Best-effort TensorCores-per-chip: v7x = 2, v5e/v6e = 1 (safe default)."""
    try:
        kind = str(getattr(jax.devices()[0], "device_kind", "")).lower()
        if "v7" in kind:
            return 2
    except Exception:
        pass
    return 1


def _pick_batch_tile(batch, num_tc):
    b8 = _round_up(max(batch, 1), 8)
    if num_tc >= 2 and batch > 8:
        # Megacore (v7x): keep >=2 grid steps so the "parallel" batch axis can
        # be sharded across both TensorCores.
        return min(_MAX_TILE, _round_up((batch + 1) // 2, 8))
    # Single-TC chips (v5e/v6e): the grid is a serial loop (~0.35us/step), so
    # use one big tile whenever the batch fits.
    return min(_MAX_TILE, b8)


def _vmem_limit_bytes(batch_tile, state_dim, hidden_dim, out_pad, w_bytes):
    """Right-sized VMEM request: double-buffered pipeline blocks + f32
    activation working set + a few MiB of headroom (critical on v7x's 64 MiB)."""
    weights = (state_dim * hidden_dim + 2 * hidden_dim * hidden_dim
               + hidden_dim * out_pad) * w_bytes
    biases = (3 * hidden_dim + out_pad) * w_bytes
    io = batch_tile * (state_dim + out_pad) * 4
    act = batch_tile * hidden_dim * 4
    est = 2 * (weights + biases + io) + 6 * act
    return int(est + 8 * 1024 * 1024)


def actor_forward(state, params, max_action, *, batch_tile=None):
    """state: [B, state_dim] float32 -> [B, action_dim] float32."""
    w1, b1, w2, b2, w2b, b2b, w3, b3 = params
    B, state_dim = state.shape
    hidden_dim = w1.shape[1]
    action_dim = w3.shape[1]
    w_dtype = w1.dtype
    w_bytes = jnp.dtype(w_dtype).itemsize

    if batch_tile is None:
        batch_tile = _pick_batch_tile(B, _num_tensorcores())
    batch_tile = _round_up(batch_tile, 8)

    # Pad the batch to a tile multiple (handled here, not by the caller).
    B_pad = _round_up(B, batch_tile)
    if B_pad != B:
        state = jnp.pad(state, ((0, B_pad - B), (0, 0)))

    # Lane-pad the action dimension so the output store is lane-dense.
    out_pad = _round_up(action_dim, 128)
    if out_pad != action_dim:
        w3 = jnp.pad(w3, ((0, 0), (0, out_pad - action_dim)))
        b3 = jnp.pad(b3, ((0, 0), (0, out_pad - action_dim)))

    precision = (lax.Precision.HIGHEST if w_dtype == jnp.float32
                 else lax.Precision.DEFAULT)
    kernel = functools.partial(actor_kernel, max_action=float(max_action),
                               precision=precision)
    grid = (B_pad // batch_tile,)

    def call(single_buffer_weights):
        def rep(shape):
            kw = {}
            if single_buffer_weights:
                # Grid-invariant blocks (constant index_map) are fetched once;
                # no need for a second pipeline buffer.
                kw["pipeline_mode"] = pl.Buffered(1)
            return pl.BlockSpec(shape, lambda i: (0,) * len(shape), **kw)

        return pl.pallas_call(
            kernel,
            out_shape=jax.ShapeDtypeStruct((B_pad, out_pad), jnp.float32),
            grid_spec=pltpu.PrefetchScalarGridSpec(
                num_scalar_prefetch=0,
                grid=grid,
                in_specs=[
                    pl.BlockSpec((batch_tile, state_dim), lambda i: (i, 0)),
                    rep((state_dim, hidden_dim)),   # w1
                    rep((1, hidden_dim)),           # b1
                    rep((hidden_dim, hidden_dim)),  # w2
                    rep((1, hidden_dim)),           # b2
                    rep((hidden_dim, hidden_dim)),  # w2b
                    rep((1, hidden_dim)),           # b2b
                    rep((hidden_dim, out_pad)),     # w3 (lane-padded)
                    rep((1, out_pad)),              # b3 (lane-padded)
                ],
                out_specs=pl.BlockSpec((batch_tile, out_pad), lambda i: (i, 0)),
            ),
            compiler_params=pltpu.CompilerParams(
                dimension_semantics=("parallel",),
                vmem_limit_bytes=_vmem_limit_bytes(
                    batch_tile, state_dim, hidden_dim, out_pad, w_bytes),
            ),
        )(state, w1, b1, w2, b2, w2b, b2b, w3, b3)

    try:
        out = call(single_buffer_weights=True)
    except Exception:
        # Fall back to default double buffering if Buffered(1) is rejected.
        out = call(single_buffer_weights=False)

    return out[:B, :action_dim]


def init_params(key, state_dim, action_dim, hidden_dim, weight_dtype=jnp.bfloat16):
    """nn.Linear-style init (uniform +/- 1/sqrt(fan_in)). Weights stored as
    [in, out]; weights AND biases stored in `weight_dtype` (the compute dtype)."""
    ks = jax.random.split(key, 8)

    def lin(kw, kb, fan_in, fan_out):
        bound = 1.0 / (float(fan_in) ** 0.5)
        w = jax.random.uniform(kw, (fan_in, fan_out), jnp.float32, -bound, bound)
        b = jax.random.uniform(kb, (1, fan_out), jnp.float32, -bound, bound)
        return w.astype(weight_dtype), b.astype(weight_dtype)

    w1, b1 = lin(ks[0], ks[1], state_dim, hidden_dim)
    w2, b2 = lin(ks[2], ks[3], hidden_dim, hidden_dim)
    w2b, b2b = lin(ks[4], ks[5], hidden_dim, hidden_dim)
    w3, b3 = lin(ks[6], ks[7], hidden_dim, action_dim)
    return (w1, b1, w2, b2, w2b, b2b, w3, b3)


def actor_reference(state, params, max_action):
    """Pure-JAX reference mirroring the kernel's compute precision (weight
    dtype drives the elementwise dtype; f32 MXU accumulation; f32 path uses
    HIGHEST-precision matmuls to match PyTorch f32 math)."""
    w1, b1, w2, b2, w2b, b2b, w3, b3 = params
    cdt = w1.dtype
    precision = (lax.Precision.HIGHEST if cdt == jnp.float32
                 else lax.Precision.DEFAULT)

    def hidden(x, w, b):
        h = jnp.dot(x.astype(cdt), w, preferred_element_type=jnp.float32,
                    precision=precision)
        return jnp.maximum(h.astype(cdt) + b, 0)

    a = hidden(state, w1, b1)
    a = hidden(a, w2, b2)
    a = hidden(a, w2b, b2b)
    z = jnp.dot(a, w3, preferred_element_type=jnp.float32,
                precision=precision) + b3.astype(jnp.float32)
    return max_action * jnp.tanh(z)


if __name__ == "__main__":
    batch = 2
    state_dim = 16
    action_dim = 8
    hidden_dim = 256
    max_action = 2.0

    key = jax.random.PRNGKey(0)
    k_state, k_params = jax.random.split(key)
    state = jax.random.normal(k_state, (batch, state_dim), jnp.float32)

    # --- Exact-semantics path (f32 weights, HIGHEST precision): PyTorch parity.
    params_f32 = init_params(k_params, state_dim, action_dim, hidden_dim,
                             weight_dtype=jnp.float32)
    out_f32 = jax.block_until_ready(actor_forward(state, params_f32, max_action))
    ref_f32 = actor_reference(state, params_f32, max_action)
    assert out_f32.shape == (batch, action_dim)
    assert jnp.allclose(out_f32, ref_f32, atol=1e-5, rtol=1e-5), "f32 mismatch"

    # --- Fast path (bf16 weights/biases, f32 MXU accum) vs precision-matched ref.
    params_bf16 = init_params(k_params, state_dim, action_dim, hidden_dim,
                              weight_dtype=jnp.bfloat16)
    out_bf16 = jax.block_until_ready(actor_forward(state, params_bf16, max_action))
    ref_bf16 = actor_reference(state, params_bf16, max_action)
    assert out_bf16.shape == (batch, action_dim)
    assert jnp.allclose(out_bf16, ref_bf16, atol=2e-2, rtol=2e-2), "bf16 mismatch"

    # --- Ragged batch: exercises batch padding + lane-padded output slicing.
    #     Single grid step on 1-TC chips; 2 "parallel" steps on v7x.
    big_batch = 300
    big_state = jax.random.normal(k_state, (big_batch, state_dim), jnp.float32)
    out_big = jax.block_until_ready(
        actor_forward(big_state, params_bf16, max_action))
    ref_big = actor_reference(big_state, params_bf16, max_action)
    assert out_big.shape == (big_batch, action_dim)
    assert jnp.allclose(out_big, ref_big, atol=2e-2, rtol=2e-2), "padded mismatch"

    print("KERNEL_OK")
</pallas_src>

<mosaic_0001>
module attributes {stable_mosaic.version = 11 : i64} {
  func.func @actor_kernel(%arg0: i32, %arg1: memref<8x16xf32, #tpu.memory_space<vmem>>, %arg2: memref<16x256xf32, #tpu.memory_space<vmem>>, %arg3: memref<1x256xf32, #tpu.memory_space<vmem>>, %arg4: memref<256x256xf32, #tpu.memory_space<vmem>>, %arg5: memref<1x256xf32, #tpu.memory_space<vmem>>, %arg6: memref<256x256xf32, #tpu.memory_space<vmem>>, %arg7: memref<1x256xf32, #tpu.memory_space<vmem>>, %arg8: memref<256x128xf32, #tpu.memory_space<vmem>>, %arg9: memref<1x128xf32, #tpu.memory_space<vmem>>, %arg10: memref<8x128xf32, #tpu.memory_space<vmem>>) attributes {dimension_semantics = [#tpu.dimension_semantics<parallel>], iteration_bounds = array<i64: 1>, scalar_prefetch = 0 : i64, scratch_operands = 0 : i64, tpu.core_type = #tpu.core_type<tc>, window_params = [{transform_indices = @transform_0, window_bounds = array<i64: 8, 16>}, {pipeline_mode = #tpu.pipeline_mode<synchronous>, transform_indices = @transform_1, window_bounds = array<i64: 16, 256>}, {pipeline_mode = #tpu.pipeline_mode<synchronous>, transform_indices = @transform_2, window_bounds = array<i64: 1, 256>}, {pipeline_mode = #tpu.pipeline_mode<synchronous>, transform_indices = @transform_3, window_bounds = array<i64: 256, 256>}, {pipeline_mode = #tpu.pipeline_mode<synchronous>, transform_indices = @transform_4, window_bounds = array<i64: 1, 256>}, {pipeline_mode = #tpu.pipeline_mode<synchronous>, transform_indices = @transform_5, window_bounds = array<i64: 256, 256>}, {pipeline_mode = #tpu.pipeline_mode<synchronous>, transform_indices = @transform_6, window_bounds = array<i64: 1, 256>}, {pipeline_mode = #tpu.pipeline_mode<synchronous>, transform_indices = @transform_7, window_bounds = array<i64: 256, 128>}, {pipeline_mode = #tpu.pipeline_mode<synchronous>, transform_indices = @transform_8, window_bounds = array<i64: 1, 128>}, {transform_indices = @transform_9, window_bounds = array<i64: 8, 128>}]} {
    %c0 = arith.constant 0 : index
    %c0_0 = arith.constant 0 : index
    %0 = vector.load %arg1[%c0, %c0_0] : memref<8x16xf32, #tpu.memory_space<vmem>>, vector<8x16xf32>
    %c0_1 = arith.constant 0 : index
    %c0_2 = arith.constant 0 : index
    %1 = vector.load %arg2[%c0_1, %c0_2] : memref<16x256xf32, #tpu.memory_space<vmem>>, vector<16x256xf32>
    %cst = arith.constant dense<0.000000e+00> : vector<8x256xf32>
    %2 = tpu.matmul %0, %1, %cst {dimension_numbers = #tpu.dot_dimension_numbers<[1], [0], [0], [1], [0, 0, 1, 1], [], []>, precision = #tpu.contract_precision<fp32>} : vector<8x16xf32>, vector<16x256xf32>, vector<8x256xf32> -> vector<8x256xf32>
    %c0_3 = arith.constant 0 : index
    %c0_4 = arith.constant 0 : index
    %3 = vector.load %arg3[%c0_3, %c0_4] : memref<1x256xf32, #tpu.memory_space<vmem>>, vector<1x256xf32>
    %4 = vector.broadcast %3 : vector<1x256xf32> to vector<8x256xf32>
    %5 = arith.addf %2, %4 : vector<8x256xf32>
    %cst_5 = arith.constant 0.000000e+00 : f32
    %6 = vector.broadcast %cst_5 : f32 to vector<8x256xf32>
    %7 = arith.maximumf %5, %6 : vector<8x256xf32>
    %c0_6 = arith.constant 0 : index
    %c0_7 = arith.constant 0 : index
    %8 = vector.load %arg4[%c0_6, %c0_7] : memref<256x256xf32, #tpu.memory_space<vmem>>, vector<256x256xf32>
    %cst_8 = arith.constant dense<0.000000e+00> : vector<8x256xf32>
    %9 = tpu.matmul %7, %8, %cst_8 {dimension_numbers = #tpu.dot_dimension_numbers<[1], [0], [0], [1], [0, 0, 1, 1], [], []>, precision = #tpu.contract_precision<fp32>} : vector<8x256xf32>, vector<256x256xf32>, vector<8x256xf32> -> vector<8x256xf32>
    %c0_9 = arith.constant 0 : index
    %c0_10 = arith.constant 0 : index
    %10 = vector.load %arg5[%c0_9, %c0_10] : memref<1x256xf32, #tpu.memory_space<vmem>>, vector<1x256xf32>
    %11 = vector.broadcast %10 : vector<1x256xf32> to vector<8x256xf32>
    %12 = arith.addf %9, %11 : vector<8x256xf32>
    %cst_11 = arith.constant 0.000000e+00 : f32
    %13 = vector.broadcast %cst_11 : f32 to vector<8x256xf32>
    %14 = arith.maximumf %12, %13 : vector<8x256xf32>
    %c0_12 = arith.constant 0 : index
    %c0_13 = arith.constant 0 : index
    %15 = vector.load %arg6[%c0_12, %c0_13] : memref<256x256xf32, #tpu.memory_space<vmem>>, vector<256x256xf32>
    %cst_14 = arith.constant dense<0.000000e+00> : vector<8x256xf32>
    %16 = tpu.matmul %14, %15, %cst_14 {dimension_numbers = #tpu.dot_dimension_numbers<[1], [0], [0], [1], [0, 0, 1, 1], [], []>, precision = #tpu.contract_precision<fp32>} : vector<8x256xf32>, vector<256x256xf32>, vector<8x256xf32> -> vector<8x256xf32>
    %c0_15 = arith.constant 0 : index
    %c0_16 = arith.constant 0 : index
    %17 = vector.load %arg7[%c0_15, %c0_16] : memref<1x256xf32, #tpu.memory_space<vmem>>, vector<1x256xf32>
    %18 = vector.broadcast %17 : vector<1x256xf32> to vector<8x256xf32>
    %19 = arith.addf %16, %18 : vector<8x256xf32>
    %cst_17 = arith.constant 0.000000e+00 : f32
    %20 = vector.broadcast %cst_17 : f32 to vector<8x256xf32>
    %21 = arith.maximumf %19, %20 : vector<8x256xf32>
    %c0_18 = arith.constant 0 : index
    %c0_19 = arith.constant 0 : index
    %22 = vector.load %arg8[%c0_18, %c0_19] : memref<256x128xf32, #tpu.memory_space<vmem>>, vector<256x128xf32>
    %cst_20 = arith.constant dense<0.000000e+00> : vector<8x128xf32>
    %23 = tpu.matmul %21, %22, %cst_20 {dimension_numbers = #tpu.dot_dimension_numbers<[1], [0], [0], [1], [0, 0, 1, 1], [], []>, precision = #tpu.contract_precision<fp32>} : vector<8x256xf32>, vector<256x128xf32>, vector<8x128xf32> -> vector<8x128xf32>
    %c0_21 = arith.constant 0 : index
    %c0_22 = arith.constant 0 : index
    %24 = vector.load %arg9[%c0_21, %c0_22] : memref<1x128xf32, #tpu.memory_space<vmem>>, vector<1x128xf32>
    %25 = vector.broadcast %24 : vector<1x128xf32> to vector<8x128xf32>
    %26 = arith.addf %23, %25 : vector<8x128xf32>
    %27 = math.tanh %26 : vector<8x128xf32>
    %cst_23 = arith.constant 2.000000e+00 : f32
    %28 = vector.broadcast %cst_23 : f32 to vector<8x128xf32>
    %29 = arith.mulf %28, %27 : vector<8x128xf32>
    %c0_24 = arith.constant 0 : index
    %c0_25 = arith.constant 0 : index
    %30 = vector.load %arg10[%c0_24, %c0_25] : memref<8x128xf32, #tpu.memory_space<vmem>>, vector<8x128xf32>
    tpu.vector_store %arg10[%c0_24, %c0_25], %29 {strides = array<i32>} : memref<8x128xf32, #tpu.memory_space<vmem>>, vector<8x128xf32>,
    return
  }
  func.func @transform_0(%arg0: i32) -> (i32, i32) {
    %c0_i32 = arith.constant 0 : i32
    %c0_i32_0 = arith.constant 0 : i32
    return %arg0, %c0_i32 : i32, i32
  }
  func.func @transform_1(%arg0: i32) -> (i32, i32) {
    %c0_i32 = arith.constant 0 : i32
    %c0_i32_0 = arith.constant 0 : i32
    %c0_i32_1 = arith.constant 0 : i32
    return %c0_i32, %c0_i32_0 : i32, i32
  }
  func.func @transform_2(%arg0: i32) -> (i32, i32) {
    %c0_i32 = arith.constant 0 : i32
    %c0_i32_0 = arith.constant 0 : i32
    %c0_i32_1 = arith.constant 0 : i32
    return %c0_i32, %c0_i32_0 : i32, i32
  }
  func.func @transform_3(%arg0: i32) -> (i32, i32) {
    %c0_i32 = arith.constant 0 : i32
    %c0_i32_0 = arith.constant 0 : i32
    %c0_i32_1 = arith.constant 0 : i32
    return %c0_i32, %c0_i32_0 : i32, i32
  }
  func.func @transform_4(%arg0: i32) -> (i32, i32) {
    %c0_i32 = arith.constant 0 : i32
    %c0_i32_0 = arith.constant 0 : i32
    %c0_i32_1 = arith.constant 0 : i32
    return %c0_i32, %c0_i32_0 : i32, i32
  }
  func.func @transform_5(%arg0: i32) -> (i32, i32) {
    %c0_i32 = arith.constant 0 : i32
    %c0_i32_0 = arith.constant 0 : i32
    %c0_i32_1 = arith.constant 0 : i32
    return %c0_i32, %c0_i32_0 : i32, i32
  }
  func.func @transform_6(%arg0: i32) -> (i32, i32) {
    %c0_i32 = arith.constant 0 : i32
    %c0_i32_0 = arith.constant 0 : i32
    %c0_i32_1 = arith.constant 0 : i32
    return %c0_i32, %c0_i32_0 : i32, i32
  }
  func.func @transform_7(%arg0: i32) -> (i32, i32) {
    %c0_i32 = arith.constant 0 : i32
    %c0_i32_0 = arith.constant 0 : i32
    %c0_i32_1 = arith.constant 0 : i32
    return %c0_i32, %c0_i32_0 : i32, i32
  }
  func.func @transform_8(%arg0: i32) -> (i32, i32) {
    %c0_i32 = arith.constant 0 : i32
    %c0_i32_0 = arith.constant 0 : i32
    %c0_i32_1 = arith.constant 0 : i32
    return %c0_i32, %c0_i32_0 : i32, i32
  }
  func.func @transform_9(%arg0: i32) -> (i32, i32) {
    %c0_i32 = arith.constant 0 : i32
    %c0_i32_0 = arith.constant 0 : i32
    return %arg0, %c0_i32 : i32, i32
  }
}

module attributes {stable_mosaic.version = 11 : i64} {
  func.func @actor_kernel(%arg0: i32, %arg1: memref<8x16xf32, #tpu.memory_space<vmem>>, %arg2: memref<16x256xf32, #tpu.memory_space<vmem>>, %arg3: memref<1x256xf32, #tpu.memory_space<vmem>>, %arg4: memref<256x256xf32, #tpu.memory_space<vmem>>, %arg5: memref<1x256xf32, #tpu.memory_space<vmem>>, %arg6: memref<256x256xf32, #tpu.memory_space<vmem>>, %arg7: memref<1x256xf32, #tpu.memory_space<vmem>>, %arg8: memref<256x128xf32, #tpu.memory_space<vmem>>, %arg9: memref<1x128xf32, #tpu.memory_space<vmem>>, %arg10: memref<8x128xf32, #tpu.memory_space<vmem>>) attributes {dimension_semantics = [#tpu.dimension_semantics<parallel>], iteration_bounds = array<i64: 1>, scalar_prefetch = 0 : i64, scratch_operands = 0 : i64, tpu.core_type = #tpu.core_type<tc>, window_params = [{transform_indices = @transform_0, window_bounds = array<i64: 8, 16>}, {pipeline_mode = #tpu.pipeline_mode<synchronous>, transform_indices = @transform_1, window_bounds = array<i64: 16, 256>}, {pipeline_mode = #tpu.pipeline_mode<synchronous>, transform_indices = @transform_2, window_bounds = array<i64: 1, 256>}, {pipeline_mode = #tpu.pipeline_mode<synchronous>, transform_indices = @transform_3, window_bounds = array<i64: 256, 256>}, {pipeline_mode = #tpu.pipeline_mode<synchronous>, transform_indices = @transform_4, window_bounds = array<i64: 1, 256>}, {pipeline_mode = #tpu.pipeline_mode<synchronous>, transform_indices = @transform_5, window_bounds = array<i64: 256, 256>}, {pipeline_mode = #tpu.pipeline_mode<synchronous>, transform_indices = @transform_6, window_bounds = array<i64: 1, 256>}, {pipeline_mode = #tpu.pipeline_mode<synchronous>, transform_indices = @transform_7, window_bounds = array<i64: 256, 128>}, {pipeline_mode = #tpu.pipeline_mode<synchronous>, transform_indices = @transform_8, window_bounds = array<i64: 1, 128>}, {transform_indices = @transform_9, window_bounds = array<i64: 8, 128>}]} {
    %c0 = arith.constant 0 : index
    %c0_0 = arith.constant 0 : index
    %0 = vector.load %arg1[%c0, %c0_0] : memref<8x16xf32, #tpu.memory_space<vmem>>, vector<8x16xf32>
    %c0_1 = arith.constant 0 : index
    %c0_2 = arith.constant 0 : index
    %1 = vector.load %arg2[%c0_1, %c0_2] : memref<16x256xf32, #tpu.memory_space<vmem>>, vector<16x256xf32>
    %cst = arith.constant dense<0.000000e+00> : vector<8x256xf32>
    %2 = tpu.matmul %0, %1, %cst {dimension_numbers = #tpu.dot_dimension_numbers<[1], [0], [0], [1], [0, 0, 1, 1], [], []>, precision = #tpu.contract_precision<fp32>} : vector<8x16xf32>, vector<16x256xf32>, vector<8x256xf32> -> vector<8x256xf32>
    %c0_3 = arith.constant 0 : index
    %c0_4 = arith.constant 0 : index
    %3 = vector.load %arg3[%c0_3, %c0_4] : memref<1x256xf32, #tpu.memory_space<vmem>>, vector<1x256xf32>
    %4 = vector.broadcast %3 : vector<1x256xf32> to vector<8x256xf32>
    %5 = arith.addf %2, %4 : vector<8x256xf32>
    %cst_5 = arith.constant 0.000000e+00 : f32
    %6 = vector.broadcast %cst_5 : f32 to vector<8x256xf32>
    %7 = arith.maximumf %5, %6 : vector<8x256xf32>
    %c0_6 = arith.constant 0 : index
    %c0_7 = arith.constant 0 : index
    %8 = vector.load %arg4[%c0_6, %c0_7] : memref<256x256xf32, #tpu.memory_space<vmem>>, vector<256x256xf32>
    %cst_8 = arith.constant dense<0.000000e+00> : vector<8x256xf32>
    %9 = tpu.matmul %7, %8, %cst_8 {dimension_numbers = #tpu.dot_dimension_numbers<[1], [0], [0], [1], [0, 0, 1, 1], [], []>, precision = #tpu.contract_precision<fp32>} : vector<8x256xf32>, vector<256x256xf32>, vector<8x256xf32> -> vector<8x256xf32>
    %c0_9 = arith.constant 0 : index
    %c0_10 = arith.constant 0 : index
    %10 = vector.load %arg5[%c0_9, %c0_10] : memref<1x256xf32, #tpu.memory_space<vmem>>, vector<1x256xf32>
    %11 = vector.broadcast %10 : vector<1x256xf32> to vector<8x256xf32>
    %12 = arith.addf %9, %11 : vector<8x256xf32>
    %cst_11 = arith.constant 0.000000e+00 : f32
    %13 = vector.broadcast %cst_11 : f32 to vector<8x256xf32>
    %14 = arith.maximumf %12, %13 : vector<8x256xf32>
    %c0_12 = arith.constant 0 : index
    %c0_13 = arith.constant 0 : index
    %15 = vector.load %arg6[%c0_12, %c0_13] : memref<256x256xf32, #tpu.memory_space<vmem>>, vector<256x256xf32>
    %cst_14 = arith.constant dense<0.000000e+00> : vector<8x256xf32>
    %16 = tpu.matmul %14, %15, %cst_14 {dimension_numbers = #tpu.dot_dimension_numbers<[1], [0], [0], [1], [0, 0, 1, 1], [], []>, precision = #tpu.contract_precision<fp32>} : vector<8x256xf32>, vector<256x256xf32>, vector<8x256xf32> -> vector<8x256xf32>
    %c0_15 = arith.constant 0 : index
    %c0_16 = arith.constant 0 : index
    %17 = vector.load %arg7[%c0_15, %c0_16] : memref<1x256xf32, #tpu.memory_space<vmem>>, vector<1x256xf32>
    %18 = vector.broadcast %17 : vector<1x256xf32> to vector<8x256xf32>
    %19 = arith.addf %16, %18 : vector<8x256xf32>
    %cst_17 = arith.constant 0.000000e+00 : f32
    %20 = vector.broadcast %cst_17 : f32 to vector<8x256xf32>
    %21 = arith.maximumf %19, %20 : vector<8x256xf32>
    %c0_18 = arith.constant 0 : index
    %c0_19 = arith.constant 0 : index
    %22 = vector.load %arg8[%c0_18, %c0_19] : memref<256x128xf32, #tpu.memory_space<vmem>>, vector<256x128xf32>
    %cst_20 = arith.constant dense<0.000000e+00> : vector<8x128xf32>
    %23 = tpu.matmul %21, %22, %cst_20 {dimension_numbers = #tpu.dot_dimension_numbers<[1], [0], [0], [1], [0, 0, 1, 1], [], []>, precision = #tpu.contract_precision<fp32>} : vector<8x256xf32>, vector<256x128xf32>, vector<8x128xf32> -> vector<8x128xf32>
    %c0_21 = arith.constant 0 : index
    %c0_22 = arith.constant 0 : index
    %24 = vector.load %arg9[%c0_21, %c0_22] : memref<1x128xf32, #tpu.memory_space<vmem>>, vector<1x128xf32>
    %25 = vector.broadcast %24 : vector<1x128xf32> to vector<8x128xf32>
    %26 = arith.addf %23, %25 : vector<8x128xf32>
    %27 = math.tanh %26 : vector<8x128xf32>
    %cst_23 = arith.constant 2.000000e+00 : f32
    %28 = vector.broadcast %cst_23 : f32 to vector<8x128xf32>
    %29 = arith.mulf %28, %27 : vector<8x128xf32>
    %c0_24 = arith.constant 0 : index
    %c0_25 = arith.constant 0 : index
    %30 = vector.load %arg10[%c0_24, %c0_25] : memref<8x128xf32, #tpu.memory_space<vmem>>, vector<8x128xf32>
    tpu.vector_store %arg10[%c0_24, %c0_25], %29 {strides = array<i32>} : memref<8x128xf32, #tpu.memory_space<vmem>>, vector<8x128xf32>,
    return
  }
  func.func @transform_0(%arg0: i32) -> (i32, i32) {
    %c0_i32 = arith.constant 0 : i32
    %c0_i32_0 = arith.constant 0 : i32
    return %arg0, %c0_i32 : i32, i32
  }
  func.func @transform_1(%arg0: i32) -> (i32, i32) {
    %c0_i32 = arith.constant 0 : i32
    %c0_i32_0 = arith.constant 0 : i32
    %c0_i32_1 = arith.constant 0 : i32
    return %c0_i32, %c0_i32_0 : i32, i32
  }
  func.func @transform_2(%arg0: i32) -> (i32, i32) {
    %c0_i32 = arith.constant 0 : i32
    %c0_i32_0 = arith.constant 0 : i32
    %c0_i32_1 = arith.constant 0 : i32
    return %c0_i32, %c0_i32_0 : i32, i32
  }
  func.func @transform_3(%arg0: i32) -> (i32, i32) {
    %c0_i32 = arith.constant 0 : i32
    %c0_i32_0 = arith.constant 0 : i32
    %c0_i32_1 = arith.constant 0 : i32
    return %c0_i32, %c0_i32_0 : i32, i32
  }
  func.func @transform_4(%arg0: i32) -> (i32, i32) {
    %c0_i32 = arith.constant 0 : i32
    %c0_i32_0 = arith.constant 0 : i32
    %c0_i32_1 = arith.constant 0 : i32
    return %c0_i32, %c0_i32_0 : i32, i32
  }
  func.func @transform_5(%arg0: i32) -> (i32, i32) {
    %c0_i32 = arith.constant 0 : i32
    %c0_i32_0 = arith.constant 0 : i32
    %c0_i32_1 = arith.constant 0 : i32
    return %c0_i32, %c0_i32_0 : i32, i32
  }
  func.func @transform_6(%arg0: i32) -> (i32, i32) {
    %c0_i32 = arith.constant 0 : i32
    %c0_i32_0 = arith.constant 0 : i32
    %c0_i32_1 = arith.constant 0 : i32
    return %c0_i32, %c0_i32_0 : i32, i32
  }
  func.func @transform_7(%arg0: i32) -> (i32, i32) {
    %c0_i32 = arith.constant 0 : i32
    %c0_i32_0 = arith.constant 0 : i32
    %c0_i32_1 = arith.constant 0 : i32
    return %c0_i32, %c0_i32_0 : i32, i32
  }
  func.func @transform_8(%arg0: i32) -> (i32, i32) {
    %c0_i32 = arith.constant 0 : i32
    %c0_i32_0 = arith.constant 0 : i32
    %c0_i32_1 = arith.constant 0 : i32
    return %c0_i32, %c0_i32_0 : i32, i32
  }
  func.func @transform_9(%arg0: i32) -> (i32, i32) {
    %c0_i32 = arith.constant 0 : i32
    %c0_i32_0 = arith.constant 0 : i32
    return %arg0, %c0_i32 : i32, i32
  }
}

</mosaic_0001>

<bundles_post_ra>
// kernel: tpu_custom_call.1
= control target key start
LH: loop header
LB: loop body
LE: loop exit
PB: predicated region body
PF: predicated region fallthrough
CT: control target
= control target key end

     0   :  { %14 = vsyncpa [#allocation3], 0  ;;  %s8238_s0 = inlined_call_operand.hbm [shape: f32[8,16], index: 0, kind: input, shape index: {}]   ;;  %s8239_s1 = inlined_call_operand.hbm [shape: f32[16,256], index: 1, kind: input, shape index: {}]   ;;  %s8240_s2 = inlined_call_operand.vmem [shape: f32[1,256], index: 2, kind: input, shape index: {}]   ;;  %s8241_s3 = inlined_call_operand.hbm [shape: f32[256,256], index: 3, kind: input, shape index: {}]   ;;  %s8242_s4 = inlined_call_operand.vmem [shape: f32[1,256], index: 4, kind: input, shape index: {}]   ;;  %s8243_s5 = inlined_call_operand.hbm [shape: f32[256,256], index: 5, kind: input, shape index: {}]   ;;  %s8244_s6 = inlined_call_operand.vmem [shape: f32[1,256], index: 6, kind: input, shape index: {}]   ;;  %s8245_s7 = inlined_call_operand.hbm [shape: f32[256,128], index: 7, kind: input, shape index: {}]   ;;  %s8246_s8 = inlined_call_operand.vmem [shape: f32[1,128], index: 8, kind: input, shape index: {}]   ;;  %s8247_s9 = inlined_call_operand.hbm [shape: f32[8,128], index: 9, kind: output, shape index: {}]  }
   0x1   :  { %15 = vsyncpa [#allocation6], 0 }
   0x2   :  { %16 = vsyncpa [#allocation9], 0 }
   0x3   :  { %17 = vsyncpa [#allocation4], 0  ;;  %s5642_s30 = smov [#allocation5]   ;;  %s5502_s13 = scalar_lea.hbm %s8239_s1, 512 }
   0x4   :  { %s33_s10 = sshll.u32 %s5642_s30, 4  ;;  %p5503_p0 = scmp.ne.s32.totalorder %s8239_s1, %s5502_s13  ;;  %s34_s10 = int_to_ptr.vmem [resolvable:$true] %s33_s10 }
   0x5   :  { %p5506_p1 = scmp.lt.u32.totalorder %s5502_s13, %s8239_s1 }
   0x7   :  { %p5508_p2 = pnand %p5506_p1, %p5503_p0 }
   0x9   :  { %5511 = shalt.err (!%p5508_p2)
}
   0xa   :  { %s5512_s18 = scalar_lea.vmem %s34_s10, 512  ;;  %p5517_p4 = scmp.lt.s32.totalorder %s34_s10, %s34_s10 }
   0xb   :  { %p5513_p3 = scmp.ne.s32.totalorder %s34_s10, %s5512_s18  ;;  %p5518_p5 = scmp.lt.s32.totalorder %s5512_s18, %s5512_s18 }
   0xd   :  { %p5519_p6 = por %p5518_p5, %p5517_p4 }
   0xf   :  { %p5520_p7 = pnand %p5519_p6, %p5513_p3 }
  0x11   :  { %5523 = shalt.err (!%p5520_p7)
}
  0x12   :  { %s5643_s19 = smov 256   ;;  %s5644_s20 = smov 16  }
  0x13   :  { %39 = dma.hbm_to_vmem [thread:$0]  %s8239_s1, 512, %s34_s10, [#allocation6], %s5643_s19, %s5643_s19, %s5644_s20  }
  0x14   :  { %s5645_s23 = smov [#allocation8]   ;;  %s5646_s25 = smov [#allocation2]  }
  0x15   :  { %s61_s24 = sshll.u32 %s5645_s23, 4  ;;  %s24_s26 = sshll.u32 %s5646_s25, 4  ;;  %s62_s24 = int_to_ptr.vmem [resolvable:$true] %s61_s24  ;;  %s25_s26 = int_to_ptr.vmem [resolvable:$true] %s24_s26 }
  0x16   :  { %s5524_s29 = scalar_lea.hbm %s8243_s5, 8192 }
  0x17   :  { %p5525_p8 = scmp.ne.s32.totalorder %s8243_s5, %s5524_s29  ;;  %p5528_p9 = scmp.lt.u32.totalorder %s5524_s29, %s8243_s5 }
  0x19   :  { %p5530_p10 = pnand %p5528_p9, %p5525_p8 }
  0x1b   :  { %5533 = shalt.err (!%p5530_p10)
}
  0x1c   :  { %s5534_s1 = scalar_lea.vmem %s62_s24, 8192  ;;  %p5539_p12 = scmp.lt.s32.totalorder %s62_s24, %s62_s24 }
  0x1d   :  { %p5535_p11 = scmp.ne.s32.totalorder %s62_s24, %s5534_s1  ;;  %p5540_p13 = scmp.lt.s32.totalorder %s5534_s1, %s5534_s1 }
  0x1f   :  { %p5541_p0 = por %p5540_p13, %p5539_p12 }
  0x21   :  { %p5542_p1 = pnand %p5541_p0, %p5535_p11 }
  0x23   :  { %5545 = shalt.err (!%p5542_p1)
}
  0x24   :  { %67 = dma.hbm_to_vmem [thread:$0]  %s8243_s5, 8192, %s62_s24, [#allocation9], %s5643_s19, %s5643_s19, %s5644_s20  }
  0x25   :  { %s5546_s17 = scalar_lea.hbm %s8238_s0, 128 }
  0x26   :  { %p5547_p2 = scmp.ne.s32.totalorder %s8238_s0, %s5546_s17  ;;  %p5550_p3 = scmp.lt.u32.totalorder %s5546_s17, %s8238_s0 }
  0x28   :  { %p5552_p4 = pnand %p5550_p3, %p5547_p2 }
  0x2a   :  { %5555 = shalt.err (!%p5552_p4)
}
  0x2b   :  { %s5556_s25 = scalar_lea.vmem %s25_s26, 128  ;;  %p5561_p6 = scmp.lt.s32.totalorder %s25_s26, %s25_s26 }
  0x2c   :  { %p5557_p5 = scmp.ne.s32.totalorder %s25_s26, %s5556_s25  ;;  %p5562_p7 = scmp.lt.s32.totalorder %s5556_s25, %s5556_s25 }
  0x2e   :  { %p5563_p8 = por %p5562_p7, %p5561_p6 }
  0x30   :  { %p5564_p9 = pnand %p5563_p8, %p5557_p5 }
  0x32   :  { %5567 = shalt.err (!%p5564_p9)
}
  0x33   :  { %27 = dma.hbm_to_vmem [thread:$0]  %s8238_s0, 128, %s25_s26, [#allocation3]  }
  0x34   :  { %s5647_s27 = smov [#allocation7]   ;;  %s5648_s29 = smov [#allocation10]  }
  0x35   :  { %s47_s28 = sshll.u32 %s5647_s27, 4  ;;  %s75_s30 = sshll.u32 %s5648_s29, 4  ;;  %s48_s28 = int_to_ptr.vmem [resolvable:$true] %s47_s28  ;;  %s76_s30 = int_to_ptr.vmem [resolvable:$true] %s75_s30 }
  0x36   :  { %s5568_s13 = scalar_lea.hbm %s8241_s3, 8192 }
  0x37   :  { %p5569_p10 = scmp.ne.s32.totalorder %s8241_s3, %s5568_s13  ;;  %p5572_p11 = scmp.lt.u32.totalorder %s5568_s13, %s8241_s3 }
  0x39   :  { %p5574_p12 = pnand %p5572_p11, %p5569_p10 }
  0x3b   :  { %5577 = shalt.err (!%p5574_p12)
}
  0x3c   :  { %s5578_s0 = scalar_lea.vmem %s48_s28, 8192  ;;  %p5583_p0 = scmp.lt.s32.totalorder %s48_s28, %s48_s28 }
  0x3d   :  { %p5579_p13 = scmp.ne.s32.totalorder %s48_s28, %s5578_s0  ;;  %p5584_p1 = scmp.lt.s32.totalorder %s5578_s0, %s5578_s0 }
  0x3f   :  { %p5585_p2 = por %p5584_p1, %p5583_p0 }
  0x41   :  { %p5586_p3 = pnand %p5585_p2, %p5579_p13 }
  0x43   :  { %5589 = shalt.err (!%p5586_p3)
}
  0x44   :  { %53 = dma.hbm_to_vmem [thread:$0]  %s8241_s3, 8192, %s48_s28, [#allocation6], %s5643_s19, %s5643_s19, %s5644_s20  }
  0x45   :  { %s5590_s21 = scalar_lea.hbm %s8245_s7, 4096 }
  0x46   :  { %p5591_p4 = scmp.ne.s32.totalorder %s8245_s7, %s5590_s21  ;;  %p5594_p5 = scmp.lt.u32.totalorder %s5590_s21, %s8245_s7 }
  0x48   :  { %p5596_p6 = pnand %p5594_p5, %p5591_p4 }
  0x4a   :  { %5599 = shalt.err (!%p5596_p6)
}
  0x4b   :  { %s5600_s24 = scalar_lea.vmem %s76_s30, 4096  ;;  %p5605_p8 = scmp.lt.s32.totalorder %s76_s30, %s76_s30 }
  0x4c   :  { %p5601_p7 = scmp.ne.s32.totalorder %s76_s30, %s5600_s24  ;;  %p5606_p9 = scmp.lt.s32.totalorder %s5600_s24, %s5600_s24 }
  0x4e   :  { %p5607_p10 = por %p5606_p9, %p5605_p8 }
  0x50   :  { %p5608_p11 = pnand %p5607_p10, %p5601_p7 }
  0x52   :  { %5611 = shalt.err (!%p5608_p11)
}
  0x53   :  { %s5649_s3 = smov 128   ;;  %s5650_s19 = smov 8  }
  0x54   :  { %81 = dma.hbm_to_vmem [thread:$0]  %s8245_s7, 4096, %s76_s30, [#allocation9], %s5649_s3, %s5649_s3, %s5650_s19  }
  0x55   :  { %5634 = dma.done.wait [#allocation3], 128  }
  0x56   :  { %5635 = vsyncadd [#allocation3], 4294967168 }
  0x57   :  { %5636 = dma.done.wait [#allocation6], 8704  }
  0x58   :  { %5637 = vsyncadd [#allocation6], 4294958592 }
  0x59   :  { %5638 = dma.done.wait [#allocation9], 12288  }
  0x5a   :  { %5639 = vsyncadd [#allocation9], 4294955008  ;;  %v5651_v0 = vmov 0.0   ;;  %vm116_vm0 = vcmask 130048   ;;  %v101_v1 = vld [vmem:[#allocation5 + $0x8] sm:$0xff]  ;;  %v103_v2 = vld [vmem:[#allocation5 + $0x18] sm:$0xff] }
  0x5b   :  { %441 = vmatprep.mubr.f32.mxu0 %v5651_v0  ;;  %188 = vmatprep.mubr.f32.mxu1 %v5651_v0  ;;  %v100_v3 = vld [vmem:[#allocation5] sm:$0xff]  ;;  %v120_v4 = vand.u32 4294901760, %v101_v1  ;;  %v124_v5 = vand.u32 4294901760, %v103_v2  ;;  %v102_v6 = vld [vmem:[#allocation5 + $0x10] sm:$0xff]  ;;  %v99_v8 = vld [vmem:[#allocation2] sm:$0xff] }
  0x5c   :  { %v122_v7 = vand.u32 4294901760, %v100_v3  ;;  %v126_v9 = vand.u32 4294901760, %v102_v6  ;;  %v118_v10 = vsel %vm116_vm0, %v99_v8, 0  ;;  %v5780_v15 = vld [vmem:[#allocation7 + $0x8] sm:$0xff]  ;;  %v5782_v16 = vld [vmem:[#allocation7 + $0x18] sm:$0xff]  ;;  %v5804_v31 = vld [vmem:[#allocation7] sm:$0xff] }
  0x5d   :  { %v4469_v11 = vpack.c.bf16 %v124_v5, %v120_v4  ;;  %v5774_v12 = vsub.f32 %v101_v1, %v120_v4  ;;  %v5776_v13 = vsub.f32 %v103_v2, %v124_v5  ;;  %v5788_v19 = vand.u32 4294901760, %v118_v10  ;;  %v5813_v36 = vld [vmem:[#allocation7 + $0x10] sm:$0xff]  ;;  %v5815_v37 = vld [vmem:[#allocation7 + $0x28] sm:$0xff]  ;;  %v5817_v38 = vld [vmem:[#allocation7 + $0x38] sm:$0xff] }
  0x5e   :  { %v5778_v14 = vsub.f32 %v100_v3, %v122_v7  ;;  %v5784_v17 = vpack.c.bf16 %v126_v9, %v122_v7  ;;  %v5786_v18 = vsub.f32 %v102_v6, %v126_v9  ;;  %v689_v25 = vand.u32 4294901760, %v5780_v15  ;;  %v5824_v43 = vld [vmem:[#allocation7 + $0x20] sm:$0xff]  ;;  %v5834_v52 = vld [vmem:[#allocation7 + $0x30] sm:$0xff]  ;;  %v5836_v53 = vld [vmem:[#allocation7 + $0x48] sm:$0xff] }
  0x5f   :  { %4482 = vmatprep.subr.bf16.mxu0 %v4469_v11  ;;  %4470 = vmatprep.subr.bf16.mxu1 %v4469_v11  ;;  %v202_v20 = vand.u32 4294901760, %v5774_v12  ;;  %v214_v21 = vand.u32 4294901760, %v5776_v13  ;;  %v5796_v23 = vsub.f32 %v118_v10, %v5788_v19  ;;  %v693_v26 = vand.u32 4294901760, %v5782_v16  ;;  %v5844_v58 = vld [vmem:[#allocation7 + $0x58] sm:$0xff]  ;;  %v5846_v59 = vld [vmem:[#allocation7 + $0x40] sm:$0xff]  ;;  %v5848_v60 = vld [vmem:[#allocation7 + $0x50] sm:$0xff] }
  0x60   :  { %v208_v22 = vand.u32 4294901760, %v5778_v14  ;;  %4484 = vmatpush1.bf16.msra.mxu0 %v5784_v17  ;;  %4472 = vmatpush1.bf16.msra.mxu1 %v5784_v17  ;;  %v220_v24 = vand.u32 4294901760, %v5786_v18  ;;  %v5811_v35 = vsub.f32 %v5780_v15, %v689_v25  ;;  %v4477_v46 = vpack.c.bf16 %v5776_v13, %v5774_v12  ;;  %v5865_v1 = vld [vmem:[#allocation7 + $0x68] sm:$0xff]  ;;  %v5867_v2 = vld [vmem:[#allocation7 + $0x78] sm:$0xff]  ;;  %v5880_v9 = vld [vmem:[#allocation7 + $0x60] sm:$0xff] }
  0x61   :  { %v203_v27 = vsub.f32 %v5774_v12, %v202_v20  ;;  %v215_v28 = vsub.f32 %v5776_v13, %v214_v21  ;;  %v4485_v29 = vpack.c.bf16 %v214_v21, %v202_v20  ;;  %v191_v32 = vand.u32 4294901760, %v5796_v23  ;;  %v5894_v20 = vld [vmem:[#allocation7 + $0x70] sm:$0xff]  ;;  %v5896_v21 = vld [vmem:[#allocation7 + $0x88] sm:$0xff]  ;;  %v5955_v15 = vld [vmem:[#allocation7 + $0xa0] sm:$0xff] }
  0x62   :  { %v209_v30 = vsub.f32 %v5778_v14, %v208_v22  ;;  %v221_v33 = vsub.f32 %v5786_v18, %v220_v24  ;;  %v4487_v34 = vpack.c.bf16 %v220_v24, %v208_v22  ;;  %v5822_v42 = vsub.f32 %v5782_v16, %v693_v26 }
  0x63   :  { %v204_v39 = vand.u32 4294901760, %v203_v27  ;;  %v216_v40 = vand.u32 4294901760, %v215_v28  ;;  %4486 = vmatprep.subr.bf16.mxu0 %v4485_v29  ;;  %445 = vmatmul.mubr.f32.vlgmr.msra.gmra.mrb[0].mxu0 %v191_v32  ;;  %v192_v44 = vsub.f32 %v5796_v23, %v191_v32  ;;  %v691_v47 = vand.u32 4294901760, %v5804_v31  ;;  %v5913_v28 = vld [vmem:[#allocation7 + $0x98] sm:$0xff]  ;;  %v5915_v29 = vld [vmem:[#allocation7 + $0x80] sm:$0xff] }
  0x64   :  { %v210_v41 = vand.u32 4294901760, %v209_v30  ;;  %v222_v45 = vand.u32 4294901760, %v221_v33  ;;  %4488 = vmatpush1.bf16.msra.mxu0 %v4487_v34  ;;  %527 = vmatprep.mubr.f32.mxu0 %v5651_v0  ;;  %v8267_v49 = vand.u32 4294901760, %v5813_v36  ;;  %v8265_v50 = vand.u32 4294901760, %v5815_v37  ;;  %v5917_v30 = vld [vmem:[#allocation7 + $0x90] sm:$0xff] }
  0x65   :  { %v4473_v48 = vpack.c.bf16 %v216_v40, %v204_v39  ;;  %v8264_v51 = vand.u32 4294901760, %v5817_v38  ;;  %v193_v54 = vand.u32 4294901760, %v192_v44  ;;  %4490 = vmatprep.subr.bf16.mxu0 %v4469_v11  ;;  %v5841_v56 = vsub.f32 %v5804_v31, %v691_v47  ;;  %v5931_v39 = vld [vmem:[#allocation7 + $0xa8] sm:$0xff]  ;;  %v5933_v40 = vld [vmem:[#allocation7 + $0xb8] sm:$0xff] }
  0x66   :  { %v4475_v55 = vpack.c.bf16 %v222_v45, %v210_v41  ;;  %v8263_v57 = vand.u32 4294901760, %v5824_v43  ;;  %v5853_v61 = vsub.f32 %v5813_v36, %v8267_v49  ;;  %v5858_v62 = vsub.f32 %v5815_v37, %v8265_v50  ;;  %v6037_v49 = vld [vmem:[#allocation7 + $0xf0] sm:$0xff]  ;;  %v6062_v31 = vld [vmem:[#allocation7 + $0x118] sm:$0xff] }
  0x67   :  { %4474 = vmatprep.subr.bf16.mxu1 %v4473_v48  ;;  %v5863_v63 = vsub.f32 %v5817_v38, %v8264_v51  ;;  %194 = vmatmul.mubr.f32.vlgmr.msra.gmra.mrb[0].mxu1 %v193_v54  ;;  %v8262_v3 = vand.u32 4294901760, %v5834_v52  ;;  %v8259_v5 = vand.u32 4294901760, %v5836_v53  ;;  %v8258_v6 = vand.u32 4294901760, %v5844_v58  ;;  %v6022_v51 = vld [vmem:[#allocation7 + $0xe0] sm:$0xff] }
  0x68   :  { %v5873_v4 = vsub.f32 %v5824_v43, %v8263_v57  ;;  %4476 = vmatpush1.bf16.msra.mxu1 %v4475_v55  ;;  %284 = vmatprep.mubr.f32.mxu1 %v5651_v0  ;;  %v8254_v7 = vand.u32 4294901760, %v5846_v59  ;;  %v8253_v8 = vand.u32 4294901760, %v5848_v60  ;;  %v8252_v12 = vand.u32 4294901760, %v5865_v1  ;;  %v5969_v55 = vld [vmem:[#allocation7 + $0xb0] sm:$0xff]  ;;  %v6039_v57 = vld [vmem:[#allocation7 + $0x108] sm:$0xff] }
  0x69   :  { %4478 = vmatprep.subr.bf16.mxu1 %v4477_v46  ;;  %v5885_v10 = vsub.f32 %v5834_v52, %v8262_v3  ;;  %v5890_v11 = vsub.f32 %v5836_v53, %v8259_v5  ;;  %v8251_v13 = vand.u32 4294901760, %v5867_v2  ;;  %v5901_v22 = vsub.f32 %v5844_v58, %v8258_v6  ;;  %v6007_v6 = vld [vmem:[#allocation7 + $0xe8] sm:$0xff]  ;;  %v6009_v5 = vld [vmem:[#allocation7 + $0xf8] sm:$0xff] }
  0x6a   :  { %8719 = vst [vmem:[#allocation16_spill] sm:$0xff] %v5873_v4  ;;  %v5906_v24 = vsub.f32 %v5846_v59, %v8254_v7  ;;  %v5911_v27 = vsub.f32 %v5848_v60, %v8253_v8  ;;  %v5923_v32 = vsub.f32 %v5865_v1, %v8252_v12  ;;  %v8248_v34 = vand.u32 4294901760, %v5880_v9  ;;  %v5989_v12 = vld [vmem:[#allocation7 + $0xd8] sm:$0xff]  ;;  %v5991_v8 = vld [vmem:[#allocation7 + $0xc0] sm:$0xff]  ;;  %v5993_v7 = vld [vmem:[#allocation7 + $0xd0] sm:$0xff] }
  0x6b   :  { %8720 = vst [vmem:[#allocation17_spill] sm:$0xff] %v5885_v10  ;;  %8721 = vst [vmem:[#allocation18_spill] sm:$0xff] %v5890_v11  ;;  %529 = vmatmul.mubr.f32.vlgmr.msra.gmra.mrb[0].mxu0 %v5788_v19  ;;  %v5928_v33 = vsub.f32 %v5867_v2, %v8251_v13  ;;  %v4479_v41 = vpack.c.bf16 %v5786_v18, %v5778_v14  ;;  %v5943_v44 = vpack.c.bf16 %v693_v26, %v689_v25 }
  0x6c   :  { %8722 = vst [vmem:[#allocation19_spill] sm:$0xff] %v5901_v22  ;;  %8723 = vst [vmem:[#allocation20_spill] sm:$0xff] %v5906_v24  ;;  %4492 = vmatpush1.bf16.msra.mxu0 %v5784_v17  ;;  %603 = vmatprep.mubr.f32.mxu0 %v5651_v0  ;;  %v8249_v45 = vand.u32 4294901760, %v5894_v20  ;;  %v8250_v46 = vand.u32 4294901760, %v5896_v21  ;;  %v5950_v48 = vsub.f32 %v5880_v9, %v8248_v34  ;;  %v8255_v14 = vand.u32 4294901760, %v5913_v28  ;;  %v5971_v34 = vld [vmem:[#allocation7 + $0xc8] sm:$0xff] }
  0x6d   :  { %8724 = vst [vmem:[#allocation21_spill] sm:$0xff] %v5911_v27  ;;  %8725 = vst [vmem:[#allocation22_spill] sm:$0xff] %v5923_v32  ;;  %v8256_v17 = vand.u32 4294901760, %v5915_v29  ;;  %v8257_v18 = vand.u32 4294901760, %v5917_v30  ;;  %v8260_v26 = vand.u32 4294901760, %v5931_v39  ;;  %v8261_v54 = vand.u32 4294901760, %v5933_v40 }
  0x6e   :  { %8726 = vst [vmem:[#allocation23_spill] sm:$0xff] %v5928_v33  ;;  %8727 = vst [vmem:[#allocation24_spill] sm:$0xff] %v5943_v44  ;;  %v5960_v16 = vsub.f32 %v5894_v20, %v8249_v45  ;;  %v5965_v25 = vsub.f32 %v5896_v21, %v8250_v46  ;;  %v5977_v45 = vsub.f32 %v5913_v28, %v8255_v14  ;;  %v8745_v3 = vand.u32 4294901760, %v5993_v7 }
  0x6f   :  { %8728 = vst [vmem:[#allocation25_spill] sm:$0xff] %v5950_v48  ;;  %286 = vmatmul.mubr.f32.vlgmr.msra.gmra.mrb[0].mxu1 %v5788_v19  ;;  %v5982_v46 = vsub.f32 %v5915_v29, %v8256_v17  ;;  %v5987_v13 = vsub.f32 %v5917_v30, %v8257_v18  ;;  %v5999_v14 = vsub.f32 %v5931_v39, %v8260_v26  ;;  %v8266_v18 = vand.u32 4294901760, %v5955_v15 }
  0x70   :  { %8729 = vst [vmem:[#allocation26_spill] sm:$0xff] %v5960_v16  ;;  %8730 = vst [vmem:[#allocation27_spill] sm:$0xff] %v5965_v25  ;;  %4480 = vmatpush1.bf16.msra.mxu1 %v4479_v41  ;;  %364 = vmatprep.mubr.f32.mxu1 %v5651_v0  ;;  %v6004_v17 = vsub.f32 %v5933_v40, %v8261_v54  ;;  %v8270_v0 = vand.u32 4294901760, %v5969_v55  ;;  %v8272_v41 = vand.u32 4294901760, %v5971_v34  ;;  %v655_v16 = vld [vmem:[#allocation7 + $0x150] sm:$0xff] }
  0x71   :  { %8731 = vst [vmem:[#allocation28_spill] sm:$0xff] %v5977_v45  ;;  %8732 = vst [vmem:[#allocation29_spill] sm:$0xff] %v5982_v46  ;;  %4494 = vmatprep.subr.bf16.mxu1 %v5943_v44  ;;  %v6017_v26 = vsub.f32 %v5955_v15, %v8266_v18  ;;  %v8760_v46 = vand.u32 4294901760, %v5836_v53  ;;  %v8761_v45 = vand.u32 4294901760, %v5844_v58 }
  0x72   :  { %8733 = vst [vmem:[#allocation30_spill] sm:$0xff] %v5987_v13  ;;  %8734 = vst [vmem:[#allocation31_spill] sm:$0xff] %v5999_v14  ;;  %v6028_v50 = vsub.f32 %v5969_v55, %v8270_v0  ;;  %v6033_v18 = vsub.f32 %v5971_v34, %v8272_v41  ;;  %v8741_v0 = vand.u32 4294901760, %v5989_v12  ;;  %v8743_v41 = vand.u32 4294901760, %v5991_v8  ;;  %v6087_v14 = vld [vmem:[#allocation7 + $0x138] sm:$0xff] }
  0x73   :  { %8735 = vst [vmem:[#allocation32_spill] sm:$0xff] %v6004_v17  ;;  %8736 = vst [vmem:[#allocation33_spill] sm:$0xff] %v6017_v26  ;;  %605 = vmatmul.mubr.f32.vlgmr.msra.gmra.mrb[0].mxu0 %v5788_v19  ;;  %v8739_v19 = vand.u32 4294901760, %v5813_v36  ;;  %v6064_v36 = vld [vmem:[#allocation7 + $0x100] sm:$0xff]  ;;  %v747_v26 = vand.u32 4294901760, %v6022_v51  ;;  %v6085_v17 = vld [vmem:[#allocation7 + $0x128] sm:$0xff]  ;;  %v6118_v25 = vpack.c.bf16 %v8761_v45, %v8760_v46 }
  0x74   :  { %8737 = vst [vmem:[#allocation34_spill] sm:$0xff] %v6028_v50  ;;  %8738 = vst [vmem:[#allocation35_spill] sm:$0xff] %v6033_v18  ;;  %v6050_v50 = vsub.f32 %v5989_v12, %v8741_v0  ;;  %v6055_v54 = vsub.f32 %v5991_v8, %v8743_v41  ;;  %v6060_v18 = vsub.f32 %v5993_v7, %v8745_v3  ;;  %v8748_v0 = vand.u32 4294901760, %v5817_v38 }
  0x75   :  { %v6045_v44 = vpack.c.bf16 %v8739_v19, %v691_v47  ;;  %v6066_v47 = vld [vmem:[#allocation7 + $0x110] sm:$0xff]  ;;  %v8747_v19 = vand.u32 4294901760, %v5815_v37  ;;  %v8750_v41 = vand.u32 4294901760, %v6007_v6  ;;  %v8752_v3 = vand.u32 4294901760, %v6009_v5  ;;  %8762 = vst [vmem:[#allocation47_spill] sm:$0xff] %v6118_v25 }
  0x76   :  { %8742 = vst [vmem:[#allocation37_spill] sm:$0xff] %v6050_v50  ;;  %8744 = vst [vmem:[#allocation38_spill] sm:$0xff] %v6055_v54  ;;  %v8754_v37 = vand.u32 4294901760, %v5824_v43  ;;  %v8755_v38 = vand.u32 4294901760, %v5834_v52  ;;  %v759_v13 = vand.u32 4294901760, %v6066_v47  ;;  %v649_v43 = vld [vmem:[#allocation7 + $0x120] sm:$0xff] }
  0x77   :  { %8740 = vst [vmem:[#allocation36_spill] sm:$0xff] %v6045_v44  ;;  %8746 = vst [vmem:[#allocation39_spill] sm:$0xff] %v6060_v18  ;;  %v6072_v50 = vpack.c.bf16 %v8748_v0, %v8747_v19  ;;  %v6077_v54 = vsub.f32 %v6007_v6, %v8750_v41  ;;  %v6082_v18 = vsub.f32 %v6009_v5, %v8752_v3  ;;  %v751_v0 = vand.u32 4294901760, %v6037_v49 }
  0x78   :  { %v6093_v19 = vpack.c.bf16 %v8755_v38, %v8754_v37  ;;  %v753_v41 = vand.u32 4294901760, %v6039_v57  ;;  %367 = vmatmul.mubr.f32.vlgmr.msra.gmra.mrb[0].mxu1 %v5796_v23  ;;  %v6099_v3 = vsub.f32 %v6022_v51, %v747_v26  ;;  %v761_v23 = vand.u32 4294901760, %v6085_v17  ;;  %v651_v38 = vld [vmem:[#allocation7 + $0x130] sm:$0xff] }
  0x79   :  { %8749 = vst [vmem:[#allocation40_spill] sm:$0xff] %v6072_v50  ;;  %8751 = vst [vmem:[#allocation41_spill] sm:$0xff] %v6077_v54  ;;  %v755_v54 = vand.u32 4294901760, %v6064_v36  ;;  %4496 = vmatpush1.bf16.msra.mxu1 %v6045_v44  ;;  %v6106_v52 = vsub.f32 %v6037_v49, %v751_v0  ;;  %v765_v51 = vand.u32 4294901760, %v6087_v14  ;;  %v6127_v44 = vsub.f32 %v6066_v47, %v759_v13 }
  0x7a   :  { %8753 = vst [vmem:[#allocation42_spill] sm:$0xff] %v6082_v18  ;;  %8756 = vst [vmem:[#allocation43_spill] sm:$0xff] %v6093_v19  ;;  %v757_v18 = vand.u32 4294901760, %v6062_v31  ;;  %v6109_v37 = vsub.f32 %v6039_v57, %v753_v41  ;;  %4498 = vmatprep.subr.bf16.mxu1 %v6072_v50  ;;  %v6130_v50 = vsub.f32 %v6085_v17, %v761_v23  ;;  %v763_v58 = vand.u32 4294901760, %v649_v43 }
  0x7b   :  { %8757 = vst [vmem:[#allocation44_spill] sm:$0xff] %v6099_v3  ;;  %8758 = vst [vmem:[#allocation45_spill] sm:$0xff] %v6106_v52  ;;  %v654_v3 = vld [vmem:[#allocation7 + $0x148] sm:$0xff]  ;;  %v6124_v57 = vsub.f32 %v6064_v36, %v755_v54  ;;  %v653_v52 = vld [vmem:[#allocation7 + $0x140] sm:$0xff]  ;;  %v6133_v53 = vsub.f32 %v6087_v14, %v765_v51  ;;  %v8768_v45 = vand.u32 4294901760, %v5846_v59  ;;  %v8769_v46 = vand.u32 4294901760, %v5848_v60 }
  0x7c   :  { %8759 = vst [vmem:[#allocation46_spill] sm:$0xff] %v6109_v37  ;;  %v6121_v49 = vsub.f32 %v6062_v31, %v757_v18  ;;  %8765 = vst [vmem:[#allocation50_spill] sm:$0xff] %v6127_v44  ;;  %v656_v37 = vld [vmem:[#allocation7 + $0x158] sm:$0xff]  ;;  %v767_v36 = vand.u32 4294901760, %v651_v38  ;;  %v6142_v47 = vsub.f32 %v649_v43, %v763_v58  ;;  %v775_v17 = vand.u32 4294901760, %v655_v16 }
  0x7d   :  { %8764 = vst [vmem:[#allocation49_spill] sm:$0xff] %v6124_v57  ;;  %8766 = vst [vmem:[#allocation51_spill] sm:$0xff] %v6130_v50  ;;  %v6139_v31 = vpack.c.bf16 %v8769_v46, %v8768_v45  ;;  %v769_v57 = vand.u32 4294901760, %v654_v3  ;;  %4500 = vmatpush1.bf16.msra.mxu1 %v6093_v19  ;;  %v773_v44 = vand.u32 4294901760, %v656_v37  ;;  %v8772_v14 = vand.u32 4294901760, %v5865_v1 }
  0x7e   :  { %8763 = vst [vmem:[#allocation48_spill] sm:$0xff] %v6121_v49  ;;  %8767 = vst [vmem:[#allocation52_spill] sm:$0xff] %v6133_v53  ;;  %v771_v49 = vand.u32 4294901760, %v653_v52  ;;  %4502 = vmatprep.subr.bf16.mxu1 %v6118_v25  ;;  %v8773_v53 = vand.u32 4294901760, %v5867_v2  ;;  %v6151_v60 = vsub.f32 %v651_v38, %v767_v36  ;;  %v6159_v43 = vsub.f32 %v655_v16, %v775_v17 }
  0x7f   :  { %8770 = vst [vmem:[#allocation53_spill] sm:$0xff] %v6139_v31  ;;  %8771 = vst [vmem:[#allocation54_spill] sm:$0xff] %v6142_v47  ;;  %v6153_v45 = vsub.f32 %v654_v3, %v769_v57  ;;  %v6155_v46 = vsub.f32 %v656_v37, %v773_v44  ;;  %v8776_v25 = vand.u32 4294901760, %v5880_v9  ;;  %v8777_v1 = vand.u32 4294901760, %v5894_v20 }
  0x80   :  { %v6149_v59 = vpack.c.bf16 %v8773_v53, %v8772_v14  ;;  %v6157_v19 = vsub.f32 %v653_v52, %v771_v49  ;;  %8775 = vst [vmem:[#allocation56_spill] sm:$0xff] %v6159_v43  ;;  %v8779_v2 = vand.u32 4294901760, %v5896_v21  ;;  %v8780_v3 = vand.u32 4294901760, %v5913_v28 }
  0x81   :  { %4504 = vmatpush1.bf16.msra.mxu1 %v6139_v31  ;;  %v6166_v47 = vpack.c.bf16 %v8777_v1, %v8776_v25  ;;  %v8782_v16 = vand.u32 4294901760, %v5915_v29  ;;  %v8783_v52 = vand.u32 4294901760, %v5917_v30  ;;  %v8785_v9 = vand.u32 4294901760, %v5931_v39 }
  0x82   :  { %8774 = vst [vmem:[#allocation55_spill] sm:$0xff] %v6149_v59  ;;  %4506 = vmatprep.subr.bf16.mxu1 %v6149_v59  ;;  %v6173_v37 = vpack.c.bf16 %v8780_v3, %v8779_v2  ;;  %v8786_v20 = vand.u32 4294901760, %v5933_v40  ;;  %v8788_v21 = vand.u32 4294901760, %v5955_v15  ;;  %v8789_v28 = vand.u32 4294901760, %v5969_v55  ;;  %v662_v3 = vld [vmem:[#allocation7 + $0x188] sm:$0xff] }
  0x83   :  { %8778 = vst [vmem:[#allocation57_spill] sm:$0xff] %v6166_v47  ;;  %v6180_v38 = vpack.c.bf16 %v8783_v52, %v8782_v16  ;;  %v8791_v29 = vand.u32 4294901760, %v5971_v34  ;;  %v8792_v30 = vand.u32 4294901760, %v5989_v12  ;;  %v8794_v39 = vand.u32 4294901760, %v5991_v8  ;;  %v664_v16 = vld [vmem:[#allocation7 + $0x198] sm:$0xff] }
  0x84   :  { %8781 = vst [vmem:[#allocation58_spill] sm:$0xff] %v6173_v37  ;;  %v6187_v25 = vpack.c.bf16 %v8786_v20, %v8785_v9  ;;  %v6194_v53 = vpack.c.bf16 %v8789_v28, %v8788_v21  ;;  %v8795_v40 = vand.u32 4294901760, %v5993_v7  ;;  %v8797_v15 = vand.u32 4294901760, %v6007_v6  ;;  %v661_v20 = vld [vmem:[#allocation7 + $0x180] sm:$0xff]  ;;  %v663_v21 = vld [vmem:[#allocation7 + $0x190] sm:$0xff] }
  0x85   :  { %4508 = vmatpush1.bf16.msra.mxu1 %v6166_v47  ;;  %8784 = vst [vmem:[#allocation59_spill] sm:$0xff] %v6180_v38  ;;  %v6201_v14 = vpack.c.bf16 %v8792_v30, %v8791_v29  ;;  %v8798_v55 = vand.u32 4294901760, %v6009_v5  ;;  %v6218_v12 = vpack.c.bf16 %v751_v0, %v747_v26  ;;  %v6221_v34 = vpack.c.bf16 %v757_v18, %v753_v41  ;;  %v660_v26 = vld [vmem:[#allocation7 + $0x178] sm:$0xff]  ;;  %v657_v41 = vld [vmem:[#allocation7 + $0x160] sm:$0xff] }
  0x86   :  { %4510 = vmatprep.subr.bf16.mxu1 %v6173_v37  ;;  %8787 = vst [vmem:[#allocation60_spill] sm:$0xff] %v6187_v25  ;;  %8790 = vst [vmem:[#allocation61_spill] sm:$0xff] %v6194_v53  ;;  %v6208_v1 = vpack.c.bf16 %v8795_v40, %v8794_v39  ;;  %v6224_v7 = vpack.c.bf16 %v759_v13, %v755_v54  ;;  %v6227_v8 = vpack.c.bf16 %v765_v51, %v761_v23  ;;  %v658_v13 = vld [vmem:[#allocation7 + $0x168] sm:$0xff]  ;;  %v659_v23 = vld [vmem:[#allocation7 + $0x170] sm:$0xff] }
  0x87   :  { %8793 = vst [vmem:[#allocation62_spill] sm:$0xff] %v6201_v14  ;;  %v6215_v2 = vpack.c.bf16 %v8798_v55, %v8797_v15  ;;  %8800 = vst [vmem:[#allocation65_spill] sm:$0xff] %v6218_v12  ;;  %v6230_v5 = vpack.c.bf16 %v767_v36, %v763_v58  ;;  %v6233_v6 = vpack.c.bf16 %v773_v44, %v769_v57  ;;  %v777_v54 = vand.u32 4294901760, %v658_v13  ;;  %v666_v15 = vld [vmem:[#allocation7 + $0x1a8] sm:$0xff]  ;;  %v668_v55 = vld [vmem:[#allocation7 + $0x1b8] sm:$0xff] }
  0x88   :  { %8796 = vst [vmem:[#allocation63_spill] sm:$0xff] %v6208_v1  ;;  %8801 = vst [vmem:[#allocation66_spill] sm:$0xff] %v6221_v34  ;;  %v6236_v18 = vpack.c.bf16 %v775_v17, %v771_v49  ;;  %v781_v0 = vand.u32 4294901760, %v660_v26  ;;  %v779_v51 = vand.u32 4294901760, %v657_v41  ;;  %v783_v58 = vand.u32 4294901760, %v659_v23  ;;  %v673_v47 = vld [vmem:[#allocation7 + $0x1e0] sm:$0xff] }
  0x89   :  { %4512 = vmatpush1.bf16.msra.mxu1 %v6180_v38  ;;  %8799 = vst [vmem:[#allocation64_spill] sm:$0xff] %v6215_v2  ;;  %8802 = vst [vmem:[#allocation67_spill] sm:$0xff] %v6224_v7  ;;  %v6242_v44 = vsub.f32 %v658_v13, %v777_v54  ;;  %v785_v9 = vand.u32 4294901760, %v662_v3  ;;  %v789_v28 = vand.u32 4294901760, %v664_v16  ;;  %v787_v29 = vand.u32 4294901760, %v661_v20 }
  0x8a   :  { %4514 = vmatprep.subr.bf16.mxu1 %v6187_v25  ;;  %8803 = vst [vmem:[#allocation68_spill] sm:$0xff] %v6227_v8  ;;  %8804 = vst [vmem:[#allocation69_spill] sm:$0xff] %v6230_v5  ;;  %v6240_v36 = vpack.c.bf16 %v781_v0, %v777_v54  ;;  %v6244_v57 = vsub.f32 %v660_v26, %v781_v0  ;;  %v6246_v49 = vpack.c.bf16 %v783_v58, %v779_v51  ;;  %v665_v54 = vld [vmem:[#allocation7 + $0x1a0] sm:$0xff]  ;;  %v667_v0 = vld [vmem:[#allocation7 + $0x1b0] sm:$0xff] }
  0x8b   :  { %8805 = vst [vmem:[#allocation70_spill] sm:$0xff] %v6233_v6  ;;  %8806 = vst [vmem:[#allocation71_spill] sm:$0xff] %v6236_v18  ;;  %v6248_v17 = vsub.f32 %v657_v41, %v779_v51  ;;  %v6251_v52 = vsub.f32 %v659_v23, %v783_v58  ;;  %v791_v30 = vand.u32 4294901760, %v663_v21  ;;  %v6254_v39 = vpack.c.bf16 %v789_v28, %v785_v9 }
  0x8c   :  { %8807 = vst [vmem:[#allocation72_spill] sm:$0xff] %v6240_v36  ;;  %8808 = vst [vmem:[#allocation73_spill] sm:$0xff] %v6246_v49  ;;  %v793_v13 = vand.u32 4294901760, %v666_v15  ;;  %v797_v26 = vand.u32 4294901760, %v668_v55  ;;  %v795_v41 = vand.u32 4294901760, %v665_v54  ;;  %v799_v23 = vand.u32 4294901760, %v667_v0 }
  0x8d   :  { %4516 = vmatpush1.bf16.msra.mxu1 %v6194_v53  ;;  %8809 = vst [vmem:[#allocation74_spill] sm:$0xff] %v6251_v52  ;;  %8810 = vst [vmem:[#allocation75_spill] sm:$0xff] %v6254_v39  ;;  %v6256_v40 = vpack.c.bf16 %v791_v30, %v787_v29  ;;  %v6273_v25 = vsub.f32 %v662_v3, %v785_v9  ;;  %v6275_v38 = vsub.f32 %v664_v16, %v789_v28  ;;  %v675_v53 = vld [vmem:[#allocation7 + $0x1f0] sm:$0xff] }
  0x8e   :  { %4518 = vmatprep.subr.bf16.mxu1 %v6201_v14  ;;  %v6260_v51 = vpack.c.bf16 %v797_v26, %v793_v13  ;;  %v6262_v58 = vpack.c.bf16 %v799_v23, %v795_v41  ;;  %v6277_v37 = vsub.f32 %v661_v20, %v787_v29  ;;  %v6281_v59 = vsub.f32 %v666_v15, %v793_v13 }
  0x8f   :  { %8811 = vst [vmem:[#allocation76_spill] sm:$0xff] %v6256_v40  ;;  %v6283_v31 = vsub.f32 %v668_v55, %v797_v26  ;;  %v6287_v52 = vsub.f32 %v667_v0, %v799_v23  ;;  %v815_v15 = vand.u32 4294901760, %v675_v53  ;;  %v8352_v23 = vand.u32 4294901760, %v5853_v61 }
  0x90   :  { %8812 = vst [vmem:[#allocation77_spill] sm:$0xff] %v6260_v51  ;;  %8813 = vst [vmem:[#allocation78_spill] sm:$0xff] %v6262_v58 }
  0x91   :  { %4520 = vmatpush1.bf16.msra.mxu1 %v6208_v1  ;;  %8816 = vst [vmem:[#allocation81_spill] sm:$0xff] %v6281_v59  ;;  %8817 = vst [vmem:[#allocation82_spill] sm:$0xff] %v6287_v52 }
  0x92   :  { %4522 = vmatprep.subr.bf16.mxu1 %v6215_v2  ;;  %v676_v2 = vld [vmem:[#allocation7 + $0x1f8] sm:$0xff] }
  0x93   :  { %v813_v14 = vand.u32 4294901760, %v676_v2 }
  0x95   :  { %4524 = vmatpush1.bf16.msra.mxu1 %v6218_v12  ;;  %v6302_v29 = vsub.f32 %v676_v2, %v813_v14 }
  0x96   :  { %4526 = vmatprep.subr.bf16.mxu1 %v6221_v34 }
  0x97   :  { %8823 = vst [vmem:[#allocation88_spill] sm:$0xff] %v6302_v29 }
  0x99   :  { %4528 = vmatpush1.bf16.msra.mxu1 %v6224_v7 }
  0x9a   :  { %4530 = vmatprep.subr.bf16.mxu1 %v6227_v8  ;;  %v671_v8 = vld [vmem:[#allocation7 + $0x1d0] sm:$0xff] }
  0x9b   :  { %v807_v34 = vand.u32 4294901760, %v671_v8 }
  0x9d   :  { %4532 = vmatpush1.bf16.msra.mxu1 %v6230_v5  ;;  %v669_v5 = vld [vmem:[#allocation7 + $0x1c0] sm:$0xff]  ;;  %v6296_v20 = vsub.f32 %v671_v8, %v807_v34 }
  0x9e   :  { %4534 = vmatprep.subr.bf16.mxu1 %v6233_v6  ;;  %v803_v7 = vand.u32 4294901760, %v669_v5 }
  0x9f   :  { %8820 = vst [vmem:[#allocation85_spill] sm:$0xff] %v6296_v20 }
  0xa0   :  { %v6268_v12 = vpack.c.bf16 %v807_v34, %v803_v7  ;;  %v6294_v9 = vsub.f32 %v669_v5, %v803_v7  ;;  %v106_v5 = vlaneseq }
  0xa1   :  { %4536 = vmatpush1.bf16.msra.mxu1 %v6236_v18 }
  0xa2   :  { %4538 = vmatprep.subr.bf16.mxu1 %v6240_v36  ;;  %v672_v36 = vld [vmem:[#allocation7 + $0x1d8] sm:$0xff]  ;;  %8815 = vst [vmem:[#allocation80_spill] sm:$0xff] %v6268_v12  ;;  %8819 = vst [vmem:[#allocation84_spill] sm:$0xff] %v6294_v9 }
  0xa3   :  { %v805_v6 = vand.u32 4294901760, %v672_v36 }
  0xa5   :  { %4540 = vmatpush1.bf16.msra.mxu1 %v6246_v49  ;;  %v670_v49 = vld [vmem:[#allocation7 + $0x1c8] sm:$0xff]  ;;  %v6292_v16 = vsub.f32 %v672_v36, %v805_v6  ;;  %v107_v36 = vshrl.u32 %v106_v5, 7  ;;  %v855_v5 = vsub.f32 %v5853_v61, %v8352_v23 }
  0xa6   :  { %4542 = vmatprep.subr.bf16.mxu1 %v6254_v39  ;;  %v801_v18 = vand.u32 4294901760, %v670_v49 }
  0xa7   :  { %8818 = vst [vmem:[#allocation83_spill] sm:$0xff] %v6292_v16 }
  0xa8   :  { %v6266_v39 = vpack.c.bf16 %v805_v6, %v801_v18  ;;  %v6290_v3 = vsub.f32 %v670_v49, %v801_v18  ;;  %v8824_v18 = vand.u32 4294901760, %v5822_v42  ;;  %v6318_v49 = vsub.s32 0, %v107_v36 }
  0xa9   :  { %4544 = vmatpush1.bf16.msra.mxu1 %v6256_v40  ;;  %v674_v40 = vld [vmem:[#allocation7 + $0x1e8] sm:$0xff] }
  0xaa   :  { %4546 = vmatprep.subr.bf16.mxu1 %v6260_v51  ;;  %8814 = vst [vmem:[#allocation79_spill] sm:$0xff] %v6266_v39  ;;  %v809_v1 = vand.u32 4294901760, %v674_v40  ;;  %v8356_v51 = vand.u32 4294901760, %v5811_v35  ;;  %v849_v6 = vsub.f32 %v5822_v42, %v8824_v18  ;;  %8828 = vst [vmem:[#allocation92_spill] sm:$0xff] %v6318_v49 }
  0xac   :  { %v6300_v28 = vsub.f32 %v674_v40, %v809_v1  ;;  %v837_v55 = vsub.f32 %v5811_v35, %v8356_v51  ;;  %v850_v2 = vand.u32 4294901760, %v849_v6  ;;  %v104_v40 = vld [vmem:[%s8240_s2] sm:$0x3]  ;;  %v8354_v6 = vand.u32 4294901760, %v5863_v63 }
  0xad   :  { %4548 = vmatpush1.bf16.msra.mxu1 %v6262_v58  ;;  %v6279_v58 = vsub.f32 %v663_v21, %v791_v30  ;;  %v6298_v21 = vpack.c.bf16 %v813_v14, %v809_v1  ;;  %v811_v30 = vand.u32 4294901760, %v673_v47  ;;  %v6315_v1 = vsub.f32 %v675_v53, %v815_v15 }
  0xae   :  { %4550 = vmatprep.subr.bf16.mxu1 %v6266_v39  ;;  %v6285_v39 = vsub.f32 %v665_v54, %v795_v41  ;;  %8822 = vst [vmem:[#allocation87_spill] sm:$0xff] %v6300_v28  ;;  %v838_v14 = vand.u32 4294901760, %v837_v55  ;;  %v109_v53 = vrot.slane %v104_v40, %v6318_v49  ;;  %v8355_v41 = vand.u32 4294901760, %v5841_v56  ;;  %v8839_v49 = vld [vmem:[#allocation26_spill] sm:$0xff] }
  0xaf   :  { %8821 = vst [vmem:[#allocation86_spill] sm:$0xff] %v6298_v21  ;;  %v6311_v34 = vsub.f32 %v673_v47, %v811_v30  ;;  %v6313_v7 = vpack.c.bf16 %v815_v15, %v811_v30  ;;  %8827 = vst [vmem:[#allocation91_spill] sm:$0xff] %v6315_v1  ;;  %v6323_v47 = vsub.s32 1, %v107_v36  ;;  %v8353_v55 = vand.u32 4294901760, %v5858_v62 }
  0xb0   :  { %v4557_v8 = vpack.c.bf16 %v850_v2, %v838_v14  ;;  %v8836_v51 = vand.u32 4294901760, %v5901_v22 }
  0xb1   :  { %4552 = vmatpush1.bf16.msra.mxu1 %v6268_v12  ;;  %8825 = vst [vmem:[#allocation89_spill] sm:$0xff] %v6311_v34  ;;  %8826 = vst [vmem:[#allocation90_spill] sm:$0xff] %v6313_v7  ;;  %v113_v54 = vrot.slane %v104_v40, %v6323_v47  ;;  %v861_v40 = vsub.f32 %v5858_v62, %v8353_v55 }
  0xb2   :  { %4554 = vmatprep.subr.bf16.mxu1 %v6298_v21  ;;  %8829 = vst [vmem:[#allocation93_spill] sm:$0xff] %v6323_v47  ;;  %v897_v47 = vsub.f32 %v5901_v22, %v8836_v51  ;;  %v8845_v22 = vld [vmem:[#allocation30_spill] sm:$0xff] }
  0xb5   :  { %4556 = vmatpush1.bf16.msra.mxu1 %v6313_v7  ;;  %v8837_v7 = vand.u32 4294901760, %v5906_v24 }
  0xb6   :  { %4558 = vmatprep.subr.bf16.mxu1 %v4557_v8  ;;  %v843_v8 = vsub.f32 %v5841_v56, %v8355_v41 }
 0x146   :  { %v606_v13 = vpop.f32.mrb[0].mxu0 }
 0x147   :  { %v608_v26 = vpop.f32.mrb[1].mxu0 }
 0x14b   :  { %v368_v0 = vpop.f32.mrb[0].mxu1 }
 0x14c   :  { %v5453_v30 = vadd.f32 %v368_v0, %v109_v53  ;;  %v370_v15 = vpop.f32.mrb[1].mxu1 }
 0x14d   :  { %v5455_v18 = vadd.f32 %v370_v15, %v113_v54  ;;  %v873_v54 = vsub.f32 %v5863_v63, %v8354_v6 }
 0x14e   :  { %v5454_v14 = vadd.f32 %v5453_v30, %v606_v13 }
 0x14f   :  { %v5456_v2 = vadd.f32 %v5455_v18, %v608_v26  ;;  %v8359_v26 = vand.u32 4294901760, %v5873_v4  ;;  %v844_v18 = vand.u32 4294901760, %v843_v8  ;;  %v874_v41 = vand.u32 4294901760, %v873_v54 }
 0x150   :  { %v611_v36 = vmax.f32 %v5454_v14, 0.0  ;;  %v856_v14 = vand.u32 4294901760, %v855_v5  ;;  %v8834_v5 = vand.u32 4294901760, %v5885_v10 }
 0x151   :  { %v612_v53 = vmax.f32 %v5456_v2, 0.0  ;;  %v862_v2 = vand.u32 4294901760, %v861_v40  ;;  %v867_v8 = vsub.f32 %v5873_v4, %v8359_v26  ;;  %v8835_v40 = vand.u32 4294901760, %v5890_v11 }
 0x152   :  { %v6343_v13 = vand.u32 4294901760, %v611_v36  ;;  %v4559_v55 = vpack.c.bf16 %v856_v14, %v844_v18  ;;  %v891_v18 = vsub.f32 %v5906_v24, %v8837_v7  ;;  %v8838_v14 = vand.u32 4294901760, %v5911_v27 }
 0x153   :  { %v6348_v15 = vand.u32 4294901760, %v612_v53  ;;  %v868_v21 = vand.u32 4294901760, %v867_v8  ;;  %v898_v4 = vand.u32 4294901760, %v897_v47  ;;  %v8842_v7 = vand.u32 4294901760, %v5923_v32 }
 0x154   :  { %8830 = vst [vmem:[#allocation94_spill] sm:$0xff] %v6343_v13  ;;  %v6351_v23 = vsub.f32 %v611_v36, %v6343_v13  ;;  %v879_v36 = vsub.f32 %v5885_v10, %v8834_v5 }
 0x155   :  { %8831 = vst [vmem:[#allocation95_spill] sm:$0xff] %v6348_v15  ;;  %v6355_v6 = vsub.f32 %v612_v53, %v6348_v15  ;;  %v885_v53 = vsub.f32 %v5890_v11, %v8835_v40  ;;  %v4561_v40 = vpack.c.bf16 %v874_v41, %v862_v2  ;;  %v8840_v11 = vld [vmem:[#allocation27_spill] sm:$0xff]  ;;  %v909_v24 = vsub.f32 %v5923_v32, %v8842_v7  ;;  %v8848_v7 = vld [vmem:[#allocation32_spill] sm:$0xff] }
 0x156   :  { %8832 = vst [vmem:[#allocation96_spill] sm:$0xff] %v6351_v23  ;;  %v8364_v30 = vand.u32 4294901760, %v6351_v23  ;;  %v880_v12 = vand.u32 4294901760, %v879_v36  ;;  %v892_v36 = vand.u32 4294901760, %v891_v18  ;;  %v8847_v41 = vld [vmem:[#allocation31_spill] sm:$0xff]  ;;  %v8850_v18 = vand.u32 4294901760, %v8840_v11 }
 0x157   :  { %8833 = vst [vmem:[#allocation97_spill] sm:$0xff] %v6355_v6  ;;  %v8377_v54 = vand.u32 4294901760, %v6355_v6  ;;  %v886_v51 = vand.u32 4294901760, %v885_v53 }
 0x158   :  { %v826_v0 = vsub.f32 %v6351_v23, %v8364_v30  ;;  %v903_v30 = vsub.f32 %v5911_v27, %v8838_v14  ;;  %v8843_v14 = vand.u32 4294901760, %v5928_v33  ;;  %v8393_v27 = vand.u32 4294901760, %v8845_v22 }
 0x159   :  { %v820_v5 = vsub.f32 %v6355_v6, %v8377_v54  ;;  %v8841_v54 = vld [vmem:[#allocation28_spill] sm:$0xff]  ;;  %v4563_v10 = vpack.c.bf16 %v880_v12, %v868_v21 }
 0x15a   :  { %v827_v2 = vand.u32 4294901760, %v826_v0  ;;  %v921_v8 = vsub.f32 %v5928_v33, %v8843_v14  ;;  %v904_v53 = vand.u32 4294901760, %v903_v30  ;;  %v8846_v0 = vand.u32 4294901760, %v5950_v48 }
 0x15b   :  { %v821_v23 = vand.u32 4294901760, %v820_v5  ;;  %v8844_v5 = vld [vmem:[#allocation29_spill] sm:$0xff]  ;;  %v8851_v12 = vand.u32 4294901760, %v8841_v54  ;;  %v4565_v14 = vpack.c.bf16 %v898_v4, %v886_v51  ;;  %v8855_v51 = vld [vmem:[#allocation34_spill] sm:$0xff] }
 0x15c   :  { %v8391_v26 = vand.u32 4294901760, %v8844_v5  ;;  %v915_v47 = vsub.f32 %v5950_v48, %v8846_v0  ;;  %v910_v0 = vand.u32 4294901760, %v909_v24  ;;  %v922_v6 = vand.u32 4294901760, %v921_v8  ;;  %v8854_v4 = vld [vmem:[#allocation33_spill] sm:$0xff]  ;;  %v8858_v48 = vld [vmem:[#allocation38_spill] sm:$0xff] }
 0x15d   :  { %822 = vmatprep.mubr.f32.mxu1 %v821_v23  ;;  %v8849_v23 = vand.u32 4294901760, %v8839_v49  ;;  %v945_v21 = vsub.f32 %v8841_v54, %v8851_v12  ;;  %v4567_v32 = vpack.c.bf16 %v904_v53, %v892_v36  ;;  %v8407_v8 = vand.u32 4294901760, %v8855_v51  ;;  %v8857_v54 = vld [vmem:[#allocation37_spill] sm:$0xff] }
 0x15e   :  { %828 = vmatmul.mubr.f32.vlgmr.msra.gmra.mrb[2].mxu1 %v827_v2  ;;  %v933_v2 = vsub.f32 %v8840_v11, %v8850_v18  ;;  %v8853_v11 = vand.u32 4294901760, %v8848_v7  ;;  %v916_v36 = vand.u32 4294901760, %v915_v47  ;;  %v8410_v33 = vand.u32 4294901760, %v8858_v48 }
 0x15f   :  { %4560 = vmatpush1.bf16.msra.mxu1 %v4559_v55  ;;  %1219 = vmatprep.mubr.f32.mxu1 %v6348_v15  ;;  %v927_v30 = vsub.f32 %v8839_v49, %v8849_v23  ;;  %v939_v55 = vsub.f32 %v8844_v5, %v8391_v26  ;;  %v951_v23 = vsub.f32 %v8845_v22, %v8393_v27  ;;  %v8852_v15 = vand.u32 4294901760, %v8847_v41  ;;  %v8856_v27 = vld [vmem:[#allocation35_spill] sm:$0xff] }
 0x160   :  { %4562 = vmatprep.subr.bf16.mxu1 %v4561_v40  ;;  %v969_v40 = vsub.f32 %v8848_v7, %v8853_v11  ;;  %v934_v12 = vand.u32 4294901760, %v933_v2  ;;  %v946_v26 = vand.u32 4294901760, %v945_v21  ;;  %v4569_v5 = vpack.c.bf16 %v922_v6, %v910_v0  ;;  %v8859_v11 = vld [vmem:[#allocation39_spill] sm:$0xff]  ;;  %v8861_v0 = vld [vmem:[#allocation41_spill] sm:$0xff] }
 0x161   :  { %v957_v18 = vsub.f32 %v8847_v41, %v8852_v15  ;;  %v928_v53 = vand.u32 4294901760, %v927_v30  ;;  %v8406_v22 = vand.u32 4294901760, %v8856_v27  ;;  %v8405_v49 = vand.u32 4294901760, %v8857_v54 }
 0x162   :  { %v940_v15 = vand.u32 4294901760, %v939_v55  ;;  %v952_v41 = vand.u32 4294901760, %v951_v23  ;;  %v8412_v7 = vand.u32 4294901760, %v8859_v11  ;;  %v970_v13 = vand.u32 4294901760, %v969_v40  ;;  %v8862_v23 = vld [vmem:[#allocation42_spill] sm:$0xff] }
 0x163   :  { %4564 = vmatpush1.bf16.msra.mxu1 %v4563_v10  ;;  %v958_v24 = vand.u32 4294901760, %v957_v18  ;;  %v8860_v10 = vand.u32 4294901760, %v8854_v4  ;;  %v975_v6 = vsub.f32 %v8855_v51, %v8407_v8  ;;  %v4571_v30 = vpack.c.bf16 %v928_v53, %v916_v36  ;;  %v8865_v8 = vld [vmem:[#allocation46_spill] sm:$0xff]  ;;  %v8866_v18 = vld [vmem:[#allocation48_spill] sm:$0xff] }
 0x164   :  { %4566 = vmatprep.subr.bf16.mxu1 %v4565_v14  ;;  %v4573_v2 = vpack.c.bf16 %v946_v26, %v934_v12  ;;  %v981_v21 = vsub.f32 %v8856_v27, %v8406_v22  ;;  %v993_v14 = vsub.f32 %v8857_v54, %v8405_v49  ;;  %v987_v40 = vsub.f32 %v8858_v48, %v8410_v33  ;;  %v8863_v12 = vld [vmem:[#allocation44_spill] sm:$0xff]  ;;  %v8864_v49 = vld [vmem:[#allocation45_spill] sm:$0xff] }
 0x165   :  { %v963_v47 = vsub.f32 %v8854_v4, %v8860_v10  ;;  %v4575_v26 = vpack.c.bf16 %v952_v41, %v940_v15  ;;  %v976_v53 = vand.u32 4294901760, %v975_v6  ;;  %v8413_v10 = vand.u32 4294901760, %v8863_v12 }
 0x166   :  { %v982_v27 = vand.u32 4294901760, %v981_v21  ;;  %v994_v33 = vand.u32 4294901760, %v993_v14  ;;  %v8867_v48 = vand.u32 4294901760, %v8861_v0  ;;  %v8872_v14 = vand.u32 4294901760, %v8864_v49 }
 0x167   :  { %4568 = vmatpush1.bf16.msra.mxu1 %v4567_v32  ;;  %v999_v32 = vsub.f32 %v8859_v11, %v8412_v7  ;;  %v964_v36 = vand.u32 4294901760, %v963_v47  ;;  %v8869_v47 = vld [vmem:[#allocation49_spill] sm:$0xff]  ;;  %v8874_v22 = vand.u32 4294901760, %v8866_v18 }
 0x168   :  { %4570 = vmatprep.subr.bf16.mxu1 %v4569_v5  ;;  %v4577_v5 = vpack.c.bf16 %v970_v13, %v958_v24  ;;  %v1005_v7 = vsub.f32 %v8861_v0, %v8867_v48  ;;  %v8868_v13 = vand.u32 4294901760, %v8862_v23  ;;  %v988_v24 = vand.u32 4294901760, %v987_v40 }
 0x169   :  { %v1000_v15 = vand.u32 4294901760, %v999_v32  ;;  %v8417_v6 = vand.u32 4294901760, %v8869_v47  ;;  %v4579_v55 = vpack.c.bf16 %v976_v53, %v964_v36  ;;  %v1011_v48 = vsub.f32 %v8863_v12, %v8413_v10 }
 0x16a   :  { %v1017_v41 = vsub.f32 %v8862_v23, %v8868_v13  ;;  %v1023_v13 = vsub.f32 %v8864_v49, %v8872_v14  ;;  %v8873_v40 = vand.u32 4294901760, %v8865_v8  ;;  %v1041_v36 = vsub.f32 %v8866_v18, %v8874_v22 }
 0x16b   :  { %4572 = vmatpush1.bf16.msra.mxu1 %v4571_v30  ;;  %v8870_v30 = vld [vmem:[#allocation50_spill] sm:$0xff]  ;;  %v4581_v53 = vpack.c.bf16 %v994_v33, %v982_v27  ;;  %v1006_v21 = vand.u32 4294901760, %v1005_v7  ;;  %v4583_v54 = vpack.c.bf16 %v1000_v15, %v988_v24  ;;  %v1035_v10 = vsub.f32 %v8869_v47, %v8417_v6 }
 0x16c   :  { %4574 = vmatprep.subr.bf16.mxu1 %v4573_v2  ;;  %v8871_v2 = vld [vmem:[#allocation52_spill] sm:$0xff]  ;;  %v1029_v32 = vsub.f32 %v8865_v8, %v8873_v40  ;;  %v8875_v12 = vand.u32 4294901760, %v8870_v30  ;;  %v8876_v49 = vand.u32 4294901760, %v6130_v50  ;;  %v8878_v27 = vld [vmem:[#allocation54_spill] sm:$0xff]  ;;  %v8436_v7 = vand.u32 4294901760, %v6151_v60 }
 0x16d   :  { %v8877_v8 = vand.u32 4294901760, %v8871_v2  ;;  %v1042_v15 = vand.u32 4294901760, %v1041_v36  ;;  %v8425_v47 = vand.u32 4294901760, %v6157_v19 }
 0x16e   :  { %v1047_v14 = vsub.f32 %v8870_v30, %v8875_v12  ;;  %v1053_v40 = vsub.f32 %v6130_v50, %v8876_v49  ;;  %v1030_v24 = vand.u32 4294901760, %v1029_v32  ;;  %v8424_v12 = vand.u32 4294901760, %v6153_v45 }
 0x16f   :  { %4576 = vmatpush1.bf16.msra.mxu1 %v4575_v26  ;;  %v1018_v26 = vand.u32 4294901760, %v1017_v41  ;;  %v1065_v22 = vsub.f32 %v8871_v2, %v8877_v8  ;;  %v1024_v41 = vand.u32 4294901760, %v1023_v13  ;;  %v8423_v30 = vand.u32 4294901760, %v6155_v46 }
 0x170   :  { %4578 = vmatprep.subr.bf16.mxu1 %v4577_v5  ;;  %v1012_v5 = vand.u32 4294901760, %v1011_v48  ;;  %v1036_v49 = vand.u32 4294901760, %v1035_v10  ;;  %v1048_v50 = vand.u32 4294901760, %v1047_v14  ;;  %v8426_v8 = vand.u32 4294901760, %v6159_v43 }
 0x171   :  { %v4585_v6 = vpack.c.bf16 %v1018_v26, %v1006_v21  ;;  %v1054_v33 = vand.u32 4294901760, %v1053_v40  ;;  %v1066_v2 = vand.u32 4294901760, %v1065_v22  ;;  %v1071_v21 = vsub.f32 %v6151_v60, %v8436_v7 }
 0x172   :  { %v4587_v13 = vpack.c.bf16 %v1024_v41, %v1012_v5  ;;  %v4589_v32 = vpack.c.bf16 %v1042_v15, %v1030_v24  ;;  %v1077_v10 = vsub.f32 %v6153_v45, %v8424_v12  ;;  %v1089_v36 = vsub.f32 %v6155_v46, %v8423_v30  ;;  %v8880_v24 = vld [vmem:[#allocation74_spill] sm:$0xff] }
 0x173   :  { %4580 = vmatpush1.bf16.msra.mxu1 %v4579_v55  ;;  %v8879_v55 = vand.u32 4294901760, %v8878_v27  ;;  %v8427_v26 = vand.u32 4294901760, %v6244_v57  ;;  %v1083_v14 = vsub.f32 %v6157_v19, %v8425_v47  ;;  %v4593_v40 = vpack.c.bf16 %v1066_v2, %v1054_v33 }
 0x174   :  { %4582 = vmatprep.subr.bf16.mxu1 %v4581_v53  ;;  %v8435_v53 = vand.u32 4294901760, %v6242_v44  ;;  %v1072_v5 = vand.u32 4294901760, %v1071_v21  ;;  %v8428_v41 = vand.u32 4294901760, %v6248_v17  ;;  %v8429_v15 = vand.u32 4294901760, %v8880_v24 }
 0x175   :  { %v1059_v48 = vsub.f32 %v8878_v27, %v8879_v55  ;;  %v8430_v55 = vand.u32 4294901760, %v6273_v25  ;;  %v8433_v30 = vand.u32 4294901760, %v6275_v38  ;;  %v1078_v12 = vand.u32 4294901760, %v1077_v10 }
 0x176   :  { %v1090_v47 = vand.u32 4294901760, %v1089_v36  ;;  %v1084_v2 = vand.u32 4294901760, %v1083_v14  ;;  %v1107_v10 = vsub.f32 %v6248_v17, %v8428_v41  ;;  %v1119_v36 = vsub.f32 %v8880_v24, %v8429_v15 }
 0x177   :  { %4584 = vmatpush1.bf16.msra.mxu1 %v4583_v54  ;;  %v1095_v54 = vsub.f32 %v6159_v43, %v8426_v8  ;;  %v1060_v22 = vand.u32 4294901760, %v1059_v48  ;;  %v1101_v8 = vsub.f32 %v6242_v44, %v8435_v53  ;;  %v8432_v48 = vand.u32 4294901760, %v6279_v58 }
 0x178   :  { %4586 = vmatprep.subr.bf16.mxu1 %v4585_v6  ;;  %v4591_v6 = vpack.c.bf16 %v1048_v50, %v1036_v49  ;;  %v1113_v50 = vsub.f32 %v6244_v57, %v8427_v26  ;;  %v8431_v49 = vand.u32 4294901760, %v6277_v37  ;;  %v1125_v14 = vsub.f32 %v6273_v25, %v8430_v55 }
 0x179   :  { %v1096_v33 = vand.u32 4294901760, %v1095_v54  ;;  %v4595_v21 = vpack.c.bf16 %v1072_v5, %v1060_v22  ;;  %v1137_v54 = vsub.f32 %v6275_v38, %v8433_v30  ;;  %v4597_v22 = vpack.c.bf16 %v1090_v47, %v1078_v12 }
 0x17a   :  { %v1102_v5 = vand.u32 4294901760, %v1101_v8  ;;  %v1131_v41 = vsub.f32 %v6277_v37, %v8431_v49  ;;  %v1143_v15 = vsub.f32 %v6279_v58, %v8432_v48  ;;  %v8449_v47 = vand.u32 4294901760, %v6285_v39 }
 0x17b   :  { %4588 = vmatpush1.bf16.msra.mxu1 %v4587_v13  ;;  %v8434_v13 = vand.u32 4294901760, %v6281_v59  ;;  %v4599_v26 = vpack.c.bf16 %v1096_v33, %v1084_v2  ;;  %v8448_v12 = vand.u32 4294901760, %v6287_v52  ;;  %v1108_v8 = vand.u32 4294901760, %v1107_v10 }
 0x17c   :  { %4590 = vmatprep.subr.bf16.mxu1 %v4589_v32  ;;  %v8439_v32 = vand.u32 4294901760, %v6283_v31  ;;  %v1126_v2 = vand.u32 4294901760, %v1125_v14  ;;  %v1138_v33 = vand.u32 4294901760, %v1137_v54  ;;  %v8447_v48 = vand.u32 4294901760, %v6290_v3 }
 0x17d   :  { %v1149_v55 = vsub.f32 %v6281_v59, %v8434_v13  ;;  %v8440_v30 = vand.u32 4294901760, %v6292_v16  ;;  %v1132_v13 = vand.u32 4294901760, %v1131_v41  ;;  %v1144_v53 = vand.u32 4294901760, %v1143_v15 }
 0x17e   :  { %v8446_v14 = vand.u32 4294901760, %v6294_v9  ;;  %v8442_v54 = vand.u32 4294901760, %v6296_v20  ;;  %v1173_v41 = vsub.f32 %v6290_v3, %v8447_v48 }
 0x17f   :  { %4592 = vmatpush1.bf16.msra.mxu1 %v4591_v6  ;;  %v1114_v6 = vand.u32 4294901760, %v1113_v50  ;;  %v1120_v50 = vand.u32 4294901760, %v1119_v36  ;;  %v1150_v7 = vand.u32 4294901760, %v1149_v55  ;;  %v4605_v36 = vpack.c.bf16 %v1138_v33, %v1126_v2 }
 0x180   :  { %4594 = vmatprep.subr.bf16.mxu1 %v4593_v40  ;;  %v1161_v40 = vsub.f32 %v6283_v31, %v8439_v32  ;;  %v1155_v32 = vsub.f32 %v6285_v39, %v8449_v47  ;;  %v1185_v15 = vsub.f32 %v6292_v16, %v8440_v30  ;;  %v8441_v55 = vand.u32 4294901760, %v6300_v28 }
 0x181   :  { %v4601_v49 = vpack.c.bf16 %v1114_v6, %v1102_v5  ;;  %v4603_v10 = vpack.c.bf16 %v1120_v50, %v1108_v8  ;;  %v1191_v8 = vsub.f32 %v6296_v20, %v8442_v54  ;;  %v8445_v50 = vand.u32 4294901760, %v6311_v34 }
 0x182   :  { %v1162_v59 = vand.u32 4294901760, %v1161_v40  ;;  %v1156_v6 = vand.u32 4294901760, %v1155_v32  ;;  %v8444_v2 = vand.u32 4294901760, %v6315_v1  ;;  %v1174_v33 = vand.u32 4294901760, %v1173_v41 }
 0x183   :  { %4596 = vmatpush1.bf16.msra.mxu1 %v4595_v21  ;;  %v1167_v21 = vsub.f32 %v6287_v52, %v8448_v12  ;;  %v1186_v30 = vand.u32 4294901760, %v1185_v15  ;;  %v1192_v32 = vand.u32 4294901760, %v1191_v8  ;;  %v8882_v8 = vld [vmem:[#allocation97_spill] sm:$0xff] }
 0x184   :  { %4598 = vmatprep.subr.bf16.mxu1 %v4597_v22  ;;  %v8443_v22 = vand.u32 4294901760, %v6302_v29  ;;  %v4609_v5 = vpack.c.bf16 %v1162_v59, %v1150_v7  ;;  %v1197_v59 = vsub.f32 %v6300_v28, %v8441_v55  ;;  %v8900_v12 = vld [vmem:[#allocation37_spill] sm:$0xff] }
 0x185   :  { %v1168_v40 = vand.u32 4294901760, %v1167_v21  ;;  %v1203_v21 = vsub.f32 %v6311_v34, %v8445_v50 }
 0x186   :  { %v1209_v7 = vsub.f32 %v6302_v29, %v8443_v22  ;;  %v1198_v41 = vand.u32 4294901760, %v1197_v59  ;;  %v8886_v59 = vld [vmem:[#allocation19_spill] sm:$0xff] }
 0x187   :  { %4600 = vmatpush1.bf16.msra.mxu1 %v4599_v26  ;;  %v4607_v26 = vpack.c.bf16 %v1144_v53, %v1132_v13  ;;  %v4611_v53 = vpack.c.bf16 %v1168_v40, %v1156_v6  ;;  %v1204_v54 = vand.u32 4294901760, %v1203_v21  ;;  %v4621_v40 = vpack.c.bf16 %v5822_v42, %v5811_v35  ;;  %v8889_v21 = vld [vmem:[#allocation22_spill] sm:$0xff] }
 0x188   :  { %4602 = vmatprep.subr.bf16.mxu1 %v4601_v49  ;;  %v1179_v49 = vsub.f32 %v6294_v9, %v8446_v14  ;;  %v1210_v15 = vand.u32 4294901760, %v1209_v7  ;;  %v8898_v14 = vld [vmem:[#allocation32_spill] sm:$0xff] }
 0x18a   :  { %v1180_v13 = vand.u32 4294901760, %v1179_v49  ;;  %v4623_v49 = vpack.c.bf16 %v5853_v61, %v5841_v56 }
 0x18b   :  { %4604 = vmatpush1.bf16.msra.mxu1 %v4603_v10  ;;  %v1215_v10 = vsub.f32 %v6315_v1, %v8444_v2  ;;  %v8896_v2 = vld [vmem:[#allocation30_spill] sm:$0xff] }
 0x18c   :  { %4606 = vmatprep.subr.bf16.mxu1 %v4605_v36  ;;  %v4613_v36 = vpack.c.bf16 %v1186_v30, %v1174_v33  ;;  %v4615_v55 = vpack.c.bf16 %v1192_v32, %v1180_v13  ;;  %v4625_v30 = vpack.c.bf16 %v5863_v63, %v5858_v62  ;;  %v8883_v33 = vld [vmem:[#allocation16_spill] sm:$0xff]  ;;  %v8888_v13 = vld [vmem:[#allocation21_spill] sm:$0xff] }
 0x18d   :  { %v1216_v22 = vand.u32 4294901760, %v1215_v10  ;;  %v8890_v10 = vld [vmem:[#allocation23_spill] sm:$0xff] }
 0x18f   :  { %4608 = vmatpush1.bf16.msra.mxu1 %v4607_v26  ;;  %v4617_v26 = vpack.c.bf16 %v1210_v15, %v1198_v41  ;;  %v4619_v6 = vpack.c.bf16 %v1216_v22, %v1204_v54  ;;  %v8885_v22 = vld [vmem:[#allocation18_spill] sm:$0xff]  ;;  %v8891_v41 = vld [vmem:[#allocation25_spill] sm:$0xff] }
 0x190   :  { %4610 = vmatprep.subr.bf16.mxu1 %v4609_v5  ;;  %v8881_v5 = vld [vmem:[#allocation94_spill] sm:$0xff]  ;;  %v4629_v7 = vpack.c.bf16 %v8886_v59, %v8885_v22 }
 0x191   :  { %v8892_v15 = vld [vmem:[#allocation26_spill] sm:$0xff] }
 0x193   :  { %4612 = vmatpush1.bf16.msra.mxu1 %v4611_v53  ;;  %v8887_v53 = vld [vmem:[#allocation20_spill] sm:$0xff] }
 0x194   :  { %4614 = vmatprep.subr.bf16.mxu1 %v4613_v36  ;;  %v4631_v32 = vpack.c.bf16 %v8888_v13, %v8887_v53  ;;  %v4633_v36 = vpack.c.bf16 %v8890_v10, %v8889_v21 }
 0x197   :  { %4616 = vmatpush1.bf16.msra.mxu1 %v4615_v55  ;;  %v8884_v55 = vld [vmem:[#allocation17_spill] sm:$0xff] }
 0x198   :  { %4618 = vmatprep.subr.bf16.mxu1 %v4617_v26  ;;  %v4627_v54 = vpack.c.bf16 %v8884_v55, %v8883_v33  ;;  %v4635_v26 = vpack.c.bf16 %v8892_v15, %v8891_v41 }
 0x19b   :  { %4620 = vmatpush1.bf16.msra.mxu1 %v4619_v6  ;;  %v8893_v6 = vld [vmem:[#allocation27_spill] sm:$0xff] }
 0x19c   :  { %4622 = vmatprep.subr.bf16.mxu1 %v4621_v40  ;;  %v8894_v40 = vld [vmem:[#allocation28_spill] sm:$0xff] }
 0x19e   :  { %1221 = vmatmul.mubr.f32.vlgmr.msra.gmra.mrb[2].mxu1 %v8881_v5 }
 0x19f   :  { %4624 = vmatpush1.bf16.msra.mxu1 %v4623_v49  ;;  %1421 = vmatprep.mubr.f32.mxu1 %v8882_v8  ;;  %v4637_v49 = vpack.c.bf16 %v8894_v40, %v8893_v6 }
 0x1a0   :  { %4626 = vmatprep.subr.bf16.mxu1 %v4625_v30  ;;  %v8895_v30 = vld [vmem:[#allocation29_spill] sm:$0xff] }
 0x1a1   :  { %v4639_v50 = vpack.c.bf16 %v8896_v2, %v8895_v30  ;;  %v8903_v2 = vld [vmem:[#allocation45_spill] sm:$0xff] }
 0x1a3   :  { %4628 = vmatpush1.bf16.msra.mxu1 %v4627_v54  ;;  %v8897_v54 = vld [vmem:[#allocation31_spill] sm:$0xff] }
 0x1a4   :  { %4630 = vmatprep.subr.bf16.mxu1 %v4629_v7  ;;  %v4641_v48 = vpack.c.bf16 %v8898_v14, %v8897_v54  ;;  %v4643_v7 = vpack.c.bf16 %v8855_v51, %v8854_v4  ;;  %v8906_v4 = vld [vmem:[#allocation50_spill] sm:$0xff] }
 0x1a7   :  { %4632 = vmatpush1.bf16.msra.mxu1 %v4631_v32  ;;  %v8899_v32 = vld [vmem:[#allocation35_spill] sm:$0xff] }
 0x1a8   :  { %4634 = vmatprep.subr.bf16.mxu1 %v4633_v36  ;;  %v4645_v47 = vpack.c.bf16 %v8900_v12, %v8899_v32  ;;  %v8901_v36 = vld [vmem:[#allocation38_spill] sm:$0xff]  ;;  %v8908_v32 = vld [vmem:[#allocation52_spill] sm:$0xff] }
 0x1a9   :  { %v4647_v5 = vpack.c.bf16 %v8859_v11, %v8901_v36 }
 0x1ab   :  { %4636 = vmatpush1.bf16.msra.mxu1 %v4635_v26  ;;  %v4649_v26 = vpack.c.bf16 %v8862_v23, %v8861_v0 }
 0x1ac   :  { %4638 = vmatprep.subr.bf16.mxu1 %v4637_v49  ;;  %v8902_v49 = vld [vmem:[#allocation44_spill] sm:$0xff] }
 0x1ad   :  { %v4651_v14 = vpack.c.bf16 %v8903_v2, %v8902_v49 }
 0x1af   :  { %4640 = vmatpush1.bf16.msra.mxu1 %v4639_v50  ;;  %v8904_v50 = vld [vmem:[#allocation46_spill] sm:$0xff] }
 0x1b0   :  { %4642 = vmatprep.subr.bf16.mxu1 %v4641_v48  ;;  %v4653_v51 = vpack.c.bf16 %v8866_v18, %v8904_v50  ;;  %v8905_v48 = vld [vmem:[#allocation49_spill] sm:$0xff] }
 0x1b1   :  { %v4655_v12 = vpack.c.bf16 %v8906_v4, %v8905_v48 }
 0x1b3   :  { %4644 = vmatpush1.bf16.msra.mxu1 %v4643_v7  ;;  %v8907_v7 = vld [vmem:[#allocation51_spill] sm:$0xff] }
 0x1b4   :  { %4646 = vmatprep.subr.bf16.mxu1 %v4645_v47  ;;  %v4657_v11 = vpack.c.bf16 %v8908_v32, %v8907_v7  ;;  %v4659_v47 = vpack.c.bf16 %v6151_v60, %v8878_v27 }
 0x1b7   :  { %4648 = vmatpush1.bf16.msra.mxu1 %v4647_v5  ;;  %v4661_v5 = vpack.c.bf16 %v6155_v46, %v6153_v45 }
 0x1b8   :  { %4650 = vmatprep.subr.bf16.mxu1 %v4649_v26  ;;  %v4663_v26 = vpack.c.bf16 %v6159_v43, %v6157_v19 }
 0x1bb   :  { %4652 = vmatpush1.bf16.msra.mxu1 %v4651_v14  ;;  %v4665_v14 = vpack.c.bf16 %v6244_v57, %v6242_v44 }
 0x1bc   :  { %4654 = vmatprep.subr.bf16.mxu1 %v4653_v51  ;;  %v4667_v51 = vpack.c.bf16 %v8880_v24, %v6248_v17 }
 0x1bf   :  { %4656 = vmatpush1.bf16.msra.mxu1 %v4655_v12  ;;  %v4669_v12 = vpack.c.bf16 %v6275_v38, %v6273_v25 }
 0x1c0   :  { %4658 = vmatprep.subr.bf16.mxu1 %v4657_v11  ;;  %v4671_v11 = vpack.c.bf16 %v6279_v58, %v6277_v37 }
 0x1c3   :  { %4660 = vmatpush1.bf16.msra.mxu1 %v4659_v47  ;;  %v8909_v47 = vld [vmem:[#allocation81_spill] sm:$0xff] }
 0x1c4   :  { %4662 = vmatprep.subr.bf16.mxu1 %v4661_v5  ;;  %v4673_v43 = vpack.c.bf16 %v6283_v31, %v8909_v47  ;;  %v4675_v5 = vpack.c.bf16 %v6287_v52, %v6285_v39  ;;  %v8912_v52 = vld [vmem:[#allocation36_spill] sm:$0xff] }
 0x1c7   :  { %4664 = vmatpush1.bf16.msra.mxu1 %v4663_v26  ;;  %v4677_v26 = vpack.c.bf16 %v6292_v16, %v6290_v3  ;;  %v1988_v16 = vld [vmem:[#allocation8 + $0x68] sm:$0xff] }
 0x1c8   :  { %4666 = vmatprep.subr.bf16.mxu1 %v4665_v14  ;;  %v4679_v14 = vpack.c.bf16 %v6296_v20, %v6294_v9  ;;  %v8914_v20 = vld [vmem:[#allocation40_spill] sm:$0xff] }
 0x1cb   :  { %4668 = vmatpush1.bf16.msra.mxu1 %v4667_v51  ;;  %v4681_v51 = vpack.c.bf16 %v6302_v29, %v6300_v28  ;;  %v8916_v29 = vld [vmem:[#allocation47_spill] sm:$0xff]  ;;  %v1985_v28 = vld [vmem:[#allocation8 + $0x50] sm:$0xff] }
 0x1cc   :  { %4670 = vmatprep.subr.bf16.mxu1 %v4669_v12  ;;  %v4683_v12 = vpack.c.bf16 %v6315_v1, %v6311_v34  ;;  %v8918_v1 = vld [vmem:[#allocation55_spill] sm:$0xff] }
 0x1cf   :  { %4672 = vmatpush1.bf16.msra.mxu1 %v4671_v11  ;;  %v8910_v11 = vld [vmem:[#allocation24_spill] sm:$0xff] }
 0x1d0   :  { %4674 = vmatprep.subr.bf16.mxu1 %v4673_v43  ;;  %v8911_v43 = vld [vmem:[#allocation96_spill] sm:$0xff] }
 0x1d3   :  { %4676 = vmatpush1.bf16.msra.mxu1 %v4675_v5  ;;  %v8913_v5 = vand.u32 4294901760, %v8882_v8  ;;  %v8923_v8 = vld [vmem:[#allocation61_spill] sm:$0xff] }
 0x1d4   :  { %4678 = vmatprep.subr.bf16.mxu1 %v4677_v26  ;;  %v8915_v26 = vld [vmem:[#allocation43_spill] sm:$0xff] }
 0x1d7   :  { %4680 = vmatpush1.bf16.msra.mxu1 %v4679_v14  ;;  %v8917_v14 = vld [vmem:[#allocation53_spill] sm:$0xff] }
 0x1d8   :  { %4682 = vmatprep.subr.bf16.mxu1 %v4681_v51  ;;  %v8919_v51 = vld [vmem:[#allocation57_spill] sm:$0xff] }
 0x1db   :  { %4684 = vmatpush1.bf16.msra.mxu1 %v4683_v12  ;;  %v8920_v12 = vld [vmem:[#allocation58_spill] sm:$0xff] }
 0x1dc   :  { %4686 = vmatprep.subr.bf16.mxu1 %v8910_v11  ;;  %v8921_v11 = vld [vmem:[#allocation59_spill] sm:$0xff] }
 0x1de   :  { %1424 = vmatmul.mubr.f32.vlgmr.msra.gmra.mrb[2].mxu1 %v8911_v43 }
 0x1df   :  { %4688 = vmatpush1.bf16.msra.mxu1 %v8912_v52  ;;  %1561 = vmatprep.mubr.f32.mxu1 %v8913_v5  ;;  %v8922_v52 = vld [vmem:[#allocation60_spill] sm:$0xff]  ;;  %v8924_v5 = vld [vmem:[#allocation62_spill] sm:$0xff] }
 0x1e0   :  { %4690 = vmatprep.subr.bf16.mxu1 %v8914_v20  ;;  %v8925_v20 = vld [vmem:[#allocation63_spill] sm:$0xff] }
 0x1e3   :  { %4692 = vmatpush1.bf16.msra.mxu1 %v8915_v26  ;;  %v8926_v26 = vld [vmem:[#allocation64_spill] sm:$0xff] }
 0x1e4   :  { %4694 = vmatprep.subr.bf16.mxu1 %v8916_v29  ;;  %v8927_v29 = vld [vmem:[#allocation65_spill] sm:$0xff] }
 0x1e7   :  { %4696 = vmatpush1.bf16.msra.mxu1 %v8917_v14  ;;  %v8928_v14 = vld [vmem:[#allocation66_spill] sm:$0xff] }
 0x1e8   :  { %4698 = vmatprep.subr.bf16.mxu1 %v8918_v1  ;;  %v8929_v1 = vld [vmem:[#allocation67_spill] sm:$0xff] }
 0x1eb   :  { %4700 = vmatpush1.bf16.msra.mxu1 %v8919_v51  ;;  %v8930_v51 = vld [vmem:[#allocation68_spill] sm:$0xff] }
 0x1ec   :  { %4702 = vmatprep.subr.bf16.mxu1 %v8920_v12  ;;  %v8931_v12 = vld [vmem:[#allocation69_spill] sm:$0xff] }
 0x1ef   :  { %4704 = vmatpush1.bf16.msra.mxu1 %v8921_v11  ;;  %v8932_v11 = vld [vmem:[#allocation70_spill] sm:$0xff] }
 0x1f0   :  { %4706 = vmatprep.subr.bf16.mxu1 %v8922_v52  ;;  %v8933_v52 = vld [vmem:[#allocation71_spill] sm:$0xff] }
 0x1f3   :  { %4708 = vmatpush1.bf16.msra.mxu1 %v8923_v8  ;;  %v8934_v8 = vld [vmem:[#allocation72_spill] sm:$0xff] }
 0x1f4   :  { %4710 = vmatprep.subr.bf16.mxu1 %v8924_v5  ;;  %v8935_v5 = vld [vmem:[#allocation73_spill] sm:$0xff] }
 0x1f7   :  { %4712 = vmatpush1.bf16.msra.mxu1 %v8925_v20  ;;  %v8936_v20 = vld [vmem:[#allocation75_spill] sm:$0xff] }
 0x1f8   :  { %4714 = vmatprep.subr.bf16.mxu1 %v8926_v26  ;;  %v8937_v26 = vld [vmem:[#allocation76_spill] sm:$0xff] }
 0x1fb   :  { %4716 = vmatpush1.bf16.msra.mxu1 %v8927_v29  ;;  %v8938_v29 = vld [vmem:[#allocation77_spill] sm:$0xff] }
 0x1fc   :  { %4718 = vmatprep.subr.bf16.mxu1 %v8928_v14  ;;  %v8939_v14 = vld [vmem:[#allocation78_spill] sm:$0xff] }
 0x1ff   :  { %4720 = vmatpush1.bf16.msra.mxu1 %v8929_v1  ;;  %v8940_v1 = vld [vmem:[#allocation79_spill] sm:$0xff] }
 0x200   :  { %4722 = vmatprep.subr.bf16.mxu1 %v8930_v51  ;;  %v8941_v51 = vld [vmem:[#allocation80_spill] sm:$0xff] }
 0x203   :  { %4724 = vmatpush1.bf16.msra.mxu1 %v8931_v12  ;;  %v8942_v12 = vld [vmem:[#allocation86_spill] sm:$0xff] }
 0x204   :  { %4726 = vmatprep.subr.bf16.mxu1 %v8932_v11 }
 0x207   :  { %4728 = vmatpush1.bf16.msra.mxu1 %v8933_v52  ;;  %v8943_v52 = vand.u32 4294901760, %v5811_v35  ;;  %v8951_v35 = vand.u32 4294901760, %v8884_v55  ;;  %v8959_v55 = vand.u32 4294901760, %v8891_v41  ;;  %v8966_v41 = vld [vmem:[#allocation95_spill] sm:$0xff] }
 0x208   :  { %4730 = vmatprep.subr.bf16.mxu1 %v8934_v8  ;;  %v8944_v8 = vand.u32 4294901760, %v5822_v42  ;;  %v8952_v42 = vand.u32 4294901760, %v8885_v22  ;;  %v8960_v22 = vand.u32 4294901760, %v8892_v15  ;;  %v8967_v15 = vand.u32 4294901760, %v8897_v54 }
 0x20a   :  { %v4749_v11 = vpack.c.bf16 %v8944_v8, %v8943_v52  ;;  %v8953_v52 = vand.u32 4294901760, %v8886_v59  ;;  %v6733_v59 = vpack.c.bf16 %v8960_v22, %v8959_v55  ;;  %v8972_v22 = vld [vmem:[#allocation34_spill] sm:$0xff] }
 0x20b   :  { %4732 = vmatpush1.bf16.msra.mxu1 %v8935_v5  ;;  %v8945_v5 = vld [vmem:[#allocation90_spill] sm:$0xff] }
 0x20c   :  { %4734 = vmatprep.subr.bf16.mxu1 %v8936_v20  ;;  %v8946_v20 = vand.u32 4294901760, %v5841_v56  ;;  %v4757_v8 = vpack.c.bf16 %v8953_v52, %v8952_v42  ;;  %v8954_v56 = vand.u32 4294901760, %v8887_v53  ;;  %v8961_v53 = vand.u32 4294901760, %v8893_v6  ;;  %v8968_v42 = vld [vmem:[#allocation32_spill] sm:$0xff] }
 0x20d   :  { %v8969_v6 = vand.u32 4294901760, %v8968_v42 }
 0x20f   :  { %4736 = vmatpush1.bf16.msra.mxu1 %v8937_v26  ;;  %v8947_v26 = vand.u32 4294901760, %v5853_v61  ;;  %v8955_v61 = vand.u32 4294901760, %v8888_v13  ;;  %v8962_v13 = vand.u32 4294901760, %v8894_v40  ;;  %v6752_v52 = vpack.c.bf16 %v8969_v6, %v8967_v15  ;;  %v1984_v15 = vld [vmem:[#allocation8 + $0x48] sm:$0xff] }
 0x210   :  { %4738 = vmatprep.subr.bf16.mxu1 %v8938_v29 }
 0x211   :  { %v4751_v29 = vpack.c.bf16 %v8947_v26, %v8946_v20  ;;  %v6719_v20 = vpack.c.bf16 %v8955_v61, %v8954_v56  ;;  %v8964_v26 = vld [vmem:[#allocation30_spill] sm:$0xff]  ;;  %v1977_v61 = vld [vmem:[#allocation8 + $0x10] sm:$0xff] }
 0x213   :  { %4740 = vmatpush1.bf16.msra.mxu1 %v8939_v14  ;;  %v8948_v14 = vand.u32 4294901760, %v5858_v62  ;;  %v8956_v62 = vand.u32 4294901760, %v8911_v43  ;;  %v8963_v43 = vand.u32 4294901760, %v8895_v30 }
 0x214   :  { %4742 = vmatprep.subr.bf16.mxu1 %v8940_v1  ;;  %v8949_v1 = vand.u32 4294901760, %v5863_v63  ;;  %v8957_v63 = vand.u32 4294901760, %v8889_v21  ;;  %v8965_v21 = vand.u32 4294901760, %v8964_v26  ;;  %v1979_v26 = vld [vmem:[#allocation8 + $0x20] sm:$0xff] }
 0x217   :  { %4744 = vmatpush1.bf16.msra.mxu1 %v8941_v51  ;;  %v4753_v51 = vpack.c.bf16 %v8949_v1, %v8948_v14  ;;  %v8958_v1 = vand.u32 4294901760, %v8890_v10  ;;  %v6745_v14 = vpack.c.bf16 %v8965_v21, %v8963_v43  ;;  %v1976_v10 = vld [vmem:[#allocation8 + $0x8] sm:$0xff]  ;;  %v1981_v21 = vld [vmem:[#allocation8 + $0x30] sm:$0xff] }
 0x218   :  { %4746 = vmatprep.subr.bf16.mxu1 %v8942_v12  ;;  %v8950_v12 = vand.u32 4294901760, %v8883_v33  ;;  %v2051_v40 = vand.u32 4294901760, %v1976_v10 }
 0x219   :  { %v6727_v33 = vpack.c.bf16 %v8958_v1, %v8957_v63  ;;  %v1982_v63 = vld [vmem:[#allocation8 + $0x38] sm:$0xff]  ;;  %v8970_v1 = vld [vmem:[#allocation33_spill] sm:$0xff] }
 0x21a   :  { %v4755_v34 = vpack.c.bf16 %v8951_v35, %v8950_v12  ;;  %v1978_v12 = vld [vmem:[#allocation8 + $0x18] sm:$0xff]  ;;  %v1975_v35 = vld [vmem:[#allocation8] sm:$0xff]  ;;  %v8971_v55 = vand.u32 4294901760, %v8970_v1  ;;  %v2063_v54 = vand.u32 4294901760, %v1982_v63  ;;  %v6762_v6 = vsub.f32 %v1976_v10, %v2051_v40 }
 0x21b   :  { %4748 = vmatpush1.bf16.msra.mxu1 %v8945_v5  ;;  %v2055_v56 = vand.u32 4294901760, %v1978_v12  ;;  %v2053_v30 = vand.u32 4294901760, %v1975_v35  ;;  %v1983_v1 = vld [vmem:[#allocation8 + $0x40] sm:$0xff] }
 0x21c   :  { %4750 = vmatprep.subr.bf16.mxu1 %v4749_v11  ;;  %v6739_v11 = vpack.c.bf16 %v8962_v13, %v8961_v53  ;;  %v8973_v53 = vand.u32 4294901760, %v8972_v22  ;;  %v2057_v13 = vand.u32 4294901760, %v1977_v61  ;;  %8975 = vst [vmem:[#allocation42_spill] sm:$0xff] %v6762_v6  ;;  %v6777_v10 = vsub.f32 %v1982_v63, %v2063_v54 }
 0x21d   :  { %v6760_v42 = vpack.c.bf16 %v2055_v56, %v2051_v40  ;;  %v6764_v5 = vsub.f32 %v1978_v12, %v2055_v56  ;;  %v2061_v12 = vand.u32 4294901760, %v1979_v26  ;;  %v2067_v40 = vand.u32 4294901760, %v1984_v15  ;;  %v1990_v56 = vld [vmem:[#allocation8 + $0x78] sm:$0xff] }
 0x21e   :  { %1565 = vmatmul.mubr.f32.vlgmr.msra.gmra.mrb[2].mxu1 %v8956_v62  ;;  %v1980_v62 = vld [vmem:[#allocation8 + $0x28] sm:$0xff]  ;;  %v6768_v22 = vpack.c.bf16 %v2057_v13, %v2053_v30  ;;  %8982 = vst [vmem:[#allocation18_spill] sm:$0xff] %v6777_v10  ;;  %v6789_v10 = vld [vmem:[#allocation8 + $0x80] sm:$0xff] }
 0x21f   :  { %4752 = vmatpush1.bf16.msra.mxu1 %v4751_v29  ;;  %1828 = vmatprep.mubr.f32.mxu1 %v8966_v41  ;;  %v6758_v29 = vpack.c.bf16 %v8973_v53, %v8971_v55  ;;  %v2059_v43 = vand.u32 4294901760, %v1980_v62  ;;  %8974 = vst [vmem:[#allocation41_spill] sm:$0xff] %v6760_v42  ;;  %8976 = vst [vmem:[#allocation48_spill] sm:$0xff] %v6764_v5  ;;  %v6766_v41 = vsub.f32 %v1975_v35, %v2053_v30 }
 0x220   :  { %4754 = vmatprep.subr.bf16.mxu1 %v4753_v51  ;;  %v1986_v51 = vld [vmem:[#allocation8 + $0x58] sm:$0xff]  ;;  %8978 = vst [vmem:[#allocation74_spill] sm:$0xff] %v6768_v22  ;;  %v6770_v55 = vsub.f32 %v1977_v61, %v2057_v13  ;;  %4878 = vmatprep.subr.bf16.mxu0 %v6760_v42  ;;  %v2065_v35 = vand.u32 4294901760, %v1981_v21  ;;  %v2069_v61 = vand.u32 4294901760, %v1983_v1  ;;  %v2073_v13 = vand.u32 4294901760, %v1985_v28  ;;  %v1992_v42 = vld [vmem:[#allocation8 + $0x88] sm:$0xff] }
 0x221   :  { %8977 = vst [vmem:[#allocation54_spill] sm:$0xff] %v6766_v41  ;;  %v6772_v53 = vpack.c.bf16 %v2063_v54, %v2059_v43  ;;  %v6774_v9 = vsub.f32 %v1980_v62, %v2059_v43  ;;  %4880 = vmatpush1.bf16.msra.mxu0 %v6768_v22  ;;  %v2071_v30 = vand.u32 4294901760, %v1986_v51  ;;  %v1987_v41 = vld [vmem:[#allocation8 + $0x60] sm:$0xff]  ;;  %v1989_v62 = vld [vmem:[#allocation8 + $0x70] sm:$0xff]  ;;  %v6783_v43 = vsub.f32 %v1979_v26, %v2061_v12 }
 0x222   :  { %8979 = vst [vmem:[#allocation97_spill] sm:$0xff] %v6770_v55  ;;  %v2075_v55 = vand.u32 4294901760, %v1988_v16  ;;  %v6785_v63 = vsub.f32 %v1981_v21, %v2065_v35  ;;  %v6787_v54 = vsub.f32 %v1984_v15, %v2067_v40  ;;  %v6795_v5 = vpack.c.bf16 %v2073_v13, %v2069_v61 }
 0x223   :  { %8980 = vst [vmem:[#allocation16_spill] sm:$0xff] %v6772_v53  ;;  %8981 = vst [vmem:[#allocation17_spill] sm:$0xff] %v6774_v9  ;;  %4756 = vmatpush1.bf16.msra.mxu1 %v4755_v34  ;;  %4882 = vmatprep.subr.bf16.mxu0 %v6772_v53  ;;  %v6781_v34 = vpack.c.bf16 %v2065_v35, %v2061_v12  ;;  %v6791_v22 = vpack.c.bf16 %v2071_v30, %v2067_v40  ;;  %v1993_v53 = vld [vmem:[#allocation8 + $0x90] sm:$0xff]  ;;  %v2079_v21 = vand.u32 4294901760, %v1990_v56 }
 0x224   :  { %4758 = vmatprep.subr.bf16.mxu1 %v4757_v8  ;;  %8984 = vst [vmem:[#allocation20_spill] sm:$0xff] %v6783_v43  ;;  %8985 = vst [vmem:[#allocation21_spill] sm:$0xff] %v6785_v63  ;;  %v1994_v8 = vld [vmem:[#allocation8 + $0x98] sm:$0xff]  ;;  %v6793_v9 = vsub.f32 %v1986_v51, %v2071_v30  ;;  %v6797_v6 = vsub.f32 %v1983_v1, %v2069_v61  ;;  %v6800_v26 = vsub.f32 %v1985_v28, %v2073_v13  ;;  %v1996_v61 = vld [vmem:[#allocation8 + $0xa8] sm:$0xff] }
 0x225   :  { %8983 = vst [vmem:[#allocation19_spill] sm:$0xff] %v6781_v34  ;;  %8986 = vst [vmem:[#allocation22_spill] sm:$0xff] %v6787_v54  ;;  %v6802_v15 = vsub.f32 %v1988_v16, %v2075_v55  ;;  %v2077_v12 = vand.u32 4294901760, %v1987_v41  ;;  %4884 = vmatpush1.bf16.msra.mxu0 %v6781_v34  ;;  %v2081_v35 = vand.u32 4294901760, %v1989_v62  ;;  %v2083_v51 = vand.u32 4294901760, %v1992_v42  ;;  %v1998_v13 = vld [vmem:[#allocation8 + $0xb8] sm:$0xff] }
 0x226   :  { %8987 = vst [vmem:[#allocation23_spill] sm:$0xff] %v6791_v22  ;;  %8988 = vst [vmem:[#allocation25_spill] sm:$0xff] %v6793_v9  ;;  %v2087_v40 = vand.u32 4294901760, %v1994_v8  ;;  %v2085_v30 = vand.u32 4294901760, %v6789_v10  ;;  %4886 = vmatprep.subr.bf16.mxu0 %v6791_v22  ;;  %v6808_v1 = vpack.c.bf16 %v2079_v21, %v2075_v55  ;;  %v2089_v16 = vand.u32 4294901760, %v1993_v53  ;;  %v9001_v54 = vld [vmem:[#allocation39_spill] sm:$0xff] }
 0x227   :  { %8989 = vst [vmem:[#allocation26_spill] sm:$0xff] %v6795_v5  ;;  %8990 = vst [vmem:[#allocation27_spill] sm:$0xff] %v6797_v6  ;;  %4760 = vmatpush1.bf16.msra.mxu1 %v6719_v20  ;;  %v6810_v20 = vsub.f32 %v1990_v56, %v2079_v21  ;;  %v6812_v28 = vsub.f32 %v1987_v41, %v2077_v12  ;;  %v9000_v9 = vand.u32 4294901760, %v8901_v36  ;;  %v9002_v63 = vand.u32 4294901760, %v9001_v54  ;;  %v1995_v41 = vld [vmem:[#allocation8 + $0xa0] sm:$0xff]  ;;  %v1997_v21 = vld [vmem:[#allocation8 + $0xb0] sm:$0xff] }
 0x228   :  { %8991 = vst [vmem:[#allocation28_spill] sm:$0xff] %v6800_v26  ;;  %8992 = vst [vmem:[#allocation29_spill] sm:$0xff] %v6802_v15  ;;  %4762 = vmatprep.subr.bf16.mxu1 %v6727_v33  ;;  %v8996_v15 = vld [vmem:[#allocation35_spill] sm:$0xff]  ;;  %v8998_v26 = vld [vmem:[#allocation37_spill] sm:$0xff]  ;;  %v6826_v55 = vsub.f32 %v1989_v62, %v2081_v35  ;;  %v6828_v56 = vsub.f32 %v1992_v42, %v2083_v51  ;;  %v6839_v36 = vsub.f32 %v1994_v8, %v2087_v40 }
 0x229   :  { %8993 = vst [vmem:[#allocation31_spill] sm:$0xff] %v6808_v1  ;;  %8994 = vst [vmem:[#allocation38_spill] sm:$0xff] %v6810_v20  ;;  %v8997_v33 = vand.u32 4294901760, %v8996_v15  ;;  %v8999_v34 = vand.u32 4294901760, %v8998_v26  ;;  %v6824_v22 = vpack.c.bf16 %v9002_v63, %v9000_v9  ;;  %v9005_v26 = vand.u32 4294901760, %v8861_v0  ;;  %v2002_v42 = vld [vmem:[#allocation8 + $0xd8] sm:$0xff]  ;;  %4888 = vmatpush1.bf16.msra.mxu0 %v6795_v5 }
 0x22a   :  { %8995 = vst [vmem:[#allocation44_spill] sm:$0xff] %v6812_v28  ;;  %9003 = vst [vmem:[#allocation45_spill] sm:$0xff] %v6826_v55  ;;  %v6830_v28 = vld [vmem:[#allocation8 + $0xc8] sm:$0xff]  ;;  %v6842_v9 = vsub.f32 %v6789_v10, %v2085_v30  ;;  %v6844_v62 = vsub.f32 %v1993_v53, %v2089_v16  ;;  %v6846_v63 = vld [vmem:[#allocation8 + $0xc0] sm:$0xff]  ;;  %v9011_v0 = vand.u32 4294901760, %v8903_v2  ;;  %v2091_v8 = vand.u32 4294901760, %v1996_v61  ;;  %4890 = vmatprep.subr.bf16.mxu0 %v6808_v1 }
 0x22b   :  { %v6818_v6 = vpack.c.bf16 %v8999_v34, %v8997_v33  ;;  %9004 = vst [vmem:[#allocation46_spill] sm:$0xff] %v6828_v56  ;;  %4764 = vmatpush1.bf16.msra.mxu1 %v6733_v59  ;;  %v9006_v34 = vand.u32 4294901760, %v8862_v23  ;;  %9007 = vst [vmem:[#allocation49_spill] sm:$0xff] %v6839_v36  ;;  %v9010_v59 = vand.u32 4294901760, %v8902_v49  ;;  %v6856_v23 = vpack.c.bf16 %v2081_v35, %v2077_v12  ;;  %v6858_v33 = vld [vmem:[#allocation8 + $0xd0] sm:$0xff]  ;;  %v6873_v5 = vld [vmem:[#allocation8 + $0xe0] sm:$0xff] }
 0x22c   :  { %9008 = vst [vmem:[#allocation50_spill] sm:$0xff] %v6842_v9  ;;  %9009 = vst [vmem:[#allocation51_spill] sm:$0xff] %v6844_v62  ;;  %4766 = vmatprep.subr.bf16.mxu1 %v6739_v11  ;;  %v2095_v10 = vand.u32 4294901760, %v1998_v13  ;;  %v6861_v53 = vpack.c.bf16 %v2087_v40, %v2083_v51  ;;  %v2097_v11 = vand.u32 4294901760, %v1997_v21  ;;  %v2099_v49 = vand.u32 4294901760, %v6830_v28 }
 0x22d   :  { %v6837_v15 = vpack.c.bf16 %v9006_v34, %v9005_v26  ;;  %v6853_v54 = vpack.c.bf16 %v9011_v0, %v9010_v59  ;;  %9012 = vst [vmem:[#allocation52_spill] sm:$0xff] %v6856_v23  ;;  %v2093_v26 = vand.u32 4294901760, %v1995_v41  ;;  %v6864_v34 = vld [vmem:[#allocation8 + $0xe8] sm:$0xff]  ;;  %v6866_v2 = vsub.f32 %v1996_v61, %v2091_v8  ;;  %v6871_v0 = vld [vmem:[#allocation8 + $0xf8] sm:$0xff]  ;;  %4892 = vmatpush1.bf16.msra.mxu0 %v6856_v23 }
 0x22e   :  { %9013 = vst [vmem:[#allocation81_spill] sm:$0xff] %v6861_v53  ;;  %v6868_v59 = vsub.f32 %v1998_v13, %v2095_v10  ;;  %v2103_v12 = vand.u32 4294901760, %v2002_v42  ;;  %v2101_v35 = vand.u32 4294901760, %v6846_v63  ;;  %v6878_v40 = vsub.f32 %v1997_v21, %v2097_v11  ;;  %v6884_v13 = vld [vmem:[#allocation8 + $0xf0] sm:$0xff]  ;;  %v6898_v21 = vld [vmem:[#allocation8 + $0x118] sm:$0xff]  ;;  %4894 = vmatprep.subr.bf16.mxu0 %v6861_v53 }
 0x22f   :  { %9014 = vst [vmem:[#allocation96_spill] sm:$0xff] %v6866_v2  ;;  %4768 = vmatpush1.bf16.msra.mxu1 %v6745_v14  ;;  %v6876_v51 = vsub.f32 %v1995_v41, %v2093_v26  ;;  %v6881_v1 = vsub.f32 %v6830_v28, %v2099_v49  ;;  %v2105_v61 = vand.u32 4294901760, %v6858_v33  ;;  %v6890_v2 = vpack.c.bf16 %v2089_v16, %v2085_v30  ;;  %v6936_v53 = vld [vmem:[#allocation8 + $0x130] sm:$0xff] }
 0x230   :  { %9015 = vst [vmem:[#allocation30_spill] sm:$0xff] %v6868_v59  ;;  %9017 = vst [vmem:[#allocation33_spill] sm:$0xff] %v6878_v40  ;;  %v6886_v59 = vld [vmem:[#allocation8 + $0x108] sm:$0xff]  ;;  %4770 = vmatprep.subr.bf16.mxu1 %v6752_v52  ;;  %v6892_v14 = vsub.f32 %v2002_v42, %v2103_v12  ;;  %v6895_v41 = vsub.f32 %v6846_v63, %v2101_v35  ;;  %v2107_v28 = vand.u32 4294901760, %v6864_v34  ;;  %v2111_v30 = vand.u32 4294901760, %v6871_v0  ;;  %v6910_v42 = vld [vmem:[#allocation8 + $0x110] sm:$0xff] }
 0x231   :  { %9016 = vst [vmem:[#allocation32_spill] sm:$0xff] %v6876_v51  ;;  %9018 = vst [vmem:[#allocation34_spill] sm:$0xff] %v6881_v1  ;;  %v6900_v1 = vld [vmem:[#allocation8 + $0x100] sm:$0xff]  ;;  %v6903_v40 = vpack.c.bf16 %v2095_v10, %v2091_v8  ;;  %v6906_v52 = vsub.f32 %v6858_v33, %v2105_v61  ;;  %v8499_v16 = vand.u32 4294901760, %v6873_v5  ;;  %v6912_v63 = vpack.c.bf16 %v2097_v11, %v2093_v26  ;;  %v6919_v8 = vld [vmem:[#allocation8 + $0x128] sm:$0xff] }
 0x232   :  { %9019 = vst [vmem:[#allocation35_spill] sm:$0xff] %v6890_v2  ;;  %9020 = vst [vmem:[#allocation37_spill] sm:$0xff] %v6892_v14  ;;  %v6915_v23 = vsub.f32 %v6864_v34, %v2107_v28  ;;  %v6921_v10 = vld [vmem:[#allocation8 + $0x138] sm:$0xff]  ;;  %v6925_v33 = vsub.f32 %v6871_v0, %v2111_v30  ;;  %v2119_v11 = vand.u32 4294901760, %v6898_v21  ;;  %4896 = vmatpush1.bf16.msra.mxu0 %v6890_v2  ;;  %v2121_v34 = vand.u32 4294901760, %v6910_v42  ;;  %v2015_v14 = vld [vmem:[#allocation8 + $0x140] sm:$0xff] }
 0x233   :  { %9021 = vst [vmem:[#allocation39_spill] sm:$0xff] %v6895_v41  ;;  %9022 = vst [vmem:[#allocation98_spill] sm:$0xff] %v6903_v40  ;;  %v2113_v41 = vand.u32 4294901760, %v6884_v13  ;;  %4772 = vmatpush1.bf16.msra.mxu1 %v6758_v29  ;;  %v6930_v26 = vsub.f32 %v6873_v5, %v8499_v16  ;;  %v6940_v29 = vpack.c.bf16 %v2103_v12, %v2099_v49  ;;  %v9030_v16 = vand.u32 4294901760, %v6886_v59 }
 0x234   :  { %9023 = vst [vmem:[#allocation99_spill] sm:$0xff] %v6906_v52  ;;  %9024 = vst [vmem:[#allocation100_spill] sm:$0xff] %v6912_v63  ;;  %4774 = vmatprep.subr.bf16.mxu1 %v6818_v6  ;;  %4898 = vmatprep.subr.bf16.mxu0 %v6903_v40  ;;  %v6955_v6 = vsub.f32 %v6898_v21, %v2119_v11  ;;  %v9033_v49 = vand.u32 4294901760, %v6900_v1  ;;  %v2127_v2 = vand.u32 4294901760, %v6921_v10 }
 0x235   :  { %9025 = vst [vmem:[#allocation101_spill] sm:$0xff] %v6915_v23  ;;  %9026 = vst [vmem:[#allocation102_spill] sm:$0xff] %v6925_v33  ;;  %v6934_v23 = vld [vmem:[#allocation8 + $0x120] sm:$0xff]  ;;  %v6943_v0 = vsub.f32 %v6884_v13, %v2113_v41  ;;  %v6951_v33 = vld [vmem:[#allocation8 + $0x148] sm:$0xff]  ;;  %v2123_v13 = vand.u32 4294901760, %v6919_v8  ;;  %v6969_v40 = vsub.f32 %v6910_v42, %v2121_v34  ;;  %v6974_v51 = vpack.c.bf16 %v2105_v61, %v2101_v35 }
 0x236   :  { %9027 = vst [vmem:[#allocation103_spill] sm:$0xff] %v6930_v26  ;;  %9028 = vst [vmem:[#allocation104_spill] sm:$0xff] %v6940_v29  ;;  %v6948_v26 = vsub.f32 %v6886_v59, %v9030_v16  ;;  %v6960_v12 = vsub.f32 %v6900_v1, %v9033_v49  ;;  %v2018_v16 = vld [vmem:[#allocation8 + $0x158] sm:$0xff]  ;;  %v2125_v21 = vand.u32 4294901760, %v6934_v23  ;;  %v2017_v49 = vld [vmem:[#allocation8 + $0x150] sm:$0xff]  ;;  %4900 = vmatpush1.bf16.msra.mxu0 %v6912_v63  ;;  %v9045_v63 = vand.u32 4294901760, %v8905_v48 }
 0x237   :  { %9029 = vst [vmem:[#allocation105_spill] sm:$0xff] %v6943_v0  ;;  %9032 = vst [vmem:[#allocation107_spill] sm:$0xff] %v6955_v6  ;;  %v9036_v0 = vand.u32 4294901760, %v8866_v18  ;;  %v2129_v6 = vand.u32 4294901760, %v6936_v53  ;;  %4776 = vmatpush1.bf16.msra.mxu1 %v6824_v22  ;;  %v6977_v62 = vsub.f32 %v6919_v8, %v2123_v13  ;;  %v6980_v18 = vsub.f32 %v6921_v10, %v2127_v2  ;;  %v2022_v42 = vld [vmem:[#allocation8 + $0x178] sm:$0xff] }
 0x238   :  { %9031 = vst [vmem:[#allocation106_spill] sm:$0xff] %v6948_v26  ;;  %9034 = vst [vmem:[#allocation108_spill] sm:$0xff] %v6960_v12  ;;  %v9035_v26 = vand.u32 4294901760, %v8904_v50  ;;  %v2020_v12 = vld [vmem:[#allocation8 + $0x168] sm:$0xff]  ;;  %v2131_v50 = vand.u32 4294901760, %v6951_v33  ;;  %4778 = vmatprep.subr.bf16.mxu1 %v6837_v15  ;;  %v6988_v22 = vsub.f32 %v6934_v23, %v2125_v21  ;;  %v2135_v61 = vand.u32 4294901760, %v2018_v16  ;;  %4902 = vmatprep.subr.bf16.mxu0 %v6940_v29 }
 0x239   :  { %9037 = vst [vmem:[#allocation109_spill] sm:$0xff] %v6969_v40  ;;  %9038 = vst [vmem:[#allocation110_spill] sm:$0xff] %v6974_v51  ;;  %v6991_v35 = vsub.f32 %v6936_v53, %v2129_v6  ;;  %v2133_v10 = vand.u32 4294901760, %v2015_v14  ;;  %v2021_v15 = vld [vmem:[#allocation8 + $0x170] sm:$0xff]  ;;  %v9047_v29 = vand.u32 4294901760, %v8907_v7 }
 0x23a   :  { %v4781_v52 = vpack.c.bf16 %v9036_v0, %v9035_v26  ;;  %9039 = vst [vmem:[#allocation111_spill] sm:$0xff] %v6977_v62  ;;  %9040 = vst [vmem:[#allocation112_spill] sm:$0xff] %v6980_v18  ;;  %v2019_v26 = vld [vmem:[#allocation8 + $0x160] sm:$0xff]  ;;  %v6985_v0 = vpack.c.bf16 %v2111_v30, %v2107_v28  ;;  %v6995_v8 = vsub.f32 %v6951_v33, %v2131_v50  ;;  %v2137_v18 = vand.u32 4294901760, %v2017_v49 }
 0x23b   :  { %9042 = vst [vmem:[#allocation114_spill] sm:$0xff] %v6988_v22  ;;  %9043 = vst [vmem:[#allocation115_spill] sm:$0xff] %v6991_v35  ;;  %v2139_v62 = vand.u32 4294901760, %v2020_v12  ;;  %v9046_v28 = vand.u32 4294901760, %v8906_v4  ;;  %v7001_v23 = vsub.f32 %v2018_v16, %v2135_v61  ;;  %v2143_v22 = vand.u32 4294901760, %v2022_v42  ;;  %4780 = vmatpush1.bf16.msra.mxu1 %v6853_v54  ;;  %4904 = vmatpush1.bf16.msra.mxu0 %v6974_v51 }
 0x23c   :  { %9041 = vst [vmem:[#allocation113_spill] sm:$0xff] %v6985_v0  ;;  %9044 = vst [vmem:[#allocation116_spill] sm:$0xff] %v6995_v8  ;;  %v2141_v53 = vand.u32 4294901760, %v2019_v26  ;;  %v9048_v33 = vand.u32 4294901760, %v8908_v32  ;;  %v7008_v35 = vsub.f32 %v2015_v14, %v2133_v10  ;;  %v7010_v40 = vsub.f32 %v2017_v49, %v2137_v18  ;;  %4782 = vmatprep.subr.bf16.mxu1 %v4781_v52 }
 0x23d   :  { %v4783_v30 = vpack.c.bf16 %v9046_v28, %v9045_v63  ;;  %v7012_v9 = vsub.f32 %v2020_v12, %v2139_v62  ;;  %v9049_v4 = vand.u32 4294901760, %v6873_v5  ;;  %v7019_v63 = vsub.f32 %v2022_v42, %v2143_v22  ;;  %4906 = vmatprep.subr.bf16.mxu0 %v6985_v0  ;;  %v9167_v0 = vld [vmem:[#allocation44_spill] sm:$0xff] }
 0x23e   :  { %v4785_v8 = vpack.c.bf16 %v9048_v33, %v9047_v29  ;;  %v2145_v54 = vand.u32 4294901760, %v2021_v15  ;;  %v7021_v7 = vsub.f32 %v2019_v26, %v2141_v53  ;;  %v9051_v32 = vand.u32 4294901760, %v6886_v59 }
 0x23f   :  { %v7017_v48 = vpack.c.bf16 %v2113_v41, %v9049_v4  ;;  %4784 = vmatpush1.bf16.msra.mxu1 %v4783_v30  ;;  %v9053_v52 = vand.u32 4294901760, %v8878_v27  ;;  %v9054_v5 = vand.u32 4294901760, %v6151_v60  ;;  %v9055_v12 = vand.u32 4294901760, %v6153_v45  ;;  %v9061_v27 = vld [vmem:[#allocation56_spill] sm:$0xff]  ;;  %v9082_v30 = vld [vmem:[#allocation83_spill] sm:$0xff]  ;;  %v9086_v4 = vld [vmem:[#allocation85_spill] sm:$0xff] }
 0x240   :  { %v7026_v14 = vpack.c.bf16 %v2119_v11, %v9051_v32  ;;  %v7028_v29 = vsub.f32 %v2021_v15, %v2145_v54  ;;  %4786 = vmatprep.subr.bf16.mxu1 %v4785_v8  ;;  %v9056_v16 = vand.u32 4294901760, %v6155_v46  ;;  %v9057_v59 = vand.u32 4294901760, %v6900_v1 }
 0x241   :  { %9050 = vst [vmem:[#allocation117_spill] sm:$0xff] %v7017_v48  ;;  %v4787_v41 = vpack.c.bf16 %v9054_v5, %v9053_v52  ;;  %4908 = vmatpush1.bf16.msra.mxu0 %v7017_v48  ;;  %v7044_v42 = vpack.c.bf16 %v2127_v2, %v2123_v13  ;;  %v9060_v60 = vand.u32 4294901760, %v6157_v19  ;;  %v9062_v26 = vand.u32 4294901760, %v9061_v27  ;;  %v9088_v52 = vld [vmem:[#allocation87_spill] sm:$0xff]  ;;  %v9090_v5 = vld [vmem:[#allocation88_spill] sm:$0xff] }
 0x242   :  { %9052 = vst [vmem:[#allocation118_spill] sm:$0xff] %v7026_v14  ;;  %v4789_v49 = vpack.c.bf16 %v9056_v16, %v9055_v12  ;;  %v7041_v11 = vpack.c.bf16 %v2121_v34, %v9057_v59  ;;  %4910 = vmatprep.subr.bf16.mxu0 %v7026_v14  ;;  %v9063_v45 = vand.u32 4294901760, %v6242_v44  ;;  %v9064_v46 = vand.u32 4294901760, %v6244_v57  ;;  %v9092_v16 = vld [vmem:[#allocation89_spill] sm:$0xff]  ;;  %v9096_v27 = vld [vmem:[#allocation24_spill] sm:$0xff] }
 0x243   :  { %9059 = vst [vmem:[#allocation120_spill] sm:$0xff] %v7044_v42  ;;  %4788 = vmatpush1.bf16.msra.mxu1 %v4787_v41  ;;  %v4791_v8 = vpack.c.bf16 %v9062_v26, %v9060_v60  ;;  %v7055_v1 = vpack.c.bf16 %v2129_v6, %v2125_v21  ;;  %v7058_v2 = vpack.c.bf16 %v2135_v61, %v2131_v50  ;;  %v9067_v19 = vand.u32 4294901760, %v6248_v17  ;;  %v9097_v26 = vld [vmem:[#allocation94_spill] sm:$0xff] }
 0x244   :  { %9058 = vst [vmem:[#allocation119_spill] sm:$0xff] %v7041_v11  ;;  %4790 = vmatprep.subr.bf16.mxu1 %v4789_v49  ;;  %v4793_v15 = vpack.c.bf16 %v9064_v46, %v9063_v45  ;;  %v9068_v34 = vand.u32 4294901760, %v8880_v24  ;;  %v9069_v44 = vand.u32 4294901760, %v6273_v25  ;;  %v9070_v57 = vand.u32 4294901760, %v6275_v38  ;;  %v9094_v49 = vld [vmem:[#allocation91_spill] sm:$0xff]  ;;  %v9100_v46 = vld [vmem:[#allocation40_spill] sm:$0xff] }
 0x245   :  { %4912 = vmatpush1.bf16.msra.mxu0 %v7041_v11  ;;  %9065 = vst [vmem:[#allocation56_spill] sm:$0xff] %v7055_v1  ;;  %9066 = vst [vmem:[#allocation121_spill] sm:$0xff] %v7058_v2  ;;  %v7069_v6 = vpack.c.bf16 %v2137_v18, %v2133_v10  ;;  %v7072_v21 = vpack.c.bf16 %v2143_v22, %v2139_v62  ;;  %v9073_v17 = vand.u32 4294901760, %v6277_v37  ;;  %v9074_v24 = vand.u32 4294901760, %v6279_v58  ;;  %v9079_v22 = vld [vmem:[#allocation82_spill] sm:$0xff]  ;;  %v9099_v45 = vld [vmem:[#allocation95_spill] sm:$0xff] }
 0x246   :  { %4914 = vmatprep.subr.bf16.mxu0 %v7044_v42  ;;  %v4795_v13 = vpack.c.bf16 %v9068_v34, %v9067_v19  ;;  %v4797_v28 = vpack.c.bf16 %v9070_v57, %v9069_v44  ;;  %v9075_v25 = vand.u32 4294901760, %v8909_v47  ;;  %v9076_v38 = vand.u32 4294901760, %v6283_v31  ;;  %v9084_v31 = vld [vmem:[#allocation84_spill] sm:$0xff]  ;;  %v9102_v19 = vld [vmem:[#allocation47_spill] sm:$0xff]  ;;  %v9103_v34 = vld [vmem:[#allocation53_spill] sm:$0xff] }
 0x247   :  { %4792 = vmatpush1.bf16.msra.mxu1 %v4791_v8  ;;  %9071 = vst [vmem:[#allocation122_spill] sm:$0xff] %v7069_v6  ;;  %9072 = vst [vmem:[#allocation123_spill] sm:$0xff] %v7072_v21  ;;  %v4799_v50 = vpack.c.bf16 %v9074_v24, %v9073_v17  ;;  %v7083_v18 = vpack.c.bf16 %v2145_v54, %v2141_v53  ;;  %v9078_v62 = vand.u32 4294901760, %v6285_v39  ;;  %v9080_v37 = vand.u32 4294901760, %v9079_v22  ;;  %v9098_v8 = vld [vmem:[#allocation36_spill] sm:$0xff]  ;;  %v9105_v44 = vld [vmem:[#allocation57_spill] sm:$0xff] }
 0x248   :  { %4794 = vmatprep.subr.bf16.mxu1 %v4793_v15  ;;  %v4801_v61 = vpack.c.bf16 %v9076_v38, %v9075_v25  ;;  %v9081_v58 = vand.u32 4294901760, %v6290_v3  ;;  %v9083_v47 = vand.u32 4294901760, %v9082_v30  ;;  %v9085_v53 = vand.u32 4294901760, %v9084_v31  ;;  %v9101_v15 = vld [vmem:[#allocation43_spill] sm:$0xff]  ;;  %v9106_v57 = vld [vmem:[#allocation58_spill] sm:$0xff]  ;;  %v9108_v17 = vld [vmem:[#allocation60_spill] sm:$0xff] }
 0x249   :  { %4916 = vmatpush1.bf16.msra.mxu0 %v7055_v1  ;;  %9077 = vst [vmem:[#allocation124_spill] sm:$0xff] %v7083_v18  ;;  %v4803_v10 = vpack.c.bf16 %v9080_v37, %v9078_v62  ;;  %v9087_v54 = vand.u32 4294901760, %v9086_v4  ;;  %v9089_v39 = vand.u32 4294901760, %v9088_v52  ;;  %v9091_v41 = vand.u32 4294901760, %v9090_v5  ;;  %v9109_v24 = vld [vmem:[#allocation61_spill] sm:$0xff]  ;;  %v9111_v25 = vld [vmem:[#allocation63_spill] sm:$0xff] }
 0x24a   :  { %4918 = vmatprep.subr.bf16.mxu0 %v7058_v2  ;;  %v4805_v33 = vpack.c.bf16 %v9083_v47, %v9081_v58  ;;  %v9093_v3 = vand.u32 4294901760, %v9092_v16  ;;  %v9095_v59 = vand.u32 4294901760, %v9094_v49  ;;  %v9112_v38 = vld [vmem:[#allocation64_spill] sm:$0xff]  ;;  %v9114_v62 = vld [vmem:[#allocation66_spill] sm:$0xff]  ;;  %v9115_v22 = vld [vmem:[#allocation67_spill] sm:$0xff] }
 0x24b   :  { %4796 = vmatpush1.bf16.msra.mxu1 %v4795_v13  ;;  %v4807_v32 = vpack.c.bf16 %v9087_v54, %v9085_v53  ;;  %v4809_v12 = vpack.c.bf16 %v9091_v41, %v9089_v39  ;;  %v9104_v13 = vld [vmem:[#allocation55_spill] sm:$0xff]  ;;  %v9116_v37 = vld [vmem:[#allocation68_spill] sm:$0xff]  ;;  %v9118_v58 = vld [vmem:[#allocation70_spill] sm:$0xff] }
 0x24c   :  { %4798 = vmatprep.subr.bf16.mxu1 %v4797_v28  ;;  %v4811_v60 = vpack.c.bf16 %v9095_v59, %v9093_v3  ;;  %v9107_v28 = vld [vmem:[#allocation59_spill] sm:$0xff]  ;;  %v9120_v47 = vld [vmem:[#allocation72_spill] sm:$0xff]  ;;  %v9124_v4 = vld [vmem:[#allocation77_spill] sm:$0xff] }
 0x24d   :  { %4920 = vmatpush1.bf16.msra.mxu0 %v7069_v6  ;;  %v9119_v30 = vld [vmem:[#allocation71_spill] sm:$0xff]  ;;  %v9123_v53 = vld [vmem:[#allocation76_spill] sm:$0xff]  ;;  %v9125_v54 = vld [vmem:[#allocation78_spill] sm:$0xff] }
 0x24e   :  { %4922 = vmatprep.subr.bf16.mxu0 %v7072_v21  ;;  %v9122_v31 = vld [vmem:[#allocation75_spill] sm:$0xff]  ;;  %v9127_v52 = vld [vmem:[#allocation80_spill] sm:$0xff]  ;;  %v9128_v39 = vld [vmem:[#allocation86_spill] sm:$0xff] }
 0x24f   :  { %4800 = vmatpush1.bf16.msra.mxu1 %v4799_v50  ;;  %v9110_v50 = vld [vmem:[#allocation62_spill] sm:$0xff]  ;;  %v2024_v41 = vld [vmem:[#allocation8 + $0x188] sm:$0xff]  ;;  %v2023_v49 = vld [vmem:[#allocation8 + $0x180] sm:$0xff] }
 0x250   :  { %4802 = vmatprep.subr.bf16.mxu1 %v4801_v61  ;;  %v9113_v61 = vld [vmem:[#allocation65_spill] sm:$0xff]  ;;  %v9129_v5 = vld [vmem:[#allocation90_spill] sm:$0xff]  ;;  %v2147_v16 = vand.u32 4294901760, %v2024_v41 }
 0x251   :  { %4924 = vmatpush1.bf16.msra.mxu0 %v7083_v18  ;;  %v2025_v59 = vld [vmem:[#allocation8 + $0x190] sm:$0xff] }
 0x253   :  { %4804 = vmatpush1.bf16.msra.mxu1 %v4803_v10  ;;  %v9117_v10 = vld [vmem:[#allocation69_spill] sm:$0xff] }
 0x254   :  { %4806 = vmatprep.subr.bf16.mxu1 %v4805_v33  ;;  %v9121_v33 = vld [vmem:[#allocation73_spill] sm:$0xff] }
 0x257   :  { %4808 = vmatpush1.bf16.msra.mxu1 %v4807_v32  ;;  %v9126_v32 = vld [vmem:[#allocation79_spill] sm:$0xff] }
 0x258   :  { %4810 = vmatprep.subr.bf16.mxu1 %v4809_v12  ;;  %v2026_v12 = vld [vmem:[#allocation8 + $0x198] sm:$0xff] }
 0x259   :  { %v2151_v3 = vand.u32 4294901760, %v2026_v12 }
 0x25b   :  { %4812 = vmatpush1.bf16.msra.mxu1 %v4811_v60  ;;  %v2149_v60 = vand.u32 4294901760, %v2023_v49  ;;  %v7172_v18 = vsub.f32 %v2026_v12, %v2151_v3 }
 0x25c   :  { %4814 = vmatprep.subr.bf16.mxu1 %v9096_v27  ;;  %v2153_v27 = vand.u32 4294901760, %v2025_v59 }
 0x25d   :  { %v7174_v21 = vsub.f32 %v2023_v49, %v2149_v60 }
 0x25e   :  { %1830 = vmatmul.mubr.f32.vlgmr.msra.gmra.mrb[2].mxu1 %v9097_v26  ;;  %v7176_v6 = vsub.f32 %v2025_v59, %v2153_v27 }
 0x25f   :  { %4816 = vmatpush1.bf16.msra.mxu1 %v9098_v8  ;;  %1965 = vmatprep.mubr.f32.mxu1 %v9099_v45  ;;  %v7142_v8 = vpack.c.bf16 %v2151_v3, %v2147_v16  ;;  %v7144_v45 = vpack.c.bf16 %v2153_v27, %v2149_v60 }
 0x260   :  { %4818 = vmatprep.subr.bf16.mxu1 %v9100_v46  ;;  %v2028_v46 = vld [vmem:[#allocation8 + $0x1a8] sm:$0xff] }
 0x261   :  { %9130 = vst [vmem:[#allocation82_spill] sm:$0xff] %v7142_v8  ;;  %9131 = vst [vmem:[#allocation83_spill] sm:$0xff] %v7144_v45  ;;  %4926 = vmatprep.subr.bf16.mxu0 %v7142_v8  ;;  %v7170_v8 = vsub.f32 %v2024_v41, %v2147_v16 }
 0x262   :  { %4928 = vmatpush1.bf16.msra.mxu0 %v7144_v45 }
 0x263   :  { %4820 = vmatpush1.bf16.msra.mxu1 %v9101_v15  ;;  %v2030_v15 = vld [vmem:[#allocation8 + $0x1b8] sm:$0xff] }
 0x264   :  { %4822 = vmatprep.subr.bf16.mxu1 %v9102_v19  ;;  %v2155_v19 = vand.u32 4294901760, %v2028_v46 }
 0x267   :  { %4824 = vmatpush1.bf16.msra.mxu1 %v9103_v34  ;;  %v2159_v34 = vand.u32 4294901760, %v2030_v15 }
 0x268   :  { %4826 = vmatprep.subr.bf16.mxu1 %v9104_v13  ;;  %v2027_v13 = vld [vmem:[#allocation8 + $0x1a0] sm:$0xff] }
 0x269   :  { %v7180_v2 = vsub.f32 %v2030_v15, %v2159_v34 }
 0x26b   :  { %4828 = vmatpush1.bf16.msra.mxu1 %v9105_v44  ;;  %v2157_v44 = vand.u32 4294901760, %v2027_v13 }
 0x26c   :  { %4830 = vmatprep.subr.bf16.mxu1 %v9106_v57 }
 0x26d   :  { %v7182_v1 = vsub.f32 %v2027_v13, %v2157_v44  ;;  %v9149_v13 = vld [vmem:[#allocation92_spill] sm:$0xff] }
 0x26f   :  { %4832 = vmatpush1.bf16.msra.mxu1 %v9107_v28  ;;  %v7148_v28 = vpack.c.bf16 %v2159_v34, %v2155_v19  ;;  %v677_v34 = vld [vmem:[%s8242_s4] sm:$0x3] }
 0x270   :  { %4834 = vmatprep.subr.bf16.mxu1 %v9108_v17 }
 0x271   :  { %9132 = vst [vmem:[#allocation84_spill] sm:$0xff] %v7148_v28  ;;  %4930 = vmatprep.subr.bf16.mxu0 %v7148_v28 }
 0x273   :  { %4836 = vmatpush1.bf16.msra.mxu1 %v9109_v24  ;;  %v2032_v24 = vld [vmem:[#allocation8 + $0x1c8] sm:$0xff] }
 0x274   :  { %4838 = vmatprep.subr.bf16.mxu1 %v9110_v50  ;;  %v2034_v50 = vld [vmem:[#allocation8 + $0x1d8] sm:$0xff] }
 0x277   :  { %4840 = vmatpush1.bf16.msra.mxu1 %v9111_v25  ;;  %v2163_v25 = vand.u32 4294901760, %v2032_v24 }
 0x278   :  { %4842 = vmatprep.subr.bf16.mxu1 %v9112_v38  ;;  %v2167_v38 = vand.u32 4294901760, %v2034_v50 }
 0x27a   :  { %v7189_v41 = vsub.f32 %v2034_v50, %v2167_v38 }
 0x27b   :  { %4844 = vmatpush1.bf16.msra.mxu1 %v9113_v61  ;;  %v2031_v61 = vld [vmem:[#allocation8 + $0x1c0] sm:$0xff] }
 0x27c   :  { %4846 = vmatprep.subr.bf16.mxu1 %v9114_v62  ;;  %v2033_v62 = vld [vmem:[#allocation8 + $0x1d0] sm:$0xff]  ;;  %9141 = vst [vmem:[#allocation94_spill] sm:$0xff] %v7189_v41 }
 0x27f   :  { %4848 = vmatpush1.bf16.msra.mxu1 %v9115_v22  ;;  %v2165_v22 = vand.u32 4294901760, %v2031_v61 }
 0x280   :  { %4850 = vmatprep.subr.bf16.mxu1 %v9116_v37  ;;  %v2169_v37 = vand.u32 4294901760, %v2033_v62 }
 0x281   :  { %v7191_v12 = vsub.f32 %v2031_v61, %v2165_v22 }
 0x282   :  { %v7193_v16 = vsub.f32 %v2033_v62, %v2169_v37  ;;  %v9153_v62 = vld [vmem:[#allocation17_spill] sm:$0xff] }
 0x283   :  { %4852 = vmatpush1.bf16.msra.mxu1 %v9117_v10  ;;  %v7154_v10 = vpack.c.bf16 %v2167_v38, %v2163_v25  ;;  %9142 = vst [vmem:[#allocation36_spill] sm:$0xff] %v7191_v12 }
 0x284   :  { %4854 = vmatprep.subr.bf16.mxu1 %v9118_v58  ;;  %v7156_v58 = vpack.c.bf16 %v2169_v37, %v2165_v22  ;;  %9143 = vst [vmem:[#allocation95_spill] sm:$0xff] %v7193_v16  ;;  %v8554_v22 = vand.u32 4294901760, %v9153_v62  ;;  %v9154_v37 = vld [vmem:[#allocation18_spill] sm:$0xff] }
 0x285   :  { %9134 = vst [vmem:[#allocation87_spill] sm:$0xff] %v7154_v10 }
 0x286   :  { %9135 = vst [vmem:[#allocation88_spill] sm:$0xff] %v7156_v58 }
 0x287   :  { %4856 = vmatpush1.bf16.msra.mxu1 %v9119_v30  ;;  %v2036_v30 = vld [vmem:[#allocation8 + $0x1e8] sm:$0xff] }
 0x288   :  { %4858 = vmatprep.subr.bf16.mxu1 %v9120_v47  ;;  %v2038_v47 = vld [vmem:[#allocation8 + $0x1f8] sm:$0xff] }
 0x28b   :  { %4860 = vmatpush1.bf16.msra.mxu1 %v9121_v33  ;;  %v2171_v33 = vand.u32 4294901760, %v2036_v30 }
 0x28c   :  { %4862 = vmatprep.subr.bf16.mxu1 %v9122_v31  ;;  %v2175_v31 = vand.u32 4294901760, %v2038_v47 }
 0x28d   :  { %v7195_v3 = vsub.f32 %v2036_v30, %v2171_v33 }
 0x28e   :  { %v7197_v49 = vsub.f32 %v2038_v47, %v2175_v31 }
 0x28f   :  { %4864 = vmatpush1.bf16.msra.mxu1 %v9123_v53  ;;  %v2035_v53 = vld [vmem:[#allocation8 + $0x1e0] sm:$0xff]  ;;  %9144 = vst [vmem:[#allocation40_spill] sm:$0xff] %v7195_v3 }
 0x290   :  { %4866 = vmatprep.subr.bf16.mxu1 %v9124_v4  ;;  %v2037_v4 = vld [vmem:[#allocation8 + $0x1f0] sm:$0xff]  ;;  %9145 = vst [vmem:[#allocation43_spill] sm:$0xff] %v7197_v49 }
 0x291   :  { %v2177_v28 = vand.u32 4294901760, %v2037_v4 }
 0x293   :  { %4868 = vmatpush1.bf16.msra.mxu1 %v9125_v54  ;;  %v9136_v54 = vld [vmem:[#allocation42_spill] sm:$0xff]  ;;  %v7203_v27 = vsub.f32 %v2037_v4, %v2177_v28 }
 0x294   :  { %4870 = vmatprep.subr.bf16.mxu1 %v9126_v32  ;;  %v8549_v32 = vand.u32 4294901760, %v9136_v54 }
 0x295   :  { %9148 = vst [vmem:[#allocation55_spill] sm:$0xff] %v7203_v27 }
 0x296   :  { %v2199_v45 = vsub.f32 %v9136_v54, %v8549_v32  ;;  %v7187_v32 = vsub.f32 %v2032_v24, %v2163_v25  ;;  %v9151_v24 = vld [vmem:[#allocation54_spill] sm:$0xff]  ;;  %v9152_v25 = vld [vmem:[#allocation97_spill] sm:$0xff] }
 0x297   :  { %4872 = vmatpush1.bf16.msra.mxu1 %v9127_v52  ;;  %v9137_v52 = vld [vmem:[#allocation48_spill] sm:$0xff]  ;;  %v8551_v50 = vand.u32 4294901760, %v9151_v24  ;;  %v8550_v38 = vand.u32 4294901760, %v9152_v25 }
 0x298   :  { %4874 = vmatprep.subr.bf16.mxu1 %v9128_v39  ;;  %v8552_v39 = vand.u32 4294901760, %v9137_v52  ;;  %9140 = vst [vmem:[#allocation24_spill] sm:$0xff] %v7187_v32 }
 0x299   :  { %v2205_v47 = vsub.f32 %v9151_v24, %v8551_v50  ;;  %v9160_v50 = vld [vmem:[#allocation25_spill] sm:$0xff] }
 0x29b   :  { %4876 = vmatpush1.bf16.msra.mxu1 %v9129_v5  ;;  %v2173_v5 = vand.u32 4294901760, %v2035_v53 }
 0x29d   :  { %v7199_v59 = vpack.c.bf16 %v2177_v28, %v2173_v5  ;;  %v7201_v60 = vsub.f32 %v2035_v53, %v2173_v5  ;;  %v8557_v53 = vand.u32 4294901760, %v6783_v43  ;;  %v9155_v5 = vld [vmem:[#allocation21_spill] sm:$0xff] }
 0x29e   :  { %1967 = vmatmul.mubr.f32.vlgmr.msra.gmra.mrb[2].mxu1 %v9097_v26  ;;  %v2029_v26 = vld [vmem:[#allocation8 + $0x1b0] sm:$0xff] }
 0x29f   :  { %v2161_v57 = vand.u32 4294901760, %v2029_v26  ;;  %9146 = vst [vmem:[#allocation47_spill] sm:$0xff] %v7199_v59  ;;  %9147 = vst [vmem:[#allocation53_spill] sm:$0xff] %v7201_v60 }
 0x2a1   :  { %v7150_v17 = vpack.c.bf16 %v2161_v57, %v2157_v44  ;;  %v7184_v42 = vsub.f32 %v2029_v26, %v2161_v57  ;;  %v682_v26 = vrot.slane %v677_v34, %v9149_v13  ;;  %v9150_v44 = vld [vmem:[#allocation93_spill] sm:$0xff] }
 0x2a2   :  { %v686_v57 = vrot.slane %v677_v34, %v9150_v44 }
 0x2a3   :  { %9133 = vst [vmem:[#allocation85_spill] sm:$0xff] %v7150_v17  ;;  %4932 = vmatpush1.bf16.msra.mxu0 %v7150_v17  ;;  %v7162_v17 = vpack.c.bf16 %v2175_v31, %v2171_v33  ;;  %9139 = vst [vmem:[#allocation91_spill] sm:$0xff] %v7184_v42  ;;  %v2217_v33 = vsub.f32 %v9152_v25, %v8550_v38  ;;  %v2229_v38 = vsub.f32 %v6783_v43, %v8557_v53  ;;  %v9164_v53 = vld [vmem:[#allocation28_spill] sm:$0xff] }
 0x2a4   :  { %4934 = vmatprep.subr.bf16.mxu0 %v7154_v10  ;;  %v2211_v10 = vsub.f32 %v9137_v52, %v8552_v39 }
 0x2a5   :  { %9138 = vst [vmem:[#allocation89_spill] sm:$0xff] %v7162_v17 }
 0x2a6   :  { %v2212_v15 = vand.u32 4294901760, %v2211_v10  ;;  %v8553_v10 = vand.u32 4294901760, %v9154_v37 }
 0x2a7   :  { %4936 = vmatpush1.bf16.msra.mxu0 %v7156_v58  ;;  %v7178_v58 = vsub.f32 %v2028_v46, %v2155_v19  ;;  %v2200_v46 = vand.u32 4294901760, %v2199_v45 }
 0x2a8   :  { %4938 = vmatprep.subr.bf16.mxu0 %v7162_v17 }
 0x2a9   :  { %v4941_v19 = vpack.c.bf16 %v2212_v15, %v2200_v46  ;;  %v8562_v46 = vand.u32 4294901760, %v9155_v5  ;;  %v9156_v15 = vld [vmem:[#allocation22_spill] sm:$0xff] }
 0x2ab   :  { %4940 = vmatpush1.bf16.msra.mxu0 %v7199_v59 }
 0x2ac   :  { %4942 = vmatprep.subr.bf16.mxu0 %v4941_v19 }
 0x371   :  { %v1968_v28 = vpop.f32.mrb[2].mxu1 }
 0x372   :  { %v5457_v61 = vadd.f32 %v1968_v28, %v682_v26  ;;  %v1970_v45 = vpop.f32.mrb[3].mxu1  ;;  %v2223_v26 = vsub.f32 %v9153_v62, %v8554_v22  ;;  %v9162_v22 = vand.u32 4294901760, %v9156_v15 }
 0x373   :  { %v5458_v30 = vadd.f32 %v1970_v45, %v686_v57  ;;  %v2235_v57 = vsub.f32 %v9154_v37, %v8553_v10  ;;  %v2218_v45 = vand.u32 4294901760, %v2217_v33  ;;  %v2241_v10 = vsub.f32 %v9155_v5, %v8562_v46  ;;  %v9163_v33 = vld [vmem:[#allocation27_spill] sm:$0xff]  ;;  %v9175_v5 = vld [vmem:[#allocation30_spill] sm:$0xff] }
 0x374   :  { %v1973_v31 = vmax.f32 %v5457_v61, 0.0  ;;  %v2206_v61 = vand.u32 4294901760, %v2205_v47  ;;  %v2247_v47 = vsub.f32 %v9156_v15, %v9162_v22  ;;  %v2224_v13 = vand.u32 4294901760, %v2223_v26  ;;  %v9166_v22 = vld [vmem:[#allocation29_spill] sm:$0xff]  ;;  %v9173_v15 = vld [vmem:[#allocation51_spill] sm:$0xff] }
 0x375   :  { %v1974_v4 = vmax.f32 %v5458_v30, 0.0  ;;  %v2236_v59 = vand.u32 4294901760, %v2235_v57  ;;  %v9165_v46 = vand.u32 4294901760, %v9160_v50  ;;  %v2230_v57 = vand.u32 4294901760, %v2229_v38  ;;  %v9174_v38 = vld [vmem:[#allocation96_spill] sm:$0xff] }
 0x376   :  { %v7224_v34 = vand.u32 4294901760, %v1973_v31  ;;  %v2242_v17 = vand.u32 4294901760, %v2241_v10  ;;  %v2248_v51 = vand.u32 4294901760, %v2247_v47  ;;  %v9171_v47 = vand.u32 4294901760, %v6810_v20 }
 0x377   :  { %v7232_v28 = vand.u32 4294901760, %v1974_v4  ;;  %v2259_v14 = vsub.f32 %v9160_v50, %v9165_v46  ;;  %v9169_v46 = vand.u32 4294901760, %v9164_v53 }
 0x378   :  { %9157 = vst [vmem:[#allocation57_spill] sm:$0xff] %v7224_v34  ;;  %v7235_v30 = vsub.f32 %v1973_v31, %v7224_v34 }
 0x379   :  { %9158 = vst [vmem:[#allocation58_spill] sm:$0xff] %v7232_v28  ;;  %v7242_v19 = vsub.f32 %v1974_v4, %v7232_v28  ;;  %v4943_v4 = vpack.c.bf16 %v2218_v45, %v2206_v61  ;;  %v8582_v61 = vand.u32 4294901760, %v9167_v0  ;;  %v4945_v45 = vpack.c.bf16 %v2236_v59, %v2224_v13 }
 0x37a   :  { %9159 = vst [vmem:[#allocation59_spill] sm:$0xff] %v7235_v30  ;;  %v8571_v44 = vand.u32 4294901760, %v7235_v30  ;;  %v2265_v48 = vsub.f32 %v9164_v53, %v9169_v46  ;;  %v9170_v59 = vand.u32 4294901760, %v9166_v22  ;;  %v9172_v46 = vld [vmem:[#allocation50_spill] sm:$0xff]  ;;  %v8590_v53 = vand.u32 4294901760, %v9173_v15 }
 0x37b   :  { %9161 = vst [vmem:[#allocation60_spill] sm:$0xff] %v7242_v19  ;;  %v8576_v39 = vand.u32 4294901760, %v7242_v19 }
 0x37c   :  { %v2188_v11 = vsub.f32 %v7235_v30, %v8571_v44  ;;  %v9168_v44 = vand.u32 4294901760, %v9163_v33  ;;  %v2271_v13 = vsub.f32 %v9166_v22, %v9170_v59  ;;  %v9186_v22 = vld [vmem:[#allocation39_spill] sm:$0xff] }
 0x37d   :  { %v2182_v26 = vsub.f32 %v7242_v19, %v8576_v39  ;;  %v2260_v39 = vand.u32 4294901760, %v2259_v14  ;;  %v8606_v43 = vand.u32 4294901760, %v9186_v22 }
 0x37e   :  { %v2253_v30 = vsub.f32 %v9163_v33, %v9168_v44  ;;  %v2189_v10 = vand.u32 4294901760, %v2188_v11  ;;  %v2283_v44 = vsub.f32 %v6810_v20, %v9171_v47  ;;  %v4947_v11 = vpack.c.bf16 %v2242_v17, %v2230_v57 }
 0x37f   :  { %v2183_v50 = vand.u32 4294901760, %v2182_v26  ;;  %v2277_v26 = vsub.f32 %v9167_v0, %v8582_v61  ;;  %v2266_v47 = vand.u32 4294901760, %v2265_v48  ;;  %v9177_v61 = vand.u32 4294901760, %v6828_v56 }
 0x380   :  { %v2254_v14 = vand.u32 4294901760, %v2253_v30  ;;  %v4949_v30 = vpack.c.bf16 %v2260_v39, %v2248_v51  ;;  %v2272_v57 = vand.u32 4294901760, %v2271_v13  ;;  %v2284_v59 = vand.u32 4294901760, %v2283_v44  ;;  %v9182_v51 = vld [vmem:[#allocation32_spill] sm:$0xff]  ;;  %v9183_v13 = vld [vmem:[#allocation33_spill] sm:$0xff] }
 0x381   :  { %2184 = vmatprep.mubr.f32.mxu0 %v2183_v50  ;;  %v9176_v50 = vand.u32 4294901760, %v6826_v55  ;;  %v2295_v31 = vsub.f32 %v6828_v56, %v9177_v61  ;;  %v9179_v33 = vand.u32 4294901760, %v9172_v46  ;;  %v9181_v56 = vand.u32 4294901760, %v9175_v5 }
 0x382   :  { %2190 = vmatmul.mubr.f32.vlgmr.msra.gmra.mrb[2].mxu0 %v2189_v10  ;;  %v9178_v10 = vand.u32 4294901760, %v6839_v36  ;;  %v8604_v44 = vand.u32 4294901760, %v9183_v13 }
 0x383   :  { %4944 = vmatpush1.bf16.msra.mxu0 %v4943_v4  ;;  %2581 = vmatprep.mubr.f32.mxu0 %v7232_v28  ;;  %v2289_v20 = vsub.f32 %v6826_v55, %v9176_v50  ;;  %v2278_v4 = vand.u32 4294901760, %v2277_v26  ;;  %v2301_v48 = vsub.f32 %v9172_v46, %v9179_v33  ;;  %v2313_v50 = vsub.f32 %v9173_v15, %v8590_v53  ;;  %v9184_v53 = vld [vmem:[#allocation34_spill] sm:$0xff]  ;;  %v9185_v55 = vld [vmem:[#allocation37_spill] sm:$0xff] }
 0x384   :  { %v2307_v17 = vsub.f32 %v6839_v36, %v9178_v10  ;;  %4946 = vmatprep.subr.bf16.mxu0 %v4945_v45  ;;  %v9180_v28 = vand.u32 4294901760, %v9174_v38  ;;  %v2331_v45 = vsub.f32 %v9175_v5, %v9181_v56  ;;  %v4951_v26 = vpack.c.bf16 %v2266_v47, %v2254_v14  ;;  %v9187_v56 = vld [vmem:[#allocation99_spill] sm:$0xff] }
 0x385   :  { %v2290_v10 = vand.u32 4294901760, %v2289_v20  ;;  %v2296_v33 = vand.u32 4294901760, %v2295_v31  ;;  %v4953_v36 = vpack.c.bf16 %v2284_v59, %v2272_v57  ;;  %v8603_v15 = vand.u32 4294901760, %v9184_v53 }
 0x386   :  { %v2319_v61 = vsub.f32 %v9174_v38, %v9180_v28  ;;  %v2308_v46 = vand.u32 4294901760, %v2307_v17  ;;  %v8602_v0 = vand.u32 4294901760, %v9185_v55  ;;  %v2302_v28 = vand.u32 4294901760, %v2301_v48  ;;  %v9190_v48 = vld [vmem:[#allocation102_spill] sm:$0xff] }
 0x387   :  { %4948 = vmatpush1.bf16.msra.mxu0 %v4947_v11  ;;  %v2314_v38 = vand.u32 4294901760, %v2313_v50  ;;  %v8608_v5 = vand.u32 4294901760, %v9187_v56  ;;  %v2332_v19 = vand.u32 4294901760, %v2331_v45  ;;  %v9188_v11 = vand.u32 4294901760, %v9182_v51  ;;  %v9194_v50 = vld [vmem:[#allocation107_spill] sm:$0xff] }
 0x388   :  { %4950 = vmatprep.subr.bf16.mxu0 %v4949_v30  ;;  %v2320_v39 = vand.u32 4294901760, %v2319_v61  ;;  %v2337_v31 = vsub.f32 %v9183_v13, %v8604_v44  ;;  %v4955_v14 = vpack.c.bf16 %v2290_v10, %v2278_v4  ;;  %v4957_v59 = vpack.c.bf16 %v2308_v46, %v2296_v33  ;;  %v9189_v30 = vld [vmem:[#allocation101_spill] sm:$0xff]  ;;  %v9191_v10 = vld [vmem:[#allocation103_spill] sm:$0xff] }
 0x389   :  { %v2325_v20 = vsub.f32 %v9182_v51, %v9188_v11  ;;  %v2343_v47 = vsub.f32 %v9184_v53, %v8603_v15  ;;  %v2355_v17 = vsub.f32 %v9185_v55, %v8602_v0  ;;  %v2349_v61 = vsub.f32 %v9186_v22, %v8606_v43  ;;  %v9192_v11 = vld [vmem:[#allocation105_spill] sm:$0xff]  ;;  %v9193_v15 = vld [vmem:[#allocation106_spill] sm:$0xff]  ;;  %v9199_v33 = vld [vmem:[#allocation111_spill] sm:$0xff] }
 0x38a   :  { %v4959_v46 = vpack.c.bf16 %v2314_v38, %v2302_v28  ;;  %v4961_v4 = vpack.c.bf16 %v2332_v19, %v2320_v39  ;;  %v9195_v22 = vand.u32 4294901760, %v9189_v30  ;;  %v9196_v19 = vand.u32 4294901760, %v9190_v48 }
 0x38b   :  { %4952 = vmatpush1.bf16.msra.mxu0 %v4951_v26  ;;  %v2326_v45 = vand.u32 4294901760, %v2325_v20  ;;  %v2338_v26 = vand.u32 4294901760, %v2337_v31  ;;  %v2344_v55 = vand.u32 4294901760, %v2343_v47  ;;  %v2356_v43 = vand.u32 4294901760, %v2355_v17  ;;  %v9197_v20 = vld [vmem:[#allocation108_spill] sm:$0xff] }
 0x38c   :  { %4954 = vmatprep.subr.bf16.mxu0 %v4953_v36  ;;  %v2361_v36 = vsub.f32 %v9187_v56, %v8608_v5  ;;  %v2367_v5 = vsub.f32 %v9189_v30, %v9195_v22  ;;  %v2379_v38 = vsub.f32 %v9190_v48, %v9196_v19  ;;  %v2350_v39 = vand.u32 4294901760, %v2349_v61 }
 0x38d   :  { %v8613_v31 = vand.u32 4294901760, %v9197_v20  ;;  %v4963_v44 = vpack.c.bf16 %v2338_v26, %v2326_v45  ;;  %v9201_v17 = vand.u32 4294901760, %v9191_v10  ;;  %v9202_v30 = vand.u32 4294901760, %v9192_v11 }
 0x38e   :  { %v2362_v28 = vand.u32 4294901760, %v2361_v36  ;;  %v9203_v61 = vand.u32 4294901760, %v9193_v15  ;;  %v9204_v0 = vand.u32 4294901760, %v9194_v50  ;;  %v4965_v26 = vpack.c.bf16 %v2356_v43, %v2344_v55  ;;  %v9208_v43 = vld [vmem:[#allocation114_spill] sm:$0xff] }
 0x38f   :  { %4956 = vmatpush1.bf16.msra.mxu0 %v4955_v14  ;;  %v9198_v14 = vld [vmem:[#allocation109_spill] sm:$0xff]  ;;  %v2373_v22 = vsub.f32 %v9191_v10, %v9201_v17  ;;  %v2385_v19 = vsub.f32 %v9192_v11, %v9202_v30  ;;  %v2368_v47 = vand.u32 4294901760, %v2367_v5  ;;  %v2397_v17 = vsub.f32 %v9197_v20, %v8613_v31  ;;  %v9209_v5 = vld [vmem:[#allocation115_spill] sm:$0xff] }
 0x390   :  { %4958 = vmatprep.subr.bf16.mxu0 %v4957_v59  ;;  %v9200_v59 = vld [vmem:[#allocation112_spill] sm:$0xff]  ;;  %v2391_v36 = vsub.f32 %v9193_v15, %v9203_v61  ;;  %v2403_v45 = vsub.f32 %v9194_v50, %v9204_v0  ;;  %v4967_v57 = vpack.c.bf16 %v2362_v28, %v2350_v39  ;;  %v9205_v10 = vand.u32 4294901760, %v9198_v14 }
 0x391   :  { %v9206_v11 = vand.u32 4294901760, %v9199_v33  ;;  %v9207_v15 = vand.u32 4294901760, %v9200_v59  ;;  %v2386_v39 = vand.u32 4294901760, %v2385_v19  ;;  %v8620_v50 = vand.u32 4294901760, %v7001_v23 }
 0x392   :  { %v2409_v30 = vsub.f32 %v9198_v14, %v9205_v10  ;;  %v2392_v28 = vand.u32 4294901760, %v2391_v36  ;;  %v2404_v31 = vand.u32 4294901760, %v2403_v45  ;;  %v9210_v10 = vld [vmem:[#allocation116_spill] sm:$0xff]  ;;  %v8621_v48 = vand.u32 4294901760, %v7008_v35 }
 0x393   :  { %4960 = vmatpush1.bf16.msra.mxu0 %v4959_v46  ;;  %v2380_v46 = vand.u32 4294901760, %v2379_v38  ;;  %v2415_v61 = vsub.f32 %v9199_v33, %v9206_v11  ;;  %v2427_v0 = vsub.f32 %v9200_v59, %v9207_v15  ;;  %v2374_v38 = vand.u32 4294901760, %v2373_v22 }
 0x394   :  { %4962 = vmatprep.subr.bf16.mxu0 %v4961_v4  ;;  %v8633_v4 = vand.u32 4294901760, %v9209_v5  ;;  %v8632_v14 = vand.u32 4294901760, %v9210_v10  ;;  %v2398_v11 = vand.u32 4294901760, %v2397_v17  ;;  %v2410_v33 = vand.u32 4294901760, %v2409_v30 }
 0x395   :  { %v4969_v20 = vpack.c.bf16 %v2380_v46, %v2368_v47  ;;  %v8622_v15 = vand.u32 4294901760, %v7010_v40  ;;  %v2416_v55 = vand.u32 4294901760, %v2415_v61  ;;  %v2428_v59 = vand.u32 4294901760, %v2427_v0 }
 0x396   :  { %v2433_v47 = vsub.f32 %v9209_v5, %v8633_v4  ;;  %v4971_v19 = vpack.c.bf16 %v2386_v39, %v2374_v38  ;;  %v4973_v36 = vpack.c.bf16 %v2404_v31, %v2392_v28  ;;  %v2439_v45 = vsub.f32 %v9210_v10, %v8632_v14 }
 0x397   :  { %4964 = vmatpush1.bf16.msra.mxu0 %v4963_v44  ;;  %v9211_v44 = vand.u32 4294901760, %v9208_v43  ;;  %v8631_v46 = vand.u32 4294901760, %v7012_v9  ;;  %v8623_v17 = vand.u32 4294901760, %v7019_v63  ;;  %v2445_v30 = vsub.f32 %v7008_v35, %v8621_v48 }
 0x398   :  { %4966 = vmatprep.subr.bf16.mxu0 %v4965_v26  ;;  %v2451_v26 = vsub.f32 %v7001_v23, %v8620_v50  ;;  %v4977_v31 = vpack.c.bf16 %v2428_v59, %v2416_v55  ;;  %v2434_v0 = vand.u32 4294901760, %v2433_v47  ;;  %v8624_v38 = vand.u32 4294901760, %v7021_v7 }
 0x399   :  { %v2421_v22 = vsub.f32 %v9208_v43, %v9211_v44  ;;  %v8625_v39 = vand.u32 4294901760, %v7028_v29  ;;  %v8626_v28 = vand.u32 4294901760, %v7170_v8  ;;  %v8629_v44 = vand.u32 4294901760, %v7172_v18 }
 0x39a   :  { %v2440_v50 = vand.u32 4294901760, %v2439_v45  ;;  %v2452_v48 = vand.u32 4294901760, %v2451_v26  ;;  %v2446_v59 = vand.u32 4294901760, %v2445_v30  ;;  %v2469_v45 = vsub.f32 %v7021_v7, %v8624_v38 }
 0x39b   :  { %4968 = vmatpush1.bf16.msra.mxu0 %v4967_v57  ;;  %v2457_v57 = vsub.f32 %v7010_v40, %v8622_v15  ;;  %v2422_v61 = vand.u32 4294901760, %v2421_v22  ;;  %v2463_v15 = vsub.f32 %v7012_v9, %v8631_v46  ;;  %v8628_v22 = vand.u32 4294901760, %v7176_v6 }
 0x39c   :  { %4970 = vmatprep.subr.bf16.mxu0 %v4969_v20  ;;  %v4975_v20 = vpack.c.bf16 %v2410_v33, %v2398_v11  ;;  %v2475_v33 = vsub.f32 %v7019_v63, %v8623_v17  ;;  %v8627_v11 = vand.u32 4294901760, %v7174_v21  ;;  %v2481_v26 = vsub.f32 %v7028_v29, %v8625_v39 }
 0x39d   :  { %v2458_v55 = vand.u32 4294901760, %v2457_v57  ;;  %v4979_v47 = vpack.c.bf16 %v2434_v0, %v2422_v61  ;;  %v2487_v30 = vsub.f32 %v7170_v8, %v8626_v28  ;;  %v2499_v57 = vsub.f32 %v7172_v18, %v8629_v44 }
 0x39e   :  { %v4981_v61 = vpack.c.bf16 %v2452_v48, %v2440_v50  ;;  %v2464_v0 = vand.u32 4294901760, %v2463_v15  ;;  %v2493_v38 = vsub.f32 %v7174_v21, %v8627_v11  ;;  %v2505_v39 = vsub.f32 %v7176_v6, %v8628_v22 }
 0x39f   :  { %4972 = vmatpush1.bf16.msra.mxu0 %v4971_v19  ;;  %v8630_v19 = vand.u32 4294901760, %v7178_v58  ;;  %v4983_v17 = vpack.c.bf16 %v2458_v55, %v2446_v59  ;;  %v8644_v48 = vand.u32 4294901760, %v7182_v1  ;;  %v8643_v50 = vand.u32 4294901760, %v7184_v42 }
 0x3a0   :  { %4974 = vmatprep.subr.bf16.mxu0 %v4973_v36  ;;  %v8634_v36 = vand.u32 4294901760, %v7180_v2  ;;  %v2470_v15 = vand.u32 4294901760, %v2469_v45  ;;  %v2488_v59 = vand.u32 4294901760, %v2487_v30  ;;  %v2500_v55 = vand.u32 4294901760, %v2499_v57 }
 0x3a1   :  { %v2511_v28 = vsub.f32 %v7178_v58, %v8630_v19  ;;  %v8642_v22 = vand.u32 4294901760, %v7187_v32  ;;  %v8635_v44 = vand.u32 4294901760, %v7189_v41  ;;  %v2494_v19 = vand.u32 4294901760, %v2493_v38 }
 0x3a2   :  { %v2506_v46 = vand.u32 4294901760, %v2505_v39  ;;  %v8641_v30 = vand.u32 4294901760, %v7191_v12  ;;  %v8637_v57 = vand.u32 4294901760, %v7193_v16 }
 0x3a3   :  { %4976 = vmatpush1.bf16.msra.mxu0 %v4975_v20  ;;  %v2476_v20 = vand.u32 4294901760, %v2475_v33  ;;  %v2482_v33 = vand.u32 4294901760, %v2481_v26  ;;  %v2512_v14 = vand.u32 4294901760, %v2511_v28  ;;  %v4989_v26 = vpack.c.bf16 %v2500_v55, %v2488_v59 }
 0x3a4   :  { %4978 = vmatprep.subr.bf16.mxu0 %v4977_v31  ;;  %v2523_v31 = vsub.f32 %v7180_v2, %v8634_v36  ;;  %v2517_v36 = vsub.f32 %v7182_v1, %v8644_v48  ;;  %v2535_v38 = vsub.f32 %v7187_v32, %v8642_v22  ;;  %v2547_v39 = vsub.f32 %v7189_v41, %v8635_v44  ;;  %v9232_v48 = vld [vmem:[#allocation102_spill] sm:$0xff] }
 0x3a5   :  { %v4985_v11 = vpack.c.bf16 %v2476_v20, %v2464_v0  ;;  %v4987_v45 = vpack.c.bf16 %v2482_v33, %v2470_v15  ;;  %v8636_v28 = vand.u32 4294901760, %v7195_v3  ;;  %v2553_v15 = vsub.f32 %v7193_v16, %v8637_v57 }
 0x3a6   :  { %v2524_v4 = vand.u32 4294901760, %v2523_v31  ;;  %v2518_v20 = vand.u32 4294901760, %v2517_v36  ;;  %v8640_v33 = vand.u32 4294901760, %v7201_v60  ;;  %v8639_v59 = vand.u32 4294901760, %v7203_v27 }
 0x3a7   :  { %4980 = vmatpush1.bf16.msra.mxu0 %v4979_v47  ;;  %v2529_v47 = vsub.f32 %v7184_v42, %v8643_v50  ;;  %v2536_v55 = vand.u32 4294901760, %v2535_v38  ;;  %v2548_v44 = vand.u32 4294901760, %v2547_v39  ;;  %v2554_v36 = vand.u32 4294901760, %v2553_v15  ;;  %v9213_v15 = vld [vmem:[#allocation20_spill] sm:$0xff] }
 0x3a8   :  { %4982 = vmatprep.subr.bf16.mxu0 %v4981_v61  ;;  %v8638_v61 = vand.u32 4294901760, %v7197_v49  ;;  %v4993_v0 = vpack.c.bf16 %v2524_v4, %v2512_v14  ;;  %v2559_v14 = vsub.f32 %v7195_v3, %v8636_v28 }
 0x3a9   :  { %v2530_v31 = vand.u32 4294901760, %v2529_v47  ;;  %v2565_v47 = vsub.f32 %v7201_v60, %v8640_v33  ;;  %v9228_v33 = vld [vmem:[#allocation30_spill] sm:$0xff] }
 0x3aa   :  { %v2571_v4 = vsub.f32 %v7197_v49, %v8638_v61  ;;  %v2560_v38 = vand.u32 4294901760, %v2559_v14 }
 0x3ab   :  { %4984 = vmatpush1.bf16.msra.mxu0 %v4983_v17  ;;  %v4991_v17 = vpack.c.bf16 %v2506_v46, %v2494_v19  ;;  %v4995_v46 = vpack.c.bf16 %v2530_v31, %v2518_v20  ;;  %v2566_v57 = vand.u32 4294901760, %v2565_v47  ;;  %v5005_v31 = vpack.c.bf16 %v9137_v52, %v9136_v54  ;;  %v9220_v47 = vld [vmem:[#allocation38_spill] sm:$0xff] }
 0x3ac   :  { %4986 = vmatprep.subr.bf16.mxu0 %v4985_v11  ;;  %v2541_v11 = vsub.f32 %v7191_v12, %v8641_v30  ;;  %v2572_v39 = vand.u32 4294901760, %v2571_v4  ;;  %v9217_v4 = vld [vmem:[#allocation27_spill] sm:$0xff] }
 0x3ae   :  { %v2542_v19 = vand.u32 4294901760, %v2541_v11  ;;  %v5007_v11 = vpack.c.bf16 %v9152_v25, %v9151_v24 }
 0x3af   :  { %4988 = vmatpush1.bf16.msra.mxu0 %v4987_v45  ;;  %v2577_v45 = vsub.f32 %v7203_v27, %v8639_v59 }
 0x3b0   :  { %4990 = vmatprep.subr.bf16.mxu0 %v4989_v26  ;;  %v4997_v26 = vpack.c.bf16 %v2548_v44, %v2536_v55  ;;  %v4999_v28 = vpack.c.bf16 %v2554_v36, %v2542_v19  ;;  %v5009_v44 = vpack.c.bf16 %v9154_v37, %v9153_v62  ;;  %v9216_v55 = vld [vmem:[#allocation25_spill] sm:$0xff] }
 0x3b1   :  { %v2578_v61 = vand.u32 4294901760, %v2577_v45  ;;  %v9219_v36 = vld [vmem:[#allocation29_spill] sm:$0xff] }
 0x3b2   :  { %v5017_v45 = vpack.c.bf16 %v9220_v47, %v9219_v36 }
 0x3b3   :  { %4992 = vmatpush1.bf16.msra.mxu0 %v4991_v17  ;;  %v5001_v17 = vpack.c.bf16 %v2572_v39, %v2560_v38  ;;  %v5003_v20 = vpack.c.bf16 %v2578_v61, %v2566_v57  ;;  %v9215_v61 = vld [vmem:[#allocation22_spill] sm:$0xff]  ;;  %v9222_v38 = vld [vmem:[#allocation45_spill] sm:$0xff] }
 0x3b4   :  { %4994 = vmatprep.subr.bf16.mxu0 %v4993_v0  ;;  %v9212_v0 = vld [vmem:[#allocation60_spill] sm:$0xff]  ;;  %v5013_v14 = vpack.c.bf16 %v9216_v55, %v9215_v61 }
 0x3b7   :  { %4996 = vmatpush1.bf16.msra.mxu0 %v4995_v46  ;;  %v9218_v46 = vld [vmem:[#allocation28_spill] sm:$0xff] }
 0x3b8   :  { %4998 = vmatprep.subr.bf16.mxu0 %v4997_v26  ;;  %v5015_v19 = vpack.c.bf16 %v9218_v46, %v9217_v4  ;;  %v9221_v26 = vld [vmem:[#allocation44_spill] sm:$0xff] }
 0x3b9   :  { %v5019_v39 = vpack.c.bf16 %v9222_v38, %v9221_v26 }
 0x3bb   :  { %5000 = vmatpush1.bf16.msra.mxu0 %v4999_v28  ;;  %v9214_v28 = vld [vmem:[#allocation21_spill] sm:$0xff] }
 0x3bc   :  { %5002 = vmatprep.subr.bf16.mxu0 %v5001_v17  ;;  %v5011_v57 = vpack.c.bf16 %v9214_v28, %v9213_v15  ;;  %v9223_v17 = vld [vmem:[#allocation46_spill] sm:$0xff] }
 0x3bf   :  { %5004 = vmatpush1.bf16.msra.mxu0 %v5003_v20  ;;  %v9224_v20 = vld [vmem:[#allocation49_spill] sm:$0xff] }
 0x3c0   :  { %5006 = vmatprep.subr.bf16.mxu0 %v5005_v31  ;;  %v5021_v31 = vpack.c.bf16 %v9224_v20, %v9223_v17 }
 0x3c2   :  { %2583 = vmatmul.mubr.f32.vlgmr.msra.gmra.mrb[2].mxu0 %v7224_v34 }
 0x3c3   :  { %5008 = vmatpush1.bf16.msra.mxu0 %v5007_v11  ;;  %2783 = vmatprep.mubr.f32.mxu0 %v9212_v0  ;;  %v9225_v11 = vld [vmem:[#allocation50_spill] sm:$0xff] }
 0x3c4   :  { %5010 = vmatprep.subr.bf16.mxu0 %v5009_v44  ;;  %v9226_v44 = vld [vmem:[#allocation51_spill] sm:$0xff] }
 0x3c5   :  { %v5023_v59 = vpack.c.bf16 %v9226_v44, %v9225_v11  ;;  %v9234_v44 = vld [vmem:[#allocation105_spill] sm:$0xff] }
 0x3c7   :  { %5012 = vmatpush1.bf16.msra.mxu0 %v5011_v57  ;;  %v9227_v57 = vld [vmem:[#allocation96_spill] sm:$0xff] }
 0x3c8   :  { %5014 = vmatprep.subr.bf16.mxu0 %v5013_v14  ;;  %v5025_v30 = vpack.c.bf16 %v9228_v33, %v9227_v57  ;;  %v5027_v14 = vpack.c.bf16 %v9183_v13, %v9182_v51  ;;  %v9236_v57 = vld [vmem:[#allocation107_spill] sm:$0xff]  ;;  %v9238_v51 = vld [vmem:[#allocation109_spill] sm:$0xff] }
 0x3cb   :  { %5016 = vmatpush1.bf16.msra.mxu0 %v5015_v19  ;;  %v9229_v19 = vld [vmem:[#allocation37_spill] sm:$0xff] }
 0x3cc   :  { %5018 = vmatprep.subr.bf16.mxu0 %v5017_v45  ;;  %v5029_v22 = vpack.c.bf16 %v9229_v19, %v9184_v53  ;;  %v9230_v45 = vld [vmem:[#allocation39_spill] sm:$0xff]  ;;  %v9240_v53 = vld [vmem:[#allocation112_spill] sm:$0xff] }
 0x3cd   :  { %v5031_v50 = vpack.c.bf16 %v9187_v56, %v9230_v45 }
 0x3cf   :  { %5020 = vmatpush1.bf16.msra.mxu0 %v5019_v39  ;;  %v9231_v39 = vld [vmem:[#allocation101_spill] sm:$0xff] }
 0x3d0   :  { %5022 = vmatprep.subr.bf16.mxu0 %v5021_v31  ;;  %v5033_v34 = vpack.c.bf16 %v9232_v48, %v9231_v39  ;;  %v9233_v31 = vld [vmem:[#allocation103_spill] sm:$0xff] }
 0x3d1   :  { %v5035_v33 = vpack.c.bf16 %v9234_v44, %v9233_v31 }
 0x3d3   :  { %5024 = vmatpush1.bf16.msra.mxu0 %v5023_v59  ;;  %v9235_v59 = vld [vmem:[#allocation106_spill] sm:$0xff] }
 0x3d4   :  { %5026 = vmatprep.subr.bf16.mxu0 %v5025_v30  ;;  %v5037_v13 = vpack.c.bf16 %v9236_v57, %v9235_v59  ;;  %v9237_v30 = vld [vmem:[#allocation108_spill] sm:$0xff] }
 0x3d5   :  { %v5039_v19 = vpack.c.bf16 %v9238_v51, %v9237_v30 }
 0x3d7   :  { %5028 = vmatpush1.bf16.msra.mxu0 %v5027_v14  ;;  %v9239_v14 = vld [vmem:[#allocation111_spill] sm:$0xff] }
 0x3d8   :  { %5030 = vmatprep.subr.bf16.mxu0 %v5029_v22  ;;  %v5041_v56 = vpack.c.bf16 %v9240_v53, %v9239_v14  ;;  %v5043_v22 = vpack.c.bf16 %v9209_v5, %v9208_v43 }
 0x3db   :  { %5032 = vmatpush1.bf16.msra.mxu0 %v5031_v50  ;;  %v5045_v50 = vpack.c.bf16 %v7001_v23, %v9210_v10 }
 0x3dc   :  { %5034 = vmatprep.subr.bf16.mxu0 %v5033_v34  ;;  %v5047_v34 = vpack.c.bf16 %v7010_v40, %v7008_v35 }
 0x3df   :  { %5036 = vmatpush1.bf16.msra.mxu0 %v5035_v33  ;;  %v5049_v33 = vpack.c.bf16 %v7019_v63, %v7012_v9 }
 0x3e0   :  { %5038 = vmatprep.subr.bf16.mxu0 %v5037_v13  ;;  %v5051_v13 = vpack.c.bf16 %v7028_v29, %v7021_v7 }
 0x3e3   :  { %5040 = vmatpush1.bf16.msra.mxu0 %v5039_v19  ;;  %v5053_v19 = vpack.c.bf16 %v7172_v18, %v7170_v8 }
 0x3e4   :  { %5042 = vmatprep.subr.bf16.mxu0 %v5041_v56  ;;  %v5055_v56 = vpack.c.bf16 %v7176_v6, %v7174_v21 }
 0x3e7   :  { %5044 = vmatpush1.bf16.msra.mxu0 %v5043_v22  ;;  %v5057_v22 = vpack.c.bf16 %v7180_v2, %v7178_v58 }
 0x3e8   :  { %5046 = vmatprep.subr.bf16.mxu0 %v5045_v50  ;;  %v5059_v50 = vpack.c.bf16 %v7184_v42, %v7182_v1  ;;  %v9243_v42 = vld [vmem:[#allocation74_spill] sm:$0xff] }
 0x3eb   :  { %5048 = vmatpush1.bf16.msra.mxu0 %v5047_v34  ;;  %v5061_v34 = vpack.c.bf16 %v7189_v41, %v7187_v32 }
 0x3ec   :  { %5050 = vmatprep.subr.bf16.mxu0 %v5049_v33  ;;  %v5063_v33 = vpack.c.bf16 %v7193_v16, %v7191_v12  ;;  %v9245_v16 = vld [vmem:[#allocation16_spill] sm:$0xff] }
 0x3ef   :  { %5052 = vmatpush1.bf16.msra.mxu0 %v5051_v13  ;;  %v5065_v13 = vpack.c.bf16 %v7197_v49, %v7195_v3  ;;  %v9247_v49 = vld [vmem:[#allocation23_spill] sm:$0xff]  ;;  %v3339_v3 = vld [vmem:[#allocation10 + $0x10] sm:$0xff] }
 0x3f0   :  { %5054 = vmatprep.subr.bf16.mxu0 %v5053_v19  ;;  %v5067_v19 = vpack.c.bf16 %v7203_v27, %v7201_v60  ;;  %v9249_v27 = vld [vmem:[#allocation31_spill] sm:$0xff]  ;;  %v3354_v60 = vld [vmem:[#allocation10 + $0x88] sm:$0xff] }
 0x3f3   :  { %5056 = vmatpush1.bf16.msra.mxu0 %v5055_v56  ;;  %v9241_v56 = vld [vmem:[#allocation41_spill] sm:$0xff] }
 0x3f4   :  { %5058 = vmatprep.subr.bf16.mxu0 %v5057_v22  ;;  %v9242_v22 = vld [vmem:[#allocation59_spill] sm:$0xff] }
 0x3f7   :  { %5060 = vmatpush1.bf16.msra.mxu0 %v5059_v50  ;;  %v9244_v50 = vand.u32 4294901760, %v9212_v0  ;;  %v9254_v0 = vld [vmem:[#allocation100_spill] sm:$0xff] }
 0x3f8   :  { %5062 = vmatprep.subr.bf16.mxu0 %v5061_v34  ;;  %v9246_v34 = vld [vmem:[#allocation19_spill] sm:$0xff] }
 0x3fb   :  { %5064 = vmatpush1.bf16.msra.mxu0 %v5063_v33  ;;  %v9248_v33 = vld [vmem:[#allocation26_spill] sm:$0xff] }
 0x3fc   :  { %5066 = vmatprep.subr.bf16.mxu0 %v5065_v13  ;;  %v9250_v13 = vld [vmem:[#allocation52_spill] sm:$0xff] }
 0x3ff   :  { %5068 = vmatpush1.bf16.msra.mxu0 %v5067_v19  ;;  %v9251_v19 = vld [vmem:[#allocation81_spill] sm:$0xff] }
 0x400   :  { %5070 = vmatprep.subr.bf16.mxu0 %v9241_v56  ;;  %v9252_v56 = vld [vmem:[#allocation35_spill] sm:$0xff] }
 0x402   :  { %2786 = vmatmul.mubr.f32.vlgmr.msra.gmra.mrb[2].mxu0 %v9242_v22 }
 0x403   :  { %5072 = vmatpush1.bf16.msra.mxu0 %v9243_v42  ;;  %2923 = vmatprep.mubr.f32.mxu0 %v9244_v50  ;;  %v9253_v42 = vld [vmem:[#allocation98_spill] sm:$0xff]  ;;  %v9255_v50 = vld [vmem:[#allocation104_spill] sm:$0xff] }
 0x404   :  { %5074 = vmatprep.subr.bf16.mxu0 %v9245_v16  ;;  %v9256_v16 = vld [vmem:[#allocation110_spill] sm:$0xff] }
 0x407   :  { %5076 = vmatpush1.bf16.msra.mxu0 %v9246_v34  ;;  %v9257_v34 = vld [vmem:[#allocation113_spill] sm:$0xff] }
 0x408   :  { %5078 = vmatprep.subr.bf16.mxu0 %v9247_v49  ;;  %v9258_v49 = vld [vmem:[#allocation117_spill] sm:$0xff] }
 0x40b   :  { %5080 = vmatpush1.bf16.msra.mxu0 %v9248_v33  ;;  %v9259_v33 = vld [vmem:[#allocation118_spill] sm:$0xff] }
 0x40c   :  { %5082 = vmatprep.subr.bf16.mxu0 %v9249_v27  ;;  %v9260_v27 = vld [vmem:[#allocation119_spill] sm:$0xff] }
 0x40f   :  { %5084 = vmatpush1.bf16.msra.mxu0 %v9250_v13  ;;  %v9261_v13 = vld [vmem:[#allocation120_spill] sm:$0xff] }
 0x410   :  { %5086 = vmatprep.subr.bf16.mxu0 %v9251_v19  ;;  %v9262_v19 = vld [vmem:[#allocation56_spill] sm:$0xff] }
 0x413   :  { %5088 = vmatpush1.bf16.msra.mxu0 %v9252_v56  ;;  %v9263_v56 = vld [vmem:[#allocation121_spill] sm:$0xff] }
 0x414   :  { %5090 = vmatprep.subr.bf16.mxu0 %v9253_v42  ;;  %v9264_v42 = vld [vmem:[#allocation122_spill] sm:$0xff] }
 0x417   :  { %5092 = vmatpush1.bf16.msra.mxu0 %v9254_v0  ;;  %v9265_v0 = vld [vmem:[#allocation123_spill] sm:$0xff] }
 0x418   :  { %5094 = vmatprep.subr.bf16.mxu0 %v9255_v50  ;;  %v9266_v50 = vld [vmem:[#allocation124_spill] sm:$0xff] }
 0x41b   :  { %5096 = vmatpush1.bf16.msra.mxu0 %v9256_v16  ;;  %v9267_v16 = vld [vmem:[#allocation82_spill] sm:$0xff] }
 0x41c   :  { %5098 = vmatprep.subr.bf16.mxu0 %v9257_v34  ;;  %v9268_v34 = vld [vmem:[#allocation83_spill] sm:$0xff] }
 0x41f   :  { %5100 = vmatpush1.bf16.msra.mxu0 %v9258_v49  ;;  %v9269_v49 = vld [vmem:[#allocation84_spill] sm:$0xff] }
 0x420   :  { %5102 = vmatprep.subr.bf16.mxu0 %v9259_v33  ;;  %v9270_v33 = vld [vmem:[#allocation85_spill] sm:$0xff] }
 0x423   :  { %5104 = vmatpush1.bf16.msra.mxu0 %v9260_v27  ;;  %v9271_v27 = vld [vmem:[#allocation87_spill] sm:$0xff] }
 0x424   :  { %5106 = vmatprep.subr.bf16.mxu0 %v9261_v13  ;;  %v9272_v13 = vld [vmem:[#allocation88_spill] sm:$0xff] }
 0x427   :  { %5108 = vmatpush1.bf16.msra.mxu0 %v9262_v19  ;;  %v9273_v19 = vld [vmem:[#allocation89_spill] sm:$0xff] }
 0x428   :  { %5110 = vmatprep.subr.bf16.mxu0 %v9263_v56 }
 0x42b   :  { %5112 = vmatpush1.bf16.msra.mxu0 %v9264_v42  ;;  %v9274_v42 = vand.u32 4294901760, %v9136_v54  ;;  %v3353_v54 = vld [vmem:[#allocation10 + $0x80] sm:$0xff] }
 0x42c   :  { %5114 = vmatprep.subr.bf16.mxu0 %v9265_v0  ;;  %v9275_v0 = vand.u32 4294901760, %v9137_v52  ;;  %v3337_v52 = vld [vmem:[#allocation10] sm:$0xff] }
 0x42e   :  { %v5133_v56 = vpack.c.bf16 %v9275_v0, %v9274_v42  ;;  %v9282_v42 = vld [vmem:[#allocation58_spill] sm:$0xff]  ;;  %v3377_v0 = vand.u32 4294901760, %v3337_v52 }
 0x42f   :  { %5116 = vmatpush1.bf16.msra.mxu0 %v9266_v50  ;;  %v9276_v50 = vld [vmem:[#allocation47_spill] sm:$0xff] }
 0x430   :  { %5118 = vmatprep.subr.bf16.mxu0 %v9267_v16  ;;  %v9277_v16 = vand.u32 4294901760, %v9151_v24  ;;  %v9283_v24 = vand.u32 4294901760, %v9213_v15  ;;  %v3340_v15 = vld [vmem:[#allocation10 + $0x18] sm:$0xff] }
 0x433   :  { %5120 = vmatpush1.bf16.msra.mxu0 %v9268_v34  ;;  %v9278_v34 = vand.u32 4294901760, %v9152_v25  ;;  %v9284_v25 = vand.u32 4294901760, %v9214_v28 }
 0x434   :  { %5122 = vmatprep.subr.bf16.mxu0 %v9269_v49 }
 0x435   :  { %v5135_v49 = vpack.c.bf16 %v9278_v34, %v9277_v16  ;;  %v5139_v16 = vpack.c.bf16 %v9284_v25, %v9283_v24  ;;  %v3428_v34 = vand.u32 4294901760, %v3354_v60  ;;  %v7606_v24 = vsub.f32 %v3337_v52, %v3377_v0 }
 0x436   :  { %v3383_v25 = vand.u32 4294901760, %v3339_v3  ;;  %v9292_v52 = vand.u32 4294901760, %v9220_v47 }
 0x437   :  { %5124 = vmatpush1.bf16.msra.mxu0 %v9270_v33  ;;  %v9279_v33 = vand.u32 4294901760, %v9153_v62  ;;  %v3338_v62 = vld [vmem:[#allocation10 + $0x8] sm:$0xff]  ;;  %v7604_v28 = vsub.f32 %v3354_v60, %v3428_v34  ;;  %v9291_v60 = vand.u32 4294901760, %v9219_v36  ;;  %v3341_v36 = vld [vmem:[#allocation10 + $0x20] sm:$0xff] }
 0x438   :  { %5126 = vmatprep.subr.bf16.mxu0 %v9271_v27  ;;  %v9280_v27 = vand.u32 4294901760, %v9154_v37  ;;  %v3355_v37 = vld [vmem:[#allocation10 + $0x90] sm:$0xff] }
 0x43b   :  { %5128 = vmatpush1.bf16.msra.mxu0 %v9272_v13  ;;  %v5137_v13 = vpack.c.bf16 %v9280_v27, %v9279_v33  ;;  %v3356_v27 = vld [vmem:[#allocation10 + $0x98] sm:$0xff]  ;;  %v9286_v33 = vand.u32 4294901760, %v9216_v55  ;;  %v3386_v55 = vand.u32 4294901760, %v3340_v15 }
 0x43c   :  { %5130 = vmatprep.subr.bf16.mxu0 %v9273_v19  ;;  %v9281_v19 = vand.u32 4294901760, %v9242_v22  ;;  %v9285_v22 = vand.u32 4294901760, %v9215_v61 }
 0x43f   :  { %5132 = vmatpush1.bf16.msra.mxu0 %v9276_v50  ;;  %v3431_v50 = vand.u32 4294901760, %v3355_v37 }
 0x440   :  { %5134 = vmatprep.subr.bf16.mxu0 %v5133_v56  ;;  %v3425_v56 = vand.u32 4294901760, %v3353_v54 }
 0x442   :  { %2927 = vmatmul.mubr.f32.vlgmr.msra.gmra.mrb[2].mxu0 %v9281_v19  ;;  %v5141_v19 = vpack.c.bf16 %v9286_v33, %v9285_v22  ;;  %v7602_v12 = vsub.f32 %v3353_v54, %v3425_v56  ;;  %v9289_v22 = vand.u32 4294901760, %v9217_v4  ;;  %v9290_v33 = vand.u32 4294901760, %v9218_v46 }
 0x443   :  { %5136 = vmatpush1.bf16.msra.mxu0 %v5135_v49  ;;  %3190 = vmatprep.mubr.f32.mxu0 %v9282_v42  ;;  %v3380_v49 = vand.u32 4294901760, %v3338_v62  ;;  %v3434_v42 = vand.u32 4294901760, %v3356_v27  ;;  %v7618_v54 = vsub.f32 %v3339_v3, %v3383_v25  ;;  %v9296_v3 = vand.u32 4294901760, %v9223_v17 }
 0x444   :  { %5138 = vmatprep.subr.bf16.mxu0 %v5137_v13  ;;  %v7610_v13 = vsub.f32 %v3355_v37, %v3431_v50  ;;  %v5143_v32 = vpack.c.bf16 %v9290_v33, %v9289_v22  ;;  %v3357_v37 = vld [vmem:[#allocation10 + $0xa0] sm:$0xff]  ;;  %v9297_v46 = vand.u32 4294901760, %v9224_v20  ;;  %v3342_v22 = vld [vmem:[#allocation10 + $0x28] sm:$0xff]  ;;  %v7634_v47 = vpack.c.bf16 %v3428_v34, %v3425_v56  ;;  %v3359_v33 = vld [vmem:[#allocation10 + $0xb0] sm:$0xff] }
 0x445   :  { %v7608_v41 = vsub.f32 %v3338_v62, %v3380_v49  ;;  %v7612_v61 = vsub.f32 %v3356_v27, %v3434_v42  ;;  %v5145_v62 = vpack.c.bf16 %v9292_v52, %v9291_v60  ;;  %v9294_v27 = vand.u32 4294901760, %v9221_v26  ;;  %v9300_v60 = vld [vmem:[#allocation51_spill] sm:$0xff]  ;;  %v3343_v56 = vld [vmem:[#allocation10 + $0x30] sm:$0xff]  ;;  %v9303_v34 = vld [vmem:[#allocation96_spill] sm:$0xff] }
 0x446   :  { %9298 = vst [vmem:[#allocation64_spill] sm:$0xff] %v7634_v47  ;;  %v9301_v26 = vand.u32 4294901760, %v9300_v60  ;;  %5262 = vmatprep.subr.bf16.mxu1 %v7634_v47  ;;  %v7643_v20 = vpack.c.bf16 %v3380_v49, %v3377_v0  ;;  %v9316_v47 = vld [vmem:[#allocation37_spill] sm:$0xff] }
 0x447   :  { %9287 = vst [vmem:[#allocation61_spill] sm:$0xff] %v7608_v41  ;;  %9288 = vst [vmem:[#allocation62_spill] sm:$0xff] %v7612_v61  ;;  %5140 = vmatpush1.bf16.msra.mxu0 %v5139_v16  ;;  %v7624_v41 = vsub.f32 %v3340_v15, %v3386_v55  ;;  %v9295_v16 = vand.u32 4294901760, %v9222_v38  ;;  %v3358_v61 = vld [vmem:[#allocation10 + $0xa8] sm:$0xff]  ;;  %v3437_v15 = vand.u32 4294901760, %v3357_v37 }
 0x448   :  { %5142 = vmatprep.subr.bf16.mxu0 %v5141_v19  ;;  %v5149_v19 = vpack.c.bf16 %v9297_v46, %v9296_v3  ;;  %v3440_v38 = vand.u32 4294901760, %v3358_v61  ;;  %9302 = vst [vmem:[#allocation65_spill] sm:$0xff] %v7643_v20  ;;  %v9304_v3 = vand.u32 4294901760, %v9303_v34  ;;  %v9305_v46 = vld [vmem:[#allocation30_spill] sm:$0xff]  ;;  %5264 = vmatpush3.bf16.msra.mxu1 %v7643_v20  ;;  %v7661_v34 = vpack.c.bf16 %v3386_v55, %v3383_v25 }
 0x449   :  { %9293 = vst [vmem:[#allocation63_spill] sm:$0xff] %v7624_v41  ;;  %v5147_v4 = vpack.c.bf16 %v9295_v16, %v9294_v27  ;;  %v3360_v27 = vld [vmem:[#allocation10 + $0xb8] sm:$0xff]  ;;  %v7641_v17 = vsub.f32 %v3357_v37, %v3437_v15  ;;  %v3392_v16 = vand.u32 4294901760, %v3342_v22  ;;  %v9318_v55 = vand.u32 4294901760, %v9230_v45 }
 0x44a   :  { %v7649_v60 = vsub.f32 %v3358_v61, %v3440_v38  ;;  %v3446_v49 = vand.u32 4294901760, %v3360_v27  ;;  %v9310_v61 = vld [vmem:[#allocation32_spill] sm:$0xff]  ;;  %v9324_v45 = vand.u32 4294901760, %v9234_v44  ;;  %v9328_v44 = vand.u32 4294901760, %v9238_v51 }
 0x44b   :  { %5144 = vmatpush1.bf16.msra.mxu0 %v5143_v32  ;;  %v9299_v32 = vand.u32 4294901760, %v9225_v11  ;;  %v9306_v11 = vand.u32 4294901760, %v9305_v46  ;;  %v7656_v0 = vsub.f32 %v3342_v22, %v3392_v16  ;;  %v9334_v51 = vand.u32 4294901760, %v7001_v23 }
 0x44c   :  { %5146 = vmatprep.subr.bf16.mxu0 %v5145_v62  ;;  %v3389_v62 = vand.u32 4294901760, %v3341_v36  ;;  %v7667_v20 = vsub.f32 %v3360_v27, %v3446_v49  ;;  %v9341_v23 = vand.u32 4294901760, %v7170_v8 }
 0x44d   :  { %v5151_v52 = vpack.c.bf16 %v9301_v26, %v9299_v32  ;;  %v5153_v41 = vpack.c.bf16 %v9306_v11, %v9304_v3  ;;  %v7651_v32 = vpack.c.bf16 %v3434_v42, %v3431_v50  ;;  %9309 = vst [vmem:[#allocation68_spill] sm:$0xff] %v7656_v0  ;;  %v3344_v26 = vld [vmem:[#allocation10 + $0x38] sm:$0xff]  ;;  %v3395_v3 = vand.u32 4294901760, %v3343_v56  ;;  %v9312_v42 = vld [vmem:[#allocation33_spill] sm:$0xff] }
 0x44e   :  { %v7654_v37 = vsub.f32 %v3341_v36, %v3389_v62  ;;  %v9311_v50 = vand.u32 4294901760, %v9310_v61  ;;  %v9313_v46 = vand.u32 4294901760, %v9312_v42  ;;  %v9314_v36 = vld [vmem:[#allocation34_spill] sm:$0xff]  ;;  %v9317_v0 = vand.u32 4294901760, %v9316_v47 }
 0x44f   :  { %5148 = vmatpush1.bf16.msra.mxu0 %v5147_v4  ;;  %9307 = vst [vmem:[#allocation66_spill] sm:$0xff] %v7651_v32  ;;  %v3443_v4 = vand.u32 4294901760, %v3359_v33  ;;  %5266 = vmatprep.subr.bf16.mxu1 %v7651_v32  ;;  %v9315_v22 = vand.u32 4294901760, %v9314_v36  ;;  %v3398_v32 = vand.u32 4294901760, %v3344_v26  ;;  %v9322_v47 = vand.u32 4294901760, %v9232_v48 }
 0x450   :  { %5150 = vmatprep.subr.bf16.mxu0 %v5149_v19  ;;  %9308 = vst [vmem:[#allocation67_spill] sm:$0xff] %v7654_v37  ;;  %v5155_v11 = vpack.c.bf16 %v9313_v46, %v9311_v50  ;;  %5268 = vmatpush3.bf16.msra.mxu1 %v7661_v34  ;;  %v7682_v50 = vpack.c.bf16 %v3440_v38, %v3437_v15  ;;  %v9325_v15 = vand.u32 4294901760, %v9235_v59  ;;  %v9326_v38 = vand.u32 4294901760, %v9236_v57 }
 0x451   :  { %v7659_v19 = vsub.f32 %v3359_v33, %v3443_v4  ;;  %v5157_v37 = vpack.c.bf16 %v9317_v0, %v9315_v22  ;;  %v7673_v33 = vsub.f32 %v3343_v56, %v3395_v3  ;;  %v7676_v25 = vsub.f32 %v3344_v26, %v3398_v32 }
 0x452   :  { %5270 = vmatprep.subr.bf16.mxu1 %v7682_v50  ;;  %v7689_v56 = vpack.c.bf16 %v3392_v16, %v3389_v62  ;;  %v9323_v26 = vand.u32 4294901760, %v9233_v31  ;;  %v7700_v48 = vpack.c.bf16 %v3446_v49, %v3443_v4  ;;  %v9327_v31 = vand.u32 4294901760, %v9237_v30 }
 0x453   :  { %5152 = vmatpush1.bf16.msra.mxu0 %v5151_v52  ;;  %v9319_v52 = vld [vmem:[#allocation99_spill] sm:$0xff]  ;;  %v9329_v59 = vand.u32 4294901760, %v9239_v14  ;;  %v9330_v57 = vand.u32 4294901760, %v9240_v53  ;;  %v9331_v4 = vand.u32 4294901760, %v9208_v43  ;;  %v9333_v30 = vand.u32 4294901760, %v9210_v10 }
 0x454   :  { %5154 = vmatprep.subr.bf16.mxu0 %v5153_v41  ;;  %v9320_v61 = vand.u32 4294901760, %v9319_v52  ;;  %v9321_v41 = vand.u32 4294901760, %v9231_v39  ;;  %v5163_v42 = vpack.c.bf16 %v9324_v45, %v9323_v26  ;;  %5272 = vmatpush3.bf16.msra.mxu1 %v7689_v56  ;;  %v7703_v39 = vpack.c.bf16 %v3398_v32, %v3395_v3 }
 0x455   :  { %5274 = vmatprep.subr.bf16.mxu1 %v7700_v48  ;;  %v5167_v62 = vpack.c.bf16 %v9328_v44, %v9327_v31  ;;  %v5169_v16 = vpack.c.bf16 %v9330_v57, %v9329_v59  ;;  %v9332_v32 = vand.u32 4294901760, %v9209_v5  ;;  %v5173_v3 = vpack.c.bf16 %v9334_v51, %v9333_v30  ;;  %v9362_v44 = vld [vmem:[#allocation53_spill] sm:$0xff]  ;;  %v9364_v59 = vld [vmem:[#allocation55_spill] sm:$0xff]  ;;  %v9369_v30 = vld [vmem:[#allocation58_spill] sm:$0xff] }
 0x456   :  { %v5159_v27 = vpack.c.bf16 %v9320_v61, %v9318_v55  ;;  %v5161_v0 = vpack.c.bf16 %v9322_v47, %v9321_v41  ;;  %v9335_v14 = vand.u32 4294901760, %v7008_v35  ;;  %v9336_v53 = vand.u32 4294901760, %v7010_v40  ;;  %v9370_v51 = vld [vmem:[#allocation16_spill] sm:$0xff] }
 0x457   :  { %5156 = vmatpush1.bf16.msra.mxu0 %v5155_v11  ;;  %v5171_v49 = vpack.c.bf16 %v9332_v32, %v9331_v4  ;;  %v9337_v11 = vand.u32 4294901760, %v7012_v9  ;;  %v9338_v43 = vand.u32 4294901760, %v7019_v63  ;;  %v9339_v5 = vand.u32 4294901760, %v7021_v7  ;;  %v9366_v4 = vld [vmem:[#allocation41_spill] sm:$0xff] }
 0x458   :  { %5158 = vmatprep.subr.bf16.mxu0 %v5157_v37  ;;  %v5165_v37 = vpack.c.bf16 %v9326_v38, %v9325_v15  ;;  %5276 = vmatpush3.bf16.msra.mxu1 %v7703_v39  ;;  %v5175_v46 = vpack.c.bf16 %v9336_v53, %v9335_v14  ;;  %v9340_v10 = vand.u32 4294901760, %v7028_v29  ;;  %v9342_v35 = vand.u32 4294901760, %v7172_v18  ;;  %v9350_v18 = vld [vmem:[#allocation24_spill] sm:$0xff]  ;;  %v9367_v32 = vld [vmem:[#allocation57_spill] sm:$0xff]  ;;  %v9372_v14 = vld [vmem:[#allocation23_spill] sm:$0xff] }
 0x459   :  { %v5177_v36 = vpack.c.bf16 %v9338_v43, %v9337_v11  ;;  %v9343_v40 = vand.u32 4294901760, %v7174_v21  ;;  %v9344_v9 = vand.u32 4294901760, %v7176_v6  ;;  %v9345_v63 = vand.u32 4294901760, %v7178_v58  ;;  %v9354_v6 = vld [vmem:[#allocation36_spill] sm:$0xff]  ;;  %v9373_v53 = vld [vmem:[#allocation26_spill] sm:$0xff]  ;;  %v9376_v43 = vld [vmem:[#allocation81_spill] sm:$0xff] }
 0x45a   :  { %v5179_v22 = vpack.c.bf16 %v9340_v10, %v9339_v5  ;;  %v5181_v55 = vpack.c.bf16 %v9342_v35, %v9341_v23  ;;  %v9346_v7 = vand.u32 4294901760, %v7180_v2  ;;  %v9347_v29 = vand.u32 4294901760, %v7182_v1  ;;  %v9358_v2 = vld [vmem:[#allocation40_spill] sm:$0xff]  ;;  %v9378_v5 = vld [vmem:[#allocation98_spill] sm:$0xff]  ;;  %v9382_v35 = vld [vmem:[#allocation113_spill] sm:$0xff] }
 0x45b   :  { %5160 = vmatpush1.bf16.msra.mxu0 %v5159_v27  ;;  %v5183_v52 = vpack.c.bf16 %v9344_v9, %v9343_v40  ;;  %v9348_v27 = vld [vmem:[#allocation91_spill] sm:$0xff]  ;;  %v9351_v47 = vand.u32 4294901760, %v9350_v18  ;;  %v9355_v45 = vand.u32 4294901760, %v9354_v6  ;;  %v9359_v38 = vand.u32 4294901760, %v9358_v2  ;;  %v9375_v11 = vld [vmem:[#allocation52_spill] sm:$0xff]  ;;  %v9381_v23 = vld [vmem:[#allocation110_spill] sm:$0xff] }
 0x45c   :  { %5162 = vmatprep.subr.bf16.mxu0 %v5161_v0  ;;  %v5185_v61 = vpack.c.bf16 %v9346_v7, %v9345_v63  ;;  %v9349_v8 = vand.u32 4294901760, %v9348_v27  ;;  %v9352_v0 = vld [vmem:[#allocation94_spill] sm:$0xff]  ;;  %v9365_v57 = vand.u32 4294901760, %v9364_v59  ;;  %v9379_v10 = vld [vmem:[#allocation100_spill] sm:$0xff]  ;;  %v9385_v9 = vld [vmem:[#allocation119_spill] sm:$0xff]  ;;  %v8684_v27 = vand.u32 4294901760, %v7602_v12 }
 0x45d   :  { %v9353_v21 = vand.u32 4294901760, %v9352_v0  ;;  %v9384_v40 = vld [vmem:[#allocation118_spill] sm:$0xff]  ;;  %v9387_v63 = vld [vmem:[#allocation56_spill] sm:$0xff]  ;;  %v9388_v7 = vld [vmem:[#allocation121_spill] sm:$0xff] }
 0x45e   :  { %v5187_v41 = vpack.c.bf16 %v9349_v8, %v9347_v29  ;;  %v9390_v29 = vld [vmem:[#allocation123_spill] sm:$0xff]  ;;  %v8683_v8 = vand.u32 4294901760, %v7604_v28  ;;  %v9391_v18 = vld [vmem:[#allocation61_spill] sm:$0xff]  ;;  %v9392_v0 = vld [vmem:[#allocation124_spill] sm:$0xff] }
 0x45f   :  { %5164 = vmatpush1.bf16.msra.mxu0 %v5163_v42  ;;  %v5189_v26 = vpack.c.bf16 %v9353_v21, %v9351_v47  ;;  %v9356_v42 = vld [vmem:[#allocation95_spill] sm:$0xff]  ;;  %v8681_v47 = vand.u32 4294901760, %v9391_v18  ;;  %v8680_v21 = vand.u32 4294901760, %v7610_v13  ;;  %v9397_v59 = vld [vmem:[#allocation84_spill] sm:$0xff] }
 0x460   :  { %5166 = vmatprep.subr.bf16.mxu0 %v5165_v37  ;;  %v9357_v58 = vand.u32 4294901760, %v9356_v42  ;;  %v9360_v37 = vld [vmem:[#allocation43_spill] sm:$0xff]  ;;  %v3604_v42 = vsub.f32 %v7602_v12, %v8684_v27 }
 0x461   :  { %v9361_v1 = vand.u32 4294901760, %v9360_v37  ;;  %v3499_v2 = vsub.f32 %v9391_v18, %v8681_v47  ;;  %v9395_v37 = vld [vmem:[#allocation83_spill] sm:$0xff] }
 0x462   :  { %v5191_v15 = vpack.c.bf16 %v9357_v58, %v9355_v45  ;;  %v9394_v45 = vld [vmem:[#allocation82_spill] sm:$0xff]  ;;  %v3611_v58 = vsub.f32 %v7604_v28, %v8683_v8 }
 0x463   :  { %5168 = vmatpush1.bf16.msra.mxu0 %v5167_v62  ;;  %v5193_v31 = vpack.c.bf16 %v9361_v1, %v9359_v38  ;;  %v9363_v62 = vand.u32 4294901760, %v9362_v44  ;;  %v8678_v38 = vand.u32 4294901760, %v7618_v54  ;;  %v3618_v1 = vsub.f32 %v7610_v13, %v8680_v21  ;;  %v9396_v44 = vld [vmem:[#allocation63_spill] sm:$0xff] }
 0x464   :  { %5170 = vmatprep.subr.bf16.mxu0 %v5169_v16 }
 0x465   :  { %v5195_v16 = vpack.c.bf16 %v9365_v57, %v9363_v62  ;;  %v8677_v62 = vand.u32 4294901760, %v9396_v44  ;;  %v3605_v57 = vand.u32 4294901760, %v3604_v42 }
 0x467   :  { %5172 = vmatpush1.bf16.msra.mxu0 %v5171_v49  ;;  %v9368_v49 = vld [vmem:[#allocation74_spill] sm:$0xff] }
 0x468   :  { %5174 = vmatprep.subr.bf16.mxu0 %v5173_v3  ;;  %v9371_v3 = vld [vmem:[#allocation19_spill] sm:$0xff] }
 0x46b   :  { %5176 = vmatpush1.bf16.msra.mxu0 %v5175_v46  ;;  %v9374_v46 = vld [vmem:[#allocation31_spill] sm:$0xff] }
 0x46c   :  { %5178 = vmatprep.subr.bf16.mxu0 %v5177_v36  ;;  %v9377_v36 = vld [vmem:[#allocation35_spill] sm:$0xff] }
 0x46f   :  { %5180 = vmatpush1.bf16.msra.mxu0 %v5179_v22  ;;  %v9380_v22 = vld [vmem:[#allocation104_spill] sm:$0xff] }
 0x470   :  { %5182 = vmatprep.subr.bf16.mxu0 %v5181_v55  ;;  %v9383_v55 = vld [vmem:[#allocation117_spill] sm:$0xff] }
 0x473   :  { %5184 = vmatpush1.bf16.msra.mxu0 %v5183_v52  ;;  %v9386_v52 = vld [vmem:[#allocation120_spill] sm:$0xff] }
 0x474   :  { %5186 = vmatprep.subr.bf16.mxu0 %v5185_v61  ;;  %v9389_v61 = vld [vmem:[#allocation122_spill] sm:$0xff] }
 0x477   :  { %5188 = vmatpush1.bf16.msra.mxu0 %v5187_v41  ;;  %v8682_v41 = vand.u32 4294901760, %v7606_v24 }
 0x478   :  { %5190 = vmatprep.subr.bf16.mxu0 %v5189_v26  ;;  %v9393_v26 = vld [vmem:[#allocation62_spill] sm:$0xff] }
 0x479   :  { %v8679_v6 = vand.u32 4294901760, %v9393_v26 }
 0x47b   :  { %5192 = vmatpush1.bf16.msra.mxu0 %v5191_v15  ;;  %v3492_v15 = vsub.f32 %v7606_v24, %v8682_v41 }
 0x47c   :  { %5194 = vmatprep.subr.bf16.mxu0 %v5193_v31  ;;  %v3625_v31 = vsub.f32 %v9393_v26, %v8679_v6 }
 0x47f   :  { %5196 = vmatpush1.bf16.msra.mxu0 %v5195_v16  ;;  %v3612_v16 = vand.u32 4294901760, %v3611_v58  ;;  %v8675_v58 = vand.u32 4294901760, %v7659_v19 }
 0x480   :  { %5198 = vmatprep.subr.bf16.mxu0 %v9366_v4  ;;  %v8672_v4 = vand.u32 4294901760, %v7641_v17 }
 0x482   :  { %3192 = vmatmul.mubr.f32.vlgmr.msra.gmra.mrb[2].mxu0 %v9367_v32 }
 0x483   :  { %5200 = vmatpush1.bf16.msra.mxu0 %v9368_v49  ;;  %3327 = vmatprep.mubr.f32.mxu0 %v9369_v30  ;;  %v8671_v49 = vand.u32 4294901760, %v7649_v60  ;;  %v7823_v30 = vld [vmem:[#allocation10 + $0xc0] sm:$0xff] }
 0x484   :  { %5202 = vmatprep.subr.bf16.mxu0 %v9370_v51  ;;  %v7825_v51 = vld [vmem:[#allocation10 + $0xc8] sm:$0xff] }
 0x487   :  { %5204 = vmatpush1.bf16.msra.mxu0 %v9371_v3  ;;  %v3493_v3 = vand.u32 4294901760, %v3492_v15  ;;  %v8676_v15 = vand.u32 4294901760, %v7667_v20 }
 0x488   :  { %5206 = vmatprep.subr.bf16.mxu0 %v9372_v14  ;;  %v3500_v14 = vand.u32 4294901760, %v3499_v2  ;;  %v9402_v2 = vld [vmem:[#allocation88_spill] sm:$0xff] }
 0x48b   :  { %5208 = vmatpush1.bf16.msra.mxu0 %v9373_v53  ;;  %v3506_v53 = vsub.f32 %v7618_v54, %v8678_v38 }
 0x48c   :  { %5210 = vmatprep.subr.bf16.mxu0 %v9374_v46  ;;  %v9398_v46 = vld [vmem:[#allocation85_spill] sm:$0xff] }
 0x48d   :  { %v3507_v42 = vand.u32 4294901760, %v3506_v53 }
 0x48f   :  { %5212 = vmatpush1.bf16.msra.mxu0 %v9375_v11  ;;  %v3619_v11 = vand.u32 4294901760, %v3618_v1 }
 0x490   :  { %5214 = vmatprep.subr.bf16.mxu0 %v9376_v43  ;;  %v3626_v43 = vand.u32 4294901760, %v3625_v31 }
 0x493   :  { %5216 = vmatpush1.bf16.msra.mxu0 %v9377_v36  ;;  %v3513_v36 = vsub.f32 %v9396_v44, %v8677_v62 }
 0x494   :  { %5218 = vmatprep.subr.bf16.mxu0 %v9378_v5  ;;  %v9399_v5 = vld [vmem:[#allocation87_spill] sm:$0xff] }
 0x495   :  { %v3514_v1 = vand.u32 4294901760, %v3513_v36 }
 0x497   :  { %5220 = vmatpush1.bf16.msra.mxu0 %v9379_v10  ;;  %v5293_v10 = vpack.c.bf16 %v3612_v16, %v3605_v57  ;;  %v9403_v57 = vld [vmem:[#allocation89_spill] sm:$0xff]  ;;  %v5299_v21 = vpack.c.bf16 %v3514_v1, %v3507_v42 }
 0x498   :  { %5222 = vmatprep.subr.bf16.mxu0 %v9380_v22  ;;  %v8702_v22 = vand.u32 4294901760, %v7823_v30 }
 0x49a   :  { %v7862_v16 = vsub.f32 %v7823_v30, %v8702_v22 }
 0x49b   :  { %5224 = vmatpush1.bf16.msra.mxu0 %v9381_v23  ;;  %v8701_v23 = vand.u32 4294901760, %v7825_v51 }
 0x49c   :  { %5226 = vmatprep.subr.bf16.mxu0 %v9382_v35  ;;  %v7837_v35 = vld [vmem:[#allocation10 + $0x40] sm:$0xff]  ;;  %v8689_v62 = vand.u32 4294901760, %v7862_v16 }
 0x49d   :  { %v8700_v31 = vand.u32 4294901760, %v7837_v35 }
 0x49f   :  { %5228 = vmatpush1.bf16.msra.mxu0 %v9383_v55  ;;  %v7839_v55 = vld [vmem:[#allocation10 + $0x48] sm:$0xff] }
 0x4a0   :  { %5230 = vmatprep.subr.bf16.mxu0 %v9384_v40  ;;  %v3632_v40 = vsub.f32 %v7641_v17, %v8672_v4  ;;  %v8690_v4 = vand.u32 4294901760, %v7673_v33 }
 0x4a3   :  { %5232 = vmatpush1.bf16.msra.mxu0 %v9385_v9  ;;  %v3639_v9 = vsub.f32 %v7649_v60, %v8671_v49  ;;  %v3653_v49 = vsub.f32 %v7667_v20, %v8676_v15 }
 0x4a4   :  { %5234 = vmatprep.subr.bf16.mxu0 %v9386_v52  ;;  %v9400_v52 = vld [vmem:[#allocation67_spill] sm:$0xff] }
 0x4a5   :  { %v3640_v36 = vand.u32 4294901760, %v3639_v9  ;;  %v9404_v9 = vld [vmem:[#allocation47_spill] sm:$0xff]  ;;  %v3654_v27 = vand.u32 4294901760, %v3653_v49  ;;  %v3660_v49 = vsub.f32 %v7862_v16, %v8689_v62 }
 0x4a7   :  { %5236 = vmatpush1.bf16.msra.mxu0 %v9387_v63  ;;  %v8673_v63 = vand.u32 4294901760, %v9400_v52 }
 0x4a8   :  { %5238 = vmatprep.subr.bf16.mxu0 %v9388_v7  ;;  %v9401_v7 = vld [vmem:[#allocation68_spill] sm:$0xff] }
 0x4ab   :  { %5240 = vmatpush1.bf16.msra.mxu0 %v9389_v61  ;;  %v8674_v61 = vand.u32 4294901760, %v9401_v7 }
 0x4ac   :  { %5242 = vmatprep.subr.bf16.mxu0 %v9390_v29  ;;  %v7849_v29 = vld [vmem:[#allocation10 + $0xd0] sm:$0xff] }
 0x4af   :  { %5244 = vmatpush1.bf16.msra.mxu0 %v9392_v0  ;;  %v7851_v0 = vld [vmem:[#allocation10 + $0xd8] sm:$0xff] }
 0x4b0   :  { %5246 = vmatprep.subr.bf16.mxu0 %v9394_v45  ;;  %v5295_v45 = vpack.c.bf16 %v3500_v14, %v3493_v3  ;;  %v7867_v3 = vsub.f32 %v7825_v51, %v8701_v23  ;;  %v8686_v14 = vand.u32 4294901760, %v7849_v29  ;;  %v8687_v53 = vand.u32 4294901760, %v7851_v0 }
 0x4b2   :  { %v8691_v38 = vand.u32 4294901760, %v7867_v3  ;;  %v7912_v6 = vsub.f32 %v7851_v0, %v8687_v53 }
 0x4b3   :  { %5248 = vmatpush1.bf16.msra.mxu0 %v9395_v37  ;;  %v5297_v37 = vpack.c.bf16 %v3626_v43, %v3619_v11  ;;  %v7873_v11 = vld [vmem:[#allocation10 + $0x58] sm:$0xff]  ;;  %v3633_v43 = vand.u32 4294901760, %v3632_v40  ;;  %v8688_v40 = vand.u32 4294901760, %v7676_v25 }
 0x4b4   :  { %5250 = vmatprep.subr.bf16.mxu0 %v9397_v59  ;;  %v8685_v59 = vand.u32 4294901760, %v7839_v55  ;;  %v8692_v15 = vand.u32 4294901760, %v7873_v11  ;;  %9407 = vst [vmem:[#allocation71_spill] sm:$0xff] %v7912_v6 }
 0x4b5   :  { %v5301_v47 = vpack.c.bf16 %v3640_v36, %v3633_v43  ;;  %v8696_v36 = vand.u32 4294901760, %v7912_v6 }
 0x4b7   :  { %5252 = vmatpush1.bf16.msra.mxu0 %v9398_v46  ;;  %v7871_v46 = vld [vmem:[#allocation10 + $0x50] sm:$0xff] }
 0x4b8   :  { %5254 = vmatprep.subr.bf16.mxu0 %v9399_v5  ;;  %v3520_v5 = vsub.f32 %v9400_v52, %v8673_v63  ;;  %v7893_v63 = vsub.f32 %v7837_v35, %v8700_v31 }
 0x4ba   :  { %v3521_v41 = vand.u32 4294901760, %v3520_v5  ;;  %v8699_v53 = vand.u32 4294901760, %v7893_v63 }
 0x4bb   :  { %5256 = vmatpush1.bf16.msra.mxu0 %v9402_v2  ;;  %v3527_v2 = vsub.f32 %v9401_v7, %v8674_v61  ;;  %v7898_v61 = vsub.f32 %v7839_v55, %v8685_v59  ;;  %v3534_v59 = vsub.f32 %v7673_v33, %v8690_v4 }
 0x4bc   :  { %5258 = vmatprep.subr.bf16.mxu0 %v9403_v57  ;;  %v3646_v57 = vsub.f32 %v7659_v19, %v8675_v58  ;;  %v8693_v58 = vand.u32 4294901760, %v7871_v46 }
 0x4bd   :  { %9405 = vst [vmem:[#allocation69_spill] sm:$0xff] %v7898_v61  ;;  %v3528_v8 = vand.u32 4294901760, %v3527_v2  ;;  %v8695_v42 = vand.u32 4294901760, %v7898_v61 }
 0x4be   :  { %v7926_v1 = vsub.f32 %v7871_v46, %v8693_v58 }
 0x4bf   :  { %5260 = vmatpush1.bf16.msra.mxu0 %v9404_v9  ;;  %v7907_v9 = vsub.f32 %v7849_v29, %v8686_v14  ;;  %v3541_v14 = vsub.f32 %v7676_v25, %v8688_v40  ;;  %v5303_v5 = vpack.c.bf16 %v3528_v8, %v3521_v41  ;;  %v3555_v62 = vsub.f32 %v7898_v61, %v8695_v42 }
 0x4c0   :  { %5294 = vmatprep.subr.bf16.mxu0 %v5293_v10  ;;  %v3647_v10 = vand.u32 4294901760, %v3646_v57  ;;  %9408 = vst [vmem:[#allocation72_spill] sm:$0xff] %v7926_v1  ;;  %v3535_v57 = vand.u32 4294901760, %v3534_v59  ;;  %v8698_v4 = vand.u32 4294901760, %v7926_v1  ;;  %v3681_v8 = vsub.f32 %v7912_v6, %v8696_v36 }
 0x4c1   :  { %9406 = vst [vmem:[#allocation70_spill] sm:$0xff] %v7907_v9  ;;  %v8694_v43 = vand.u32 4294901760, %v7907_v9  ;;  %v3542_v40 = vand.u32 4294901760, %v3541_v14  ;;  %v3556_v59 = vand.u32 4294901760, %v3555_v62  ;;  %v9410_v61 = vand.u32 4294901760, %v7823_v30 }
 0x4c2   :  { %3329 = vmatmul.mubr.f32.vlgmr.msra.gmra.mrb[2].mxu0 %v9367_v32  ;;  %v7931_v32 = vsub.f32 %v7873_v11, %v8692_v15  ;;  %v5305_v2 = vpack.c.bf16 %v3654_v27, %v3647_v10  ;;  %v3661_v15 = vand.u32 4294901760, %v3660_v49  ;;  %v3562_v14 = vsub.f32 %v7926_v1, %v8698_v4 }
 0x4c3   :  { %5296 = vmatpush3.bf16.msra.mxu0 %v5295_v45  ;;  %v3667_v45 = vsub.f32 %v7867_v3, %v8691_v38  ;;  %v3674_v27 = vsub.f32 %v7907_v9, %v8694_v43  ;;  %v5307_v41 = vpack.c.bf16 %v3542_v40, %v3535_v57  ;;  %v7963_v57 = vld [vmem:[#allocation10 + $0xe8] sm:$0xff] }
 0x4c4   :  { %9409 = vst [vmem:[#allocation73_spill] sm:$0xff] %v7931_v32  ;;  %5298 = vmatprep.subr.bf16.mxu0 %v5297_v37  ;;  %v3548_v37 = vsub.f32 %v7893_v63, %v8699_v53  ;;  %v8697_v38 = vand.u32 4294901760, %v7931_v32  ;;  %v3563_v42 = vand.u32 4294901760, %v3562_v14 }
 0x4c5   :  { %v3668_v58 = vand.u32 4294901760, %v3667_v45  ;;  %v3675_v49 = vand.u32 4294901760, %v3674_v27  ;;  %v3682_v45 = vand.u32 4294901760, %v3681_v8 }
 0x4c7   :  { %5300 = vmatpush3.bf16.msra.mxu0 %v5299_v21  ;;  %v3549_v21 = vand.u32 4294901760, %v3548_v37  ;;  %v5309_v10 = vpack.c.bf16 %v3668_v58, %v3661_v15  ;;  %v5313_v40 = vpack.c.bf16 %v3682_v45, %v3675_v49  ;;  %v3464_v58 = vand.u32 4294901760, %v7963_v57  ;;  %v7967_v15 = vld [vmem:[#allocation10 + $0x60] sm:$0xff]  ;;  %v3351_v45 = vld [vmem:[#allocation10 + $0x70] sm:$0xff] }
 0x4c8   :  { %5302 = vmatprep.subr.bf16.mxu0 %v5301_v47  ;;  %v3569_v47 = vsub.f32 %v7931_v32, %v8697_v38  ;;  %v3413_v27 = vand.u32 4294901760, %v7967_v15 }
 0x4c9   :  { %v5311_v43 = vpack.c.bf16 %v3556_v59, %v3549_v21  ;;  %v3367_v21 = vld [vmem:[#allocation10 + $0xf0] sm:$0xff]  ;;  %v3368_v59 = vld [vmem:[#allocation10 + $0xf8] sm:$0xff] }
 0x4ca   :  { %v3570_v36 = vand.u32 4294901760, %v3569_v47  ;;  %v3470_v49 = vand.u32 4294901760, %v3368_v59 }
 0x4cb   :  { %5304 = vmatpush3.bf16.msra.mxu0 %v5303_v5  ;;  %v7961_v5 = vld [vmem:[#allocation10 + $0xe0] sm:$0xff] }
 0x4cc   :  { %5306 = vmatprep.subr.bf16.mxu0 %v5305_v2  ;;  %v5315_v62 = vpack.c.bf16 %v3570_v36, %v3563_v42  ;;  %v3461_v37 = vand.u32 4294901760, %v7961_v5  ;;  %v3350_v2 = vld [vmem:[#allocation10 + $0x68] sm:$0xff]  ;;  %v7974_v42 = vsub.f32 %v7963_v57, %v3464_v58  ;;  %v3419_v57 = vand.u32 4294901760, %v3351_v45 }
 0x4cd   :  { %v3416_v8 = vand.u32 4294901760, %v3350_v2  ;;  %v7993_v53 = vsub.f32 %v3368_v59, %v3470_v49 }
 0x4ce   :  { %v8708_v47 = vand.u32 4294901760, %v7974_v42  ;;  %v8001_v22 = vsub.f32 %v3351_v45, %v3419_v57 }
 0x4cf   :  { %5308 = vmatpush3.bf16.msra.mxu0 %v5307_v41  ;;  %v7971_v41 = vsub.f32 %v7961_v5, %v3461_v37  ;;  %v7979_v36 = vsub.f32 %v3350_v2, %v3416_v8 }
 0x4d0   :  { %5310 = vmatprep.subr.bf16.mxu0 %v5309_v10  ;;  %v3467_v10 = vand.u32 4294901760, %v3367_v21  ;;  %v3695_v2 = vsub.f32 %v7974_v42, %v8708_v47  ;;  %v8717_v9 = vand.u32 4294901760, %v8001_v22 }
 0x4d1   :  { %v8705_v14 = vand.u32 4294901760, %v7971_v41  ;;  %v8716_v5 = vand.u32 4294901760, %v7979_v36 }
 0x4d2   :  { %v7991_v4 = vsub.f32 %v3367_v21, %v3467_v10  ;;  %v3696_v1 = vand.u32 4294901760, %v3695_v2  ;;  %v8718_v21 = vand.u32 4294901760, %v7993_v53  ;;  %v9413_v2 = vand.u32 4294901760, %v7839_v55 }
 0x4d3   :  { %5312 = vmatpush3.bf16.msra.mxu0 %v5311_v43  ;;  %v7977_v43 = vsub.f32 %v7967_v15, %v3413_v27  ;;  %v3688_v15 = vsub.f32 %v7971_v41, %v8705_v14  ;;  %v3583_v23 = vsub.f32 %v7979_v36, %v8716_v5  ;;  %v9411_v5 = vand.u32 4294901760, %v7825_v51 }
 0x4d4   :  { %5314 = vmatprep.subr.bf16.mxu0 %v5313_v40  ;;  %v3352_v40 = vld [vmem:[#allocation10 + $0x78] sm:$0xff]  ;;  %v3701_v47 = vand.u32 4294901760, %v7991_v4  ;;  %v3590_v51 = vsub.f32 %v8001_v22, %v8717_v9  ;;  %v9417_v9 = vand.u32 4294901760, %v7871_v46  ;;  %v8056_v46 = vpack.c.bf16 %v3470_v49, %v3467_v10  ;;  %v9420_v10 = vld [vmem:[#allocation92_spill] sm:$0xff] }
 0x4d5   :  { %v3422_v38 = vand.u32 4294901760, %v3352_v40  ;;  %v3689_v14 = vand.u32 4294901760, %v3688_v15  ;;  %v3584_v6 = vand.u32 4294901760, %v3583_v23  ;;  %v8013_v45 = vpack.c.bf16 %v9411_v5, %v9410_v61 }
 0x4d6   :  { %v3702_v15 = vsub.f32 %v7991_v4, %v3701_v47  ;;  %v9412_v23 = vand.u32 4294901760, %v7837_v35  ;;  %v3591_v35 = vand.u32 4294901760, %v3590_v51 }
 0x4d7   :  { %5316 = vmatpush3.bf16.msra.mxu0 %v5315_v62  ;;  %v8713_v62 = vand.u32 4294901760, %v7977_v43  ;;  %v8003_v32 = vsub.f32 %v3352_v40, %v3422_v38  ;;  %v5317_v40 = vpack.c.bf16 %v3696_v1, %v3689_v14  ;;  %5278 = vmatprep.subr.bf16.mxu1 %v8013_v45 }
 0x4d8   :  { %v3703_v14 = vand.u32 4294901760, %v3702_v15  ;;  %v8049_v15 = vpack.c.bf16 %v3464_v58, %v3461_v37  ;;  %v5349_v37 = vpack.c.bf16 %v7974_v42, %v7971_v41  ;;  %v5351_v58 = vpack.c.bf16 %v7979_v36, %v7977_v43 }
 0x4d9   :  { %v3576_v31 = vsub.f32 %v7977_v43, %v8713_v62  ;;  %v8025_v62 = vpack.c.bf16 %v9413_v2, %v9412_v23  ;;  %v9414_v61 = vand.u32 4294901760, %v8003_v32  ;;  %5318 = vmatprep.subr.bf16.mxu0 %v5317_v40 }
 0x4db   :  { %v3577_v59 = vand.u32 4294901760, %v3576_v31  ;;  %v3709_v31 = vsub.f32 %v7993_v53, %v8718_v21  ;;  %v3597_v1 = vsub.f32 %v8003_v32, %v9414_v61  ;;  %5280 = vmatpush3.bf16.msra.mxu1 %v8025_v62  ;;  %v9418_v61 = vand.u32 4294901760, %v7873_v11 }
 0x4dc   :  { %v8058_v11 = vpack.c.bf16 %v3422_v38, %v3419_v57  ;;  %v5355_v38 = vpack.c.bf16 %v8003_v32, %v8001_v22  ;;  %v9421_v57 = vld [vmem:[#allocation93_spill] sm:$0xff] }
 0x4dd   :  { %v5319_v30 = vpack.c.bf16 %v3584_v6, %v3577_v59  ;;  %v3710_v5 = vand.u32 4294901760, %v3709_v31  ;;  %v3598_v55 = vand.u32 4294901760, %v3597_v1  ;;  %v9415_v6 = vand.u32 4294901760, %v7849_v29  ;;  %v9419_v29 = vld [vmem:[#allocation64_spill] sm:$0xff] }
 0x4de   :  { %v9416_v59 = vand.u32 4294901760, %v7851_v0  ;;  %v8045_v21 = vpack.c.bf16 %v9418_v61, %v9417_v9  ;;  %v8052_v0 = vpack.c.bf16 %v3416_v8, %v3413_v27  ;;  %v5325_v9 = vpack.c.bf16 %v7604_v28, %v7602_v12  ;;  %v2039_v8 = vld [vmem:[%s8244_s6] sm:$0x3] }
 0x4df   :  { %5320 = vmatpush3.bf16.msra.mxu0 %v5319_v30  ;;  %v5321_v2 = vpack.c.bf16 %v3710_v5, %v3703_v14  ;;  %v5323_v40 = vpack.c.bf16 %v3598_v55, %v3591_v35  ;;  %v5353_v27 = vpack.c.bf16 %v7993_v53, %v7991_v4  ;;  %v2044_v49 = vrot.slane %v2039_v8, %v9420_v10  ;;  %v9423_v10 = vld [vmem:[#allocation66_spill] sm:$0xff] }
 0x4e0   :  { %v8039_v23 = vpack.c.bf16 %v9416_v59, %v9415_v6  ;;  %v2048_v31 = vrot.slane %v2039_v8, %v9421_v57  ;;  %v4258_v4 = vld [vmem:[%s8246_s8] ss:$0 sm:$0xff]  ;;  %s5652_s8 = smov [#allocation11]  }
 0x4e1   :  { %5322 = vmatprep.subr.bf16.mxu0 %v5321_v2  ;;  %s4247_s12 = sshll.u32 %s5652_s8, 4  ;;  %s4248_s12 = int_to_ptr.vmem [resolvable:$true] %s4247_s12 }
 0x4e2   :  { %5282 = vmatprep.subr.bf16.mxu1 %v8039_v23  ;;  %s5612_s13 = scalar_lea.vmem %s4248_s12, 128  ;;  %p5617_p13 = scmp.lt.s32.totalorder %s4248_s12, %s4248_s12 }
 0x4e3   :  { %5284 = vmatpush3.bf16.msra.mxu1 %v8045_v21  ;;  %5324 = vmatpush3.bf16.msra.mxu0 %v5323_v40  ;;  %v9422_v40 = vld [vmem:[#allocation65_spill] sm:$0xff]  ;;  %p5613_p12 = scmp.ne.s32.totalorder %s4248_s12, %s5612_s13  ;;  %p5618_p0 = scmp.lt.s32.totalorder %s5612_s13, %s5612_s13 }
 0x4e4   :  { %5358 = vmatprep.subr.bf16.mxu0 %v9419_v29  ;;  %5286 = vmatprep.subr.bf16.mxu1 %v8049_v15 }
 0x4e5   :  { %p5619_p1 = por %p5618_p0, %p5617_p13 }
 0x4e7   :  { %5288 = vmatpush3.bf16.msra.mxu1 %v8052_v0  ;;  %p5620_p2 = pnand %p5619_p1, %p5613_p12 }
 0x4e8   :  { %5290 = vmatprep.subr.bf16.mxu1 %v8056_v46 }
 0x4eb   :  { %5292 = vmatpush3.bf16.msra.mxu1 %v8058_v11 }
 0x4ec   :  { %5326 = vmatprep.subr.bf16.mxu1 %v5325_v9 }
 0x595   :  { %v3330_v30 = vpop.f32.mrb[2].mxu0 }
 0x596   :  { %v5459_v51 = vadd.f32 %v3330_v30, %v2044_v49  ;;  %v3332_v1 = vpop.f32.mrb[3].mxu0 }
 0x597   :  { %v5460_v14 = vadd.f32 %v3332_v1, %v2048_v31  ;;  %v5327_v31 = vpack.c.bf16 %v9391_v18, %v7606_v24  ;;  %v5331_v1 = vpack.c.bf16 %v9396_v44, %v7618_v54 }
 0x598   :  { %v3335_v5 = vmax.f32 %v5459_v51, 0.0  ;;  %v5329_v51 = vpack.c.bf16 %v9393_v26, %v7610_v13 }
 0x599   :  { %v3336_v35 = vmax.f32 %v5460_v14, 0.0  ;;  %v5333_v14 = vpack.c.bf16 %v7649_v60, %v7641_v17 }
 0x59a   :  { %v8077_v55 = vand.u32 4294901760, %v3335_v5 }
 0x59b   :  { %v8079_v6 = vand.u32 4294901760, %v3336_v35 }
 0x59c   :  { %v8082_v59 = vsub.f32 %v3335_v5, %v8077_v55  ;;  %v5335_v5 = vpack.c.bf16 %v9401_v7, %v9400_v52 }
 0x59d   :  { %v3473_v2 = vsub.f32 %v3336_v35, %v8079_v6  ;;  %3713 = vmatprep.mubr.f32.mxu0 %v8079_v6  ;;  %v5337_v35 = vpack.c.bf16 %v7667_v20, %v7659_v19 }
 0x59e   :  { %v3480_v61 = vand.u32 4294901760, %v8082_v59  ;;  %3715 = vmatmul.mubr.f32.vlgmr.msra.gmra.mrb[4].mxu0 %v8077_v55 }
 0x59f   :  { %5360 = vmatpush3.bf16.msra.mxu0 %v9422_v40  ;;  %v3474_v9 = vand.u32 4294901760, %v3473_v2 }
 0x5a0   :  { %v3481_v8 = vsub.f32 %v8082_v59, %v3480_v61  ;;  %5362 = vmatprep.subr.bf16.mxu0 %v9423_v10 }
 0x5a1   :  { %3957 = vmatprep.mubr.f32.mxu0 %v3474_v9  ;;  %v3475_v49 = vsub.f32 %v3473_v2, %v3474_v9  ;;  %v5341_v9 = vpack.c.bf16 %v7867_v3, %v7862_v16 }
 0x5a2   :  { %v3482_v30 = vand.u32 4294901760, %v3481_v8  ;;  %v9424_v8 = vld [vmem:[#allocation69_spill] sm:$0xff] }
 0x5a3   :  { %5364 = vmatpush3.bf16.msra.mxu0 %v7661_v34  ;;  %v3476_v57 = vand.u32 4294901760, %v3475_v49  ;;  %v5343_v49 = vpack.c.bf16 %v9424_v8, %v7893_v63 }
 0x5a4   :  { %5366 = vmatprep.subr.bf16.mxu0 %v7682_v50 }
 0x5a5   :  { %3477 = vmatprep.mubr.f32.mxu1 %v3476_v57  ;;  %v9425_v57 = vld [vmem:[#allocation70_spill] sm:$0xff] }
 0x5a6   :  { %3483 = vmatmul.mubr.f32.vlgmr.msra.gmra.mrb[4].mxu1 %v3482_v30 }
 0x5a7   :  { %5328 = vmatpush3.bf16.msra.mxu1 %v5327_v31  ;;  %5368 = vmatpush3.bf16.msra.mxu0 %v7689_v56  ;;  %v9426_v31 = vld [vmem:[#allocation71_spill] sm:$0xff] }
 0x5a8   :  { %3850 = vmatprep.mubr.f32.mxu1 %v3473_v2  ;;  %5330 = vmatprep.subr.bf16.mxu1 %v5329_v51  ;;  %v5339_v2 = vpack.c.bf16 %v7676_v25, %v7673_v33  ;;  %v5345_v30 = vpack.c.bf16 %v9426_v31, %v9425_v57  ;;  %v9427_v51 = vld [vmem:[#allocation72_spill] sm:$0xff] }
 0x5a9   :  { %5370 = vmatprep.subr.bf16.mxu0 %v7700_v48 }
 0x5ab   :  { %5332 = vmatpush3.bf16.msra.mxu1 %v5331_v1  ;;  %5372 = vmatpush3.bf16.msra.mxu0 %v7703_v39  ;;  %v9428_v1 = vld [vmem:[#allocation73_spill] sm:$0xff] }
 0x5ac   :  { %5334 = vmatprep.subr.bf16.mxu1 %v5333_v14  ;;  %5374 = vmatprep.subr.bf16.mxu0 %v8013_v45  ;;  %v5347_v14 = vpack.c.bf16 %v9428_v1, %v9427_v51 }
 0x5af   :  { %5336 = vmatpush3.bf16.msra.mxu1 %v5335_v5  ;;  %5376 = vmatpush3.bf16.msra.mxu0 %v8025_v62  ;;  %v9429_v5 = vand.u32 4294901760, %v7602_v12  ;;  %v9433_v12 = vand.u32 4294901760, %v7610_v13  ;;  %v9438_v13 = vand.u32 4294901760, %v7649_v60  ;;  %v9444_v60 = vand.u32 4294901760, %v7676_v25 }
 0x5b0   :  { %5338 = vmatprep.subr.bf16.mxu1 %v5337_v35  ;;  %5378 = vmatprep.subr.bf16.mxu0 %v8039_v23  ;;  %v9430_v35 = vand.u32 4294901760, %v7604_v28  ;;  %v9434_v28 = vand.u32 4294901760, %v9393_v26  ;;  %v9439_v26 = vand.u32 4294901760, %v9400_v52  ;;  %v9445_v52 = vand.u32 4294901760, %v7862_v16 }
 0x5b1   :  { %v9450_v25 = vand.u32 4294901760, %v9426_v31  ;;  %v9451_v16 = vand.u32 4294901760, %v9427_v51 }
 0x5b3   :  { %5340 = vmatpush3.bf16.msra.mxu1 %v5339_v2  ;;  %5380 = vmatpush3.bf16.msra.mxu0 %v8045_v21 }
 0x5b4   :  { %5342 = vmatprep.subr.bf16.mxu1 %v5341_v9  ;;  %5382 = vmatprep.subr.bf16.mxu0 %v8049_v15 }
 0x5b7   :  { %5344 = vmatpush3.bf16.msra.mxu1 %v5343_v49  ;;  %5384 = vmatpush3.bf16.msra.mxu0 %v8052_v0 }
 0x5b8   :  { %5346 = vmatprep.subr.bf16.mxu1 %v5345_v30  ;;  %5386 = vmatprep.subr.bf16.mxu0 %v8056_v46 }
 0x5bb   :  { %5348 = vmatpush3.bf16.msra.mxu1 %v5347_v14  ;;  %5388 = vmatpush3.bf16.msra.mxu0 %v8058_v11 }
 0x5bc   :  { %5350 = vmatprep.subr.bf16.mxu1 %v5349_v37  ;;  %5422 = vmatprep.subr.bf16.mxu0 %v9419_v29  ;;  %v5389_v37 = vpack.c.bf16 %v9430_v35, %v9429_v5  ;;  %v9431_v29 = vand.u32 4294901760, %v7606_v24  ;;  %v9436_v24 = vand.u32 4294901760, %v9396_v44 }
 0x5be   :  { %3961 = vmatmul.mubr.f32.vlgmr.msra.gmra.mrb[6].mxu0 %v3480_v61 }
 0x5bf   :  { %5352 = vmatpush3.bf16.msra.mxu1 %v5351_v58  ;;  %5424 = vmatpush3.bf16.msra.mxu0 %v9422_v40  ;;  %v9432_v58 = vand.u32 4294901760, %v9391_v18 }
 0x5c0   :  { %4231 = vmatprep.mubr.f32.mxu0 %v8079_v6  ;;  %5354 = vmatprep.subr.bf16.mxu1 %v5353_v27  ;;  %v5393_v27 = vpack.c.bf16 %v9434_v28, %v9433_v12 }
 0x5c1   :  { %5426 = vmatprep.subr.bf16.mxu0 %v9423_v10  ;;  %v5391_v61 = vpack.c.bf16 %v9432_v58, %v9431_v29  ;;  %v9455_v10 = vand.u32 4294901760, %v7977_v43 }
 0x5c3   :  { %5356 = vmatpush3.bf16.msra.mxu1 %v5355_v38  ;;  %5428 = vmatpush3.bf16.msra.mxu0 %v7661_v34  ;;  %v9435_v34 = vand.u32 4294901760, %v7618_v54  ;;  %v9441_v54 = vand.u32 4294901760, %v7659_v19  ;;  %v9448_v19 = vand.u32 4294901760, %v9424_v8 }
 0x5c4   :  { %5390 = vmatprep.subr.bf16.mxu1 %v5389_v37  ;;  %5430 = vmatprep.subr.bf16.mxu0 %v7682_v50  ;;  %v9437_v50 = vand.u32 4294901760, %v7641_v17  ;;  %v9443_v17 = vand.u32 4294901760, %v7673_v33  ;;  %v9449_v33 = vand.u32 4294901760, %v9425_v57 }
 0x5c5   :  { %v5395_v38 = vpack.c.bf16 %v9436_v24, %v9435_v34 }
 0x5c6   :  { %3853 = vmatmul.mubr.f32.vlgmr.msra.gmra.mrb[6].mxu1 %v8082_v59  ;;  %v5397_v18 = vpack.c.bf16 %v9438_v13, %v9437_v50 }
 0x5c7   :  { %5392 = vmatpush3.bf16.msra.mxu1 %v5391_v61  ;;  %4127 = vmatprep.mubr.f32.mxu1 %v8079_v6  ;;  %v9440_v6 = vand.u32 4294901760, %v9401_v7 }
 0x5c8   :  { %5432 = vmatpush3.bf16.msra.mxu0 %v7689_v56  ;;  %5394 = vmatprep.subr.bf16.mxu1 %v5393_v27  ;;  %v9442_v56 = vand.u32 4294901760, %v7667_v20  ;;  %v9447_v20 = vand.u32 4294901760, %v7893_v63  ;;  %v9453_v63 = vand.u32 4294901760, %v7971_v41  ;;  %v9458_v41 = vand.u32 4294901760, %v8001_v22 }
 0x5c9   :  { %5434 = vmatprep.subr.bf16.mxu0 %v7700_v48  ;;  %v5399_v59 = vpack.c.bf16 %v9440_v6, %v9439_v26  ;;  %v5403_v48 = vpack.c.bf16 %v9444_v60, %v9443_v17 }
 0x5ca   :  { %v5401_v44 = vpack.c.bf16 %v9442_v56, %v9441_v54 }
 0x5cb   :  { %5396 = vmatpush3.bf16.msra.mxu1 %v5395_v38 }
 0x5cc   :  { %5436 = vmatpush3.bf16.msra.mxu0 %v7703_v39  ;;  %5398 = vmatprep.subr.bf16.mxu1 %v5397_v18  ;;  %v9446_v39 = vand.u32 4294901760, %v7867_v3  ;;  %v9452_v3 = vand.u32 4294901760, %v9428_v1 }
 0x5cd   :  { %5438 = vmatprep.subr.bf16.mxu0 %v8013_v45  ;;  %v5407_v45 = vpack.c.bf16 %v9448_v19, %v9447_v20 }
 0x5ce   :  { %v5405_v7 = vpack.c.bf16 %v9446_v39, %v9445_v52 }
 0x5cf   :  { %5400 = vmatpush3.bf16.msra.mxu1 %v5399_v59 }
 0x5d0   :  { %5440 = vmatpush3.bf16.msra.mxu0 %v8025_v62  ;;  %5402 = vmatprep.subr.bf16.mxu1 %v5401_v44  ;;  %v5409_v62 = vpack.c.bf16 %v9450_v25, %v9449_v33 }
 0x5d1   :  { %5442 = vmatprep.subr.bf16.mxu0 %v8039_v23  ;;  %v5411_v23 = vpack.c.bf16 %v9452_v3, %v9451_v16 }
 0x5d3   :  { %5404 = vmatpush3.bf16.msra.mxu1 %v5403_v48 }
 0x5d4   :  { %5444 = vmatpush3.bf16.msra.mxu0 %v8045_v21  ;;  %5406 = vmatprep.subr.bf16.mxu1 %v5405_v7  ;;  %v9454_v21 = vand.u32 4294901760, %v7974_v42  ;;  %v9459_v42 = vand.u32 4294901760, %v8003_v32 }
 0x5d5   :  { %5446 = vmatprep.subr.bf16.mxu0 %v8049_v15  ;;  %v9456_v15 = vand.u32 4294901760, %v7979_v36 }
 0x5d6   :  { %v5413_v40 = vpack.c.bf16 %v9454_v21, %v9453_v63 }
 0x5d7   :  { %5408 = vmatpush3.bf16.msra.mxu1 %v5407_v45  ;;  %v5415_v2 = vpack.c.bf16 %v9456_v15, %v9455_v10 }
 0x5d8   :  { %5448 = vmatpush3.bf16.msra.mxu0 %v8052_v0  ;;  %5410 = vmatprep.subr.bf16.mxu1 %v5409_v62  ;;  %v9457_v0 = vand.u32 4294901760, %v7993_v53 }
 0x5d9   :  { %5450 = vmatprep.subr.bf16.mxu0 %v8056_v46  ;;  %v5419_v46 = vpack.c.bf16 %v9459_v42, %v9458_v41 }
 0x5da   :  { %v5417_v9 = vpack.c.bf16 %v9457_v0, %v3701_v47 }
 0x5db   :  { %5412 = vmatpush3.bf16.msra.mxu1 %v5411_v23 }
 0x5dc   :  { %5452 = vmatpush3.bf16.msra.mxu0 %v8058_v11  ;;  %5414 = vmatprep.subr.bf16.mxu1 %v5413_v40 }
 0x5df   :  { %4233 = vmatmul.mubr.f32.vlgmr.msra.gmra.mrb[8].mxu0 %v8077_v55  ;;  %5416 = vmatpush3.bf16.msra.mxu1 %v5415_v2 }
 0x5e0   :  { %5418 = vmatprep.subr.bf16.mxu1 %v5417_v9 }
 0x5e3   :  { %5420 = vmatpush3.bf16.msra.mxu1 %v5419_v46 }
 0x5e6   :  { %4129 = vmatmul.mubr.f32.vlgmr.msra.gmra.mrb[8].mxu1 %v8077_v55 }
 0x671   :  { %v4326_v43 = vpop.f32.mrb[4].mxu0 }
 0x672   :  { %v4327_v36 = vpop.f32.mrb[5].mxu0 }
 0x673   :  { %v4328_v11 = vadd.f32 %v4327_v36, %v4326_v43 }
 0x679   :  { %v4291_v8 = vpop.f32.mrb[4].mxu1 }
 0x67a   :  { %v4292_v53 = vpop.f32.mrb[5].mxu1 }
 0x67b   :  { %v4293_v47 = vadd.f32 %v4292_v53, %v4291_v8 }
 0x67d   :  { %v3485_v49 = vadd.f32 %v4293_v47, %v4258_v4 }
 0x67f   :  { %v3717_v57 = vadd.f32 %v4328_v11, %v3485_v49 }
 0x691   :  { %v4396_v22 = vpop.f32.mrb[6].mxu0 }
 0x692   :  { %v4397_v31 = vpop.f32.mrb[7].mxu0 }
 0x693   :  { %v4398_v32 = vadd.f32 %v4397_v31, %v4396_v22 }
 0x699   :  { %v4361_v30 = vpop.f32.mrb[6].mxu1 }
 0x69a   :  { %v4362_v51 = vpop.f32.mrb[7].mxu1 }
 0x69b   :  { %v4363_v1 = vadd.f32 %v4362_v51, %v4361_v30 }
 0x69d   :  { %v3855_v14 = vadd.f32 %v4363_v1, %v3717_v57 }
 0x69f   :  { %v3963_v55 = vadd.f32 %v4398_v32, %v3855_v14 }
 0x6b2   :  { %v4466_v5 = vpop.f32.mrb[8].mxu0 }
 0x6b3   :  { %v4467_v35 = vpop.f32.mrb[9].mxu0 }
 0x6b4   :  { %v4468_v37 = vadd.f32 %v4467_v35, %v4466_v5 }
 0x6b9   :  { %v4431_v29 = vpop.f32.mrb[8].mxu1 }
 0x6ba   :  { %v4432_v58 = vpop.f32.mrb[9].mxu1 }
 0x6bb   :  { %v4433_v61 = vadd.f32 %v4432_v58, %v4431_v29 }
 0x6bd   :  { %v4131_v12 = vadd.f32 %v4433_v61, %v3963_v55 }
 0x6bf   :  { %v4235_v28 = vadd.f32 %v4468_v37, %v4131_v12 }
 0x6c1   :  { %5500 = vtanh.f32 %v4235_v28 }
 0x6cb   :  { %v5501_v27 = vpop.eup %5500 }
 0x6cc   :  { %v4239_v34 = vmul.f32 2.0, %v5501_v27 }
 0x6ce   :  { %4240 = vst [vmem:[#allocation11] sm:$0xff] %v4239_v34 }
 0x6cf   :  { %5623 = shalt.err (!%p5620_p2)
}
 0x6d0   :  { %s5624_s14 = scalar_lea.hbm %s8247_s9, 128 }
 0x6d1   :  { %p5625_p3 = scmp.ne.s32.totalorder %s8247_s9, %s5624_s14  ;;  %p5628_p4 = scmp.lt.u32.totalorder %s5624_s14, %s8247_s9 }
 0x6d3   :  { %p5630_p5 = pnand %p5628_p4, %p5625_p3 }
 0x6d5   :  { %5633 = shalt.err (!%p5630_p5)
}
 0x6d6   :  { %4250 = dma.vmem_to_hbm [thread:$0]  %s4248_s12, 128, %s8247_s9, [#allocation4]  }
 0x6d7   :  { %5640 = dma.done.wait [#allocation4], 128  }
 0x6d8   :  { %5641 = vsyncadd [#allocation4], 4294967168 }
 0x6d9   :  { %4254 = vsyncpa [#allocation3], 1 }
 0x6da   :  { %4255 = vsyncpa [#allocation6], 1 }
 0x6db   :  { %4256 = vsyncpa [#allocation9], 1 }
 0x6dc   :  { %4257 = vsyncpa [#allocation4], 1 }

// kernel: tpu_custom_call.1
= control target key start
LH: loop header
LB: loop body
LE: loop exit
PB: predicated region body
PF: predicated region fallthrough
CT: control target
= control target key end

     0   :  { %14 = vsyncpa [#allocation3], 0  ;;  %s8238_s0 = inlined_call_operand.hbm [shape: f32[8,16], index: 0, kind: input, shape index: {}]   ;;  %s8239_s1 = inlined_call_operand.hbm [shape: f32[16,256], index: 1, kind: input, shape index: {}]   ;;  %s8240_s2 = inlined_call_operand.vmem [shape: f32[1,256], index: 2, kind: input, shape index: {}]   ;;  %s8241_s3 = inlined_call_operand.hbm [shape: f32[256,256], index: 3, kind: input, shape index: {}]   ;;  %s8242_s4 = inlined_call_operand.vmem [shape: f32[1,256], index: 4, kind: input, shape index: {}]   ;;  %s8243_s5 = inlined_call_operand.hbm [shape: f32[256,256], index: 5, kind: input, shape index: {}]   ;;  %s8244_s6 = inlined_call_operand.vmem [shape: f32[1,256], index: 6, kind: input, shape index: {}]   ;;  %s8245_s7 = inlined_call_operand.hbm [shape: f32[256,128], index: 7, kind: input, shape index: {}]   ;;  %s8246_s8 = inlined_call_operand.vmem [shape: f32[1,128], index: 8, kind: input, shape index: {}]   ;;  %s8247_s9 = inlined_call_operand.hbm [shape: f32[8,128], index: 9, kind: output, shape index: {}]  }
   0x1   :  { %15 = vsyncpa [#allocation6], 0 }
   0x2   :  { %16 = vsyncpa [#allocation9], 0 }
   0x3   :  { %17 = vsyncpa [#allocation4], 0  ;;  %s5642_s30 = smov [#allocation5]   ;;  %s5502_s13 = scalar_lea.hbm %s8239_s1, 512 }
   0x4   :  { %s33_s10 = sshll.u32 %s5642_s30, 4  ;;  %p5503_p0 = scmp.ne.s32.totalorder %s8239_s1, %s5502_s13  ;;  %s34_s10 = int_to_ptr.vmem [resolvable:$true] %s33_s10 }
   0x5   :  { %p5506_p1 = scmp.lt.u32.totalorder %s5502_s13, %s8239_s1 }
   0x7   :  { %p5508_p2 = pnand %p5506_p1, %p5503_p0 }
   0x9   :  { %5511 = shalt.err (!%p5508_p2)
}
   0xa   :  { %s5512_s18 = scalar_lea.vmem %s34_s10, 512  ;;  %p5517_p4 = scmp.lt.s32.totalorder %s34_s10, %s34_s10 }
   0xb   :  { %p5513_p3 = scmp.ne.s32.totalorder %s34_s10, %s5512_s18  ;;  %p5518_p5 = scmp.lt.s32.totalorder %s5512_s18, %s5512_s18 }
   0xd   :  { %p5519_p6 = por %p5518_p5, %p5517_p4 }
   0xf   :  { %p5520_p7 = pnand %p5519_p6, %p5513_p3 }
  0x11   :  { %5523 = shalt.err (!%p5520_p7)
}
  0x12   :  { %s5643_s19 = smov 256   ;;  %s5644_s20 = smov 16  }
  0x13   :  { %39 = dma.hbm_to_vmem [thread:$0]  %s8239_s1, 512, %s34_s10, [#allocation6], %s5643_s19, %s5643_s19, %s5644_s20  }
  0x14   :  { %s5645_s23 = smov [#allocation8]   ;;  %s5646_s25 = smov [#allocation2]  }
  0x15   :  { %s61_s24 = sshll.u32 %s5645_s23, 4  ;;  %s24_s26 = sshll.u32 %s5646_s25, 4  ;;  %s62_s24 = int_to_ptr.vmem [resolvable:$true] %s61_s24  ;;  %s25_s26 = int_to_ptr.vmem [resolvable:$true] %s24_s26 }
  0x16   :  { %s5524_s29 = scalar_lea.hbm %s8243_s5, 8192 }
  0x17   :  { %p5525_p8 = scmp.ne.s32.totalorder %s8243_s5, %s5524_s29  ;;  %p5528_p9 = scmp.lt.u32.totalorder %s5524_s29, %s8243_s5 }
  0x19   :  { %p5530_p10 = pnand %p5528_p9, %p5525_p8 }
  0x1b   :  { %5533 = shalt.err (!%p5530_p10)
}
  0x1c   :  { %s5534_s1 = scalar_lea.vmem %s62_s24, 8192  ;;  %p5539_p12 = scmp.lt.s32.totalorder %s62_s24, %s62_s24 }
  0x1d   :  { %p5535_p11 = scmp.ne.s32.totalorder %s62_s24, %s5534_s1  ;;  %p5540_p13 = scmp.lt.s32.totalorder %s5534_s1, %s5534_s1 }
  0x1f   :  { %p5541_p0 = por %p5540_p13, %p5539_p12 }
  0x21   :  { %p5542_p1 = pnand %p5541_p0, %p5535_p11 }
  0x23   :  { %5545 = shalt.err (!%p5542_p1)
}
  0x24   :  { %67 = dma.hbm_to_vmem [thread:$0]  %s8243_s5, 8192, %s62_s24, [#allocation9], %s5643_s19, %s5643_s19, %s5644_s20  }
  0x25   :  { %s5546_s17 = scalar_lea.hbm %s8238_s0, 128 }
  0x26   :  { %p5547_p2 = scmp.ne.s32.totalorder %s8238_s0, %s5546_s17  ;;  %p5550_p3 = scmp.lt.u32.totalorder %s5546_s17, %s8238_s0 }
  0x28   :  { %p5552_p4 = pnand %p5550_p3, %p5547_p2 }
  0x2a   :  { %5555 = shalt.err (!%p5552_p4)
}
  0x2b   :  { %s5556_s25 = scalar_lea.vmem %s25_s26, 128  ;;  %p5561_p6 = scmp.lt.s32.totalorder %s25_s26, %s25_s26 }
  0x2c   :  { %p5557_p5 = scmp.ne.s32.totalorder %s25_s26, %s5556_s25  ;;  %p5562_p7 = scmp.lt.s32.totalorder %s5556_s25, %s5556_s25 }
  0x2e   :  { %p5563_p8 = por %p5562_p7, %p5561_p6 }
  0x30   :  { %p5564_p9 = pnand %p5563_p8, %p5557_p5 }
  0x32   :  { %5567 = shalt.err (!%p5564_p9)
}
  0x33   :  { %27 = dma.hbm_to_vmem [thread:$0]  %s8238_s0, 128, %s25_s26, [#allocation3]  }
  0x34   :  { %s5647_s27 = smov [#allocation7]   ;;  %s5648_s29 = smov [#allocation10]  }
  0x35   :  { %s47_s28 = sshll.u32 %s5647_s27, 4  ;;  %s75_s30 = sshll.u32 %s5648_s29, 4  ;;  %s48_s28 = int_to_ptr.vmem [resolvable:$true] %s47_s28  ;;  %s76_s30 = int_to_ptr.vmem [resolvable:$true] %s75_s30 }
  0x36   :  { %s5568_s13 = scalar_lea.hbm %s8241_s3, 8192 }
  0x37   :  { %p5569_p10 = scmp.ne.s32.totalorder %s8241_s3, %s5568_s13  ;;  %p5572_p11 = scmp.lt.u32.totalorder %s5568_s13, %s8241_s3 }
  0x39   :  { %p5574_p12 = pnand %p5572_p11, %p5569_p10 }
  0x3b   :  { %5577 = shalt.err (!%p5574_p12)
}
  0x3c   :  { %s5578_s0 = scalar_lea.vmem %s48_s28, 8192  ;;  %p5583_p0 = scmp.lt.s32.totalorder %s48_s28, %s48_s28 }
  0x3d   :  { %p5579_p13 = scmp.ne.s32.totalorder %s48_s28, %s5578_s0  ;;  %p5584_p1 = scmp.lt.s32.totalorder %s5578_s0, %s5578_s0 }
  0x3f   :  { %p5585_p2 = por %p5584_p1, %p5583_p0 }
  0x41   :  { %p5586_p3 = pnand %p5585_p2, %p5579_p13 }
  0x43   :  { %5589 = shalt.err (!%p5586_p3)
}
  0x44   :  { %53 = dma.hbm_to_vmem [thread:$0]  %s8241_s3, 8192, %s48_s28, [#allocation6], %s5643_s19, %s5643_s19, %s5644_s20  }
  0x45   :  { %s5590_s21 = scalar_lea.hbm %s8245_s7, 4096 }
  0x46   :  { %p5591_p4 = scmp.ne.s32.totalorder %s8245_s7, %s5590_s21  ;;  %p5594_p5 = scmp.lt.u32.totalorder %s5590_s21, %s8245_s7 }
  0x48   :  { %p5596_p6 = pnand %p5594_p5, %p5591_p4 }
  0x4a   :  { %5599 = shalt.err (!%p5596_p6)
}
  0x4b   :  { %s5600_s24 = scalar_lea.vmem %s76_s30, 4096  ;;  %p5605_p8 = scmp.lt.s32.totalorder %s76_s30, %s76_s30 }
  0x4c   :  { %p5601_p7 = scmp.ne.s32.totalorder %s76_s30, %s5600_s24  ;;  %p5606_p9 = scmp.lt.s32.totalorder %s5600_s24, %s5600_s24 }
  0x4e   :  { %p5607_p10 = por %p5606_p9, %p5605_p8 }
  0x50   :  { %p5608_p11 = pnand %p5607_p10, %p5601_p7 }
  0x52   :  { %5611 = shalt.err (!%p5608_p11)
}
  0x53   :  { %s5649_s3 = smov 128   ;;  %s5650_s19 = smov 8  }
  0x54   :  { %81 = dma.hbm_to_vmem [thread:$0]  %s8245_s7, 4096, %s76_s30, [#allocation9], %s5649_s3, %s5649_s3, %s5650_s19  }
  0x55   :  { %5634 = dma.done.wait [#allocation3], 128  }
  0x56   :  { %5635 = vsyncadd [#allocation3], 4294967168 }
  0x57   :  { %5636 = dma.done.wait [#allocation6], 8704  }
  0x58   :  { %5637 = vsyncadd [#allocation6], 4294958592 }
  0x59   :  { %5638 = dma.done.wait [#allocation9], 12288  }
  0x5a   :  { %5639 = vsyncadd [#allocation9], 4294955008  ;;  %v5651_v0 = vmov 0.0   ;;  %vm116_vm0 = vcmask 130048   ;;  %v101_v1 = vld [vmem:[#allocation5 + $0x8] sm:$0xff]  ;;  %v103_v2 = vld [vmem:[#allocation5 + $0x18] sm:$0xff] }
  0x5b   :  { %441 = vmatprep.mubr.f32.mxu0 %v5651_v0  ;;  %188 = vmatprep.mubr.f32.mxu1 %v5651_v0  ;;  %v100_v3 = vld [vmem:[#allocation5] sm:$0xff]  ;;  %v120_v4 = vand.u32 4294901760, %v101_v1  ;;  %v124_v5 = vand.u32 4294901760, %v103_v2  ;;  %v102_v6 = vld [vmem:[#allocation5 + $0x10] sm:$0xff]  ;;  %v99_v8 = vld [vmem:[#allocation2] sm:$0xff] }
  0x5c   :  { %v122_v7 = vand.u32 4294901760, %v100_v3  ;;  %v126_v9 = vand.u32 4294901760, %v102_v6  ;;  %v118_v10 = vsel %vm116_vm0, %v99_v8, 0  ;;  %v5780_v15 = vld [vmem:[#allocation7 + $0x8] sm:$0xff]  ;;  %v5782_v16 = vld [vmem:[#allocation7 + $0x18] sm:$0xff]  ;;  %v5804_v31 = vld [vmem:[#allocation7] sm:$0xff] }
  0x5d   :  { %v4469_v11 = vpack.c.bf16 %v124_v5, %v120_v4  ;;  %v5774_v12 = vsub.f32 %v101_v1, %v120_v4  ;;  %v5776_v13 = vsub.f32 %v103_v2, %v124_v5  ;;  %v5788_v19 = vand.u32 4294901760, %v118_v10  ;;  %v5813_v36 = vld [vmem:[#allocation7 + $0x10] sm:$0xff]  ;;  %v5815_v37 = vld [vmem:[#allocation7 + $0x28] sm:$0xff]  ;;  %v5817_v38 = vld [vmem:[#allocation7 + $0x38] sm:$0xff] }
  0x5e   :  { %v5778_v14 = vsub.f32 %v100_v3, %v122_v7  ;;  %v5784_v17 = vpack.c.bf16 %v126_v9, %v122_v7  ;;  %v5786_v18 = vsub.f32 %v102_v6, %v126_v9  ;;  %v689_v25 = vand.u32 4294901760, %v5780_v15  ;;  %v5824_v43 = vld [vmem:[#allocation7 + $0x20] sm:$0xff]  ;;  %v5834_v52 = vld [vmem:[#allocation7 + $0x30] sm:$0xff]  ;;  %v5836_v53 = vld [vmem:[#allocation7 + $0x48] sm:$0xff] }
  0x5f   :  { %4482 = vmatprep.subr.bf16.mxu0 %v4469_v11  ;;  %4470 = vmatprep.subr.bf16.mxu1 %v4469_v11  ;;  %v202_v20 = vand.u32 4294901760, %v5774_v12  ;;  %v214_v21 = vand.u32 4294901760, %v5776_v13  ;;  %v5796_v23 = vsub.f32 %v118_v10, %v5788_v19  ;;  %v693_v26 = vand.u32 4294901760, %v5782_v16  ;;  %v5844_v58 = vld [vmem:[#allocation7 + $0x58] sm:$0xff]  ;;  %v5846_v59 = vld [vmem:[#allocation7 + $0x40] sm:$0xff]  ;;  %v5848_v60 = vld [vmem:[#allocation7 + $0x50] sm:$0xff] }
  0x60   :  { %v208_v22 = vand.u32 4294901760, %v5778_v14  ;;  %4484 = vmatpush1.bf16.msra.mxu0 %v5784_v17  ;;  %4472 = vmatpush1.bf16.msra.mxu1 %v5784_v17  ;;  %v220_v24 = vand.u32 4294901760, %v5786_v18  ;;  %v5811_v35 = vsub.f32 %v5780_v15, %v689_v25  ;;  %v4477_v46 = vpack.c.bf16 %v5776_v13, %v5774_v12  ;;  %v5865_v1 = vld [vmem:[#allocation7 + $0x68] sm:$0xff]  ;;  %v5867_v2 = vld [vmem:[#allocation7 + $0x78] sm:$0xff]  ;;  %v5880_v9 = vld [vmem:[#allocation7 + $0x60] sm:$0xff] }
  0x61   :  { %v203_v27 = vsub.f32 %v5774_v12, %v202_v20  ;;  %v215_v28 = vsub.f32 %v5776_v13, %v214_v21  ;;  %v4485_v29 = vpack.c.bf16 %v214_v21, %v202_v20  ;;  %v191_v32 = vand.u32 4294901760, %v5796_v23  ;;  %v5894_v20 = vld [vmem:[#allocation7 + $0x70] sm:$0xff]  ;;  %v5896_v21 = vld [vmem:[#allocation7 + $0x88] sm:$0xff]  ;;  %v5955_v15 = vld [vmem:[#allocation7 + $0xa0] sm:$0xff] }
  0x62   :  { %v209_v30 = vsub.f32 %v5778_v14, %v208_v22  ;;  %v221_v33 = vsub.f32 %v5786_v18, %v220_v24  ;;  %v4487_v34 = vpack.c.bf16 %v220_v24, %v208_v22  ;;  %v5822_v42 = vsub.f32 %v5782_v16, %v693_v26 }
  0x63   :  { %v204_v39 = vand.u32 4294901760, %v203_v27  ;;  %v216_v40 = vand.u32 4294901760, %v215_v28  ;;  %4486 = vmatprep.subr.bf16.mxu0 %v4485_v29  ;;  %445 = vmatmul.mubr.f32.vlgmr.msra.gmra.mrb[0].mxu0 %v191_v32  ;;  %v192_v44 = vsub.f32 %v5796_v23, %v191_v32  ;;  %v691_v47 = vand.u32 4294901760, %v5804_v31  ;;  %v5913_v28 = vld [vmem:[#allocation7 + $0x98] sm:$0xff]  ;;  %v5915_v29 = vld [vmem:[#allocation7 + $0x80] sm:$0xff] }
  0x64   :  { %v210_v41 = vand.u32 4294901760, %v209_v30  ;;  %v222_v45 = vand.u32 4294901760, %v221_v33  ;;  %4488 = vmatpush1.bf16.msra.mxu0 %v4487_v34  ;;  %527 = vmatprep.mubr.f32.mxu0 %v5651_v0  ;;  %v8267_v49 = vand.u32 4294901760, %v5813_v36  ;;  %v8265_v50 = vand.u32 4294901760, %v5815_v37  ;;  %v5917_v30 = vld [vmem:[#allocation7 + $0x90] sm:$0xff] }
  0x65   :  { %v4473_v48 = vpack.c.bf16 %v216_v40, %v204_v39  ;;  %v8264_v51 = vand.u32 4294901760, %v5817_v38  ;;  %v193_v54 = vand.u32 4294901760, %v192_v44  ;;  %4490 = vmatprep.subr.bf16.mxu0 %v4469_v11  ;;  %v5841_v56 = vsub.f32 %v5804_v31, %v691_v47  ;;  %v5931_v39 = vld [vmem:[#allocation7 + $0xa8] sm:$0xff]  ;;  %v5933_v40 = vld [vmem:[#allocation7 + $0xb8] sm:$0xff] }
  0x66   :  { %v4475_v55 = vpack.c.bf16 %v222_v45, %v210_v41  ;;  %v8263_v57 = vand.u32 4294901760, %v5824_v43  ;;  %v5853_v61 = vsub.f32 %v5813_v36, %v8267_v49  ;;  %v5858_v62 = vsub.f32 %v5815_v37, %v8265_v50  ;;  %v6037_v49 = vld [vmem:[#allocation7 + $0xf0] sm:$0xff]  ;;  %v6062_v31 = vld [vmem:[#allocation7 + $0x118] sm:$0xff] }
  0x67   :  { %4474 = vmatprep.subr.bf16.mxu1 %v4473_v48  ;;  %v5863_v63 = vsub.f32 %v5817_v38, %v8264_v51  ;;  %194 = vmatmul.mubr.f32.vlgmr.msra.gmra.mrb[0].mxu1 %v193_v54  ;;  %v8262_v3 = vand.u32 4294901760, %v5834_v52  ;;  %v8259_v5 = vand.u32 4294901760, %v5836_v53  ;;  %v8258_v6 = vand.u32 4294901760, %v5844_v58  ;;  %v6022_v51 = vld [vmem:[#allocation7 + $0xe0] sm:$0xff] }
  0x68   :  { %v5873_v4 = vsub.f32 %v5824_v43, %v8263_v57  ;;  %4476 = vmatpush1.bf16.msra.mxu1 %v4475_v55  ;;  %284 = vmatprep.mubr.f32.mxu1 %v5651_v0  ;;  %v8254_v7 = vand.u32 4294901760, %v5846_v59  ;;  %v8253_v8 = vand.u32 4294901760, %v5848_v60  ;;  %v8252_v12 = vand.u32 4294901760, %v5865_v1  ;;  %v5969_v55 = vld [vmem:[#allocation7 + $0xb0] sm:$0xff]  ;;  %v6039_v57 = vld [vmem:[#allocation7 + $0x108] sm:$0xff] }
  0x69   :  { %4478 = vmatprep.subr.bf16.mxu1 %v4477_v46  ;;  %v5885_v10 = vsub.f32 %v5834_v52, %v8262_v3  ;;  %v5890_v11 = vsub.f32 %v5836_v53, %v8259_v5  ;;  %v8251_v13 = vand.u32 4294901760, %v5867_v2  ;;  %v5901_v22 = vsub.f32 %v5844_v58, %v8258_v6  ;;  %v6007_v6 = vld [vmem:[#allocation7 + $0xe8] sm:$0xff]  ;;  %v6009_v5 = vld [vmem:[#allocation7 + $0xf8] sm:$0xff] }
  0x6a   :  { %8719 = vst [vmem:[#allocation16_spill] sm:$0xff] %v5873_v4  ;;  %v5906_v24 = vsub.f32 %v5846_v59, %v8254_v7  ;;  %v5911_v27 = vsub.f32 %v5848_v60, %v8253_v8  ;;  %v5923_v32 = vsub.f32 %v5865_v1, %v8252_v12  ;;  %v8248_v34 = vand.u32 4294901760, %v5880_v9  ;;  %v5989_v12 = vld [vmem:[#allocation7 + $0xd8] sm:$0xff]  ;;  %v5991_v8 = vld [vmem:[#allocation7 + $0xc0] sm:$0xff]  ;;  %v5993_v7 = vld [vmem:[#allocation7 + $0xd0] sm:$0xff] }
  0x6b   :  { %8720 = vst [vmem:[#allocation17_spill] sm:$0xff] %v5885_v10  ;;  %8721 = vst [vmem:[#allocation18_spill] sm:$0xff] %v5890_v11  ;;  %529 = vmatmul.mubr.f32.vlgmr.msra.gmra.mrb[0].mxu0 %v5788_v19  ;;  %v5928_v33 = vsub.f32 %v5867_v2, %v8251_v13  ;;  %v4479_v41 = vpack.c.bf16 %v5786_v18, %v5778_v14  ;;  %v5943_v44 = vpack.c.bf16 %v693_v26, %v689_v25 }
  0x6c   :  { %8722 = vst [vmem:[#allocation19_spill] sm:$0xff] %v5901_v22  ;;  %8723 = vst [vmem:[#allocation20_spill] sm:$0xff] %v5906_v24  ;;  %4492 = vmatpush1.bf16.msra.mxu0 %v5784_v17  ;;  %603 = vmatprep.mubr.f32.mxu0 %v5651_v0  ;;  %v8249_v45 = vand.u32 4294901760, %v5894_v20  ;;  %v8250_v46 = vand.u32 4294901760, %v5896_v21  ;;  %v5950_v48 = vsub.f32 %v5880_v9, %v8248_v34  ;;  %v8255_v14 = vand.u32 4294901760, %v5913_v28  ;;  %v5971_v34 = vld [vmem:[#allocation7 + $0xc8] sm:$0xff] }
  0x6d   :  { %8724 = vst [vmem:[#allocation21_spill] sm:$0xff] %v5911_v27  ;;  %8725 = vst [vmem:[#allocation22_spill] sm:$0xff] %v5923_v32  ;;  %v8256_v17 = vand.u32 4294901760, %v5915_v29  ;;  %v8257_v18 = vand.u32 4294901760, %v5917_v30  ;;  %v8260_v26 = vand.u32 4294901760, %v5931_v39  ;;  %v8261_v54 = vand.u32 4294901760, %v5933_v40 }
  0x6e   :  { %8726 = vst [vmem:[#allocation23_spill] sm:$0xff] %v5928_v33  ;;  %8727 = vst [vmem:[#allocation24_spill] sm:$0xff] %v5943_v44  ;;  %v5960_v16 = vsub.f32 %v5894_v20, %v8249_v45  ;;  %v5965_v25 = vsub.f32 %v5896_v21, %v8250_v46  ;;  %v5977_v45 = vsub.f32 %v5913_v28, %v8255_v14  ;;  %v8745_v3 = vand.u32 4294901760, %v5993_v7 }
  0x6f   :  { %8728 = vst [vmem:[#allocation25_spill] sm:$0xff] %v5950_v48  ;;  %286 = vmatmul.mubr.f32.vlgmr.msra.gmra.mrb[0].mxu1 %v5788_v19  ;;  %v5982_v46 = vsub.f32 %v5915_v29, %v8256_v17  ;;  %v5987_v13 = vsub.f32 %v5917_v30, %v8257_v18  ;;  %v5999_v14 = vsub.f32 %v5931_v39, %v8260_v26  ;;  %v8266_v18 = vand.u32 4294901760, %v5955_v15 }
  0x70   :  { %8729 = vst [vmem:[#allocation26_spill] sm:$0xff] %v5960_v16  ;;  %8730 = vst [vmem:[#allocation27_spill] sm:$0xff] %v5965_v25  ;;  %4480 = vmatpush1.bf16.msra.mxu1 %v4479_v41  ;;  %364 = vmatprep.mubr.f32.mxu1 %v5651_v0  ;;  %v6004_v17 = vsub.f32 %v5933_v40, %v8261_v54  ;;  %v8270_v0 = vand.u32 4294901760, %v5969_v55  ;;  %v8272_v41 = vand.u32 4294901760, %v5971_v34  ;;  %v655_v16 = vld [vmem:[#allocation7 + $0x150] sm:$0xff] }
  0x71   :  { %8731 = vst [vmem:[#allocation28_spill] sm:$0xff] %v5977_v45  ;;  %8732 = vst [vmem:[#allocation29_spill] sm:$0xff] %v5982_v46  ;;  %4494 = vmatprep.subr.bf16.mxu1 %v5943_v44  ;;  %v6017_v26 = vsub.f32 %v5955_v15, %v8266_v18  ;;  %v8760_v46 = vand.u32 4294901760, %v5836_v53  ;;  %v8761_v45 = vand.u32 4294901760, %v5844_v58 }
  0x72   :  { %8733 = vst [vmem:[#allocation30_spill] sm:$0xff] %v5987_v13  ;;  %8734 = vst [vmem:[#allocation31_spill] sm:$0xff] %v5999_v14  ;;  %v6028_v50 = vsub.f32 %v5969_v55, %v8270_v0  ;;  %v6033_v18 = vsub.f32 %v5971_v34, %v8272_v41  ;;  %v8741_v0 = vand.u32 4294901760, %v5989_v12  ;;  %v8743_v41 = vand.u32 4294901760, %v5991_v8  ;;  %v6087_v14 = vld [vmem:[#allocation7 + $0x138] sm:$0xff] }
  0x73   :  { %8735 = vst [vmem:[#allocation32_spill] sm:$0xff] %v6004_v17  ;;  %8736 = vst [vmem:[#allocation33_spill] sm:$0xff] %v6017_v26  ;;  %605 = vmatmul.mubr.f32.vlgmr.msra.gmra.mrb[0].mxu0 %v5788_v19  ;;  %v8739_v19 = vand.u32 4294901760, %v5813_v36  ;;  %v6064_v36 = vld [vmem:[#allocation7 + $0x100] sm:$0xff]  ;;  %v747_v26 = vand.u32 4294901760, %v6022_v51  ;;  %v6085_v17 = vld [vmem:[#allocation7 + $0x128] sm:$0xff]  ;;  %v6118_v25 = vpack.c.bf16 %v8761_v45, %v8760_v46 }
  0x74   :  { %8737 = vst [vmem:[#allocation34_spill] sm:$0xff] %v6028_v50  ;;  %8738 = vst [vmem:[#allocation35_spill] sm:$0xff] %v6033_v18  ;;  %v6050_v50 = vsub.f32 %v5989_v12, %v8741_v0  ;;  %v6055_v54 = vsub.f32 %v5991_v8, %v8743_v41  ;;  %v6060_v18 = vsub.f32 %v5993_v7, %v8745_v3  ;;  %v8748_v0 = vand.u32 4294901760, %v5817_v38 }
  0x75   :  { %v6045_v44 = vpack.c.bf16 %v8739_v19, %v691_v47  ;;  %v6066_v47 = vld [vmem:[#allocation7 + $0x110] sm:$0xff]  ;;  %v8747_v19 = vand.u32 4294901760, %v5815_v37  ;;  %v8750_v41 = vand.u32 4294901760, %v6007_v6  ;;  %v8752_v3 = vand.u32 4294901760, %v6009_v5  ;;  %8762 = vst [vmem:[#allocation47_spill] sm:$0xff] %v6118_v25 }
  0x76   :  { %8742 = vst [vmem:[#allocation37_spill] sm:$0xff] %v6050_v50  ;;  %8744 = vst [vmem:[#allocation38_spill] sm:$0xff] %v6055_v54  ;;  %v8754_v37 = vand.u32 4294901760, %v5824_v43  ;;  %v8755_v38 = vand.u32 4294901760, %v5834_v52  ;;  %v759_v13 = vand.u32 4294901760, %v6066_v47  ;;  %v649_v43 = vld [vmem:[#allocation7 + $0x120] sm:$0xff] }
  0x77   :  { %8740 = vst [vmem:[#allocation36_spill] sm:$0xff] %v6045_v44  ;;  %8746 = vst [vmem:[#allocation39_spill] sm:$0xff] %v6060_v18  ;;  %v6072_v50 = vpack.c.bf16 %v8748_v0, %v8747_v19  ;;  %v6077_v54 = vsub.f32 %v6007_v6, %v8750_v41  ;;  %v6082_v18 = vsub.f32 %v6009_v5, %v8752_v3  ;;  %v751_v0 = vand.u32 4294901760, %v6037_v49 }
  0x78   :  { %v6093_v19 = vpack.c.bf16 %v8755_v38, %v8754_v37  ;;  %v753_v41 = vand.u32 4294901760, %v6039_v57  ;;  %367 = vmatmul.mubr.f32.vlgmr.msra.gmra.mrb[0].mxu1 %v5796_v23  ;;  %v6099_v3 = vsub.f32 %v6022_v51, %v747_v26  ;;  %v761_v23 = vand.u32 4294901760, %v6085_v17  ;;  %v651_v38 = vld [vmem:[#allocation7 + $0x130] sm:$0xff] }
  0x79   :  { %8749 = vst [vmem:[#allocation40_spill] sm:$0xff] %v6072_v50  ;;  %8751 = vst [vmem:[#allocation41_spill] sm:$0xff] %v6077_v54  ;;  %v755_v54 = vand.u32 4294901760, %v6064_v36  ;;  %4496 = vmatpush1.bf16.msra.mxu1 %v6045_v44  ;;  %v6106_v52 = vsub.f32 %v6037_v49, %v751_v0  ;;  %v765_v51 = vand.u32 4294901760, %v6087_v14  ;;  %v6127_v44 = vsub.f32 %v6066_v47, %v759_v13 }
  0x7a   :  { %8753 = vst [vmem:[#allocation42_spill] sm:$0xff] %v6082_v18  ;;  %8756 = vst [vmem:[#allocation43_spill] sm:$0xff] %v6093_v19  ;;  %v757_v18 = vand.u32 4294901760, %v6062_v31  ;;  %v6109_v37 = vsub.f32 %v6039_v57, %v753_v41  ;;  %4498 = vmatprep.subr.bf16.mxu1 %v6072_v50  ;;  %v6130_v50 = vsub.f32 %v6085_v17, %v761_v23  ;;  %v763_v58 = vand.u32 4294901760, %v649_v43 }
  0x7b   :  { %8757 = vst [vmem:[#allocation44_spill] sm:$0xff] %v6099_v3  ;;  %8758 = vst [vmem:[#allocation45_spill] sm:$0xff] %v6106_v52  ;;  %v654_v3 = vld [vmem:[#allocation7 + $0x148] sm:$0xff]  ;;  %v6124_v57 = vsub.f32 %v6064_v36, %v755_v54  ;;  %v653_v52 = vld [vmem:[#allocation7 + $0x140] sm:$0xff]  ;;  %v6133_v53 = vsub.f32 %v6087_v14, %v765_v51  ;;  %v8768_v45 = vand.u32 4294901760, %v5846_v59  ;;  %v8769_v46 = vand.u32 4294901760, %v5848_v60 }
  0x7c   :  { %8759 = vst [vmem:[#allocation46_spill] sm:$0xff] %v6109_v37  ;;  %v6121_v49 = vsub.f32 %v6062_v31, %v757_v18  ;;  %8765 = vst [vmem:[#allocation50_spill] sm:$0xff] %v6127_v44  ;;  %v656_v37 = vld [vmem:[#allocation7 + $0x158] sm:$0xff]  ;;  %v767_v36 = vand.u32 4294901760, %v651_v38  ;;  %v6142_v47 = vsub.f32 %v649_v43, %v763_v58  ;;  %v775_v17 = vand.u32 4294901760, %v655_v16 }
  0x7d   :  { %8764 = vst [vmem:[#allocation49_spill] sm:$0xff] %v6124_v57  ;;  %8766 = vst [vmem:[#allocation51_spill] sm:$0xff] %v6130_v50  ;;  %v6139_v31 = vpack.c.bf16 %v8769_v46, %v8768_v45  ;;  %v769_v57 = vand.u32 4294901760, %v654_v3  ;;  %4500 = vmatpush1.bf16.msra.mxu1 %v6093_v19  ;;  %v773_v44 = vand.u32 4294901760, %v656_v37  ;;  %v8772_v14 = vand.u32 4294901760, %v5865_v1 }
  0x7e   :  { %8763 = vst [vmem:[#allocation48_spill] sm:$0xff] %v6121_v49  ;;  %8767 = vst [vmem:[#allocation52_spill] sm:$0xff] %v6133_v53  ;;  %v771_v49 = vand.u32 4294901760, %v653_v52  ;;  %4502 = vmatprep.subr.bf16.mxu1 %v6118_v25  ;;  %v8773_v53 = vand.u32 4294901760, %v5867_v2  ;;  %v6151_v60 = vsub.f32 %v651_v38, %v767_v36  ;;  %v6159_v43 = vsub.f32 %v655_v16, %v775_v17 }
  0x7f   :  { %8770 = vst [vmem:[#allocation53_spill] sm:$0xff] %v6139_v31  ;;  %8771 = vst [vmem:[#allocation54_spill] sm:$0xff] %v6142_v47  ;;  %v6153_v45 = vsub.f32 %v654_v3, %v769_v57  ;;  %v6155_v46 = vsub.f32 %v656_v37, %v773_v44  ;;  %v8776_v25 = vand.u32 4294901760, %v5880_v9  ;;  %v8777_v1 = vand.u32 4294901760, %v5894_v20 }
  0x80   :  { %v6149_v59 = vpack.c.bf16 %v8773_v53, %v8772_v14  ;;  %v6157_v19 = vsub.f32 %v653_v52, %v771_v49  ;;  %8775 = vst [vmem:[#allocation56_spill] sm:$0xff] %v6159_v43  ;;  %v8779_v2 = vand.u32 4294901760, %v5896_v21  ;;  %v8780_v3 = vand.u32 4294901760, %v5913_v28 }
  0x81   :  { %4504 = vmatpush1.bf16.msra.mxu1 %v6139_v31  ;;  %v6166_v47 = vpack.c.bf16 %v8777_v1, %v8776_v25  ;;  %v8782_v16 = vand.u32 4294901760, %v5915_v29  ;;  %v8783_v52 = vand.u32 4294901760, %v5917_v30  ;;  %v8785_v9 = vand.u32 4294901760, %v5931_v39 }
  0x82   :  { %8774 = vst [vmem:[#allocation55_spill] sm:$0xff] %v6149_v59  ;;  %4506 = vmatprep.subr.bf16.mxu1 %v6149_v59  ;;  %v6173_v37 = vpack.c.bf16 %v8780_v3, %v8779_v2  ;;  %v8786_v20 = vand.u32 4294901760, %v5933_v40  ;;  %v8788_v21 = vand.u32 4294901760, %v5955_v15  ;;  %v8789_v28 = vand.u32 4294901760, %v5969_v55  ;;  %v662_v3 = vld [vmem:[#allocation7 + $0x188] sm:$0xff] }
  0x83   :  { %8778 = vst [vmem:[#allocation57_spill] sm:$0xff] %v6166_v47  ;;  %v6180_v38 = vpack.c.bf16 %v8783_v52, %v8782_v16  ;;  %v8791_v29 = vand.u32 4294901760, %v5971_v34  ;;  %v8792_v30 = vand.u32 4294901760, %v5989_v12  ;;  %v8794_v39 = vand.u32 4294901760, %v5991_v8  ;;  %v664_v16 = vld [vmem:[#allocation7 + $0x198] sm:$0xff] }
  0x84   :  { %8781 = vst [vmem:[#allocation58_spill] sm:$0xff] %v6173_v37  ;;  %v6187_v25 = vpack.c.bf16 %v8786_v20, %v8785_v9  ;;  %v6194_v53 = vpack.c.bf16 %v8789_v28, %v8788_v21  ;;  %v8795_v40 = vand.u32 4294901760, %v5993_v7  ;;  %v8797_v15 = vand.u32 4294901760, %v6007_v6  ;;  %v661_v20 = vld [vmem:[#allocation7 + $0x180] sm:$0xff]  ;;  %v663_v21 = vld [vmem:[#allocation7 + $0x190] sm:$0xff] }
  0x85   :  { %4508 = vmatpush1.bf16.msra.mxu1 %v6166_v47  ;;  %8784 = vst [vmem:[#allocation59_spill] sm:$0xff] %v6180_v38  ;;  %v6201_v14 = vpack.c.bf16 %v8792_v30, %v8791_v29  ;;  %v8798_v55 = vand.u32 4294901760, %v6009_v5  ;;  %v6218_v12 = vpack.c.bf16 %v751_v0, %v747_v26  ;;  %v6221_v34 = vpack.c.bf16 %v757_v18, %v753_v41  ;;  %v660_v26 = vld [vmem:[#allocation7 + $0x178] sm:$0xff]  ;;  %v657_v41 = vld [vmem:[#allocation7 + $0x160] sm:$0xff] }
  0x86   :  { %4510 = vmatprep.subr.bf16.mxu1 %v6173_v37  ;;  %8787 = vst [vmem:[#allocation60_spill] sm:$0xff] %v6187_v25  ;;  %8790 = vst [vmem:[#allocation61_spill] sm:$0xff] %v6194_v53  ;;  %v6208_v1 = vpack.c.bf16 %v8795_v40, %v8794_v39  ;;  %v6224_v7 = vpack.c.bf16 %v759_v13, %v755_v54  ;;  %v6227_v8 = vpack.c.bf16 %v765_v51, %v761_v23  ;;  %v658_v13 = vld [vmem:[#allocation7 + $0x168] sm:$0xff]  ;;  %v659_v23 = vld [vmem:[#allocation7 + $0x170] sm:$0xff] }
  0x87   :  { %8793 = vst [vmem:[#allocation62_spill] sm:$0xff] %v6201_v14  ;;  %v6215_v2 = vpack.c.bf16 %v8798_v55, %v8797_v15  ;;  %8800 = vst [vmem:[#allocation65_spill] sm:$0xff] %v6218_v12  ;;  %v6230_v5 = vpack.c.bf16 %v767_v36, %v763_v58  ;;  %v6233_v6 = vpack.c.bf16 %v773_v44, %v769_v57  ;;  %v777_v54 = vand.u32 4294901760, %v658_v13  ;;  %v666_v15 = vld [vmem:[#allocation7 + $0x1a8] sm:$0xff]  ;;  %v668_v55 = vld [vmem:[#allocation7 + $0x1b8] sm:$0xff] }
  0x88   :  { %8796 = vst [vmem:[#allocation63_spill] sm:$0xff] %v6208_v1  ;;  %8801 = vst [vmem:[#allocation66_spill] sm:$0xff] %v6221_v34  ;;  %v6236_v18 = vpack.c.bf16 %v775_v17, %v771_v49  ;;  %v781_v0 = vand.u32 4294901760, %v660_v26  ;;  %v779_v51 = vand.u32 4294901760, %v657_v41  ;;  %v783_v58 = vand.u32 4294901760, %v659_v23  ;;  %v673_v47 = vld [vmem:[#allocation7 + $0x1e0] sm:$0xff] }
  0x89   :  { %4512 = vmatpush1.bf16.msra.mxu1 %v6180_v38  ;;  %8799 = vst [vmem:[#allocation64_spill] sm:$0xff] %v6215_v2  ;;  %8802 = vst [vmem:[#allocation67_spill] sm:$0xff] %v6224_v7  ;;  %v6242_v44 = vsub.f32 %v658_v13, %v777_v54  ;;  %v785_v9 = vand.u32 4294901760, %v662_v3  ;;  %v789_v28 = vand.u32 4294901760, %v664_v16  ;;  %v787_v29 = vand.u32 4294901760, %v661_v20 }
  0x8a   :  { %4514 = vmatprep.subr.bf16.mxu1 %v6187_v25  ;;  %8803 = vst [vmem:[#allocation68_spill] sm:$0xff] %v6227_v8  ;;  %8804 = vst [vmem:[#allocation69_spill] sm:$0xff] %v6230_v5  ;;  %v6240_v36 = vpack.c.bf16 %v781_v0, %v777_v54  ;;  %v6244_v57 = vsub.f32 %v660_v26, %v781_v0  ;;  %v6246_v49 = vpack.c.bf16 %v783_v58, %v779_v51  ;;  %v665_v54 = vld [vmem:[#allocation7 + $0x1a0] sm:$0xff]  ;;  %v667_v0 = vld [vmem:[#allocation7 + $0x1b0] sm:$0xff] }
  0x8b   :  { %8805 = vst [vmem:[#allocation70_spill] sm:$0xff] %v6233_v6  ;;  %8806 = vst [vmem:[#allocation71_spill] sm:$0xff] %v6236_v18  ;;  %v6248_v17 = vsub.f32 %v657_v41, %v779_v51  ;;  %v6251_v52 = vsub.f32 %v659_v23, %v783_v58  ;;  %v791_v30 = vand.u32 4294901760, %v663_v21  ;;  %v6254_v39 = vpack.c.bf16 %v789_v28, %v785_v9 }
  0x8c   :  { %8807 = vst [vmem:[#allocation72_spill] sm:$0xff] %v6240_v36  ;;  %8808 = vst [vmem:[#allocation73_spill] sm:$0xff] %v6246_v49  ;;  %v793_v13 = vand.u32 4294901760, %v666_v15  ;;  %v797_v26 = vand.u32 4294901760, %v668_v55  ;;  %v795_v41 = vand.u32 4294901760, %v665_v54  ;;  %v799_v23 = vand.u32 4294901760, %v667_v0 }
  0x8d   :  { %4516 = vmatpush1.bf16.msra.mxu1 %v6194_v53  ;;  %8809 = vst [vmem:[#allocation74_spill] sm:$0xff] %v6251_v52  ;;  %8810 = vst [vmem:[#allocation75_spill] sm:$0xff] %v6254_v39  ;;  %v6256_v40 = vpack.c.bf16 %v791_v30, %v787_v29  ;;  %v6273_v25 = vsub.f32 %v662_v3, %v785_v9  ;;  %v6275_v38 = vsub.f32 %v664_v16, %v789_v28  ;;  %v675_v53 = vld [vmem:[#allocation7 + $0x1f0] sm:$0xff] }
  0x8e   :  { %4518 = vmatprep.subr.bf16.mxu1 %v6201_v14  ;;  %v6260_v51 = vpack.c.bf16 %v797_v26, %v793_v13  ;;  %v6262_v58 = vpack.c.bf16 %v799_v23, %v795_v41  ;;  %v6277_v37 = vsub.f32 %v661_v20, %v787_v29  ;;  %v6281_v59 = vsub.f32 %v666_v15, %v793_v13 }
  0x8f   :  { %8811 = vst [vmem:[#allocation76_spill] sm:$0xff] %v6256_v40  ;;  %v6283_v31 = vsub.f32 %v668_v55, %v797_v26  ;;  %v6287_v52 = vsub.f32 %v667_v0, %v799_v23  ;;  %v815_v15 = vand.u32 4294901760, %v675_v53  ;;  %v8352_v23 = vand.u32 4294901760, %v5853_v61 }
  0x90   :  { %8812 = vst [vmem:[#allocation77_spill] sm:$0xff] %v6260_v51  ;;  %8813 = vst [vmem:[#allocation78_spill] sm:$0xff] %v6262_v58 }
  0x91   :  { %4520 = vmatpush1.bf16.msra.mxu1 %v6208_v1  ;;  %8816 = vst [vmem:[#allocation81_spill] sm:$0xff] %v6281_v59  ;;  %8817 = vst [vmem:[#allocation82_spill] sm:$0xff] %v6287_v52 }
  0x92   :  { %4522 = vmatprep.subr.bf16.mxu1 %v6215_v2  ;;  %v676_v2 = vld [vmem:[#allocation7 + $0x1f8] sm:$0xff] }
  0x93   :  { %v813_v14 = vand.u32 4294901760, %v676_v2 }
  0x95   :  { %4524 = vmatpush1.bf16.msra.mxu1 %v6218_v12  ;;  %v6302_v29 = vsub.f32 %v676_v2, %v813_v14 }
  0x96   :  { %4526 = vmatprep.subr.bf16.mxu1 %v6221_v34 }
  0x97   :  { %8823 = vst [vmem:[#allocation88_spill] sm:$0xff] %v6302_v29 }
  0x99   :  { %4528 = vmatpush1.bf16.msra.mxu1 %v6224_v7 }
  0x9a   :  { %4530 = vmatprep.subr.bf16.mxu1 %v6227_v8  ;;  %v671_v8 = vld [vmem:[#allocation7 + $0x1d0] sm:$0xff] }
  0x9b   :  { %v807_v34 = vand.u32 4294901760, %v671_v8 }
  0x9d   :  { %4532 = vmatpush1.bf16.msra.mxu1 %v6230_v5  ;;  %v669_v5 = vld [vmem:[#allocation7 + $0x1c0] sm:$0xff]  ;;  %v6296_v20 = vsub.f32 %v671_v8, %v807_v34 }
  0x9e   :  { %4534 = vmatprep.subr.bf16.mxu1 %v6233_v6  ;;  %v803_v7 = vand.u32 4294901760, %v669_v5 }
  0x9f   :  { %8820 = vst [vmem:[#allocation85_spill] sm:$0xff] %v6296_v20 }
  0xa0   :  { %v6268_v12 = vpack.c.bf16 %v807_v34, %v803_v7  ;;  %v6294_v9 = vsub.f32 %v669_v5, %v803_v7  ;;  %v106_v5 = vlaneseq }
  0xa1   :  { %4536 = vmatpush1.bf16.msra.mxu1 %v6236_v18 }
  0xa2   :  { %4538 = vmatprep.subr.bf16.mxu1 %v6240_v36  ;;  %v672_v36 = vld [vmem:[#allocation7 + $0x1d8] sm:$0xff]  ;;  %8815 = vst [vmem:[#allocation80_spill] sm:$0xff] %v6268_v12  ;;  %8819 = vst [vmem:[#allocation84_spill] sm:$0xff] %v6294_v9 }
  0xa3   :  { %v805_v6 = vand.u32 4294901760, %v672_v36 }
  0xa5   :  { %4540 = vmatpush1.bf16.msra.mxu1 %v6246_v49  ;;  %v670_v49 = vld [vmem:[#allocation7 + $0x1c8] sm:$0xff]  ;;  %v6292_v16 = vsub.f32 %v672_v36, %v805_v6  ;;  %v107_v36 = vshrl.u32 %v106_v5, 7  ;;  %v855_v5 = vsub.f32 %v5853_v61, %v8352_v23 }
  0xa6   :  { %4542 = vmatprep.subr.bf16.mxu1 %v6254_v39  ;;  %v801_v18 = vand.u32 4294901760, %v670_v49 }
  0xa7   :  { %8818 = vst [vmem:[#allocation83_spill] sm:$0xff] %v6292_v16 }
  0xa8   :  { %v6266_v39 = vpack.c.bf16 %v805_v6, %v801_v18  ;;  %v6290_v3 = vsub.f32 %v670_v49, %v801_v18  ;;  %v8824_v18 = vand.u32 4294901760, %v5822_v42  ;;  %v6318_v49 = vsub.s32 0, %v107_v36 }
  0xa9   :  { %4544 = vmatpush1.bf16.msra.mxu1 %v6256_v40  ;;  %v674_v40 = vld [vmem:[#allocation7 + $0x1e8] sm:$0xff] }
  0xaa   :  { %4546 = vmatprep.subr.bf16.mxu1 %v6260_v51  ;;  %8814 = vst [vmem:[#allocation79_spill] sm:$0xff] %v6266_v39  ;;  %v809_v1 = vand.u32 4294901760, %v674_v40  ;;  %v8356_v51 = vand.u32 4294901760, %v5811_v35  ;;  %v849_v6 = vsub.f32 %v5822_v42, %v8824_v18  ;;  %8828 = vst [vmem:[#allocation92_spill] sm:$0xff] %v6318_v49 }
  0xac   :  { %v6300_v28 = vsub.f32 %v674_v40, %v809_v1  ;;  %v837_v55 = vsub.f32 %v5811_v35, %v8356_v51  ;;  %v850_v2 = vand.u32 4294901760, %v849_v6  ;;  %v104_v40 = vld [vmem:[%s8240_s2] sm:$0x3]  ;;  %v8354_v6 = vand.u32 4294901760, %v5863_v63 }
  0xad   :  { %4548 = vmatpush1.bf16.msra.mxu1 %v6262_v58  ;;  %v6279_v58 = vsub.f32 %v663_v21, %v791_v30  ;;  %v6298_v21 = vpack.c.bf16 %v813_v14, %v809_v1  ;;  %v811_v30 = vand.u32 4294901760, %v673_v47  ;;  %v6315_v1 = vsub.f32 %v675_v53, %v815_v15 }
  0xae   :  { %4550 = vmatprep.subr.bf16.mxu1 %v6266_v39  ;;  %v6285_v39 = vsub.f32 %v665_v54, %v795_v41  ;;  %8822 = vst [vmem:[#allocation87_spill] sm:$0xff] %v6300_v28  ;;  %v838_v14 = vand.u32 4294901760, %v837_v55  ;;  %v109_v53 = vrot.slane %v104_v40, %v6318_v49  ;;  %v8355_v41 = vand.u32 4294901760, %v5841_v56  ;;  %v8839_v49 = vld [vmem:[#allocation26_spill] sm:$0xff] }
  0xaf   :  { %8821 = vst [vmem:[#allocation86_spill] sm:$0xff] %v6298_v21  ;;  %v6311_v34 = vsub.f32 %v673_v47, %v811_v30  ;;  %v6313_v7 = vpack.c.bf16 %v815_v15, %v811_v30  ;;  %8827 = vst [vmem:[#allocation91_spill] sm:$0xff] %v6315_v1  ;;  %v6323_v47 = vsub.s32 1, %v107_v36  ;;  %v8353_v55 = vand.u32 4294901760, %v5858_v62 }
  0xb0   :  { %v4557_v8 = vpack.c.bf16 %v850_v2, %v838_v14  ;;  %v8836_v51 = vand.u32 4294901760, %v5901_v22 }
  0xb1   :  { %4552 = vmatpush1.bf16.msra.mxu1 %v6268_v12  ;;  %8825 = vst [vmem:[#allocation89_spill] sm:$0xff] %v6311_v34  ;;  %8826 = vst [vmem:[#allocation90_spill] sm:$0xff] %v6313_v7  ;;  %v113_v54 = vrot.slane %v104_v40, %v6323_v47  ;;  %v861_v40 = vsub.f32 %v5858_v62, %v8353_v55 }
  0xb2   :  { %4554 = vmatprep.subr.bf16.mxu1 %v6298_v21  ;;  %8829 = vst [vmem:[#allocation93_spill] sm:$0xff] %v6323_v47  ;;  %v897_v47 = vsub.f32 %v5901_v22, %v8836_v51  ;;  %v8845_v22 = vld [vmem:[#allocation30_spill] sm:$0xff] }
  0xb5   :  { %4556 = vmatpush1.bf16.msra.mxu1 %v6313_v7  ;;  %v8837_v7 = vand.u32 4294901760, %v5906_v24 }
  0xb6   :  { %4558 = vmatprep.subr.bf16.mxu1 %v4557_v8  ;;  %v843_v8 = vsub.f32 %v5841_v56, %v8355_v41 }
 0x146   :  { %v606_v13 = vpop.f32.mrb[0].mxu0 }
 0x147   :  { %v608_v26 = vpop.f32.mrb[1].mxu0 }
 0x14b   :  { %v368_v0 = vpop.f32.mrb[0].mxu1 }
 0x14c   :  { %v5453_v30 = vadd.f32 %v368_v0, %v109_v53  ;;  %v370_v15 = vpop.f32.mrb[1].mxu1 }
 0x14d   :  { %v5455_v18 = vadd.f32 %v370_v15, %v113_v54  ;;  %v873_v54 = vsub.f32 %v5863_v63, %v8354_v6 }
 0x14e   :  { %v5454_v14 = vadd.f32 %v5453_v30, %v606_v13 }
 0x14f   :  { %v5456_v2 = vadd.f32 %v5455_v18, %v608_v26  ;;  %v8359_v26 = vand.u32 4294901760, %v5873_v4  ;;  %v844_v18 = vand.u32 4294901760, %v843_v8  ;;  %v874_v41 = vand.u32 4294901760, %v873_v54 }
 0x150   :  { %v611_v36 = vmax.f32 %v5454_v14, 0.0  ;;  %v856_v14 = vand.u32 4294901760, %v855_v5  ;;  %v8834_v5 = vand.u32 4294901760, %v5885_v10 }
 0x151   :  { %v612_v53 = vmax.f32 %v5456_v2, 0.0  ;;  %v862_v2 = vand.u32 4294901760, %v861_v40  ;;  %v867_v8 = vsub.f32 %v5873_v4, %v8359_v26  ;;  %v8835_v40 = vand.u32 4294901760, %v5890_v11 }
 0x152   :  { %v6343_v13 = vand.u32 4294901760, %v611_v36  ;;  %v4559_v55 = vpack.c.bf16 %v856_v14, %v844_v18  ;;  %v891_v18 = vsub.f32 %v5906_v24, %v8837_v7  ;;  %v8838_v14 = vand.u32 4294901760, %v5911_v27 }
 0x153   :  { %v6348_v15 = vand.u32 4294901760, %v612_v53  ;;  %v868_v21 = vand.u32 4294901760, %v867_v8  ;;  %v898_v4 = vand.u32 4294901760, %v897_v47  ;;  %v8842_v7 = vand.u32 4294901760, %v5923_v32 }
 0x154   :  { %8830 = vst [vmem:[#allocation94_spill] sm:$0xff] %v6343_v13  ;;  %v6351_v23 = vsub.f32 %v611_v36, %v6343_v13  ;;  %v879_v36 = vsub.f32 %v5885_v10, %v8834_v5 }
 0x155   :  { %8831 = vst [vmem:[#allocation95_spill] sm:$0xff] %v6348_v15  ;;  %v6355_v6 = vsub.f32 %v612_v53, %v6348_v15  ;;  %v885_v53 = vsub.f32 %v5890_v11, %v8835_v40  ;;  %v4561_v40 = vpack.c.bf16 %v874_v41, %v862_v2  ;;  %v8840_v11 = vld [vmem:[#allocation27_spill] sm:$0xff]  ;;  %v909_v24 = vsub.f32 %v5923_v32, %v8842_v7  ;;  %v8848_v7 = vld [vmem:[#allocation32_spill] sm:$0xff] }
 0x156   :  { %8832 = vst [vmem:[#allocation96_spill] sm:$0xff] %v6351_v23  ;;  %v8364_v30 = vand.u32 4294901760, %v6351_v23  ;;  %v880_v12 = vand.u32 4294901760, %v879_v36  ;;  %v892_v36 = vand.u32 4294901760, %v891_v18  ;;  %v8847_v41 = vld [vmem:[#allocation31_spill] sm:$0xff]  ;;  %v8850_v18 = vand.u32 4294901760, %v8840_v11 }
 0x157   :  { %8833 = vst [vmem:[#allocation97_spill] sm:$0xff] %v6355_v6  ;;  %v8377_v54 = vand.u32 4294901760, %v6355_v6  ;;  %v886_v51 = vand.u32 4294901760, %v885_v53 }
 0x158   :  { %v826_v0 = vsub.f32 %v6351_v23, %v8364_v30  ;;  %v903_v30 = vsub.f32 %v5911_v27, %v8838_v14  ;;  %v8843_v14 = vand.u32 4294901760, %v5928_v33  ;;  %v8393_v27 = vand.u32 4294901760, %v8845_v22 }
 0x159   :  { %v820_v5 = vsub.f32 %v6355_v6, %v8377_v54  ;;  %v8841_v54 = vld [vmem:[#allocation28_spill] sm:$0xff]  ;;  %v4563_v10 = vpack.c.bf16 %v880_v12, %v868_v21 }
 0x15a   :  { %v827_v2 = vand.u32 4294901760, %v826_v0  ;;  %v921_v8 = vsub.f32 %v5928_v33, %v8843_v14  ;;  %v904_v53 = vand.u32 4294901760, %v903_v30  ;;  %v8846_v0 = vand.u32 4294901760, %v5950_v48 }
 0x15b   :  { %v821_v23 = vand.u32 4294901760, %v820_v5  ;;  %v8844_v5 = vld [vmem:[#allocation29_spill] sm:$0xff]  ;;  %v8851_v12 = vand.u32 4294901760, %v8841_v54  ;;  %v4565_v14 = vpack.c.bf16 %v898_v4, %v886_v51  ;;  %v8855_v51 = vld [vmem:[#allocation34_spill] sm:$0xff] }
 0x15c   :  { %v8391_v26 = vand.u32 4294901760, %v8844_v5  ;;  %v915_v47 = vsub.f32 %v5950_v48, %v8846_v0  ;;  %v910_v0 = vand.u32 4294901760, %v909_v24  ;;  %v922_v6 = vand.u32 4294901760, %v921_v8  ;;  %v8854_v4 = vld [vmem:[#allocation33_spill] sm:$0xff]  ;;  %v8858_v48 = vld [vmem:[#allocation38_spill] sm:$0xff] }
 0x15d   :  { %822 = vmatprep.mubr.f32.mxu1 %v821_v23  ;;  %v8849_v23 = vand.u32 4294901760, %v8839_v49  ;;  %v945_v21 = vsub.f32 %v8841_v54, %v8851_v12  ;;  %v4567_v32 = vpack.c.bf16 %v904_v53, %v892_v36  ;;  %v8407_v8 = vand.u32 4294901760, %v8855_v51  ;;  %v8857_v54 = vld [vmem:[#allocation37_spill] sm:$0xff] }
 0x15e   :  { %828 = vmatmul.mubr.f32.vlgmr.msra.gmra.mrb[2].mxu1 %v827_v2  ;;  %v933_v2 = vsub.f32 %v8840_v11, %v8850_v18  ;;  %v8853_v11 = vand.u32 4294901760, %v8848_v7  ;;  %v916_v36 = vand.u32 4294901760, %v915_v47  ;;  %v8410_v33 = vand.u32 4294901760, %v8858_v48 }
 0x15f   :  { %4560 = vmatpush1.bf16.msra.mxu1 %v4559_v55  ;;  %1219 = vmatprep.mubr.f32.mxu1 %v6348_v15  ;;  %v927_v30 = vsub.f32 %v8839_v49, %v8849_v23  ;;  %v939_v55 = vsub.f32 %v8844_v5, %v8391_v26  ;;  %v951_v23 = vsub.f32 %v8845_v22, %v8393_v27  ;;  %v8852_v15 = vand.u32 4294901760, %v8847_v41  ;;  %v8856_v27 = vld [vmem:[#allocation35_spill] sm:$0xff] }
 0x160   :  { %4562 = vmatprep.subr.bf16.mxu1 %v4561_v40  ;;  %v969_v40 = vsub.f32 %v8848_v7, %v8853_v11  ;;  %v934_v12 = vand.u32 4294901760, %v933_v2  ;;  %v946_v26 = vand.u32 4294901760, %v945_v21  ;;  %v4569_v5 = vpack.c.bf16 %v922_v6, %v910_v0  ;;  %v8859_v11 = vld [vmem:[#allocation39_spill] sm:$0xff]  ;;  %v8861_v0 = vld [vmem:[#allocation41_spill] sm:$0xff] }
 0x161   :  { %v957_v18 = vsub.f32 %v8847_v41, %v8852_v15  ;;  %v928_v53 = vand.u32 4294901760, %v927_v30  ;;  %v8406_v22 = vand.u32 4294901760, %v8856_v27  ;;  %v8405_v49 = vand.u32 4294901760, %v8857_v54 }
 0x162   :  { %v940_v15 = vand.u32 4294901760, %v939_v55  ;;  %v952_v41 = vand.u32 4294901760, %v951_v23  ;;  %v8412_v7 = vand.u32 4294901760, %v8859_v11  ;;  %v970_v13 = vand.u32 4294901760, %v969_v40  ;;  %v8862_v23 = vld [vmem:[#allocation42_spill] sm:$0xff] }
 0x163   :  { %4564 = vmatpush1.bf16.msra.mxu1 %v4563_v10  ;;  %v958_v24 = vand.u32 4294901760, %v957_v18  ;;  %v8860_v10 = vand.u32 4294901760, %v8854_v4  ;;  %v975_v6 = vsub.f32 %v8855_v51, %v8407_v8  ;;  %v4571_v30 = vpack.c.bf16 %v928_v53, %v916_v36  ;;  %v8865_v8 = vld [vmem:[#allocation46_spill] sm:$0xff]  ;;  %v8866_v18 = vld [vmem:[#allocation48_spill] sm:$0xff] }
 0x164   :  { %4566 = vmatprep.subr.bf16.mxu1 %v4565_v14  ;;  %v4573_v2 = vpack.c.bf16 %v946_v26, %v934_v12  ;;  %v981_v21 = vsub.f32 %v8856_v27, %v8406_v22  ;;  %v993_v14 = vsub.f32 %v8857_v54, %v8405_v49  ;;  %v987_v40 = vsub.f32 %v8858_v48, %v8410_v33  ;;  %v8863_v12 = vld [vmem:[#allocation44_spill] sm:$0xff]  ;;  %v8864_v49 = vld [vmem:[#allocation45_spill] sm:$0xff] }
 0x165   :  { %v963_v47 = vsub.f32 %v8854_v4, %v8860_v10  ;;  %v4575_v26 = vpack.c.bf16 %v952_v41, %v940_v15  ;;  %v976_v53 = vand.u32 4294901760, %v975_v6  ;;  %v8413_v10 = vand.u32 4294901760, %v8863_v12 }
 0x166   :  { %v982_v27 = vand.u32 4294901760, %v981_v21  ;;  %v994_v33 = vand.u32 4294901760, %v993_v14  ;;  %v8867_v48 = vand.u32 4294901760, %v8861_v0  ;;  %v8872_v14 = vand.u32 4294901760, %v8864_v49 }
 0x167   :  { %4568 = vmatpush1.bf16.msra.mxu1 %v4567_v32  ;;  %v999_v32 = vsub.f32 %v8859_v11, %v8412_v7  ;;  %v964_v36 = vand.u32 4294901760, %v963_v47  ;;  %v8869_v47 = vld [vmem:[#allocation49_spill] sm:$0xff]  ;;  %v8874_v22 = vand.u32 4294901760, %v8866_v18 }
 0x168   :  { %4570 = vmatprep.subr.bf16.mxu1 %v4569_v5  ;;  %v4577_v5 = vpack.c.bf16 %v970_v13, %v958_v24  ;;  %v1005_v7 = vsub.f32 %v8861_v0, %v8867_v48  ;;  %v8868_v13 = vand.u32 4294901760, %v8862_v23  ;;  %v988_v24 = vand.u32 4294901760, %v987_v40 }
 0x169   :  { %v1000_v15 = vand.u32 4294901760, %v999_v32  ;;  %v8417_v6 = vand.u32 4294901760, %v8869_v47  ;;  %v4579_v55 = vpack.c.bf16 %v976_v53, %v964_v36  ;;  %v1011_v48 = vsub.f32 %v8863_v12, %v8413_v10 }
 0x16a   :  { %v1017_v41 = vsub.f32 %v8862_v23, %v8868_v13  ;;  %v1023_v13 = vsub.f32 %v8864_v49, %v8872_v14  ;;  %v8873_v40 = vand.u32 4294901760, %v8865_v8  ;;  %v1041_v36 = vsub.f32 %v8866_v18, %v8874_v22 }
 0x16b   :  { %4572 = vmatpush1.bf16.msra.mxu1 %v4571_v30  ;;  %v8870_v30 = vld [vmem:[#allocation50_spill] sm:$0xff]  ;;  %v4581_v53 = vpack.c.bf16 %v994_v33, %v982_v27  ;;  %v1006_v21 = vand.u32 4294901760, %v1005_v7  ;;  %v4583_v54 = vpack.c.bf16 %v1000_v15, %v988_v24  ;;  %v1035_v10 = vsub.f32 %v8869_v47, %v8417_v6 }
 0x16c   :  { %4574 = vmatprep.subr.bf16.mxu1 %v4573_v2  ;;  %v8871_v2 = vld [vmem:[#allocation52_spill] sm:$0xff]  ;;  %v1029_v32 = vsub.f32 %v8865_v8, %v8873_v40  ;;  %v8875_v12 = vand.u32 4294901760, %v8870_v30  ;;  %v8876_v49 = vand.u32 4294901760, %v6130_v50  ;;  %v8878_v27 = vld [vmem:[#allocation54_spill] sm:$0xff]  ;;  %v8436_v7 = vand.u32 4294901760, %v6151_v60 }
 0x16d   :  { %v8877_v8 = vand.u32 4294901760, %v8871_v2  ;;  %v1042_v15 = vand.u32 4294901760, %v1041_v36  ;;  %v8425_v47 = vand.u32 4294901760, %v6157_v19 }
 0x16e   :  { %v1047_v14 = vsub.f32 %v8870_v30, %v8875_v12  ;;  %v1053_v40 = vsub.f32 %v6130_v50, %v8876_v49  ;;  %v1030_v24 = vand.u32 4294901760, %v1029_v32  ;;  %v8424_v12 = vand.u32 4294901760, %v6153_v45 }
 0x16f   :  { %4576 = vmatpush1.bf16.msra.mxu1 %v4575_v26  ;;  %v1018_v26 = vand.u32 4294901760, %v1017_v41  ;;  %v1065_v22 = vsub.f32 %v8871_v2, %v8877_v8  ;;  %v1024_v41 = vand.u32 4294901760, %v1023_v13  ;;  %v8423_v30 = vand.u32 4294901760, %v6155_v46 }
 0x170   :  { %4578 = vmatprep.subr.bf16.mxu1 %v4577_v5  ;;  %v1012_v5 = vand.u32 4294901760, %v1011_v48  ;;  %v1036_v49 = vand.u32 4294901760, %v1035_v10  ;;  %v1048_v50 = vand.u32 4294901760, %v1047_v14  ;;  %v8426_v8 = vand.u32 4294901760, %v6159_v43 }
 0x171   :  { %v4585_v6 = vpack.c.bf16 %v1018_v26, %v1006_v21  ;;  %v1054_v33 = vand.u32 4294901760, %v1053_v40  ;;  %v1066_v2 = vand.u32 4294901760, %v1065_v22  ;;  %v1071_v21 = vsub.f32 %v6151_v60, %v8436_v7 }
 0x172   :  { %v4587_v13 = vpack.c.bf16 %v1024_v41, %v1012_v5  ;;  %v4589_v32 = vpack.c.bf16 %v1042_v15, %v1030_v24  ;;  %v1077_v10 = vsub.f32 %v6153_v45, %v8424_v12  ;;  %v1089_v36 = vsub.f32 %v6155_v46, %v8423_v30  ;;  %v8880_v24 = vld [vmem:[#allocation74_spill] sm:$0xff] }
 0x173   :  { %4580 = vmatpush1.bf16.msra.mxu1 %v4579_v55  ;;  %v8879_v55 = vand.u32 4294901760, %v8878_v27  ;;  %v8427_v26 = vand.u32 4294901760, %v6244_v57  ;;  %v1083_v14 = vsub.f32 %v6157_v19, %v8425_v47  ;;  %v4593_v40 = vpack.c.bf16 %v1066_v2, %v1054_v33 }
 0x174   :  { %4582 = vmatprep.subr.bf16.mxu1 %v4581_v53  ;;  %v8435_v53 = vand.u32 4294901760, %v6242_v44  ;;  %v1072_v5 = vand.u32 4294901760, %v1071_v21  ;;  %v8428_v41 = vand.u32 4294901760, %v6248_v17  ;;  %v8429_v15 = vand.u32 4294901760, %v8880_v24 }
 0x175   :  { %v1059_v48 = vsub.f32 %v8878_v27, %v8879_v55  ;;  %v8430_v55 = vand.u32 4294901760, %v6273_v25  ;;  %v8433_v30 = vand.u32 4294901760, %v6275_v38  ;;  %v1078_v12 = vand.u32 4294901760, %v1077_v10 }
 0x176   :  { %v1090_v47 = vand.u32 4294901760, %v1089_v36  ;;  %v1084_v2 = vand.u32 4294901760, %v1083_v14  ;;  %v1107_v10 = vsub.f32 %v6248_v17, %v8428_v41  ;;  %v1119_v36 = vsub.f32 %v8880_v24, %v8429_v15 }
 0x177   :  { %4584 = vmatpush1.bf16.msra.mxu1 %v4583_v54  ;;  %v1095_v54 = vsub.f32 %v6159_v43, %v8426_v8  ;;  %v1060_v22 = vand.u32 4294901760, %v1059_v48  ;;  %v1101_v8 = vsub.f32 %v6242_v44, %v8435_v53  ;;  %v8432_v48 = vand.u32 4294901760, %v6279_v58 }
 0x178   :  { %4586 = vmatprep.subr.bf16.mxu1 %v4585_v6  ;;  %v4591_v6 = vpack.c.bf16 %v1048_v50, %v1036_v49  ;;  %v1113_v50 = vsub.f32 %v6244_v57, %v8427_v26  ;;  %v8431_v49 = vand.u32 4294901760, %v6277_v37  ;;  %v1125_v14 = vsub.f32 %v6273_v25, %v8430_v55 }
 0x179   :  { %v1096_v33 = vand.u32 4294901760, %v1095_v54  ;;  %v4595_v21 = vpack.c.bf16 %v1072_v5, %v1060_v22  ;;  %v1137_v54 = vsub.f32 %v6275_v38, %v8433_v30  ;;  %v4597_v22 = vpack.c.bf16 %v1090_v47, %v1078_v12 }
 0x17a   :  { %v1102_v5 = vand.u32 4294901760, %v1101_v8  ;;  %v1131_v41 = vsub.f32 %v6277_v37, %v8431_v49  ;;  %v1143_v15 = vsub.f32 %v6279_v58, %v8432_v48  ;;  %v8449_v47 = vand.u32 4294901760, %v6285_v39 }
 0x17b   :  { %4588 = vmatpush1.bf16.msra.mxu1 %v4587_v13  ;;  %v8434_v13 = vand.u32 4294901760, %v6281_v59  ;;  %v4599_v26 = vpack.c.bf16 %v1096_v33, %v1084_v2  ;;  %v8448_v12 = vand.u32 4294901760, %v6287_v52  ;;  %v1108_v8 = vand.u32 4294901760, %v1107_v10 }
 0x17c   :  { %4590 = vmatprep.subr.bf16.mxu1 %v4589_v32  ;;  %v8439_v32 = vand.u32 4294901760, %v6283_v31  ;;  %v1126_v2 = vand.u32 4294901760, %v1125_v14  ;;  %v1138_v33 = vand.u32 4294901760, %v1137_v54  ;;  %v8447_v48 = vand.u32 4294901760, %v6290_v3 }
 0x17d   :  { %v1149_v55 = vsub.f32 %v6281_v59, %v8434_v13  ;;  %v8440_v30 = vand.u32 4294901760, %v6292_v16  ;;  %v1132_v13 = vand.u32 4294901760, %v1131_v41  ;;  %v1144_v53 = vand.u32 4294901760, %v1143_v15 }
 0x17e   :  { %v8446_v14 = vand.u32 4294901760, %v6294_v9  ;;  %v8442_v54 = vand.u32 4294901760, %v6296_v20  ;;  %v1173_v41 = vsub.f32 %v6290_v3, %v8447_v48 }
 0x17f   :  { %4592 = vmatpush1.bf16.msra.mxu1 %v4591_v6  ;;  %v1114_v6 = vand.u32 4294901760, %v1113_v50  ;;  %v1120_v50 = vand.u32 4294901760, %v1119_v36  ;;  %v1150_v7 = vand.u32 4294901760, %v1149_v55  ;;  %v4605_v36 = vpack.c.bf16 %v1138_v33, %v1126_v2 }
 0x180   :  { %4594 = vmatprep.subr.bf16.mxu1 %v4593_v40  ;;  %v1161_v40 = vsub.f32 %v6283_v31, %v8439_v32  ;;  %v1155_v32 = vsub.f32 %v6285_v39, %v8449_v47  ;;  %v1185_v15 = vsub.f32 %v6292_v16, %v8440_v30  ;;  %v8441_v55 = vand.u32 4294901760, %v6300_v28 }
 0x181   :  { %v4601_v49 = vpack.c.bf16 %v1114_v6, %v1102_v5  ;;  %v4603_v10 = vpack.c.bf16 %v1120_v50, %v1108_v8  ;;  %v1191_v8 = vsub.f32 %v6296_v20, %v8442_v54  ;;  %v8445_v50 = vand.u32 4294901760, %v6311_v34 }
 0x182   :  { %v1162_v59 = vand.u32 4294901760, %v1161_v40  ;;  %v1156_v6 = vand.u32 4294901760, %v1155_v32  ;;  %v8444_v2 = vand.u32 4294901760, %v6315_v1  ;;  %v1174_v33 = vand.u32 4294901760, %v1173_v41 }
 0x183   :  { %4596 = vmatpush1.bf16.msra.mxu1 %v4595_v21  ;;  %v1167_v21 = vsub.f32 %v6287_v52, %v8448_v12  ;;  %v1186_v30 = vand.u32 4294901760, %v1185_v15  ;;  %v1192_v32 = vand.u32 4294901760, %v1191_v8  ;;  %v8882_v8 = vld [vmem:[#allocation97_spill] sm:$0xff] }
 0x184   :  { %4598 = vmatprep.subr.bf16.mxu1 %v4597_v22  ;;  %v8443_v22 = vand.u32 4294901760, %v6302_v29  ;;  %v4609_v5 = vpack.c.bf16 %v1162_v59, %v1150_v7  ;;  %v1197_v59 = vsub.f32 %v6300_v28, %v8441_v55  ;;  %v8900_v12 = vld [vmem:[#allocation37_spill] sm:$0xff] }
 0x185   :  { %v1168_v40 = vand.u32 4294901760, %v1167_v21  ;;  %v1203_v21 = vsub.f32 %v6311_v34, %v8445_v50 }
 0x186   :  { %v1209_v7 = vsub.f32 %v6302_v29, %v8443_v22  ;;  %v1198_v41 = vand.u32 4294901760, %v1197_v59  ;;  %v8886_v59 = vld [vmem:[#allocation19_spill] sm:$0xff] }
 0x187   :  { %4600 = vmatpush1.bf16.msra.mxu1 %v4599_v26  ;;  %v4607_v26 = vpack.c.bf16 %v1144_v53, %v1132_v13  ;;  %v4611_v53 = vpack.c.bf16 %v1168_v40, %v1156_v6  ;;  %v1204_v54 = vand.u32 4294901760, %v1203_v21  ;;  %v4621_v40 = vpack.c.bf16 %v5822_v42, %v5811_v35  ;;  %v8889_v21 = vld [vmem:[#allocation22_spill] sm:$0xff] }
 0x188   :  { %4602 = vmatprep.subr.bf16.mxu1 %v4601_v49  ;;  %v1179_v49 = vsub.f32 %v6294_v9, %v8446_v14  ;;  %v1210_v15 = vand.u32 4294901760, %v1209_v7  ;;  %v8898_v14 = vld [vmem:[#allocation32_spill] sm:$0xff] }
 0x18a   :  { %v1180_v13 = vand.u32 4294901760, %v1179_v49  ;;  %v4623_v49 = vpack.c.bf16 %v5853_v61, %v5841_v56 }
 0x18b   :  { %4604 = vmatpush1.bf16.msra.mxu1 %v4603_v10  ;;  %v1215_v10 = vsub.f32 %v6315_v1, %v8444_v2  ;;  %v8896_v2 = vld [vmem:[#allocation30_spill] sm:$0xff] }
 0x18c   :  { %4606 = vmatprep.subr.bf16.mxu1 %v4605_v36  ;;  %v4613_v36 = vpack.c.bf16 %v1186_v30, %v1174_v33  ;;  %v4615_v55 = vpack.c.bf16 %v1192_v32, %v1180_v13  ;;  %v4625_v30 = vpack.c.bf16 %v5863_v63, %v5858_v62  ;;  %v8883_v33 = vld [vmem:[#allocation16_spill] sm:$0xff]  ;;  %v8888_v13 = vld [vmem:[#allocation21_spill] sm:$0xff] }
 0x18d   :  { %v1216_v22 = vand.u32 4294901760, %v1215_v10  ;;  %v8890_v10 = vld [vmem:[#allocation23_spill] sm:$0xff] }
 0x18f   :  { %4608 = vmatpush1.bf16.msra.mxu1 %v4607_v26  ;;  %v4617_v26 = vpack.c.bf16 %v1210_v15, %v1198_v41  ;;  %v4619_v6 = vpack.c.bf16 %v1216_v22, %v1204_v54  ;;  %v8885_v22 = vld [vmem:[#allocation18_spill] sm:$0xff]  ;;  %v8891_v41 = vld [vmem:[#allocation25_spill] sm:$0xff] }
 0x190   :  { %4610 = vmatprep.subr.bf16.mxu1 %v4609_v5  ;;  %v8881_v5 = vld [vmem:[#allocation94_spill] sm:$0xff]  ;;  %v4629_v7 = vpack.c.bf16 %v8886_v59, %v8885_v22 }
 0x191   :  { %v8892_v15 = vld [vmem:[#allocation26_spill] sm:$0xff] }
 0x193   :  { %4612 = vmatpush1.bf16.msra.mxu1 %v4611_v53  ;;  %v8887_v53 = vld [vmem:[#allocation20_spill] sm:$0xff] }
 0x194   :  { %4614 = vmatprep.subr.bf16.mxu1 %v4613_v36  ;;  %v4631_v32 = vpack.c.bf16 %v8888_v13, %v8887_v53  ;;  %v4633_v36 = vpack.c.bf16 %v8890_v10, %v8889_v21 }
 0x197   :  { %4616 = vmatpush1.bf16.msra.mxu1 %v4615_v55  ;;  %v8884_v55 = vld [vmem:[#allocation17_spill] sm:$0xff] }
 0x198   :  { %4618 = vmatprep.subr.bf16.mxu1 %v4617_v26  ;;  %v4627_v54 = vpack.c.bf16 %v8884_v55, %v8883_v33  ;;  %v4635_v26 = vpack.c.bf16 %v8892_v15, %v8891_v41 }
 0x19b   :  { %4620 = vmatpush1.bf16.msra.mxu1 %v4619_v6  ;;  %v8893_v6 = vld [vmem:[#allocation27_spill] sm:$0xff] }
 0x19c   :  { %4622 = vmatprep.subr.bf16.mxu1 %v4621_v40  ;;  %v8894_v40 = vld [vmem:[#allocation28_spill] sm:$0xff] }
 0x19e   :  { %1221 = vmatmul.mubr.f32.vlgmr.msra.gmra.mrb[2].mxu1 %v8881_v5 }
 0x19f   :  { %4624 = vmatpush1.bf16.msra.mxu1 %v4623_v49  ;;  %1421 = vmatprep.mubr.f32.mxu1 %v8882_v8  ;;  %v4637_v49 = vpack.c.bf16 %v8894_v40, %v8893_v6 }
 0x1a0   :  { %4626 = vmatprep.subr.bf16.mxu1 %v4625_v30  ;;  %v8895_v30 = vld [vmem:[#allocation29_spill] sm:$0xff] }
 0x1a1   :  { %v4639_v50 = vpack.c.bf16 %v8896_v2, %v8895_v30  ;;  %v8903_v2 = vld [vmem:[#allocation45_spill] sm:$0xff] }
 0x1a3   :  { %4628 = vmatpush1.bf16.msra.mxu1 %v4627_v54  ;;  %v8897_v54 = vld [vmem:[#allocation31_spill] sm:$0xff] }
 0x1a4   :  { %4630 = vmatprep.subr.bf16.mxu1 %v4629_v7  ;;  %v4641_v48 = vpack.c.bf16 %v8898_v14, %v8897_v54  ;;  %v4643_v7 = vpack.c.bf16 %v8855_v51, %v8854_v4  ;;  %v8906_v4 = vld [vmem:[#allocation50_spill] sm:$0xff] }
 0x1a7   :  { %4632 = vmatpush1.bf16.msra.mxu1 %v4631_v32  ;;  %v8899_v32 = vld [vmem:[#allocation35_spill] sm:$0xff] }
 0x1a8   :  { %4634 = vmatprep.subr.bf16.mxu1 %v4633_v36  ;;  %v4645_v47 = vpack.c.bf16 %v8900_v12, %v8899_v32  ;;  %v8901_v36 = vld [vmem:[#allocation38_spill] sm:$0xff]  ;;  %v8908_v32 = vld [vmem:[#allocation52_spill] sm:$0xff] }
 0x1a9   :  { %v4647_v5 = vpack.c.bf16 %v8859_v11, %v8901_v36 }
 0x1ab   :  { %4636 = vmatpush1.bf16.msra.mxu1 %v4635_v26  ;;  %v4649_v26 = vpack.c.bf16 %v8862_v23, %v8861_v0 }
 0x1ac   :  { %4638 = vmatprep.subr.bf16.mxu1 %v4637_v49  ;;  %v8902_v49 = vld [vmem:[#allocation44_spill] sm:$0xff] }
 0x1ad   :  { %v4651_v14 = vpack.c.bf16 %v8903_v2, %v8902_v49 }
 0x1af   :  { %4640 = vmatpush1.bf16.msra.mxu1 %v4639_v50  ;;  %v8904_v50 = vld [vmem:[#allocation46_spill] sm:$0xff] }
 0x1b0   :  { %4642 = vmatprep.subr.bf16.mxu1 %v4641_v48  ;;  %v4653_v51 = vpack.c.bf16 %v8866_v18, %v8904_v50  ;;  %v8905_v48 = vld [vmem:[#allocation49_spill] sm:$0xff] }
 0x1b1   :  { %v4655_v12 = vpack.c.bf16 %v8906_v4, %v8905_v48 }
 0x1b3   :  { %4644 = vmatpush1.bf16.msra.mxu1 %v4643_v7  ;;  %v8907_v7 = vld [vmem:[#allocation51_spill] sm:$0xff] }
 0x1b4   :  { %4646 = vmatprep.subr.bf16.mxu1 %v4645_v47  ;;  %v4657_v11 = vpack.c.bf16 %v8908_v32, %v8907_v7  ;;  %v4659_v47 = vpack.c.bf16 %v6151_v60, %v8878_v27 }
 0x1b7   :  { %4648 = vmatpush1.bf16.msra.mxu1 %v4647_v5  ;;  %v4661_v5 = vpack.c.bf16 %v6155_v46, %v6153_v45 }
 0x1b8   :  { %4650 = vmatprep.subr.bf16.mxu1 %v4649_v26  ;;  %v4663_v26 = vpack.c.bf16 %v6159_v43, %v6157_v19 }
 0x1bb   :  { %4652 = vmatpush1.bf16.msra.mxu1 %v4651_v14  ;;  %v4665_v14 = vpack.c.bf16 %v6244_v57, %v6242_v44 }
 0x1bc   :  { %4654 = vmatprep.subr.bf16.mxu1 %v4653_v51  ;;  %v4667_v51 = vpack.c.bf16 %v8880_v24, %v6248_v17 }
 0x1bf   :  { %4656 = vmatpush1.bf16.msra.mxu1 %v4655_v12  ;;  %v4669_v12 = vpack.c.bf16 %v6275_v38, %v6273_v25 }
 0x1c0   :  { %4658 = vmatprep.subr.bf16.mxu1 %v4657_v11  ;;  %v4671_v11 = vpack.c.bf16 %v6279_v58, %v6277_v37 }
 0x1c3   :  { %4660 = vmatpush1.bf16.msra.mxu1 %v4659_v47  ;;  %v8909_v47 = vld [vmem:[#allocation81_spill] sm:$0xff] }
 0x1c4   :  { %4662 = vmatprep.subr.bf16.mxu1 %v4661_v5  ;;  %v4673_v43 = vpack.c.bf16 %v6283_v31, %v8909_v47  ;;  %v4675_v5 = vpack.c.bf16 %v6287_v52, %v6285_v39  ;;  %v8912_v52 = vld [vmem:[#allocation36_spill] sm:$0xff] }
 0x1c7   :  { %4664 = vmatpush1.bf16.msra.mxu1 %v4663_v26  ;;  %v4677_v26 = vpack.c.bf16 %v6292_v16, %v6290_v3  ;;  %v1988_v16 = vld [vmem:[#allocation8 + $0x68] sm:$0xff] }
 0x1c8   :  { %4666 = vmatprep.subr.bf16.mxu1 %v4665_v14  ;;  %v4679_v14 = vpack.c.bf16 %v6296_v20, %v6294_v9  ;;  %v8914_v20 = vld [vmem:[#allocation40_spill] sm:$0xff] }
 0x1cb   :  { %4668 = vmatpush1.bf16.msra.mxu1 %v4667_v51  ;;  %v4681_v51 = vpack.c.bf16 %v6302_v29, %v6300_v28  ;;  %v8916_v29 = vld [vmem:[#allocation47_spill] sm:$0xff]  ;;  %v1985_v28 = vld [vmem:[#allocation8 + $0x50] sm:$0xff] }
 0x1cc   :  { %4670 = vmatprep.subr.bf16.mxu1 %v4669_v12  ;;  %v4683_v12 = vpack.c.bf16 %v6315_v1, %v6311_v34  ;;  %v8918_v1 = vld [vmem:[#allocation55_spill] sm:$0xff] }
 0x1cf   :  { %4672 = vmatpush1.bf16.msra.mxu1 %v4671_v11  ;;  %v8910_v11 = vld [vmem:[#allocation24_spill] sm:$0xff] }
 0x1d0   :  { %4674 = vmatprep.subr.bf16.mxu1 %v4673_v43  ;;  %v8911_v43 = vld [vmem:[#allocation96_spill] sm:$0xff] }
 0x1d3   :  { %4676 = vmatpush1.bf16.msra.mxu1 %v4675_v5  ;;  %v8913_v5 = vand.u32 4294901760, %v8882_v8  ;;  %v8923_v8 = vld [vmem:[#allocation61_spill] sm:$0xff] }
 0x1d4   :  { %4678 = vmatprep.subr.bf16.mxu1 %v4677_v26  ;;  %v8915_v26 = vld [vmem:[#allocation43_spill] sm:$0xff] }
 0x1d7   :  { %4680 = vmatpush1.bf16.msra.mxu1 %v4679_v14  ;;  %v8917_v14 = vld [vmem:[#allocation53_spill] sm:$0xff] }
 0x1d8   :  { %4682 = vmatprep.subr.bf16.mxu1 %v4681_v51  ;;  %v8919_v51 = vld [vmem:[#allocation57_spill] sm:$0xff] }
 0x1db   :  { %4684 = vmatpush1.bf16.msra.mxu1 %v4683_v12  ;;  %v8920_v12 = vld [vmem:[#allocation58_spill] sm:$0xff] }
 0x1dc   :  { %4686 = vmatprep.subr.bf16.mxu1 %v8910_v11  ;;  %v8921_v11 = vld [vmem:[#allocation59_spill] sm:$0xff] }
 0x1de   :  { %1424 = vmatmul.mubr.f32.vlgmr.msra.gmra.mrb[2].mxu1 %v8911_v43 }
 0x1df   :  { %4688 = vmatpush1.bf16.msra.mxu1 %v8912_v52  ;;  %1561 = vmatprep.mubr.f32.mxu1 %v8913_v5  ;;  %v8922_v52 = vld [vmem:[#allocation60_spill] sm:$0xff]  ;;  %v8924_v5 = vld [vmem:[#allocation62_spill] sm:$0xff] }
 0x1e0   :  { %4690 = vmatprep.subr.bf16.mxu1 %v8914_v20  ;;  %v8925_v20 = vld [vmem:[#allocation63_spill] sm:$0xff] }
 0x1e3   :  { %4692 = vmatpush1.bf16.msra.mxu1 %v8915_v26  ;;  %v8926_v26 = vld [vmem:[#allocation64_spill] sm:$0xff] }
 0x1e4   :  { %4694 = vmatprep.subr.bf16.mxu1 %v8916_v29  ;;  %v8927_v29 = vld [vmem:[#allocation65_spill] sm:$0xff] }
 0x1e7   :  { %4696 = vmatpush1.bf16.msra.mxu1 %v8917_v14  ;;  %v8928_v14 = vld [vmem:[#allocation66_spill] sm:$0xff] }
 0x1e8   :  { %4698 = vmatprep.subr.bf16.mxu1 %v8918_v1  ;;  %v8929_v1 = vld [vmem:[#allocation67_spill] sm:$0xff] }
 0x1eb   :  { %4700 = vmatpush1.bf16.msra.mxu1 %v8919_v51  ;;  %v8930_v51 = vld [vmem:[#allocation68_spill] sm:$0xff] }
 0x1ec   :  { %4702 = vmatprep.subr.bf16.mxu1 %v8920_v12  ;;  %v8931_v12 = vld [vmem:[#allocation69_spill] sm:$0xff] }
 0x1ef   :  { %4704 = vmatpush1.bf16.msra.mxu1 %v8921_v11  ;;  %v8932_v11 = vld [vmem:[#allocation70_spill] sm:$0xff] }
 0x1f0   :  { %4706 = vmatprep.subr.bf16.mxu1 %v8922_v52  ;;  %v8933_v52 = vld [vmem:[#allocation71_spill] sm:$0xff] }
 0x1f3   :  { %4708 = vmatpush1.bf16.msra.mxu1 %v8923_v8  ;;  %v8934_v8 = vld [vmem:[#allocation72_spill] sm:$0xff] }
 0x1f4   :  { %4710 = vmatprep.subr.bf16.mxu1 %v8924_v5  ;;  %v8935_v5 = vld [vmem:[#allocation73_spill] sm:$0xff] }
 0x1f7   :  { %4712 = vmatpush1.bf16.msra.mxu1 %v8925_v20  ;;  %v8936_v20 = vld [vmem:[#allocation75_spill] sm:$0xff] }
 0x1f8   :  { %4714 = vmatprep.subr.bf16.mxu1 %v8926_v26  ;;  %v8937_v26 = vld [vmem:[#allocation76_spill] sm:$0xff] }
 0x1fb   :  { %4716 = vmatpush1.bf16.msra.mxu1 %v8927_v29  ;;  %v8938_v29 = vld [vmem:[#allocation77_spill] sm:$0xff] }
 0x1fc   :  { %4718 = vmatprep.subr.bf16.mxu1 %v8928_v14  ;;  %v8939_v14 = vld [vmem:[#allocation78_spill] sm:$0xff] }
 0x1ff   :  { %4720 = vmatpush1.bf16.msra.mxu1 %v8929_v1  ;;  %v8940_v1 = vld [vmem:[#allocation79_spill] sm:$0xff] }
 0x200   :  { %4722 = vmatprep.subr.bf16.mxu1 %v8930_v51  ;;  %v8941_v51 = vld [vmem:[#allocation80_spill] sm:$0xff] }
 0x203   :  { %4724 = vmatpush1.bf16.msra.mxu1 %v8931_v12  ;;  %v8942_v12 = vld [vmem:[#allocation86_spill] sm:$0xff] }
 0x204   :  { %4726 = vmatprep.subr.bf16.mxu1 %v8932_v11 }
 0x207   :  { %4728 = vmatpush1.bf16.msra.mxu1 %v8933_v52  ;;  %v8943_v52 = vand.u32 4294901760, %v5811_v35  ;;  %v8951_v35 = vand.u32 4294901760, %v8884_v55  ;;  %v8959_v55 = vand.u32 4294901760, %v8891_v41  ;;  %v8966_v41 = vld [vmem:[#allocation95_spill] sm:$0xff] }
 0x208   :  { %4730 = vmatprep.subr.bf16.mxu1 %v8934_v8  ;;  %v8944_v8 = vand.u32 4294901760, %v5822_v42  ;;  %v8952_v42 = vand.u32 4294901760, %v8885_v22  ;;  %v8960_v22 = vand.u32 4294901760, %v8892_v15  ;;  %v8967_v15 = vand.u32 4294901760, %v8897_v54 }
 0x20a   :  { %v4749_v11 = vpack.c.bf16 %v8944_v8, %v8943_v52  ;;  %v8953_v52 = vand.u32 4294901760, %v8886_v59  ;;  %v6733_v59 = vpack.c.bf16 %v8960_v22, %v8959_v55  ;;  %v8972_v22 = vld [vmem:[#allocation34_spill] sm:$0xff] }
 0x20b   :  { %4732 = vmatpush1.bf16.msra.mxu1 %v8935_v5  ;;  %v8945_v5 = vld [vmem:[#allocation90_spill] sm:$0xff] }
 0x20c   :  { %4734 = vmatprep.subr.bf16.mxu1 %v8936_v20  ;;  %v8946_v20 = vand.u32 4294901760, %v5841_v56  ;;  %v4757_v8 = vpack.c.bf16 %v8953_v52, %v8952_v42  ;;  %v8954_v56 = vand.u32 4294901760, %v8887_v53  ;;  %v8961_v53 = vand.u32 4294901760, %v8893_v6  ;;  %v8968_v42 = vld [vmem:[#allocation32_spill] sm:$0xff] }
 0x20d   :  { %v8969_v6 = vand.u32 4294901760, %v8968_v42 }
 0x20f   :  { %4736 = vmatpush1.bf16.msra.mxu1 %v8937_v26  ;;  %v8947_v26 = vand.u32 4294901760, %v5853_v61  ;;  %v8955_v61 = vand.u32 4294901760, %v8888_v13  ;;  %v8962_v13 = vand.u32 4294901760, %v8894_v40  ;;  %v6752_v52 = vpack.c.bf16 %v8969_v6, %v8967_v15  ;;  %v1984_v15 = vld [vmem:[#allocation8 + $0x48] sm:$0xff] }
 0x210   :  { %4738 = vmatprep.subr.bf16.mxu1 %v8938_v29 }
 0x211   :  { %v4751_v29 = vpack.c.bf16 %v8947_v26, %v8946_v20  ;;  %v6719_v20 = vpack.c.bf16 %v8955_v61, %v8954_v56  ;;  %v8964_v26 = vld [vmem:[#allocation30_spill] sm:$0xff]  ;;  %v1977_v61 = vld [vmem:[#allocation8 + $0x10] sm:$0xff] }
 0x213   :  { %4740 = vmatpush1.bf16.msra.mxu1 %v8939_v14  ;;  %v8948_v14 = vand.u32 4294901760, %v5858_v62  ;;  %v8956_v62 = vand.u32 4294901760, %v8911_v43  ;;  %v8963_v43 = vand.u32 4294901760, %v8895_v30 }
 0x214   :  { %4742 = vmatprep.subr.bf16.mxu1 %v8940_v1  ;;  %v8949_v1 = vand.u32 4294901760, %v5863_v63  ;;  %v8957_v63 = vand.u32 4294901760, %v8889_v21  ;;  %v8965_v21 = vand.u32 4294901760, %v8964_v26  ;;  %v1979_v26 = vld [vmem:[#allocation8 + $0x20] sm:$0xff] }
 0x217   :  { %4744 = vmatpush1.bf16.msra.mxu1 %v8941_v51  ;;  %v4753_v51 = vpack.c.bf16 %v8949_v1, %v8948_v14  ;;  %v8958_v1 = vand.u32 4294901760, %v8890_v10  ;;  %v6745_v14 = vpack.c.bf16 %v8965_v21, %v8963_v43  ;;  %v1976_v10 = vld [vmem:[#allocation8 + $0x8] sm:$0xff]  ;;  %v1981_v21 = vld [vmem:[#allocation8 + $0x30] sm:$0xff] }
 0x218   :  { %4746 = vmatprep.subr.bf16.mxu1 %v8942_v12  ;;  %v8950_v12 = vand.u32 4294901760, %v8883_v33  ;;  %v2051_v40 = vand.u32 4294901760, %v1976_v10 }
 0x219   :  { %v6727_v33 = vpack.c.bf16 %v8958_v1, %v8957_v63  ;;  %v1982_v63 = vld [vmem:[#allocation8 + $0x38] sm:$0xff]  ;;  %v8970_v1 = vld [vmem:[#allocation33_spill] sm:$0xff] }
 0x21a   :  { %v4755_v34 = vpack.c.bf16 %v8951_v35, %v8950_v12  ;;  %v1978_v12 = vld [vmem:[#allocation8 + $0x18] sm:$0xff]  ;;  %v1975_v35 = vld [vmem:[#allocation8] sm:$0xff]  ;;  %v8971_v55 = vand.u32 4294901760, %v8970_v1  ;;  %v2063_v54 = vand.u32 4294901760, %v1982_v63  ;;  %v6762_v6 = vsub.f32 %v1976_v10, %v2051_v40 }
 0x21b   :  { %4748 = vmatpush1.bf16.msra.mxu1 %v8945_v5  ;;  %v2055_v56 = vand.u32 4294901760, %v1978_v12  ;;  %v2053_v30 = vand.u32 4294901760, %v1975_v35  ;;  %v1983_v1 = vld [vmem:[#allocation8 + $0x40] sm:$0xff] }
 0x21c   :  { %4750 = vmatprep.subr.bf16.mxu1 %v4749_v11  ;;  %v6739_v11 = vpack.c.bf16 %v8962_v13, %v8961_v53  ;;  %v8973_v53 = vand.u32 4294901760, %v8972_v22  ;;  %v2057_v13 = vand.u32 4294901760, %v1977_v61  ;;  %8975 = vst [vmem:[#allocation42_spill] sm:$0xff] %v6762_v6  ;;  %v6777_v10 = vsub.f32 %v1982_v63, %v2063_v54 }
 0x21d   :  { %v6760_v42 = vpack.c.bf16 %v2055_v56, %v2051_v40  ;;  %v6764_v5 = vsub.f32 %v1978_v12, %v2055_v56  ;;  %v2061_v12 = vand.u32 4294901760, %v1979_v26  ;;  %v2067_v40 = vand.u32 4294901760, %v1984_v15  ;;  %v1990_v56 = vld [vmem:[#allocation8 + $0x78] sm:$0xff] }
 0x21e   :  { %1565 = vmatmul.mubr.f32.vlgmr.msra.gmra.mrb[2].mxu1 %v8956_v62  ;;  %v1980_v62 = vld [vmem:[#allocation8 + $0x28] sm:$0xff]  ;;  %v6768_v22 = vpack.c.bf16 %v2057_v13, %v2053_v30  ;;  %8982 = vst [vmem:[#allocation18_spill] sm:$0xff] %v6777_v10  ;;  %v6789_v10 = vld [vmem:[#allocation8 + $0x80] sm:$0xff] }
 0x21f   :  { %4752 = vmatpush1.bf16.msra.mxu1 %v4751_v29  ;;  %1828 = vmatprep.mubr.f32.mxu1 %v8966_v41  ;;  %v6758_v29 = vpack.c.bf16 %v8973_v53, %v8971_v55  ;;  %v2059_v43 = vand.u32 4294901760, %v1980_v62  ;;  %8974 = vst [vmem:[#allocation41_spill] sm:$0xff] %v6760_v42  ;;  %8976 = vst [vmem:[#allocation48_spill] sm:$0xff] %v6764_v5  ;;  %v6766_v41 = vsub.f32 %v1975_v35, %v2053_v30 }
 0x220   :  { %4754 = vmatprep.subr.bf16.mxu1 %v4753_v51  ;;  %v1986_v51 = vld [vmem:[#allocation8 + $0x58] sm:$0xff]  ;;  %8978 = vst [vmem:[#allocation74_spill] sm:$0xff] %v6768_v22  ;;  %v6770_v55 = vsub.f32 %v1977_v61, %v2057_v13  ;;  %4878 = vmatprep.subr.bf16.mxu0 %v6760_v42  ;;  %v2065_v35 = vand.u32 4294901760, %v1981_v21  ;;  %v2069_v61 = vand.u32 4294901760, %v1983_v1  ;;  %v2073_v13 = vand.u32 4294901760, %v1985_v28  ;;  %v1992_v42 = vld [vmem:[#allocation8 + $0x88] sm:$0xff] }
 0x221   :  { %8977 = vst [vmem:[#allocation54_spill] sm:$0xff] %v6766_v41  ;;  %v6772_v53 = vpack.c.bf16 %v2063_v54, %v2059_v43  ;;  %v6774_v9 = vsub.f32 %v1980_v62, %v2059_v43  ;;  %4880 = vmatpush1.bf16.msra.mxu0 %v6768_v22  ;;  %v2071_v30 = vand.u32 4294901760, %v1986_v51  ;;  %v1987_v41 = vld [vmem:[#allocation8 + $0x60] sm:$0xff]  ;;  %v1989_v62 = vld [vmem:[#allocation8 + $0x70] sm:$0xff]  ;;  %v6783_v43 = vsub.f32 %v1979_v26, %v2061_v12 }
 0x222   :  { %8979 = vst [vmem:[#allocation97_spill] sm:$0xff] %v6770_v55  ;;  %v2075_v55 = vand.u32 4294901760, %v1988_v16  ;;  %v6785_v63 = vsub.f32 %v1981_v21, %v2065_v35  ;;  %v6787_v54 = vsub.f32 %v1984_v15, %v2067_v40  ;;  %v6795_v5 = vpack.c.bf16 %v2073_v13, %v2069_v61 }
 0x223   :  { %8980 = vst [vmem:[#allocation16_spill] sm:$0xff] %v6772_v53  ;;  %8981 = vst [vmem:[#allocation17_spill] sm:$0xff] %v6774_v9  ;;  %4756 = vmatpush1.bf16.msra.mxu1 %v4755_v34  ;;  %4882 = vmatprep.subr.bf16.mxu0 %v6772_v53  ;;  %v6781_v34 = vpack.c.bf16 %v2065_v35, %v2061_v12  ;;  %v6791_v22 = vpack.c.bf16 %v2071_v30, %v2067_v40  ;;  %v1993_v53 = vld [vmem:[#allocation8 + $0x90] sm:$0xff]  ;;  %v2079_v21 = vand.u32 4294901760, %v1990_v56 }
 0x224   :  { %4758 = vmatprep.subr.bf16.mxu1 %v4757_v8  ;;  %8984 = vst [vmem:[#allocation20_spill] sm:$0xff] %v6783_v43  ;;  %8985 = vst [vmem:[#allocation21_spill] sm:$0xff] %v6785_v63  ;;  %v1994_v8 = vld [vmem:[#allocation8 + $0x98] sm:$0xff]  ;;  %v6793_v9 = vsub.f32 %v1986_v51, %v2071_v30  ;;  %v6797_v6 = vsub.f32 %v1983_v1, %v2069_v61  ;;  %v6800_v26 = vsub.f32 %v1985_v28, %v2073_v13  ;;  %v1996_v61 = vld [vmem:[#allocation8 + $0xa8] sm:$0xff] }
 0x225   :  { %8983 = vst [vmem:[#allocation19_spill] sm:$0xff] %v6781_v34  ;;  %8986 = vst [vmem:[#allocation22_spill] sm:$0xff] %v6787_v54  ;;  %v6802_v15 = vsub.f32 %v1988_v16, %v2075_v55  ;;  %v2077_v12 = vand.u32 4294901760, %v1987_v41  ;;  %4884 = vmatpush1.bf16.msra.mxu0 %v6781_v34  ;;  %v2081_v35 = vand.u32 4294901760, %v1989_v62  ;;  %v2083_v51 = vand.u32 4294901760, %v1992_v42  ;;  %v1998_v13 = vld [vmem:[#allocation8 + $0xb8] sm:$0xff] }
 0x226   :  { %8987 = vst [vmem:[#allocation23_spill] sm:$0xff] %v6791_v22  ;;  %8988 = vst [vmem:[#allocation25_spill] sm:$0xff] %v6793_v9  ;;  %v2087_v40 = vand.u32 4294901760, %v1994_v8  ;;  %v2085_v30 = vand.u32 4294901760, %v6789_v10  ;;  %4886 = vmatprep.subr.bf16.mxu0 %v6791_v22  ;;  %v6808_v1 = vpack.c.bf16 %v2079_v21, %v2075_v55  ;;  %v2089_v16 = vand.u32 4294901760, %v1993_v53  ;;  %v9001_v54 = vld [vmem:[#allocation39_spill] sm:$0xff] }
 0x227   :  { %8989 = vst [vmem:[#allocation26_spill] sm:$0xff] %v6795_v5  ;;  %8990 = vst [vmem:[#allocation27_spill] sm:$0xff] %v6797_v6  ;;  %4760 = vmatpush1.bf16.msra.mxu1 %v6719_v20  ;;  %v6810_v20 = vsub.f32 %v1990_v56, %v2079_v21  ;;  %v6812_v28 = vsub.f32 %v1987_v41, %v2077_v12  ;;  %v9000_v9 = vand.u32 4294901760, %v8901_v36  ;;  %v9002_v63 = vand.u32 4294901760, %v9001_v54  ;;  %v1995_v41 = vld [vmem:[#allocation8 + $0xa0] sm:$0xff]  ;;  %v1997_v21 = vld [vmem:[#allocation8 + $0xb0] sm:$0xff] }
 0x228   :  { %8991 = vst [vmem:[#allocation28_spill] sm:$0xff] %v6800_v26  ;;  %8992 = vst [vmem:[#allocation29_spill] sm:$0xff] %v6802_v15  ;;  %4762 = vmatprep.subr.bf16.mxu1 %v6727_v33  ;;  %v8996_v15 = vld [vmem:[#allocation35_spill] sm:$0xff]  ;;  %v8998_v26 = vld [vmem:[#allocation37_spill] sm:$0xff]  ;;  %v6826_v55 = vsub.f32 %v1989_v62, %v2081_v35  ;;  %v6828_v56 = vsub.f32 %v1992_v42, %v2083_v51  ;;  %v6839_v36 = vsub.f32 %v1994_v8, %v2087_v40 }
 0x229   :  { %8993 = vst [vmem:[#allocation31_spill] sm:$0xff] %v6808_v1  ;;  %8994 = vst [vmem:[#allocation38_spill] sm:$0xff] %v6810_v20  ;;  %v8997_v33 = vand.u32 4294901760, %v8996_v15  ;;  %v8999_v34 = vand.u32 4294901760, %v8998_v26  ;;  %v6824_v22 = vpack.c.bf16 %v9002_v63, %v9000_v9  ;;  %v9005_v26 = vand.u32 4294901760, %v8861_v0  ;;  %v2002_v42 = vld [vmem:[#allocation8 + $0xd8] sm:$0xff]  ;;  %4888 = vmatpush1.bf16.msra.mxu0 %v6795_v5 }
 0x22a   :  { %8995 = vst [vmem:[#allocation44_spill] sm:$0xff] %v6812_v28  ;;  %9003 = vst [vmem:[#allocation45_spill] sm:$0xff] %v6826_v55  ;;  %v6830_v28 = vld [vmem:[#allocation8 + $0xc8] sm:$0xff]  ;;  %v6842_v9 = vsub.f32 %v6789_v10, %v2085_v30  ;;  %v6844_v62 = vsub.f32 %v1993_v53, %v2089_v16  ;;  %v6846_v63 = vld [vmem:[#allocation8 + $0xc0] sm:$0xff]  ;;  %v9011_v0 = vand.u32 4294901760, %v8903_v2  ;;  %v2091_v8 = vand.u32 4294901760, %v1996_v61  ;;  %4890 = vmatprep.subr.bf16.mxu0 %v6808_v1 }
 0x22b   :  { %v6818_v6 = vpack.c.bf16 %v8999_v34, %v8997_v33  ;;  %9004 = vst [vmem:[#allocation46_spill] sm:$0xff] %v6828_v56  ;;  %4764 = vmatpush1.bf16.msra.mxu1 %v6733_v59  ;;  %v9006_v34 = vand.u32 4294901760, %v8862_v23  ;;  %9007 = vst [vmem:[#allocation49_spill] sm:$0xff] %v6839_v36  ;;  %v9010_v59 = vand.u32 4294901760, %v8902_v49  ;;  %v6856_v23 = vpack.c.bf16 %v2081_v35, %v2077_v12  ;;  %v6858_v33 = vld [vmem:[#allocation8 + $0xd0] sm:$0xff]  ;;  %v6873_v5 = vld [vmem:[#allocation8 + $0xe0] sm:$0xff] }
 0x22c   :  { %9008 = vst [vmem:[#allocation50_spill] sm:$0xff] %v6842_v9  ;;  %9009 = vst [vmem:[#allocation51_spill] sm:$0xff] %v6844_v62  ;;  %4766 = vmatprep.subr.bf16.mxu1 %v6739_v11  ;;  %v2095_v10 = vand.u32 4294901760, %v1998_v13  ;;  %v6861_v53 = vpack.c.bf16 %v2087_v40, %v2083_v51  ;;  %v2097_v11 = vand.u32 4294901760, %v1997_v21  ;;  %v2099_v49 = vand.u32 4294901760, %v6830_v28 }
 0x22d   :  { %v6837_v15 = vpack.c.bf16 %v9006_v34, %v9005_v26  ;;  %v6853_v54 = vpack.c.bf16 %v9011_v0, %v9010_v59  ;;  %9012 = vst [vmem:[#allocation52_spill] sm:$0xff] %v6856_v23  ;;  %v2093_v26 = vand.u32 4294901760, %v1995_v41  ;;  %v6864_v34 = vld [vmem:[#allocation8 + $0xe8] sm:$0xff]  ;;  %v6866_v2 = vsub.f32 %v1996_v61, %v2091_v8  ;;  %v6871_v0 = vld [vmem:[#allocation8 + $0xf8] sm:$0xff]  ;;  %4892 = vmatpush1.bf16.msra.mxu0 %v6856_v23 }
 0x22e   :  { %9013 = vst [vmem:[#allocation81_spill] sm:$0xff] %v6861_v53  ;;  %v6868_v59 = vsub.f32 %v1998_v13, %v2095_v10  ;;  %v2103_v12 = vand.u32 4294901760, %v2002_v42  ;;  %v2101_v35 = vand.u32 4294901760, %v6846_v63  ;;  %v6878_v40 = vsub.f32 %v1997_v21, %v2097_v11  ;;  %v6884_v13 = vld [vmem:[#allocation8 + $0xf0] sm:$0xff]  ;;  %v6898_v21 = vld [vmem:[#allocation8 + $0x118] sm:$0xff]  ;;  %4894 = vmatprep.subr.bf16.mxu0 %v6861_v53 }
 0x22f   :  { %9014 = vst [vmem:[#allocation96_spill] sm:$0xff] %v6866_v2  ;;  %4768 = vmatpush1.bf16.msra.mxu1 %v6745_v14  ;;  %v6876_v51 = vsub.f32 %v1995_v41, %v2093_v26  ;;  %v6881_v1 = vsub.f32 %v6830_v28, %v2099_v49  ;;  %v2105_v61 = vand.u32 4294901760, %v6858_v33  ;;  %v6890_v2 = vpack.c.bf16 %v2089_v16, %v2085_v30  ;;  %v6936_v53 = vld [vmem:[#allocation8 + $0x130] sm:$0xff] }
 0x230   :  { %9015 = vst [vmem:[#allocation30_spill] sm:$0xff] %v6868_v59  ;;  %9017 = vst [vmem:[#allocation33_spill] sm:$0xff] %v6878_v40  ;;  %v6886_v59 = vld [vmem:[#allocation8 + $0x108] sm:$0xff]  ;;  %4770 = vmatprep.subr.bf16.mxu1 %v6752_v52  ;;  %v6892_v14 = vsub.f32 %v2002_v42, %v2103_v12  ;;  %v6895_v41 = vsub.f32 %v6846_v63, %v2101_v35  ;;  %v2107_v28 = vand.u32 4294901760, %v6864_v34  ;;  %v2111_v30 = vand.u32 4294901760, %v6871_v0  ;;  %v6910_v42 = vld [vmem:[#allocation8 + $0x110] sm:$0xff] }
 0x231   :  { %9016 = vst [vmem:[#allocation32_spill] sm:$0xff] %v6876_v51  ;;  %9018 = vst [vmem:[#allocation34_spill] sm:$0xff] %v6881_v1  ;;  %v6900_v1 = vld [vmem:[#allocation8 + $0x100] sm:$0xff]  ;;  %v6903_v40 = vpack.c.bf16 %v2095_v10, %v2091_v8  ;;  %v6906_v52 = vsub.f32 %v6858_v33, %v2105_v61  ;;  %v8499_v16 = vand.u32 4294901760, %v6873_v5  ;;  %v6912_v63 = vpack.c.bf16 %v2097_v11, %v2093_v26  ;;  %v6919_v8 = vld [vmem:[#allocation8 + $0x128] sm:$0xff] }
 0x232   :  { %9019 = vst [vmem:[#allocation35_spill] sm:$0xff] %v6890_v2  ;;  %9020 = vst [vmem:[#allocation37_spill] sm:$0xff] %v6892_v14  ;;  %v6915_v23 = vsub.f32 %v6864_v34, %v2107_v28  ;;  %v6921_v10 = vld [vmem:[#allocation8 + $0x138] sm:$0xff]  ;;  %v6925_v33 = vsub.f32 %v6871_v0, %v2111_v30  ;;  %v2119_v11 = vand.u32 4294901760, %v6898_v21  ;;  %4896 = vmatpush1.bf16.msra.mxu0 %v6890_v2  ;;  %v2121_v34 = vand.u32 4294901760, %v6910_v42  ;;  %v2015_v14 = vld [vmem:[#allocation8 + $0x140] sm:$0xff] }
 0x233   :  { %9021 = vst [vmem:[#allocation39_spill] sm:$0xff] %v6895_v41  ;;  %9022 = vst [vmem:[#allocation98_spill] sm:$0xff] %v6903_v40  ;;  %v2113_v41 = vand.u32 4294901760, %v6884_v13  ;;  %4772 = vmatpush1.bf16.msra.mxu1 %v6758_v29  ;;  %v6930_v26 = vsub.f32 %v6873_v5, %v8499_v16  ;;  %v6940_v29 = vpack.c.bf16 %v2103_v12, %v2099_v49  ;;  %v9030_v16 = vand.u32 4294901760, %v6886_v59 }
 0x234   :  { %9023 = vst [vmem:[#allocation99_spill] sm:$0xff] %v6906_v52  ;;  %9024 = vst [vmem:[#allocation100_spill] sm:$0xff] %v6912_v63  ;;  %4774 = vmatprep.subr.bf16.mxu1 %v6818_v6  ;;  %4898 = vmatprep.subr.bf16.mxu0 %v6903_v40  ;;  %v6955_v6 = vsub.f32 %v6898_v21, %v2119_v11  ;;  %v9033_v49 = vand.u32 4294901760, %v6900_v1  ;;  %v2127_v2 = vand.u32 4294901760, %v6921_v10 }
 0x235   :  { %9025 = vst [vmem:[#allocation101_spill] sm:$0xff] %v6915_v23  ;;  %9026 = vst [vmem:[#allocation102_spill] sm:$0xff] %v6925_v33  ;;  %v6934_v23 = vld [vmem:[#allocation8 + $0x120] sm:$0xff]  ;;  %v6943_v0 = vsub.f32 %v6884_v13, %v2113_v41  ;;  %v6951_v33 = vld [vmem:[#allocation8 + $0x148] sm:$0xff]  ;;  %v2123_v13 = vand.u32 4294901760, %v6919_v8  ;;  %v6969_v40 = vsub.f32 %v6910_v42, %v2121_v34  ;;  %v6974_v51 = vpack.c.bf16 %v2105_v61, %v2101_v35 }
 0x236   :  { %9027 = vst [vmem:[#allocation103_spill] sm:$0xff] %v6930_v26  ;;  %9028 = vst [vmem:[#allocation104_spill] sm:$0xff] %v6940_v29  ;;  %v6948_v26 = vsub.f32 %v6886_v59, %v9030_v16  ;;  %v6960_v12 = vsub.f32 %v6900_v1, %v9033_v49  ;;  %v2018_v16 = vld [vmem:[#allocation8 + $0x158] sm:$0xff]  ;;  %v2125_v21 = vand.u32 4294901760, %v6934_v23  ;;  %v2017_v49 = vld [vmem:[#allocation8 + $0x150] sm:$0xff]  ;;  %4900 = vmatpush1.bf16.msra.mxu0 %v6912_v63  ;;  %v9045_v63 = vand.u32 4294901760, %v8905_v48 }
 0x237   :  { %9029 = vst [vmem:[#allocation105_spill] sm:$0xff] %v6943_v0  ;;  %9032 = vst [vmem:[#allocation107_spill] sm:$0xff] %v6955_v6  ;;  %v9036_v0 = vand.u32 4294901760, %v8866_v18  ;;  %v2129_v6 = vand.u32 4294901760, %v6936_v53  ;;  %4776 = vmatpush1.bf16.msra.mxu1 %v6824_v22  ;;  %v6977_v62 = vsub.f32 %v6919_v8, %v2123_v13  ;;  %v6980_v18 = vsub.f32 %v6921_v10, %v2127_v2  ;;  %v2022_v42 = vld [vmem:[#allocation8 + $0x178] sm:$0xff] }
 0x238   :  { %9031 = vst [vmem:[#allocation106_spill] sm:$0xff] %v6948_v26  ;;  %9034 = vst [vmem:[#allocation108_spill] sm:$0xff] %v6960_v12  ;;  %v9035_v26 = vand.u32 4294901760, %v8904_v50  ;;  %v2020_v12 = vld [vmem:[#allocation8 + $0x168] sm:$0xff]  ;;  %v2131_v50 = vand.u32 4294901760, %v6951_v33  ;;  %4778 = vmatprep.subr.bf16.mxu1 %v6837_v15  ;;  %v6988_v22 = vsub.f32 %v6934_v23, %v2125_v21  ;;  %v2135_v61 = vand.u32 4294901760, %v2018_v16  ;;  %4902 = vmatprep.subr.bf16.mxu0 %v6940_v29 }
 0x239   :  { %9037 = vst [vmem:[#allocation109_spill] sm:$0xff] %v6969_v40  ;;  %9038 = vst [vmem:[#allocation110_spill] sm:$0xff] %v6974_v51  ;;  %v6991_v35 = vsub.f32 %v6936_v53, %v2129_v6  ;;  %v2133_v10 = vand.u32 4294901760, %v2015_v14  ;;  %v2021_v15 = vld [vmem:[#allocation8 + $0x170] sm:$0xff]  ;;  %v9047_v29 = vand.u32 4294901760, %v8907_v7 }
 0x23a   :  { %v4781_v52 = vpack.c.bf16 %v9036_v0, %v9035_v26  ;;  %9039 = vst [vmem:[#allocation111_spill] sm:$0xff] %v6977_v62  ;;  %9040 = vst [vmem:[#allocation112_spill] sm:$0xff] %v6980_v18  ;;  %v2019_v26 = vld [vmem:[#allocation8 + $0x160] sm:$0xff]  ;;  %v6985_v0 = vpack.c.bf16 %v2111_v30, %v2107_v28  ;;  %v6995_v8 = vsub.f32 %v6951_v33, %v2131_v50  ;;  %v2137_v18 = vand.u32 4294901760, %v2017_v49 }
 0x23b   :  { %9042 = vst [vmem:[#allocation114_spill] sm:$0xff] %v6988_v22  ;;  %9043 = vst [vmem:[#allocation115_spill] sm:$0xff] %v6991_v35  ;;  %v2139_v62 = vand.u32 4294901760, %v2020_v12  ;;  %v9046_v28 = vand.u32 4294901760, %v8906_v4  ;;  %v7001_v23 = vsub.f32 %v2018_v16, %v2135_v61  ;;  %v2143_v22 = vand.u32 4294901760, %v2022_v42  ;;  %4780 = vmatpush1.bf16.msra.mxu1 %v6853_v54  ;;  %4904 = vmatpush1.bf16.msra.mxu0 %v6974_v51 }
 0x23c   :  { %9041 = vst [vmem:[#allocation113_spill] sm:$0xff] %v6985_v0  ;;  %9044 = vst [vmem:[#allocation116_spill] sm:$0xff] %v6995_v8  ;;  %v2141_v53 = vand.u32 4294901760, %v2019_v26  ;;  %v9048_v33 = vand.u32 4294901760, %v8908_v32  ;;  %v7008_v35 = vsub.f32 %v2015_v14, %v2133_v10  ;;  %v7010_v40 = vsub.f32 %v2017_v49, %v2137_v18  ;;  %4782 = vmatprep.subr.bf16.mxu1 %v4781_v52 }
 0x23d   :  { %v4783_v30 = vpack.c.bf16 %v9046_v28, %v9045_v63  ;;  %v7012_v9 = vsub.f32 %v2020_v12, %v2139_v62  ;;  %v9049_v4 = vand.u32 4294901760, %v6873_v5  ;;  %v7019_v63 = vsub.f32 %v2022_v42, %v2143_v22  ;;  %4906 = vmatprep.subr.bf16.mxu0 %v6985_v0  ;;  %v9167_v0 = vld [vmem:[#allocation44_spill] sm:$0xff] }
 0x23e   :  { %v4785_v8 = vpack.c.bf16 %v9048_v33, %v9047_v29  ;;  %v2145_v54 = vand.u32 4294901760, %v2021_v15  ;;  %v7021_v7 = vsub.f32 %v2019_v26, %v2141_v53  ;;  %v9051_v32 = vand.u32 4294901760, %v6886_v59 }
 0x23f   :  { %v7017_v48 = vpack.c.bf16 %v2113_v41, %v9049_v4  ;;  %4784 = vmatpush1.bf16.msra.mxu1 %v4783_v30  ;;  %v9053_v52 = vand.u32 4294901760, %v8878_v27  ;;  %v9054_v5 = vand.u32 4294901760, %v6151_v60  ;;  %v9055_v12 = vand.u32 4294901760, %v6153_v45  ;;  %v9061_v27 = vld [vmem:[#allocation56_spill] sm:$0xff]  ;;  %v9082_v30 = vld [vmem:[#allocation83_spill] sm:$0xff]  ;;  %v9086_v4 = vld [vmem:[#allocation85_spill] sm:$0xff] }
 0x240   :  { %v7026_v14 = vpack.c.bf16 %v2119_v11, %v9051_v32  ;;  %v7028_v29 = vsub.f32 %v2021_v15, %v2145_v54  ;;  %4786 = vmatprep.subr.bf16.mxu1 %v4785_v8  ;;  %v9056_v16 = vand.u32 4294901760, %v6155_v46  ;;  %v9057_v59 = vand.u32 4294901760, %v6900_v1 }
 0x241   :  { %9050 = vst [vmem:[#allocation117_spill] sm:$0xff] %v7017_v48  ;;  %v4787_v41 = vpack.c.bf16 %v9054_v5, %v9053_v52  ;;  %4908 = vmatpush1.bf16.msra.mxu0 %v7017_v48  ;;  %v7044_v42 = vpack.c.bf16 %v2127_v2, %v2123_v13  ;;  %v9060_v60 = vand.u32 4294901760, %v6157_v19  ;;  %v9062_v26 = vand.u32 4294901760, %v9061_v27  ;;  %v9088_v52 = vld [vmem:[#allocation87_spill] sm:$0xff]  ;;  %v9090_v5 = vld [vmem:[#allocation88_spill] sm:$0xff] }
 0x242   :  { %9052 = vst [vmem:[#allocation118_spill] sm:$0xff] %v7026_v14  ;;  %v4789_v49 = vpack.c.bf16 %v9056_v16, %v9055_v12  ;;  %v7041_v11 = vpack.c.bf16 %v2121_v34, %v9057_v59  ;;  %4910 = vmatprep.subr.bf16.mxu0 %v7026_v14  ;;  %v9063_v45 = vand.u32 4294901760, %v6242_v44  ;;  %v9064_v46 = vand.u32 4294901760, %v6244_v57  ;;  %v9092_v16 = vld [vmem:[#allocation89_spill] sm:$0xff]  ;;  %v9096_v27 = vld [vmem:[#allocation24_spill] sm:$0xff] }
 0x243   :  { %9059 = vst [vmem:[#allocation120_spill] sm:$0xff] %v7044_v42  ;;  %4788 = vmatpush1.bf16.msra.mxu1 %v4787_v41  ;;  %v4791_v8 = vpack.c.bf16 %v9062_v26, %v9060_v60  ;;  %v7055_v1 = vpack.c.bf16 %v2129_v6, %v2125_v21  ;;  %v7058_v2 = vpack.c.bf16 %v2135_v61, %v2131_v50  ;;  %v9067_v19 = vand.u32 4294901760, %v6248_v17  ;;  %v9097_v26 = vld [vmem:[#allocation94_spill] sm:$0xff] }
 0x244   :  { %9058 = vst [vmem:[#allocation119_spill] sm:$0xff] %v7041_v11  ;;  %4790 = vmatprep.subr.bf16.mxu1 %v4789_v49  ;;  %v4793_v15 = vpack.c.bf16 %v9064_v46, %v9063_v45  ;;  %v9068_v34 = vand.u32 4294901760, %v8880_v24  ;;  %v9069_v44 = vand.u32 4294901760, %v6273_v25  ;;  %v9070_v57 = vand.u32 4294901760, %v6275_v38  ;;  %v9094_v49 = vld [vmem:[#allocation91_spill] sm:$0xff]  ;;  %v9100_v46 = vld [vmem:[#allocation40_spill] sm:$0xff] }
 0x245   :  { %4912 = vmatpush1.bf16.msra.mxu0 %v7041_v11  ;;  %9065 = vst [vmem:[#allocation56_spill] sm:$0xff] %v7055_v1  ;;  %9066 = vst [vmem:[#allocation121_spill] sm:$0xff] %v7058_v2  ;;  %v7069_v6 = vpack.c.bf16 %v2137_v18, %v2133_v10  ;;  %v7072_v21 = vpack.c.bf16 %v2143_v22, %v2139_v62  ;;  %v9073_v17 = vand.u32 4294901760, %v6277_v37  ;;  %v9074_v24 = vand.u32 4294901760, %v6279_v58  ;;  %v9079_v22 = vld [vmem:[#allocation82_spill] sm:$0xff]  ;;  %v9099_v45 = vld [vmem:[#allocation95_spill] sm:$0xff] }
 0x246   :  { %4914 = vmatprep.subr.bf16.mxu0 %v7044_v42  ;;  %v4795_v13 = vpack.c.bf16 %v9068_v34, %v9067_v19  ;;  %v4797_v28 = vpack.c.bf16 %v9070_v57, %v9069_v44  ;;  %v9075_v25 = vand.u32 4294901760, %v8909_v47  ;;  %v9076_v38 = vand.u32 4294901760, %v6283_v31  ;;  %v9084_v31 = vld [vmem:[#allocation84_spill] sm:$0xff]  ;;  %v9102_v19 = vld [vmem:[#allocation47_spill] sm:$0xff]  ;;  %v9103_v34 = vld [vmem:[#allocation53_spill] sm:$0xff] }
 0x247   :  { %4792 = vmatpush1.bf16.msra.mxu1 %v4791_v8  ;;  %9071 = vst [vmem:[#allocation122_spill] sm:$0xff] %v7069_v6  ;;  %9072 = vst [vmem:[#allocation123_spill] sm:$0xff] %v7072_v21  ;;  %v4799_v50 = vpack.c.bf16 %v9074_v24, %v9073_v17  ;;  %v7083_v18 = vpack.c.bf16 %v2145_v54, %v2141_v53  ;;  %v9078_v62 = vand.u32 4294901760, %v6285_v39  ;;  %v9080_v37 = vand.u32 4294901760, %v9079_v22  ;;  %v9098_v8 = vld [vmem:[#allocation36_spill] sm:$0xff]  ;;  %v9105_v44 = vld [vmem:[#allocation57_spill] sm:$0xff] }
 0x248   :  { %4794 = vmatprep.subr.bf16.mxu1 %v4793_v15  ;;  %v4801_v61 = vpack.c.bf16 %v9076_v38, %v9075_v25  ;;  %v9081_v58 = vand.u32 4294901760, %v6290_v3  ;;  %v9083_v47 = vand.u32 4294901760, %v9082_v30  ;;  %v9085_v53 = vand.u32 4294901760, %v9084_v31  ;;  %v9101_v15 = vld [vmem:[#allocation43_spill] sm:$0xff]  ;;  %v9106_v57 = vld [vmem:[#allocation58_spill] sm:$0xff]  ;;  %v9108_v17 = vld [vmem:[#allocation60_spill] sm:$0xff] }
 0x249   :  { %4916 = vmatpush1.bf16.msra.mxu0 %v7055_v1  ;;  %9077 = vst [vmem:[#allocation124_spill] sm:$0xff] %v7083_v18  ;;  %v4803_v10 = vpack.c.bf16 %v9080_v37, %v9078_v62  ;;  %v9087_v54 = vand.u32 4294901760, %v9086_v4  ;;  %v9089_v39 = vand.u32 4294901760, %v9088_v52  ;;  %v9091_v41 = vand.u32 4294901760, %v9090_v5  ;;  %v9109_v24 = vld [vmem:[#allocation61_spill] sm:$0xff]  ;;  %v9111_v25 = vld [vmem:[#allocation63_spill] sm:$0xff] }
 0x24a   :  { %4918 = vmatprep.subr.bf16.mxu0 %v7058_v2  ;;  %v4805_v33 = vpack.c.bf16 %v9083_v47, %v9081_v58  ;;  %v9093_v3 = vand.u32 4294901760, %v9092_v16  ;;  %v9095_v59 = vand.u32 4294901760, %v9094_v49  ;;  %v9112_v38 = vld [vmem:[#allocation64_spill] sm:$0xff]  ;;  %v9114_v62 = vld [vmem:[#allocation66_spill] sm:$0xff]  ;;  %v9115_v22 = vld [vmem:[#allocation67_spill] sm:$0xff] }
 0x24b   :  { %4796 = vmatpush1.bf16.msra.mxu1 %v4795_v13  ;;  %v4807_v32 = vpack.c.bf16 %v9087_v54, %v9085_v53  ;;  %v4809_v12 = vpack.c.bf16 %v9091_v41, %v9089_v39  ;;  %v9104_v13 = vld [vmem:[#allocation55_spill] sm:$0xff]  ;;  %v9116_v37 = vld [vmem:[#allocation68_spill] sm:$0xff]  ;;  %v9118_v58 = vld [vmem:[#allocation70_spill] sm:$0xff] }
 0x24c   :  { %4798 = vmatprep.subr.bf16.mxu1 %v4797_v28  ;;  %v4811_v60 = vpack.c.bf16 %v9095_v59, %v9093_v3  ;;  %v9107_v28 = vld [vmem:[#allocation59_spill] sm:$0xff]  ;;  %v9120_v47 = vld [vmem:[#allocation72_spill] sm:$0xff]  ;;  %v9124_v4 = vld [vmem:[#allocation77_spill] sm:$0xff] }
 0x24d   :  { %4920 = vmatpush1.bf16.msra.mxu0 %v7069_v6  ;;  %v9119_v30 = vld [vmem:[#allocation71_spill] sm:$0xff]  ;;  %v9123_v53 = vld [vmem:[#allocation76_spill] sm:$0xff]  ;;  %v9125_v54 = vld [vmem:[#allocation78_spill] sm:$0xff] }
 0x24e   :  { %4922 = vmatprep.subr.bf16.mxu0 %v7072_v21  ;;  %v9122_v31 = vld [vmem:[#allocation75_spill] sm:$0xff]  ;;  %v9127_v52 = vld [vmem:[#allocation80_spill] sm:$0xff]  ;;  %v9128_v39 = vld [vmem:[#allocation86_spill] sm:$0xff] }
 0x24f   :  { %4800 = vmatpush1.bf16.msra.mxu1 %v4799_v50  ;;  %v9110_v50 = vld [vmem:[#allocation62_spill] sm:$0xff]  ;;  %v2024_v41 = vld [vmem:[#allocation8 + $0x188] sm:$0xff]  ;;  %v2023_v49 = vld [vmem:[#allocation8 + $0x180] sm:$0xff] }
 0x250   :  { %4802 = vmatprep.subr.bf16.mxu1 %v4801_v61  ;;  %v9113_v61 = vld [vmem:[#allocation65_spill] sm:$0xff]  ;;  %v9129_v5 = vld [vmem:[#allocation90_spill] sm:$0xff]  ;;  %v2147_v16 = vand.u32 4294901760, %v2024_v41 }
 0x251   :  { %4924 = vmatpush1.bf16.msra.mxu0 %v7083_v18  ;;  %v2025_v59 = vld [vmem:[#allocation8 + $0x190] sm:$0xff] }
 0x253   :  { %4804 = vmatpush1.bf16.msra.mxu1 %v4803_v10  ;;  %v9117_v10 = vld [vmem:[#allocation69_spill] sm:$0xff] }
 0x254   :  { %4806 = vmatprep.subr.bf16.mxu1 %v4805_v33  ;;  %v9121_v33 = vld [vmem:[#allocation73_spill] sm:$0xff] }
 0x257   :  { %4808 = vmatpush1.bf16.msra.mxu1 %v4807_v32  ;;  %v9126_v32 = vld [vmem:[#allocation79_spill] sm:$0xff] }
 0x258   :  { %4810 = vmatprep.subr.bf16.mxu1 %v4809_v12  ;;  %v2026_v12 = vld [vmem:[#allocation8 + $0x198] sm:$0xff] }
 0x259   :  { %v2151_v3 = vand.u32 4294901760, %v2026_v12 }
 0x25b   :  { %4812 = vmatpush1.bf16.msra.mxu1 %v4811_v60  ;;  %v2149_v60 = vand.u32 4294901760, %v2023_v49  ;;  %v7172_v18 = vsub.f32 %v2026_v12, %v2151_v3 }
 0x25c   :  { %4814 = vmatprep.subr.bf16.mxu1 %v9096_v27  ;;  %v2153_v27 = vand.u32 4294901760, %v2025_v59 }
 0x25d   :  { %v7174_v21 = vsub.f32 %v2023_v49, %v2149_v60 }
 0x25e   :  { %1830 = vmatmul.mubr.f32.vlgmr.msra.gmra.mrb[2].mxu1 %v9097_v26  ;;  %v7176_v6 = vsub.f32 %v2025_v59, %v2153_v27 }
 0x25f   :  { %4816 = vmatpush1.bf16.msra.mxu1 %v9098_v8  ;;  %1965 = vmatprep.mubr.f32.mxu1 %v9099_v45  ;;  %v7142_v8 = vpack.c.bf16 %v2151_v3, %v2147_v16  ;;  %v7144_v45 = vpack.c.bf16 %v2153_v27, %v2149_v60 }
 0x260   :  { %4818 = vmatprep.subr.bf16.mxu1 %v9100_v46  ;;  %v2028_v46 = vld [vmem:[#allocation8 + $0x1a8] sm:$0xff] }
 0x261   :  { %9130 = vst [vmem:[#allocation82_spill] sm:$0xff] %v7142_v8  ;;  %9131 = vst [vmem:[#allocation83_spill] sm:$0xff] %v7144_v45  ;;  %4926 = vmatprep.subr.bf16.mxu0 %v7142_v8  ;;  %v7170_v8 = vsub.f32 %v2024_v41, %v2147_v16 }
 0x262   :  { %4928 = vmatpush1.bf16.msra.mxu0 %v7144_v45 }
 0x263   :  { %4820 = vmatpush1.bf16.msra.mxu1 %v9101_v15  ;;  %v2030_v15 = vld [vmem:[#allocation8 + $0x1b8] sm:$0xff] }
 0x264   :  { %4822 = vmatprep.subr.bf16.mxu1 %v9102_v19  ;;  %v2155_v19 = vand.u32 4294901760, %v2028_v46 }
 0x267   :  { %4824 = vmatpush1.bf16.msra.mxu1 %v9103_v34  ;;  %v2159_v34 = vand.u32 4294901760, %v2030_v15 }
 0x268   :  { %4826 = vmatprep.subr.bf16.mxu1 %v9104_v13  ;;  %v2027_v13 = vld [vmem:[#allocation8 + $0x1a0] sm:$0xff] }
 0x269   :  { %v7180_v2 = vsub.f32 %v2030_v15, %v2159_v34 }
 0x26b   :  { %4828 = vmatpush1.bf16.msra.mxu1 %v9105_v44  ;;  %v2157_v44 = vand.u32 4294901760, %v2027_v13 }
 0x26c   :  { %4830 = vmatprep.subr.bf16.mxu1 %v9106_v57 }
 0x26d   :  { %v7182_v1 = vsub.f32 %v2027_v13, %v2157_v44  ;;  %v9149_v13 = vld [vmem:[#allocation92_spill] sm:$0xff] }
 0x26f   :  { %4832 = vmatpush1.bf16.msra.mxu1 %v9107_v28  ;;  %v7148_v28 = vpack.c.bf16 %v2159_v34, %v2155_v19  ;;  %v677_v34 = vld [vmem:[%s8242_s4] sm:$0x3] }
 0x270   :  { %4834 = vmatprep.subr.bf16.mxu1 %v9108_v17 }
 0x271   :  { %9132 = vst [vmem:[#allocation84_spill] sm:$0xff] %v7148_v28  ;;  %4930 = vmatprep.subr.bf16.mxu0 %v7148_v28 }
 0x273   :  { %4836 = vmatpush1.bf16.msra.mxu1 %v9109_v24  ;;  %v2032_v24 = vld [vmem:[#allocation8 + $0x1c8] sm:$0xff] }
 0x274   :  { %4838 = vmatprep.subr.bf16.mxu1 %v9110_v50  ;;  %v2034_v50 = vld [vmem:[#allocation8 + $0x1d8] sm:$0xff] }
 0x277   :  { %4840 = vmatpush1.bf16.msra.mxu1 %v9111_v25  ;;  %v2163_v25 = vand.u32 4294901760, %v2032_v24 }
 0x278   :  { %4842 = vmatprep.subr.bf16.mxu1 %v9112_v38  ;;  %v2167_v38 = vand.u32 4294901760, %v2034_v50 }
 0x27a   :  { %v7189_v41 = vsub.f32 %v2034_v50, %v2167_v38 }
 0x27b   :  { %4844 = vmatpush1.bf16.msra.mxu1 %v9113_v61  ;;  %v2031_v61 = vld [vmem:[#allocation8 + $0x1c0] sm:$0xff] }
 0x27c   :  { %4846 = vmatprep.subr.bf16.mxu1 %v9114_v62  ;;  %v2033_v62 = vld [vmem:[#allocation8 + $0x1d0] sm:$0xff]  ;;  %9141 = vst [vmem:[#allocation94_spill] sm:$0xff] %v7189_v41 }
 0x27f   :  { %4848 = vmatpush1.bf16.msra.mxu1 %v9115_v22  ;;  %v2165_v22 = vand.u32 4294901760, %v2031_v61 }
 0x280   :  { %4850 = vmatprep.subr.bf16.mxu1 %v9116_v37  ;;  %v2169_v37 = vand.u32 4294901760, %v2033_v62 }
 0x281   :  { %v7191_v12 = vsub.f32 %v2031_v61, %v2165_v22 }
 0x282   :  { %v7193_v16 = vsub.f32 %v2033_v62, %v2169_v37  ;;  %v9153_v62 = vld [vmem:[#allocation17_spill] sm:$0xff] }
 0x283   :  { %4852 = vmatpush1.bf16.msra.mxu1 %v9117_v10  ;;  %v7154_v10 = vpack.c.bf16 %v2167_v38, %v2163_v25  ;;  %9142 = vst [vmem:[#allocation36_spill] sm:$0xff] %v7191_v12 }
 0x284   :  { %4854 = vmatprep.subr.bf16.mxu1 %v9118_v58  ;;  %v7156_v58 = vpack.c.bf16 %v2169_v37, %v2165_v22  ;;  %9143 = vst [vmem:[#allocation95_spill] sm:$0xff] %v7193_v16  ;;  %v8554_v22 = vand.u32 4294901760, %v9153_v62  ;;  %v9154_v37 = vld [vmem:[#allocation18_spill] sm:$0xff] }
 0x285   :  { %9134 = vst [vmem:[#allocation87_spill] sm:$0xff] %v7154_v10 }
 0x286   :  { %9135 = vst [vmem:[#allocation88_spill] sm:$0xff] %v7156_v58 }
 0x287   :  { %4856 = vmatpush1.bf16.msra.mxu1 %v9119_v30  ;;  %v2036_v30 = vld [vmem:[#allocation8 + $0x1e8] sm:$0xff] }
 0x288   :  { %4858 = vmatprep.subr.bf16.mxu1 %v9120_v47  ;;  %v2038_v47 = vld [vmem:[#allocation8 + $0x1f8] sm:$0xff] }
 0x28b   :  { %4860 = vmatpush1.bf16.msra.mxu1 %v9121_v33  ;;  %v2171_v33 = vand.u32 4294901760, %v2036_v30 }
 0x28c   :  { %4862 = vmatprep.subr.bf16.mxu1 %v9122_v31  ;;  %v2175_v31 = vand.u32 4294901760, %v2038_v47 }
 0x28d   :  { %v7195_v3 = vsub.f32 %v2036_v30, %v2171_v33 }
 0x28e   :  { %v7197_v49 = vsub.f32 %v2038_v47, %v2175_v31 }
 0x28f   :  { %4864 = vmatpush1.bf16.msra.mxu1 %v9123_v53  ;;  %v2035_v53 = vld [vmem:[#allocation8 + $0x1e0] sm:$0xff]  ;;  %9144 = vst [vmem:[#allocation40_spill] sm:$0xff] %v7195_v3 }
 0x290   :  { %4866 = vmatprep.subr.bf16.mxu1 %v9124_v4  ;;  %v2037_v4 = vld [vmem:[#allocation8 + $0x1f0] sm:$0xff]  ;;  %9145 = vst [vmem:[#allocation43_spill] sm:$0xff] %v7197_v49 }
 0x291   :  { %v2177_v28 = vand.u32 4294901760, %v2037_v4 }
 0x293   :  { %4868 = vmatpush1.bf16.msra.mxu1 %v9125_v54  ;;  %v9136_v54 = vld [vmem:[#allocation42_spill] sm:$0xff]  ;;  %v7203_v27 = vsub.f32 %v2037_v4, %v2177_v28 }
 0x294   :  { %4870 = vmatprep.subr.bf16.mxu1 %v9126_v32  ;;  %v8549_v32 = vand.u32 4294901760, %v9136_v54 }
 0x295   :  { %9148 = vst [vmem:[#allocation55_spill] sm:$0xff] %v7203_v27 }
 0x296   :  { %v2199_v45 = vsub.f32 %v9136_v54, %v8549_v32  ;;  %v7187_v32 = vsub.f32 %v2032_v24, %v2163_v25  ;;  %v9151_v24 = vld [vmem:[#allocation54_spill] sm:$0xff]  ;;  %v9152_v25 = vld [vmem:[#allocation97_spill] sm:$0xff] }
 0x297   :  { %4872 = vmatpush1.bf16.msra.mxu1 %v9127_v52  ;;  %v9137_v52 = vld [vmem:[#allocation48_spill] sm:$0xff]  ;;  %v8551_v50 = vand.u32 4294901760, %v9151_v24  ;;  %v8550_v38 = vand.u32 4294901760, %v9152_v25 }
 0x298   :  { %4874 = vmatprep.subr.bf16.mxu1 %v9128_v39  ;;  %v8552_v39 = vand.u32 4294901760, %v9137_v52  ;;  %9140 = vst [vmem:[#allocation24_spill] sm:$0xff] %v7187_v32 }
 0x299   :  { %v2205_v47 = vsub.f32 %v9151_v24, %v8551_v50  ;;  %v9160_v50 = vld [vmem:[#allocation25_spill] sm:$0xff] }
 0x29b   :  { %4876 = vmatpush1.bf16.msra.mxu1 %v9129_v5  ;;  %v2173_v5 = vand.u32 4294901760, %v2035_v53 }
 0x29d   :  { %v7199_v59 = vpack.c.bf16 %v2177_v28, %v2173_v5  ;;  %v7201_v60 = vsub.f32 %v2035_v53, %v2173_v5  ;;  %v8557_v53 = vand.u32 4294901760, %v6783_v43  ;;  %v9155_v5 = vld [vmem:[#allocation21_spill] sm:$0xff] }
 0x29e   :  { %1967 = vmatmul.mubr.f32.vlgmr.msra.gmra.mrb[2].mxu1 %v9097_v26  ;;  %v2029_v26 = vld [vmem:[#allocation8 + $0x1b0] sm:$0xff] }
 0x29f   :  { %v2161_v57 = vand.u32 4294901760, %v2029_v26  ;;  %9146 = vst [vmem:[#allocation47_spill] sm:$0xff] %v7199_v59  ;;  %9147 = vst [vmem:[#allocation53_spill] sm:$0xff] %v7201_v60 }
 0x2a1   :  { %v7150_v17 = vpack.c.bf16 %v2161_v57, %v2157_v44  ;;  %v7184_v42 = vsub.f32 %v2029_v26, %v2161_v57  ;;  %v682_v26 = vrot.slane %v677_v34, %v9149_v13  ;;  %v9150_v44 = vld [vmem:[#allocation93_spill] sm:$0xff] }
 0x2a2   :  { %v686_v57 = vrot.slane %v677_v34, %v9150_v44 }
 0x2a3   :  { %9133 = vst [vmem:[#allocation85_spill] sm:$0xff] %v7150_v17  ;;  %4932 = vmatpush1.bf16.msra.mxu0 %v7150_v17  ;;  %v7162_v17 = vpack.c.bf16 %v2175_v31, %v2171_v33  ;;  %9139 = vst [vmem:[#allocation91_spill] sm:$0xff] %v7184_v42  ;;  %v2217_v33 = vsub.f32 %v9152_v25, %v8550_v38  ;;  %v2229_v38 = vsub.f32 %v6783_v43, %v8557_v53  ;;  %v9164_v53 = vld [vmem:[#allocation28_spill] sm:$0xff] }
 0x2a4   :  { %4934 = vmatprep.subr.bf16.mxu0 %v7154_v10  ;;  %v2211_v10 = vsub.f32 %v9137_v52, %v8552_v39 }
 0x2a5   :  { %9138 = vst [vmem:[#allocation89_spill] sm:$0xff] %v7162_v17 }
 0x2a6   :  { %v2212_v15 = vand.u32 4294901760, %v2211_v10  ;;  %v8553_v10 = vand.u32 4294901760, %v9154_v37 }
 0x2a7   :  { %4936 = vmatpush1.bf16.msra.mxu0 %v7156_v58  ;;  %v7178_v58 = vsub.f32 %v2028_v46, %v2155_v19  ;;  %v2200_v46 = vand.u32 4294901760, %v2199_v45 }
 0x2a8   :  { %4938 = vmatprep.subr.bf16.mxu0 %v7162_v17 }
 0x2a9   :  { %v4941_v19 = vpack.c.bf16 %v2212_v15, %v2200_v46  ;;  %v8562_v46 = vand.u32 4294901760, %v9155_v5  ;;  %v9156_v15 = vld [vmem:[#allocation22_spill] sm:$0xff] }
 0x2ab   :  { %4940 = vmatpush1.bf16.msra.mxu0 %v7199_v59 }
 0x2ac   :  { %4942 = vmatprep.subr.bf16.mxu0 %v4941_v19 }
 0x371   :  { %v1968_v28 = vpop.f32.mrb[2].mxu1 }
 0x372   :  { %v5457_v61 = vadd.f32 %v1968_v28, %v682_v26  ;;  %v1970_v45 = vpop.f32.mrb[3].mxu1  ;;  %v2223_v26 = vsub.f32 %v9153_v62, %v8554_v22  ;;  %v9162_v22 = vand.u32 4294901760, %v9156_v15 }
 0x373   :  { %v5458_v30 = vadd.f32 %v1970_v45, %v686_v57  ;;  %v2235_v57 = vsub.f32 %v9154_v37, %v8553_v10  ;;  %v2218_v45 = vand.u32 4294901760, %v2217_v33  ;;  %v2241_v10 = vsub.f32 %v9155_v5, %v8562_v46  ;;  %v9163_v33 = vld [vmem:[#allocation27_spill] sm:$0xff]  ;;  %v9175_v5 = vld [vmem:[#allocation30_spill] sm:$0xff] }
 0x374   :  { %v1973_v31 = vmax.f32 %v5457_v61, 0.0  ;;  %v2206_v61 = vand.u32 4294901760, %v2205_v47  ;;  %v2247_v47 = vsub.f32 %v9156_v15, %v9162_v22  ;;  %v2224_v13 = vand.u32 4294901760, %v2223_v26  ;;  %v9166_v22 = vld [vmem:[#allocation29_spill] sm:$0xff]  ;;  %v9173_v15 = vld [vmem:[#allocation51_spill] sm:$0xff] }
 0x375   :  { %v1974_v4 = vmax.f32 %v5458_v30, 0.0  ;;  %v2236_v59 = vand.u32 4294901760, %v2235_v57  ;;  %v9165_v46 = vand.u32 4294901760, %v9160_v50  ;;  %v2230_v57 = vand.u32 4294901760, %v2229_v38  ;;  %v9174_v38 = vld [vmem:[#allocation96_spill] sm:$0xff] }
 0x376   :  { %v7224_v34 = vand.u32 4294901760, %v1973_v31  ;;  %v2242_v17 = vand.u32 4294901760, %v2241_v10  ;;  %v2248_v51 = vand.u32 4294901760, %v2247_v47  ;;  %v9171_v47 = vand.u32 4294901760, %v6810_v20 }
 0x377   :  { %v7232_v28 = vand.u32 4294901760, %v1974_v4  ;;  %v2259_v14 = vsub.f32 %v9160_v50, %v9165_v46  ;;  %v9169_v46 = vand.u32 4294901760, %v9164_v53 }
 0x378   :  { %9157 = vst [vmem:[#allocation57_spill] sm:$0xff] %v7224_v34  ;;  %v7235_v30 = vsub.f32 %v1973_v31, %v7224_v34 }
 0x379   :  { %9158 = vst [vmem:[#allocation58_spill] sm:$0xff] %v7232_v28  ;;  %v7242_v19 = vsub.f32 %v1974_v4, %v7232_v28  ;;  %v4943_v4 = vpack.c.bf16 %v2218_v45, %v2206_v61  ;;  %v8582_v61 = vand.u32 4294901760, %v9167_v0  ;;  %v4945_v45 = vpack.c.bf16 %v2236_v59, %v2224_v13 }
 0x37a   :  { %9159 = vst [vmem:[#allocation59_spill] sm:$0xff] %v7235_v30  ;;  %v8571_v44 = vand.u32 4294901760, %v7235_v30  ;;  %v2265_v48 = vsub.f32 %v9164_v53, %v9169_v46  ;;  %v9170_v59 = vand.u32 4294901760, %v9166_v22  ;;  %v9172_v46 = vld [vmem:[#allocation50_spill] sm:$0xff]  ;;  %v8590_v53 = vand.u32 4294901760, %v9173_v15 }
 0x37b   :  { %9161 = vst [vmem:[#allocation60_spill] sm:$0xff] %v7242_v19  ;;  %v8576_v39 = vand.u32 4294901760, %v7242_v19 }
 0x37c   :  { %v2188_v11 = vsub.f32 %v7235_v30, %v8571_v44  ;;  %v9168_v44 = vand.u32 4294901760, %v9163_v33  ;;  %v2271_v13 = vsub.f32 %v9166_v22, %v9170_v59  ;;  %v9186_v22 = vld [vmem:[#allocation39_spill] sm:$0xff] }
 0x37d   :  { %v2182_v26 = vsub.f32 %v7242_v19, %v8576_v39  ;;  %v2260_v39 = vand.u32 4294901760, %v2259_v14  ;;  %v8606_v43 = vand.u32 4294901760, %v9186_v22 }
 0x37e   :  { %v2253_v30 = vsub.f32 %v9163_v33, %v9168_v44  ;;  %v2189_v10 = vand.u32 4294901760, %v2188_v11  ;;  %v2283_v44 = vsub.f32 %v6810_v20, %v9171_v47  ;;  %v4947_v11 = vpack.c.bf16 %v2242_v17, %v2230_v57 }
 0x37f   :  { %v2183_v50 = vand.u32 4294901760, %v2182_v26  ;;  %v2277_v26 = vsub.f32 %v9167_v0, %v8582_v61  ;;  %v2266_v47 = vand.u32 4294901760, %v2265_v48  ;;  %v9177_v61 = vand.u32 4294901760, %v6828_v56 }
 0x380   :  { %v2254_v14 = vand.u32 4294901760, %v2253_v30  ;;  %v4949_v30 = vpack.c.bf16 %v2260_v39, %v2248_v51  ;;  %v2272_v57 = vand.u32 4294901760, %v2271_v13  ;;  %v2284_v59 = vand.u32 4294901760, %v2283_v44  ;;  %v9182_v51 = vld [vmem:[#allocation32_spill] sm:$0xff]  ;;  %v9183_v13 = vld [vmem:[#allocation33_spill] sm:$0xff] }
 0x381   :  { %2184 = vmatprep.mubr.f32.mxu0 %v2183_v50  ;;  %v9176_v50 = vand.u32 4294901760, %v6826_v55  ;;  %v2295_v31 = vsub.f32 %v6828_v56, %v9177_v61  ;;  %v9179_v33 = vand.u32 4294901760, %v9172_v46  ;;  %v9181_v56 = vand.u32 4294901760, %v9175_v5 }
 0x382   :  { %2190 = vmatmul.mubr.f32.vlgmr.msra.gmra.mrb[2].mxu0 %v2189_v10  ;;  %v9178_v10 = vand.u32 4294901760, %v6839_v36  ;;  %v8604_v44 = vand.u32 4294901760, %v9183_v13 }
 0x383   :  { %4944 = vmatpush1.bf16.msra.mxu0 %v4943_v4  ;;  %2581 = vmatprep.mubr.f32.mxu0 %v7232_v28  ;;  %v2289_v20 = vsub.f32 %v6826_v55, %v9176_v50  ;;  %v2278_v4 = vand.u32 4294901760, %v2277_v26  ;;  %v2301_v48 = vsub.f32 %v9172_v46, %v9179_v33  ;;  %v2313_v50 = vsub.f32 %v9173_v15, %v8590_v53  ;;  %v9184_v53 = vld [vmem:[#allocation34_spill] sm:$0xff]  ;;  %v9185_v55 = vld [vmem:[#allocation37_spill] sm:$0xff] }
 0x384   :  { %v2307_v17 = vsub.f32 %v6839_v36, %v9178_v10  ;;  %4946 = vmatprep.subr.bf16.mxu0 %v4945_v45  ;;  %v9180_v28 = vand.u32 4294901760, %v9174_v38  ;;  %v2331_v45 = vsub.f32 %v9175_v5, %v9181_v56  ;;  %v4951_v26 = vpack.c.bf16 %v2266_v47, %v2254_v14  ;;  %v9187_v56 = vld [vmem:[#allocation99_spill] sm:$0xff] }
 0x385   :  { %v2290_v10 = vand.u32 4294901760, %v2289_v20  ;;  %v2296_v33 = vand.u32 4294901760, %v2295_v31  ;;  %v4953_v36 = vpack.c.bf16 %v2284_v59, %v2272_v57  ;;  %v8603_v15 = vand.u32 4294901760, %v9184_v53 }
 0x386   :  { %v2319_v61 = vsub.f32 %v9174_v38, %v9180_v28  ;;  %v2308_v46 = vand.u32 4294901760, %v2307_v17  ;;  %v8602_v0 = vand.u32 4294901760, %v9185_v55  ;;  %v2302_v28 = vand.u32 4294901760, %v2301_v48  ;;  %v9190_v48 = vld [vmem:[#allocation102_spill] sm:$0xff] }
 0x387   :  { %4948 = vmatpush1.bf16.msra.mxu0 %v4947_v11  ;;  %v2314_v38 = vand.u32 4294901760, %v2313_v50  ;;  %v8608_v5 = vand.u32 4294901760, %v9187_v56  ;;  %v2332_v19 = vand.u32 4294901760, %v2331_v45  ;;  %v9188_v11 = vand.u32 4294901760, %v9182_v51  ;;  %v9194_v50 = vld [vmem:[#allocation107_spill] sm:$0xff] }
 0x388   :  { %4950 = vmatprep.subr.bf16.mxu0 %v4949_v30  ;;  %v2320_v39 = vand.u32 4294901760, %v2319_v61  ;;  %v2337_v31 = vsub.f32 %v9183_v13, %v8604_v44  ;;  %v4955_v14 = vpack.c.bf16 %v2290_v10, %v2278_v4  ;;  %v4957_v59 = vpack.c.bf16 %v2308_v46, %v2296_v33  ;;  %v9189_v30 = vld [vmem:[#allocation101_spill] sm:$0xff]  ;;  %v9191_v10 = vld [vmem:[#allocation103_spill] sm:$0xff] }
 0x389   :  { %v2325_v20 = vsub.f32 %v9182_v51, %v9188_v11  ;;  %v2343_v47 = vsub.f32 %v9184_v53, %v8603_v15  ;;  %v2355_v17 = vsub.f32 %v9185_v55, %v8602_v0  ;;  %v2349_v61 = vsub.f32 %v9186_v22, %v8606_v43  ;;  %v9192_v11 = vld [vmem:[#allocation105_spill] sm:$0xff]  ;;  %v9193_v15 = vld [vmem:[#allocation106_spill] sm:$0xff]  ;;  %v9199_v33 = vld [vmem:[#allocation111_spill] sm:$0xff] }
 0x38a   :  { %v4959_v46 = vpack.c.bf16 %v2314_v38, %v2302_v28  ;;  %v4961_v4 = vpack.c.bf16 %v2332_v19, %v2320_v39  ;;  %v9195_v22 = vand.u32 4294901760, %v9189_v30  ;;  %v9196_v19 = vand.u32 4294901760, %v9190_v48 }
 0x38b   :  { %4952 = vmatpush1.bf16.msra.mxu0 %v4951_v26  ;;  %v2326_v45 = vand.u32 4294901760, %v2325_v20  ;;  %v2338_v26 = vand.u32 4294901760, %v2337_v31  ;;  %v2344_v55 = vand.u32 4294901760, %v2343_v47  ;;  %v2356_v43 = vand.u32 4294901760, %v2355_v17  ;;  %v9197_v20 = vld [vmem:[#allocation108_spill] sm:$0xff] }
 0x38c   :  { %4954 = vmatprep.subr.bf16.mxu0 %v4953_v36  ;;  %v2361_v36 = vsub.f32 %v9187_v56, %v8608_v5  ;;  %v2367_v5 = vsub.f32 %v9189_v30, %v9195_v22  ;;  %v2379_v38 = vsub.f32 %v9190_v48, %v9196_v19  ;;  %v2350_v39 = vand.u32 4294901760, %v2349_v61 }
 0x38d   :  { %v8613_v31 = vand.u32 4294901760, %v9197_v20  ;;  %v4963_v44 = vpack.c.bf16 %v2338_v26, %v2326_v45  ;;  %v9201_v17 = vand.u32 4294901760, %v9191_v10  ;;  %v9202_v30 = vand.u32 4294901760, %v9192_v11 }
 0x38e   :  { %v2362_v28 = vand.u32 4294901760, %v2361_v36  ;;  %v9203_v61 = vand.u32 4294901760, %v9193_v15  ;;  %v9204_v0 = vand.u32 4294901760, %v9194_v50  ;;  %v4965_v26 = vpack.c.bf16 %v2356_v43, %v2344_v55  ;;  %v9208_v43 = vld [vmem:[#allocation114_spill] sm:$0xff] }
 0x38f   :  { %4956 = vmatpush1.bf16.msra.mxu0 %v4955_v14  ;;  %v9198_v14 = vld [vmem:[#allocation109_spill] sm:$0xff]  ;;  %v2373_v22 = vsub.f32 %v9191_v10, %v9201_v17  ;;  %v2385_v19 = vsub.f32 %v9192_v11, %v9202_v30  ;;  %v2368_v47 = vand.u32 4294901760, %v2367_v5  ;;  %v2397_v17 = vsub.f32 %v9197_v20, %v8613_v31  ;;  %v9209_v5 = vld [vmem:[#allocation115_spill] sm:$0xff] }
 0x390   :  { %4958 = vmatprep.subr.bf16.mxu0 %v4957_v59  ;;  %v9200_v59 = vld [vmem:[#allocation112_spill] sm:$0xff]  ;;  %v2391_v36 = vsub.f32 %v9193_v15, %v9203_v61  ;;  %v2403_v45 = vsub.f32 %v9194_v50, %v9204_v0  ;;  %v4967_v57 = vpack.c.bf16 %v2362_v28, %v2350_v39  ;;  %v9205_v10 = vand.u32 4294901760, %v9198_v14 }
 0x391   :  { %v9206_v11 = vand.u32 4294901760, %v9199_v33  ;;  %v9207_v15 = vand.u32 4294901760, %v9200_v59  ;;  %v2386_v39 = vand.u32 4294901760, %v2385_v19  ;;  %v8620_v50 = vand.u32 4294901760, %v7001_v23 }
 0x392   :  { %v2409_v30 = vsub.f32 %v9198_v14, %v9205_v10  ;;  %v2392_v28 = vand.u32 4294901760, %v2391_v36  ;;  %v2404_v31 = vand.u32 4294901760, %v2403_v45  ;;  %v9210_v10 = vld [vmem:[#allocation116_spill] sm:$0xff]  ;;  %v8621_v48 = vand.u32 4294901760, %v7008_v35 }
 0x393   :  { %4960 = vmatpush1.bf16.msra.mxu0 %v4959_v46  ;;  %v2380_v46 = vand.u32 4294901760, %v2379_v38  ;;  %v2415_v61 = vsub.f32 %v9199_v33, %v9206_v11  ;;  %v2427_v0 = vsub.f32 %v9200_v59, %v9207_v15  ;;  %v2374_v38 = vand.u32 4294901760, %v2373_v22 }
 0x394   :  { %4962 = vmatprep.subr.bf16.mxu0 %v4961_v4  ;;  %v8633_v4 = vand.u32 4294901760, %v9209_v5  ;;  %v8632_v14 = vand.u32 4294901760, %v9210_v10  ;;  %v2398_v11 = vand.u32 4294901760, %v2397_v17  ;;  %v2410_v33 = vand.u32 4294901760, %v2409_v30 }
 0x395   :  { %v4969_v20 = vpack.c.bf16 %v2380_v46, %v2368_v47  ;;  %v8622_v15 = vand.u32 4294901760, %v7010_v40  ;;  %v2416_v55 = vand.u32 4294901760, %v2415_v61  ;;  %v2428_v59 = vand.u32 4294901760, %v2427_v0 }
 0x396   :  { %v2433_v47 = vsub.f32 %v9209_v5, %v8633_v4  ;;  %v4971_v19 = vpack.c.bf16 %v2386_v39, %v2374_v38  ;;  %v4973_v36 = vpack.c.bf16 %v2404_v31, %v2392_v28  ;;  %v2439_v45 = vsub.f32 %v9210_v10, %v8632_v14 }
 0x397   :  { %4964 = vmatpush1.bf16.msra.mxu0 %v4963_v44  ;;  %v9211_v44 = vand.u32 4294901760, %v9208_v43  ;;  %v8631_v46 = vand.u32 4294901760, %v7012_v9  ;;  %v8623_v17 = vand.u32 4294901760, %v7019_v63  ;;  %v2445_v30 = vsub.f32 %v7008_v35, %v8621_v48 }
 0x398   :  { %4966 = vmatprep.subr.bf16.mxu0 %v4965_v26  ;;  %v2451_v26 = vsub.f32 %v7001_v23, %v8620_v50  ;;  %v4977_v31 = vpack.c.bf16 %v2428_v59, %v2416_v55  ;;  %v2434_v0 = vand.u32 4294901760, %v2433_v47  ;;  %v8624_v38 = vand.u32 4294901760, %v7021_v7 }
 0x399   :  { %v2421_v22 = vsub.f32 %v9208_v43, %v9211_v44  ;;  %v8625_v39 = vand.u32 4294901760, %v7028_v29  ;;  %v8626_v28 = vand.u32 4294901760, %v7170_v8  ;;  %v8629_v44 = vand.u32 4294901760, %v7172_v18 }
 0x39a   :  { %v2440_v50 = vand.u32 4294901760, %v2439_v45  ;;  %v2452_v48 = vand.u32 4294901760, %v2451_v26  ;;  %v2446_v59 = vand.u32 4294901760, %v2445_v30  ;;  %v2469_v45 = vsub.f32 %v7021_v7, %v8624_v38 }
 0x39b   :  { %4968 = vmatpush1.bf16.msra.mxu0 %v4967_v57  ;;  %v2457_v57 = vsub.f32 %v7010_v40, %v8622_v15  ;;  %v2422_v61 = vand.u32 4294901760, %v2421_v22  ;;  %v2463_v15 = vsub.f32 %v7012_v9, %v8631_v46  ;;  %v8628_v22 = vand.u32 4294901760, %v7176_v6 }
 0x39c   :  { %4970 = vmatprep.subr.bf16.mxu0 %v4969_v20  ;;  %v4975_v20 = vpack.c.bf16 %v2410_v33, %v2398_v11  ;;  %v2475_v33 = vsub.f32 %v7019_v63, %v8623_v17  ;;  %v8627_v11 = vand.u32 4294901760, %v7174_v21  ;;  %v2481_v26 = vsub.f32 %v7028_v29, %v8625_v39 }
 0x39d   :  { %v2458_v55 = vand.u32 4294901760, %v2457_v57  ;;  %v4979_v47 = vpack.c.bf16 %v2434_v0, %v2422_v61  ;;  %v2487_v30 = vsub.f32 %v7170_v8, %v8626_v28  ;;  %v2499_v57 = vsub.f32 %v7172_v18, %v8629_v44 }
 0x39e   :  { %v4981_v61 = vpack.c.bf16 %v2452_v48, %v2440_v50  ;;  %v2464_v0 = vand.u32 4294901760, %v2463_v15  ;;  %v2493_v38 = vsub.f32 %v7174_v21, %v8627_v11  ;;  %v2505_v39 = vsub.f32 %v7176_v6, %v8628_v22 }
 0x39f   :  { %4972 = vmatpush1.bf16.msra.mxu0 %v4971_v19  ;;  %v8630_v19 = vand.u32 4294901760, %v7178_v58  ;;  %v4983_v17 = vpack.c.bf16 %v2458_v55, %v2446_v59  ;;  %v8644_v48 = vand.u32 4294901760, %v7182_v1  ;;  %v8643_v50 = vand.u32 4294901760, %v7184_v42 }
 0x3a0   :  { %4974 = vmatprep.subr.bf16.mxu0 %v4973_v36  ;;  %v8634_v36 = vand.u32 4294901760, %v7180_v2  ;;  %v2470_v15 = vand.u32 4294901760, %v2469_v45  ;;  %v2488_v59 = vand.u32 4294901760, %v2487_v30  ;;  %v2500_v55 = vand.u32 4294901760, %v2499_v57 }
 0x3a1   :  { %v2511_v28 = vsub.f32 %v7178_v58, %v8630_v19  ;;  %v8642_v22 = vand.u32 4294901760, %v7187_v32  ;;  %v8635_v44 = vand.u32 4294901760, %v7189_v41  ;;  %v2494_v19 = vand.u32 4294901760, %v2493_v38 }
 0x3a2   :  { %v2506_v46 = vand.u32 4294901760, %v2505_v39  ;;  %v8641_v30 = vand.u32 4294901760, %v7191_v12  ;;  %v8637_v57 = vand.u32 4294901760, %v7193_v16 }
 0x3a3   :  { %4976 = vmatpush1.bf16.msra.mxu0 %v4975_v20  ;;  %v2476_v20 = vand.u32 4294901760, %v2475_v33  ;;  %v2482_v33 = vand.u32 4294901760, %v2481_v26  ;;  %v2512_v14 = vand.u32 4294901760, %v2511_v28  ;;  %v4989_v26 = vpack.c.bf16 %v2500_v55, %v2488_v59 }
 0x3a4   :  { %4978 = vmatprep.subr.bf16.mxu0 %v4977_v31  ;;  %v2523_v31 = vsub.f32 %v7180_v2, %v8634_v36  ;;  %v2517_v36 = vsub.f32 %v7182_v1, %v8644_v48  ;;  %v2535_v38 = vsub.f32 %v7187_v32, %v8642_v22  ;;  %v2547_v39 = vsub.f32 %v7189_v41, %v8635_v44  ;;  %v9232_v48 = vld [vmem:[#allocation102_spill] sm:$0xff] }
 0x3a5   :  { %v4985_v11 = vpack.c.bf16 %v2476_v20, %v2464_v0  ;;  %v4987_v45 = vpack.c.bf16 %v2482_v33, %v2470_v15  ;;  %v8636_v28 = vand.u32 4294901760, %v7195_v3  ;;  %v2553_v15 = vsub.f32 %v7193_v16, %v8637_v57 }
 0x3a6   :  { %v2524_v4 = vand.u32 4294901760, %v2523_v31  ;;  %v2518_v20 = vand.u32 4294901760, %v2517_v36  ;;  %v8640_v33 = vand.u32 4294901760, %v7201_v60  ;;  %v8639_v59 = vand.u32 4294901760, %v7203_v27 }
 0x3a7   :  { %4980 = vmatpush1.bf16.msra.mxu0 %v4979_v47  ;;  %v2529_v47 = vsub.f32 %v7184_v42, %v8643_v50  ;;  %v2536_v55 = vand.u32 4294901760, %v2535_v38  ;;  %v2548_v44 = vand.u32 4294901760, %v2547_v39  ;;  %v2554_v36 = vand.u32 4294901760, %v2553_v15  ;;  %v9213_v15 = vld [vmem:[#allocation20_spill] sm:$0xff] }
 0x3a8   :  { %4982 = vmatprep.subr.bf16.mxu0 %v4981_v61  ;;  %v8638_v61 = vand.u32 4294901760, %v7197_v49  ;;  %v4993_v0 = vpack.c.bf16 %v2524_v4, %v2512_v14  ;;  %v2559_v14 = vsub.f32 %v7195_v3, %v8636_v28 }
 0x3a9   :  { %v2530_v31 = vand.u32 4294901760, %v2529_v47  ;;  %v2565_v47 = vsub.f32 %v7201_v60, %v8640_v33  ;;  %v9228_v33 = vld [vmem:[#allocation30_spill] sm:$0xff] }
 0x3aa   :  { %v2571_v4 = vsub.f32 %v7197_v49, %v8638_v61  ;;  %v2560_v38 = vand.u32 4294901760, %v2559_v14 }
 0x3ab   :  { %4984 = vmatpush1.bf16.msra.mxu0 %v4983_v17  ;;  %v4991_v17 = vpack.c.bf16 %v2506_v46, %v2494_v19  ;;  %v4995_v46 = vpack.c.bf16 %v2530_v31, %v2518_v20  ;;  %v2566_v57 = vand.u32 4294901760, %v2565_v47  ;;  %v5005_v31 = vpack.c.bf16 %v9137_v52, %v9136_v54  ;;  %v9220_v47 = vld [vmem:[#allocation38_spill] sm:$0xff] }
 0x3ac   :  { %4986 = vmatprep.subr.bf16.mxu0 %v4985_v11  ;;  %v2541_v11 = vsub.f32 %v7191_v12, %v8641_v30  ;;  %v2572_v39 = vand.u32 4294901760, %v2571_v4  ;;  %v9217_v4 = vld [vmem:[#allocation27_spill] sm:$0xff] }
 0x3ae   :  { %v2542_v19 = vand.u32 4294901760, %v2541_v11  ;;  %v5007_v11 = vpack.c.bf16 %v9152_v25, %v9151_v24 }
 0x3af   :  { %4988 = vmatpush1.bf16.msra.mxu0 %v4987_v45  ;;  %v2577_v45 = vsub.f32 %v7203_v27, %v8639_v59 }
 0x3b0   :  { %4990 = vmatprep.subr.bf16.mxu0 %v4989_v26  ;;  %v4997_v26 = vpack.c.bf16 %v2548_v44, %v2536_v55  ;;  %v4999_v28 = vpack.c.bf16 %v2554_v36, %v2542_v19  ;;  %v5009_v44 = vpack.c.bf16 %v9154_v37, %v9153_v62  ;;  %v9216_v55 = vld [vmem:[#allocation25_spill] sm:$0xff] }
 0x3b1   :  { %v2578_v61 = vand.u32 4294901760, %v2577_v45  ;;  %v9219_v36 = vld [vmem:[#allocation29_spill] sm:$0xff] }
 0x3b2   :  { %v5017_v45 = vpack.c.bf16 %v9220_v47, %v9219_v36 }
 0x3b3   :  { %4992 = vmatpush1.bf16.msra.mxu0 %v4991_v17  ;;  %v5001_v17 = vpack.c.bf16 %v2572_v39, %v2560_v38  ;;  %v5003_v20 = vpack.c.bf16 %v2578_v61, %v2566_v57  ;;  %v9215_v61 = vld [vmem:[#allocation22_spill] sm:$0xff]  ;;  %v9222_v38 = vld [vmem:[#allocation45_spill] sm:$0xff] }
 0x3b4   :  { %4994 = vmatprep.subr.bf16.mxu0 %v4993_v0  ;;  %v9212_v0 = vld [vmem:[#allocation60_spill] sm:$0xff]  ;;  %v5013_v14 = vpack.c.bf16 %v9216_v55, %v9215_v61 }
 0x3b7   :  { %4996 = vmatpush1.bf16.msra.mxu0 %v4995_v46  ;;  %v9218_v46 = vld [vmem:[#allocation28_spill] sm:$0xff] }
 0x3b8   :  { %4998 = vmatprep.subr.bf16.mxu0 %v4997_v26  ;;  %v5015_v19 = vpack.c.bf16 %v9218_v46, %v9217_v4  ;;  %v9221_v26 = vld [vmem:[#allocation44_spill] sm:$0xff] }
 0x3b9   :  { %v5019_v39 = vpack.c.bf16 %v9222_v38, %v9221_v26 }
 0x3bb   :  { %5000 = vmatpush1.bf16.msra.mxu0 %v4999_v28  ;;  %v9214_v28 = vld [vmem:[#allocation21_spill] sm:$0xff] }
 0x3bc   :  { %5002 = vmatprep.subr.bf16.mxu0 %v5001_v17  ;;  %v5011_v57 = vpack.c.bf16 %v9214_v28, %v9213_v15  ;;  %v9223_v17 = vld [vmem:[#allocation46_spill] sm:$0xff] }
 0x3bf   :  { %5004 = vmatpush1.bf16.msra.mxu0 %v5003_v20  ;;  %v9224_v20 = vld [vmem:[#allocation49_spill] sm:$0xff] }
 0x3c0   :  { %5006 = vmatprep.subr.bf16.mxu0 %v5005_v31  ;;  %v5021_v31 = vpack.c.bf16 %v9224_v20, %v9223_v17 }
 0x3c2   :  { %2583 = vmatmul.mubr.f32.vlgmr.msra.gmra.mrb[2].mxu0 %v7224_v34 }
 0x3c3   :  { %5008 = vmatpush1.bf16.msra.mxu0 %v5007_v11  ;;  %2783 = vmatprep.mubr.f32.mxu0 %v9212_v0  ;;  %v9225_v11 = vld [vmem:[#allocation50_spill] sm:$0xff] }
 0x3c4   :  { %5010 = vmatprep.subr.bf16.mxu0 %v5009_v44  ;;  %v9226_v44 = vld [vmem:[#allocation51_spill] sm:$0xff] }
 0x3c5   :  { %v5023_v59 = vpack.c.bf16 %v9226_v44, %v9225_v11  ;;  %v9234_v44 = vld [vmem:[#allocation105_spill] sm:$0xff] }
 0x3c7   :  { %5012 = vmatpush1.bf16.msra.mxu0 %v5011_v57  ;;  %v9227_v57 = vld [vmem:[#allocation96_spill] sm:$0xff] }
 0x3c8   :  { %5014 = vmatprep.subr.bf16.mxu0 %v5013_v14  ;;  %v5025_v30 = vpack.c.bf16 %v9228_v33, %v9227_v57  ;;  %v5027_v14 = vpack.c.bf16 %v9183_v13, %v9182_v51  ;;  %v9236_v57 = vld [vmem:[#allocation107_spill] sm:$0xff]  ;;  %v9238_v51 = vld [vmem:[#allocation109_spill] sm:$0xff] }
 0x3cb   :  { %5016 = vmatpush1.bf16.msra.mxu0 %v5015_v19  ;;  %v9229_v19 = vld [vmem:[#allocation37_spill] sm:$0xff] }
 0x3cc   :  { %5018 = vmatprep.subr.bf16.mxu0 %v5017_v45  ;;  %v5029_v22 = vpack.c.bf16 %v9229_v19, %v9184_v53  ;;  %v9230_v45 = vld [vmem:[#allocation39_spill] sm:$0xff]  ;;  %v9240_v53 = vld [vmem:[#allocation112_spill] sm:$0xff] }
 0x3cd   :  { %v5031_v50 = vpack.c.bf16 %v9187_v56, %v9230_v45 }
 0x3cf   :  { %5020 = vmatpush1.bf16.msra.mxu0 %v5019_v39  ;;  %v9231_v39 = vld [vmem:[#allocation101_spill] sm:$0xff] }
 0x3d0   :  { %5022 = vmatprep.subr.bf16.mxu0 %v5021_v31  ;;  %v5033_v34 = vpack.c.bf16 %v9232_v48, %v9231_v39  ;;  %v9233_v31 = vld [vmem:[#allocation103_spill] sm:$0xff] }
 0x3d1   :  { %v5035_v33 = vpack.c.bf16 %v9234_v44, %v9233_v31 }
 0x3d3   :  { %5024 = vmatpush1.bf16.msra.mxu0 %v5023_v59  ;;  %v9235_v59 = vld [vmem:[#allocation106_spill] sm:$0xff] }
 0x3d4   :  { %5026 = vmatprep.subr.bf16.mxu0 %v5025_v30  ;;  %v5037_v13 = vpack.c.bf16 %v9236_v57, %v9235_v59  ;;  %v9237_v30 = vld [vmem:[#allocation108_spill] sm:$0xff] }
 0x3d5   :  { %v5039_v19 = vpack.c.bf16 %v9238_v51, %v9237_v30 }
 0x3d7   :  { %5028 = vmatpush1.bf16.msra.mxu0 %v5027_v14  ;;  %v9239_v14 = vld [vmem:[#allocation111_spill] sm:$0xff] }
 0x3d8   :  { %5030 = vmatprep.subr.bf16.mxu0 %v5029_v22  ;;  %v5041_v56 = vpack.c.bf16 %v9240_v53, %v9239_v14  ;;  %v5043_v22 = vpack.c.bf16 %v9209_v5, %v9208_v43 }
 0x3db   :  { %5032 = vmatpush1.bf16.msra.mxu0 %v5031_v50  ;;  %v5045_v50 = vpack.c.bf16 %v7001_v23, %v9210_v10 }
 0x3dc   :  { %5034 = vmatprep.subr.bf16.mxu0 %v5033_v34  ;;  %v5047_v34 = vpack.c.bf16 %v7010_v40, %v7008_v35 }
 0x3df   :  { %5036 = vmatpush1.bf16.msra.mxu0 %v5035_v33  ;;  %v5049_v33 = vpack.c.bf16 %v7019_v63, %v7012_v9 }
 0x3e0   :  { %5038 = vmatprep.subr.bf16.mxu0 %v5037_v13  ;;  %v5051_v13 = vpack.c.bf16 %v7028_v29, %v7021_v7 }
 0x3e3   :  { %5040 = vmatpush1.bf16.msra.mxu0 %v5039_v19  ;;  %v5053_v19 = vpack.c.bf16 %v7172_v18, %v7170_v8 }
 0x3e4   :  { %5042 = vmatprep.subr.bf16.mxu0 %v5041_v56  ;;  %v5055_v56 = vpack.c.bf16 %v7176_v6, %v7174_v21 }
 0x3e7   :  { %5044 = vmatpush1.bf16.msra.mxu0 %v5043_v22  ;;  %v5057_v22 = vpack.c.bf16 %v7180_v2, %v7178_v58 }
 0x3e8   :  { %5046 = vmatprep.subr.bf16.mxu0 %v5045_v50  ;;  %v5059_v50 = vpack.c.bf16 %v7184_v42, %v7182_v1  ;;  %v9243_v42 = vld [vmem:[#allocation74_spill] sm:$0xff] }
 0x3eb   :  { %5048 = vmatpush1.bf16.msra.mxu0 %v5047_v34  ;;  %v5061_v34 = vpack.c.bf16 %v7189_v41, %v7187_v32 }
 0x3ec   :  { %5050 = vmatprep.subr.bf16.mxu0 %v5049_v33  ;;  %v5063_v33 = vpack.c.bf16 %v7193_v16, %v7191_v12  ;;  %v9245_v16 = vld [vmem:[#allocation16_spill] sm:$0xff] }
 0x3ef   :  { %5052 = vmatpush1.bf16.msra.mxu0 %v5051_v13  ;;  %v5065_v13 = vpack.c.bf16 %v7197_v49, %v7195_v3  ;;  %v9247_v49 = vld [vmem:[#allocation23_spill] sm:$0xff]  ;;  %v3339_v3 = vld [vmem:[#allocation10 + $0x10] sm:$0xff] }
 0x3f0   :  { %5054 = vmatprep.subr.bf16.mxu0 %v5053_v19  ;;  %v5067_v19 = vpack.c.bf16 %v7203_v27, %v7201_v60  ;;  %v9249_v27 = vld [vmem:[#allocation31_spill] sm:$0xff]  ;;  %v3354_v60 = vld [vmem:[#allocation10 + $0x88] sm:$0xff] }
 0x3f3   :  { %5056 = vmatpush1.bf16.msra.mxu0 %v5055_v56  ;;  %v9241_v56 = vld [vmem:[#allocation41_spill] sm:$0xff] }
 0x3f4   :  { %5058 = vmatprep.subr.bf16.mxu0 %v5057_v22  ;;  %v9242_v22 = vld [vmem:[#allocation59_spill] sm:$0xff] }
 0x3f7   :  { %5060 = vmatpush1.bf16.msra.mxu0 %v5059_v50  ;;  %v9244_v50 = vand.u32 4294901760, %v9212_v0  ;;  %v9254_v0 = vld [vmem:[#allocation100_spill] sm:$0xff] }
 0x3f8   :  { %5062 = vmatprep.subr.bf16.mxu0 %v5061_v34  ;;  %v9246_v34 = vld [vmem:[#allocation19_spill] sm:$0xff] }
 0x3fb   :  { %5064 = vmatpush1.bf16.msra.mxu0 %v5063_v33  ;;  %v9248_v33 = vld [vmem:[#allocation26_spill] sm:$0xff] }
 0x3fc   :  { %5066 = vmatprep.subr.bf16.mxu0 %v5065_v13  ;;  %v9250_v13 = vld [vmem:[#allocation52_spill] sm:$0xff] }
 0x3ff   :  { %5068 = vmatpush1.bf16.msra.mxu0 %v5067_v19  ;;  %v9251_v19 = vld [vmem:[#allocation81_spill] sm:$0xff] }
 0x400   :  { %5070 = vmatprep.subr.bf16.mxu0 %v9241_v56  ;;  %v9252_v56 = vld [vmem:[#allocation35_spill] sm:$0xff] }
 0x402   :  { %2786 = vmatmul.mubr.f32.vlgmr.msra.gmra.mrb[2].mxu0 %v9242_v22 }
 0x403   :  { %5072 = vmatpush1.bf16.msra.mxu0 %v9243_v42  ;;  %2923 = vmatprep.mubr.f32.mxu0 %v9244_v50  ;;  %v9253_v42 = vld [vmem:[#allocation98_spill] sm:$0xff]  ;;  %v9255_v50 = vld [vmem:[#allocation104_spill] sm:$0xff] }
 0x404   :  { %5074 = vmatprep.subr.bf16.mxu0 %v9245_v16  ;;  %v9256_v16 = vld [vmem:[#allocation110_spill] sm:$0xff] }
 0x407   :  { %5076 = vmatpush1.bf16.msra.mxu0 %v9246_v34  ;;  %v9257_v34 = vld [vmem:[#allocation113_spill] sm:$0xff] }
 0x408   :  { %5078 = vmatprep.subr.bf16.mxu0 %v9247_v49  ;;  %v9258_v49 = vld [vmem:[#allocation117_spill] sm:$0xff] }
 0x40b   :  { %5080 = vmatpush1.bf16.msra.mxu0 %v9248_v33  ;;  %v9259_v33 = vld [vmem:[#allocation118_spill] sm:$0xff] }
 0x40c   :  { %5082 = vmatprep.subr.bf16.mxu0 %v9249_v27  ;;  %v9260_v27 = vld [vmem:[#allocation119_spill] sm:$0xff] }
 0x40f   :  { %5084 = vmatpush1.bf16.msra.mxu0 %v9250_v13  ;;  %v9261_v13 = vld [vmem:[#allocation120_spill] sm:$0xff] }
 0x410   :  { %5086 = vmatprep.subr.bf16.mxu0 %v9251_v19  ;;  %v9262_v19 = vld [vmem:[#allocation56_spill] sm:$0xff] }
 0x413   :  { %5088 = vmatpush1.bf16.msra.mxu0 %v9252_v56  ;;  %v9263_v56 = vld [vmem:[#allocation121_spill] sm:$0xff] }
 0x414   :  { %5090 = vmatprep.subr.bf16.mxu0 %v9253_v42  ;;  %v9264_v42 = vld [vmem:[#allocation122_spill] sm:$0xff] }
 0x417   :  { %5092 = vmatpush1.bf16.msra.mxu0 %v9254_v0  ;;  %v9265_v0 = vld [vmem:[#allocation123_spill] sm:$0xff] }
 0x418   :  { %5094 = vmatprep.subr.bf16.mxu0 %v9255_v50  ;;  %v9266_v50 = vld [vmem:[#allocation124_spill] sm:$0xff] }
 0x41b   :  { %5096 = vmatpush1.bf16.msra.mxu0 %v9256_v16  ;;  %v9267_v16 = vld [vmem:[#allocation82_spill] sm:$0xff] }
 0x41c   :  { %5098 = vmatprep.subr.bf16.mxu0 %v9257_v34  ;;  %v9268_v34 = vld [vmem:[#allocation83_spill] sm:$0xff] }
 0x41f   :  { %5100 = vmatpush1.bf16.msra.mxu0 %v9258_v49  ;;  %v9269_v49 = vld [vmem:[#allocation84_spill] sm:$0xff] }
 0x420   :  { %5102 = vmatprep.subr.bf16.mxu0 %v9259_v33  ;;  %v9270_v33 = vld [vmem:[#allocation85_spill] sm:$0xff] }
 0x423   :  { %5104 = vmatpush1.bf16.msra.mxu0 %v9260_v27  ;;  %v9271_v27 = vld [vmem:[#allocation87_spill] sm:$0xff] }
 0x424   :  { %5106 = vmatprep.subr.bf16.mxu0 %v9261_v13  ;;  %v9272_v13 = vld [vmem:[#allocation88_spill] sm:$0xff] }
 0x427   :  { %5108 = vmatpush1.bf16.msra.mxu0 %v9262_v19  ;;  %v9273_v19 = vld [vmem:[#allocation89_spill] sm:$0xff] }
 0x428   :  { %5110 = vmatprep.subr.bf16.mxu0 %v9263_v56 }
 0x42b   :  { %5112 = vmatpush1.bf16.msra.mxu0 %v9264_v42  ;;  %v9274_v42 = vand.u32 4294901760, %v9136_v54  ;;  %v3353_v54 = vld [vmem:[#allocation10 + $0x80] sm:$0xff] }
 0x42c   :  { %5114 = vmatprep.subr.bf16.mxu0 %v9265_v0  ;;  %v9275_v0 = vand.u32 4294901760, %v9137_v52  ;;  %v3337_v52 = vld [vmem:[#allocation10] sm:$0xff] }
 0x42e   :  { %v5133_v56 = vpack.c.bf16 %v9275_v0, %v9274_v42  ;;  %v9282_v42 = vld [vmem:[#allocation58_spill] sm:$0xff]  ;;  %v3377_v0 = vand.u32 4294901760, %v3337_v52 }
 0x42f   :  { %5116 = vmatpush1.bf16.msra.mxu0 %v9266_v50  ;;  %v9276_v50 = vld [vmem:[#allocation47_spill] sm:$0xff] }
 0x430   :  { %5118 = vmatprep.subr.bf16.mxu0 %v9267_v16  ;;  %v9277_v16 = vand.u32 4294901760, %v9151_v24  ;;  %v9283_v24 = vand.u32 4294901760, %v9213_v15  ;;  %v3340_v15 = vld [vmem:[#allocation10 + $0x18] sm:$0xff] }
 0x433   :  { %5120 = vmatpush1.bf16.msra.mxu0 %v9268_v34  ;;  %v9278_v34 = vand.u32 4294901760, %v9152_v25  ;;  %v9284_v25 = vand.u32 4294901760, %v9214_v28 }
 0x434   :  { %5122 = vmatprep.subr.bf16.mxu0 %v9269_v49 }
 0x435   :  { %v5135_v49 = vpack.c.bf16 %v9278_v34, %v9277_v16  ;;  %v5139_v16 = vpack.c.bf16 %v9284_v25, %v9283_v24  ;;  %v3428_v34 = vand.u32 4294901760, %v3354_v60  ;;  %v7606_v24 = vsub.f32 %v3337_v52, %v3377_v0 }
 0x436   :  { %v3383_v25 = vand.u32 4294901760, %v3339_v3  ;;  %v9292_v52 = vand.u32 4294901760, %v9220_v47 }
 0x437   :  { %5124 = vmatpush1.bf16.msra.mxu0 %v9270_v33  ;;  %v9279_v33 = vand.u32 4294901760, %v9153_v62  ;;  %v3338_v62 = vld [vmem:[#allocation10 + $0x8] sm:$0xff]  ;;  %v7604_v28 = vsub.f32 %v3354_v60, %v3428_v34  ;;  %v9291_v60 = vand.u32 4294901760, %v9219_v36  ;;  %v3341_v36 = vld [vmem:[#allocation10 + $0x20] sm:$0xff] }
 0x438   :  { %5126 = vmatprep.subr.bf16.mxu0 %v9271_v27  ;;  %v9280_v27 = vand.u32 4294901760, %v9154_v37  ;;  %v3355_v37 = vld [vmem:[#allocation10 + $0x90] sm:$0xff] }
 0x43b   :  { %5128 = vmatpush1.bf16.msra.mxu0 %v9272_v13  ;;  %v5137_v13 = vpack.c.bf16 %v9280_v27, %v9279_v33  ;;  %v3356_v27 = vld [vmem:[#allocation10 + $0x98] sm:$0xff]  ;;  %v9286_v33 = vand.u32 4294901760, %v9216_v55  ;;  %v3386_v55 = vand.u32 4294901760, %v3340_v15 }
 0x43c   :  { %5130 = vmatprep.subr.bf16.mxu0 %v9273_v19  ;;  %v9281_v19 = vand.u32 4294901760, %v9242_v22  ;;  %v9285_v22 = vand.u32 4294901760, %v9215_v61 }
 0x43f   :  { %5132 = vmatpush1.bf16.msra.mxu0 %v9276_v50  ;;  %v3431_v50 = vand.u32 4294901760, %v3355_v37 }
 0x440   :  { %5134 = vmatprep.subr.bf16.mxu0 %v5133_v56  ;;  %v3425_v56 = vand.u32 4294901760, %v3353_v54 }
 0x442   :  { %2927 = vmatmul.mubr.f32.vlgmr.msra.gmra.mrb[2].mxu0 %v9281_v19  ;;  %v5141_v19 = vpack.c.bf16 %v9286_v33, %v9285_v22  ;;  %v7602_v12 = vsub.f32 %v3353_v54, %v3425_v56  ;;  %v9289_v22 = vand.u32 4294901760, %v9217_v4  ;;  %v9290_v33 = vand.u32 4294901760, %v9218_v46 }
 0x443   :  { %5136 = vmatpush1.bf16.msra.mxu0 %v5135_v49  ;;  %3190 = vmatprep.mubr.f32.mxu0 %v9282_v42  ;;  %v3380_v49 = vand.u32 4294901760, %v3338_v62  ;;  %v3434_v42 = vand.u32 4294901760, %v3356_v27  ;;  %v7618_v54 = vsub.f32 %v3339_v3, %v3383_v25  ;;  %v9296_v3 = vand.u32 4294901760, %v9223_v17 }
 0x444   :  { %5138 = vmatprep.subr.bf16.mxu0 %v5137_v13  ;;  %v7610_v13 = vsub.f32 %v3355_v37, %v3431_v50  ;;  %v5143_v32 = vpack.c.bf16 %v9290_v33, %v9289_v22  ;;  %v3357_v37 = vld [vmem:[#allocation10 + $0xa0] sm:$0xff]  ;;  %v9297_v46 = vand.u32 4294901760, %v9224_v20  ;;  %v3342_v22 = vld [vmem:[#allocation10 + $0x28] sm:$0xff]  ;;  %v7634_v47 = vpack.c.bf16 %v3428_v34, %v3425_v56  ;;  %v3359_v33 = vld [vmem:[#allocation10 + $0xb0] sm:$0xff] }
 0x445   :  { %v7608_v41 = vsub.f32 %v3338_v62, %v3380_v49  ;;  %v7612_v61 = vsub.f32 %v3356_v27, %v3434_v42  ;;  %v5145_v62 = vpack.c.bf16 %v9292_v52, %v9291_v60  ;;  %v9294_v27 = vand.u32 4294901760, %v9221_v26  ;;  %v9300_v60 = vld [vmem:[#allocation51_spill] sm:$0xff]  ;;  %v3343_v56 = vld [vmem:[#allocation10 + $0x30] sm:$0xff]  ;;  %v9303_v34 = vld [vmem:[#allocation96_spill] sm:$0xff] }
 0x446   :  { %9298 = vst [vmem:[#allocation64_spill] sm:$0xff] %v7634_v47  ;;  %v9301_v26 = vand.u32 4294901760, %v9300_v60  ;;  %5262 = vmatprep.subr.bf16.mxu1 %v7634_v47  ;;  %v7643_v20 = vpack.c.bf16 %v3380_v49, %v3377_v0  ;;  %v9316_v47 = vld [vmem:[#allocation37_spill] sm:$0xff] }
 0x447   :  { %9287 = vst [vmem:[#allocation61_spill] sm:$0xff] %v7608_v41  ;;  %9288 = vst [vmem:[#allocation62_spill] sm:$0xff] %v7612_v61  ;;  %5140 = vmatpush1.bf16.msra.mxu0 %v5139_v16  ;;  %v7624_v41 = vsub.f32 %v3340_v15, %v3386_v55  ;;  %v9295_v16 = vand.u32 4294901760, %v9222_v38  ;;  %v3358_v61 = vld [vmem:[#allocation10 + $0xa8] sm:$0xff]  ;;  %v3437_v15 = vand.u32 4294901760, %v3357_v37 }
 0x448   :  { %5142 = vmatprep.subr.bf16.mxu0 %v5141_v19  ;;  %v5149_v19 = vpack.c.bf16 %v9297_v46, %v9296_v3  ;;  %v3440_v38 = vand.u32 4294901760, %v3358_v61  ;;  %9302 = vst [vmem:[#allocation65_spill] sm:$0xff] %v7643_v20  ;;  %v9304_v3 = vand.u32 4294901760, %v9303_v34  ;;  %v9305_v46 = vld [vmem:[#allocation30_spill] sm:$0xff]  ;;  %5264 = vmatpush3.bf16.msra.mxu1 %v7643_v20  ;;  %v7661_v34 = vpack.c.bf16 %v3386_v55, %v3383_v25 }
 0x449   :  { %9293 = vst [vmem:[#allocation63_spill] sm:$0xff] %v7624_v41  ;;  %v5147_v4 = vpack.c.bf16 %v9295_v16, %v9294_v27  ;;  %v3360_v27 = vld [vmem:[#allocation10 + $0xb8] sm:$0xff]  ;;  %v7641_v17 = vsub.f32 %v3357_v37, %v3437_v15  ;;  %v3392_v16 = vand.u32 4294901760, %v3342_v22  ;;  %v9318_v55 = vand.u32 4294901760, %v9230_v45 }
 0x44a   :  { %v7649_v60 = vsub.f32 %v3358_v61, %v3440_v38  ;;  %v3446_v49 = vand.u32 4294901760, %v3360_v27  ;;  %v9310_v61 = vld [vmem:[#allocation32_spill] sm:$0xff]  ;;  %v9324_v45 = vand.u32 4294901760, %v9234_v44  ;;  %v9328_v44 = vand.u32 4294901760, %v9238_v51 }
 0x44b   :  { %5144 = vmatpush1.bf16.msra.mxu0 %v5143_v32  ;;  %v9299_v32 = vand.u32 4294901760, %v9225_v11  ;;  %v9306_v11 = vand.u32 4294901760, %v9305_v46  ;;  %v7656_v0 = vsub.f32 %v3342_v22, %v3392_v16  ;;  %v9334_v51 = vand.u32 4294901760, %v7001_v23 }
 0x44c   :  { %5146 = vmatprep.subr.bf16.mxu0 %v5145_v62  ;;  %v3389_v62 = vand.u32 4294901760, %v3341_v36  ;;  %v7667_v20 = vsub.f32 %v3360_v27, %v3446_v49  ;;  %v9341_v23 = vand.u32 4294901760, %v7170_v8 }
 0x44d   :  { %v5151_v52 = vpack.c.bf16 %v9301_v26, %v9299_v32  ;;  %v5153_v41 = vpack.c.bf16 %v9306_v11, %v9304_v3  ;;  %v7651_v32 = vpack.c.bf16 %v3434_v42, %v3431_v50  ;;  %9309 = vst [vmem:[#allocation68_spill] sm:$0xff] %v7656_v0  ;;  %v3344_v26 = vld [vmem:[#allocation10 + $0x38] sm:$0xff]  ;;  %v3395_v3 = vand.u32 4294901760, %v3343_v56  ;;  %v9312_v42 = vld [vmem:[#allocation33_spill] sm:$0xff] }
 0x44e   :  { %v7654_v37 = vsub.f32 %v3341_v36, %v3389_v62  ;;  %v9311_v50 = vand.u32 4294901760, %v9310_v61  ;;  %v9313_v46 = vand.u32 4294901760, %v9312_v42  ;;  %v9314_v36 = vld [vmem:[#allocation34_spill] sm:$0xff]  ;;  %v9317_v0 = vand.u32 4294901760, %v9316_v47 }
 0x44f   :  { %5148 = vmatpush1.bf16.msra.mxu0 %v5147_v4  ;;  %9307 = vst [vmem:[#allocation66_spill] sm:$0xff] %v7651_v32  ;;  %v3443_v4 = vand.u32 4294901760, %v3359_v33  ;;  %5266 = vmatprep.subr.bf16.mxu1 %v7651_v32  ;;  %v9315_v22 = vand.u32 4294901760, %v9314_v36  ;;  %v3398_v32 = vand.u32 4294901760, %v3344_v26  ;;  %v9322_v47 = vand.u32 4294901760, %v9232_v48 }
 0x450   :  { %5150 = vmatprep.subr.bf16.mxu0 %v5149_v19  ;;  %9308 = vst [vmem:[#allocation67_spill] sm:$0xff] %v7654_v37  ;;  %v5155_v11 = vpack.c.bf16 %v9313_v46, %v9311_v50  ;;  %5268 = vmatpush3.bf16.msra.mxu1 %v7661_v34  ;;  %v7682_v50 = vpack.c.bf16 %v3440_v38, %v3437_v15  ;;  %v9325_v15 = vand.u32 4294901760, %v9235_v59  ;;  %v9326_v38 = vand.u32 4294901760, %v9236_v57 }
 0x451   :  { %v7659_v19 = vsub.f32 %v3359_v33, %v3443_v4  ;;  %v5157_v37 = vpack.c.bf16 %v9317_v0, %v9315_v22  ;;  %v7673_v33 = vsub.f32 %v3343_v56, %v3395_v3  ;;  %v7676_v25 = vsub.f32 %v3344_v26, %v3398_v32 }
 0x452   :  { %5270 = vmatprep.subr.bf16.mxu1 %v7682_v50  ;;  %v7689_v56 = vpack.c.bf16 %v3392_v16, %v3389_v62  ;;  %v9323_v26 = vand.u32 4294901760, %v9233_v31  ;;  %v7700_v48 = vpack.c.bf16 %v3446_v49, %v3443_v4  ;;  %v9327_v31 = vand.u32 4294901760, %v9237_v30 }
 0x453   :  { %5152 = vmatpush1.bf16.msra.mxu0 %v5151_v52  ;;  %v9319_v52 = vld [vmem:[#allocation99_spill] sm:$0xff]  ;;  %v9329_v59 = vand.u32 4294901760, %v9239_v14  ;;  %v9330_v57 = vand.u32 4294901760, %v9240_v53  ;;  %v9331_v4 = vand.u32 4294901760, %v9208_v43  ;;  %v9333_v30 = vand.u32 4294901760, %v9210_v10 }
 0x454   :  { %5154 = vmatprep.subr.bf16.mxu0 %v5153_v41  ;;  %v9320_v61 = vand.u32 4294901760, %v9319_v52  ;;  %v9321_v41 = vand.u32 4294901760, %v9231_v39  ;;  %v5163_v42 = vpack.c.bf16 %v9324_v45, %v9323_v26  ;;  %5272 = vmatpush3.bf16.msra.mxu1 %v7689_v56  ;;  %v7703_v39 = vpack.c.bf16 %v3398_v32, %v3395_v3 }
 0x455   :  { %5274 = vmatprep.subr.bf16.mxu1 %v7700_v48  ;;  %v5167_v62 = vpack.c.bf16 %v9328_v44, %v9327_v31  ;;  %v5169_v16 = vpack.c.bf16 %v9330_v57, %v9329_v59  ;;  %v9332_v32 = vand.u32 4294901760, %v9209_v5  ;;  %v5173_v3 = vpack.c.bf16 %v9334_v51, %v9333_v30  ;;  %v9362_v44 = vld [vmem:[#allocation53_spill] sm:$0xff]  ;;  %v9364_v59 = vld [vmem:[#allocation55_spill] sm:$0xff]  ;;  %v9369_v30 = vld [vmem:[#allocation58_spill] sm:$0xff] }
 0x456   :  { %v5159_v27 = vpack.c.bf16 %v9320_v61, %v9318_v55  ;;  %v5161_v0 = vpack.c.bf16 %v9322_v47, %v9321_v41  ;;  %v9335_v14 = vand.u32 4294901760, %v7008_v35  ;;  %v9336_v53 = vand.u32 4294901760, %v7010_v40  ;;  %v9370_v51 = vld [vmem:[#allocation16_spill] sm:$0xff] }
 0x457   :  { %5156 = vmatpush1.bf16.msra.mxu0 %v5155_v11  ;;  %v5171_v49 = vpack.c.bf16 %v9332_v32, %v9331_v4  ;;  %v9337_v11 = vand.u32 4294901760, %v7012_v9  ;;  %v9338_v43 = vand.u32 4294901760, %v7019_v63  ;;  %v9339_v5 = vand.u32 4294901760, %v7021_v7  ;;  %v9366_v4 = vld [vmem:[#allocation41_spill] sm:$0xff] }
 0x458   :  { %5158 = vmatprep.subr.bf16.mxu0 %v5157_v37  ;;  %v5165_v37 = vpack.c.bf16 %v9326_v38, %v9325_v15  ;;  %5276 = vmatpush3.bf16.msra.mxu1 %v7703_v39  ;;  %v5175_v46 = vpack.c.bf16 %v9336_v53, %v9335_v14  ;;  %v9340_v10 = vand.u32 4294901760, %v7028_v29  ;;  %v9342_v35 = vand.u32 4294901760, %v7172_v18  ;;  %v9350_v18 = vld [vmem:[#allocation24_spill] sm:$0xff]  ;;  %v9367_v32 = vld [vmem:[#allocation57_spill] sm:$0xff]  ;;  %v9372_v14 = vld [vmem:[#allocation23_spill] sm:$0xff] }
 0x459   :  { %v5177_v36 = vpack.c.bf16 %v9338_v43, %v9337_v11  ;;  %v9343_v40 = vand.u32 4294901760, %v7174_v21  ;;  %v9344_v9 = vand.u32 4294901760, %v7176_v6  ;;  %v9345_v63 = vand.u32 4294901760, %v7178_v58  ;;  %v9354_v6 = vld [vmem:[#allocation36_spill] sm:$0xff]  ;;  %v9373_v53 = vld [vmem:[#allocation26_spill] sm:$0xff]  ;;  %v9376_v43 = vld [vmem:[#allocation81_spill] sm:$0xff] }
 0x45a   :  { %v5179_v22 = vpack.c.bf16 %v9340_v10, %v9339_v5  ;;  %v5181_v55 = vpack.c.bf16 %v9342_v35, %v9341_v23  ;;  %v9346_v7 = vand.u32 4294901760, %v7180_v2  ;;  %v9347_v29 = vand.u32 4294901760, %v7182_v1  ;;  %v9358_v2 = vld [vmem:[#allocation40_spill] sm:$0xff]  ;;  %v9378_v5 = vld [vmem:[#allocation98_spill] sm:$0xff]  ;;  %v9382_v35 = vld [vmem:[#allocation113_spill] sm:$0xff] }
 0x45b   :  { %5160 = vmatpush1.bf16.msra.mxu0 %v5159_v27  ;;  %v5183_v52 = vpack.c.bf16 %v9344_v9, %v9343_v40  ;;  %v9348_v27 = vld [vmem:[#allocation91_spill] sm:$0xff]  ;;  %v9351_v47 = vand.u32 4294901760, %v9350_v18  ;;  %v9355_v45 = vand.u32 4294901760, %v9354_v6  ;;  %v9359_v38 = vand.u32 4294901760, %v9358_v2  ;;  %v9375_v11 = vld [vmem:[#allocation52_spill] sm:$0xff]  ;;  %v9381_v23 = vld [vmem:[#allocation110_spill] sm:$0xff] }
 0x45c   :  { %5162 = vmatprep.subr.bf16.mxu0 %v5161_v0  ;;  %v5185_v61 = vpack.c.bf16 %v9346_v7, %v9345_v63  ;;  %v9349_v8 = vand.u32 4294901760, %v9348_v27  ;;  %v9352_v0 = vld [vmem:[#allocation94_spill] sm:$0xff]  ;;  %v9365_v57 = vand.u32 4294901760, %v9364_v59  ;;  %v9379_v10 = vld [vmem:[#allocation100_spill] sm:$0xff]  ;;  %v9385_v9 = vld [vmem:[#allocation119_spill] sm:$0xff]  ;;  %v8684_v27 = vand.u32 4294901760, %v7602_v12 }
 0x45d   :  { %v9353_v21 = vand.u32 4294901760, %v9352_v0  ;;  %v9384_v40 = vld [vmem:[#allocation118_spill] sm:$0xff]  ;;  %v9387_v63 = vld [vmem:[#allocation56_spill] sm:$0xff]  ;;  %v9388_v7 = vld [vmem:[#allocation121_spill] sm:$0xff] }
 0x45e   :  { %v5187_v41 = vpack.c.bf16 %v9349_v8, %v9347_v29  ;;  %v9390_v29 = vld [vmem:[#allocation123_spill] sm:$0xff]  ;;  %v8683_v8 = vand.u32 4294901760, %v7604_v28  ;;  %v9391_v18 = vld [vmem:[#allocation61_spill] sm:$0xff]  ;;  %v9392_v0 = vld [vmem:[#allocation124_spill] sm:$0xff] }
 0x45f   :  { %5164 = vmatpush1.bf16.msra.mxu0 %v5163_v42  ;;  %v5189_v26 = vpack.c.bf16 %v9353_v21, %v9351_v47  ;;  %v9356_v42 = vld [vmem:[#allocation95_spill] sm:$0xff]  ;;  %v8681_v47 = vand.u32 4294901760, %v9391_v18  ;;  %v8680_v21 = vand.u32 4294901760, %v7610_v13  ;;  %v9397_v59 = vld [vmem:[#allocation84_spill] sm:$0xff] }
 0x460   :  { %5166 = vmatprep.subr.bf16.mxu0 %v5165_v37  ;;  %v9357_v58 = vand.u32 4294901760, %v9356_v42  ;;  %v9360_v37 = vld [vmem:[#allocation43_spill] sm:$0xff]  ;;  %v3604_v42 = vsub.f32 %v7602_v12, %v8684_v27 }
 0x461   :  { %v9361_v1 = vand.u32 4294901760, %v9360_v37  ;;  %v3499_v2 = vsub.f32 %v9391_v18, %v8681_v47  ;;  %v9395_v37 = vld [vmem:[#allocation83_spill] sm:$0xff] }
 0x462   :  { %v5191_v15 = vpack.c.bf16 %v9357_v58, %v9355_v45  ;;  %v9394_v45 = vld [vmem:[#allocation82_spill] sm:$0xff]  ;;  %v3611_v58 = vsub.f32 %v7604_v28, %v8683_v8 }
 0x463   :  { %5168 = vmatpush1.bf16.msra.mxu0 %v5167_v62  ;;  %v5193_v31 = vpack.c.bf16 %v9361_v1, %v9359_v38  ;;  %v9363_v62 = vand.u32 4294901760, %v9362_v44  ;;  %v8678_v38 = vand.u32 4294901760, %v7618_v54  ;;  %v3618_v1 = vsub.f32 %v7610_v13, %v8680_v21  ;;  %v9396_v44 = vld [vmem:[#allocation63_spill] sm:$0xff] }
 0x464   :  { %5170 = vmatprep.subr.bf16.mxu0 %v5169_v16 }
 0x465   :  { %v5195_v16 = vpack.c.bf16 %v9365_v57, %v9363_v62  ;;  %v8677_v62 = vand.u32 4294901760, %v9396_v44  ;;  %v3605_v57 = vand.u32 4294901760, %v3604_v42 }
 0x467   :  { %5172 = vmatpush1.bf16.msra.mxu0 %v5171_v49  ;;  %v9368_v49 = vld [vmem:[#allocation74_spill] sm:$0xff] }
 0x468   :  { %5174 = vmatprep.subr.bf16.mxu0 %v5173_v3  ;;  %v9371_v3 = vld [vmem:[#allocation19_spill] sm:$0xff] }
 0x46b   :  { %5176 = vmatpush1.bf16.msra.mxu0 %v5175_v46  ;;  %v9374_v46 = vld [vmem:[#allocation31_spill] sm:$0xff] }
 0x46c   :  { %5178 = vmatprep.subr.bf16.mxu0 %v5177_v36  ;;  %v9377_v36 = vld [vmem:[#allocation35_spill] sm:$0xff] }
 0x46f   :  { %5180 = vmatpush1.bf16.msra.mxu0 %v5179_v22  ;;  %v9380_v22 = vld [vmem:[#allocation104_spill] sm:$0xff] }
 0x470   :  { %5182 = vmatprep.subr.bf16.mxu0 %v5181_v55  ;;  %v9383_v55 = vld [vmem:[#allocation117_spill] sm:$0xff] }
 0x473   :  { %5184 = vmatpush1.bf16.msra.mxu0 %v5183_v52  ;;  %v9386_v52 = vld [vmem:[#allocation120_spill] sm:$0xff] }
 0x474   :  { %5186 = vmatprep.subr.bf16.mxu0 %v5185_v61  ;;  %v9389_v61 = vld [vmem:[#allocation122_spill] sm:$0xff] }
 0x477   :  { %5188 = vmatpush1.bf16.msra.mxu0 %v5187_v41  ;;  %v8682_v41 = vand.u32 4294901760, %v7606_v24 }
 0x478   :  { %5190 = vmatprep.subr.bf16.mxu0 %v5189_v26  ;;  %v9393_v26 = vld [vmem:[#allocation62_spill] sm:$0xff] }
 0x479   :  { %v8679_v6 = vand.u32 4294901760, %v9393_v26 }
 0x47b   :  { %5192 = vmatpush1.bf16.msra.mxu0 %v5191_v15  ;;  %v3492_v15 = vsub.f32 %v7606_v24, %v8682_v41 }
 0x47c   :  { %5194 = vmatprep.subr.bf16.mxu0 %v5193_v31  ;;  %v3625_v31 = vsub.f32 %v9393_v26, %v8679_v6 }
 0x47f   :  { %5196 = vmatpush1.bf16.msra.mxu0 %v5195_v16  ;;  %v3612_v16 = vand.u32 4294901760, %v3611_v58  ;;  %v8675_v58 = vand.u32 4294901760, %v7659_v19 }
 0x480   :  { %5198 = vmatprep.subr.bf16.mxu0 %v9366_v4  ;;  %v8672_v4 = vand.u32 4294901760, %v7641_v17 }
 0x482   :  { %3192 = vmatmul.mubr.f32.vlgmr.msra.gmra.mrb[2].mxu0 %v9367_v32 }
 0x483   :  { %5200 = vmatpush1.bf16.msra.mxu0 %v9368_v49  ;;  %3327 = vmatprep.mubr.f32.mxu0 %v9369_v30  ;;  %v8671_v49 = vand.u32 4294901760, %v7649_v60  ;;  %v7823_v30 = vld [vmem:[#allocation10 + $0xc0] sm:$0xff] }
 0x484   :  { %5202 = vmatprep.subr.bf16.mxu0 %v9370_v51  ;;  %v7825_v51 = vld [vmem:[#allocation10 + $0xc8] sm:$0xff] }
 0x487   :  { %5204 = vmatpush1.bf16.msra.mxu0 %v9371_v3  ;;  %v3493_v3 = vand.u32 4294901760, %v3492_v15  ;;  %v8676_v15 = vand.u32 4294901760, %v7667_v20 }
 0x488   :  { %5206 = vmatprep.subr.bf16.mxu0 %v9372_v14  ;;  %v3500_v14 = vand.u32 4294901760, %v3499_v2  ;;  %v9402_v2 = vld [vmem:[#allocation88_spill] sm:$0xff] }
 0x48b   :  { %5208 = vmatpush1.bf16.msra.mxu0 %v9373_v53  ;;  %v3506_v53 = vsub.f32 %v7618_v54, %v8678_v38 }
 0x48c   :  { %5210 = vmatprep.subr.bf16.mxu0 %v9374_v46  ;;  %v9398_v46 = vld [vmem:[#allocation85_spill] sm:$0xff] }
 0x48d   :  { %v3507_v42 = vand.u32 4294901760, %v3506_v53 }
 0x48f   :  { %5212 = vmatpush1.bf16.msra.mxu0 %v9375_v11  ;;  %v3619_v11 = vand.u32 4294901760, %v3618_v1 }
 0x490   :  { %5214 = vmatprep.subr.bf16.mxu0 %v9376_v43  ;;  %v3626_v43 = vand.u32 4294901760, %v3625_v31 }
 0x493   :  { %5216 = vmatpush1.bf16.msra.mxu0 %v9377_v36  ;;  %v3513_v36 = vsub.f32 %v9396_v44, %v8677_v62 }
 0x494   :  { %5218 = vmatprep.subr.bf16.mxu0 %v9378_v5  ;;  %v9399_v5 = vld [vmem:[#allocation87_spill] sm:$0xff] }
 0x495   :  { %v3514_v1 = vand.u32 4294901760, %v3513_v36 }
 0x497   :  { %5220 = vmatpush1.bf16.msra.mxu0 %v9379_v10  ;;  %v5293_v10 = vpack.c.bf16 %v3612_v16, %v3605_v57  ;;  %v9403_v57 = vld [vmem:[#allocation89_spill] sm:$0xff]  ;;  %v5299_v21 = vpack.c.bf16 %v3514_v1, %v3507_v42 }
 0x498   :  { %5222 = vmatprep.subr.bf16.mxu0 %v9380_v22  ;;  %v8702_v22 = vand.u32 4294901760, %v7823_v30 }
 0x49a   :  { %v7862_v16 = vsub.f32 %v7823_v30, %v8702_v22 }
 0x49b   :  { %5224 = vmatpush1.bf16.msra.mxu0 %v9381_v23  ;;  %v8701_v23 = vand.u32 4294901760, %v7825_v51 }
 0x49c   :  { %5226 = vmatprep.subr.bf16.mxu0 %v9382_v35  ;;  %v7837_v35 = vld [vmem:[#allocation10 + $0x40] sm:$0xff]  ;;  %v8689_v62 = vand.u32 4294901760, %v7862_v16 }
 0x49d   :  { %v8700_v31 = vand.u32 4294901760, %v7837_v35 }
 0x49f   :  { %5228 = vmatpush1.bf16.msra.mxu0 %v9383_v55  ;;  %v7839_v55 = vld [vmem:[#allocation10 + $0x48] sm:$0xff] }
 0x4a0   :  { %5230 = vmatprep.subr.bf16.mxu0 %v9384_v40  ;;  %v3632_v40 = vsub.f32 %v7641_v17, %v8672_v4  ;;  %v8690_v4 = vand.u32 4294901760, %v7673_v33 }
 0x4a3   :  { %5232 = vmatpush1.bf16.msra.mxu0 %v9385_v9  ;;  %v3639_v9 = vsub.f32 %v7649_v60, %v8671_v49  ;;  %v3653_v49 = vsub.f32 %v7667_v20, %v8676_v15 }
 0x4a4   :  { %5234 = vmatprep.subr.bf16.mxu0 %v9386_v52  ;;  %v9400_v52 = vld [vmem:[#allocation67_spill] sm:$0xff] }
 0x4a5   :  { %v3640_v36 = vand.u32 4294901760, %v3639_v9  ;;  %v9404_v9 = vld [vmem:[#allocation47_spill] sm:$0xff]  ;;  %v3654_v27 = vand.u32 4294901760, %v3653_v49  ;;  %v3660_v49 = vsub.f32 %v7862_v16, %v8689_v62 }
 0x4a7   :  { %5236 = vmatpush1.bf16.msra.mxu0 %v9387_v63  ;;  %v8673_v63 = vand.u32 4294901760, %v9400_v52 }
 0x4a8   :  { %5238 = vmatprep.subr.bf16.mxu0 %v9388_v7  ;;  %v9401_v7 = vld [vmem:[#allocation68_spill] sm:$0xff] }
 0x4ab   :  { %5240 = vmatpush1.bf16.msra.mxu0 %v9389_v61  ;;  %v8674_v61 = vand.u32 4294901760, %v9401_v7 }
 0x4ac   :  { %5242 = vmatprep.subr.bf16.mxu0 %v9390_v29  ;;  %v7849_v29 = vld [vmem:[#allocation10 + $0xd0] sm:$0xff] }
 0x4af   :  { %5244 = vmatpush1.bf16.msra.mxu0 %v9392_v0  ;;  %v7851_v0 = vld [vmem:[#allocation10 + $0xd8] sm:$0xff] }
 0x4b0   :  { %5246 = vmatprep.subr.bf16.mxu0 %v9394_v45  ;;  %v5295_v45 = vpack.c.bf16 %v3500_v14, %v3493_v3  ;;  %v7867_v3 = vsub.f32 %v7825_v51, %v8701_v23  ;;  %v8686_v14 = vand.u32 4294901760, %v7849_v29  ;;  %v8687_v53 = vand.u32 4294901760, %v7851_v0 }
 0x4b2   :  { %v8691_v38 = vand.u32 4294901760, %v7867_v3  ;;  %v7912_v6 = vsub.f32 %v7851_v0, %v8687_v53 }
 0x4b3   :  { %5248 = vmatpush1.bf16.msra.mxu0 %v9395_v37  ;;  %v5297_v37 = vpack.c.bf16 %v3626_v43, %v3619_v11  ;;  %v7873_v11 = vld [vmem:[#allocation10 + $0x58] sm:$0xff]  ;;  %v3633_v43 = vand.u32 4294901760, %v3632_v40  ;;  %v8688_v40 = vand.u32 4294901760, %v7676_v25 }
 0x4b4   :  { %5250 = vmatprep.subr.bf16.mxu0 %v9397_v59  ;;  %v8685_v59 = vand.u32 4294901760, %v7839_v55  ;;  %v8692_v15 = vand.u32 4294901760, %v7873_v11  ;;  %9407 = vst [vmem:[#allocation71_spill] sm:$0xff] %v7912_v6 }
 0x4b5   :  { %v5301_v47 = vpack.c.bf16 %v3640_v36, %v3633_v43  ;;  %v8696_v36 = vand.u32 4294901760, %v7912_v6 }
 0x4b7   :  { %5252 = vmatpush1.bf16.msra.mxu0 %v9398_v46  ;;  %v7871_v46 = vld [vmem:[#allocation10 + $0x50] sm:$0xff] }
 0x4b8   :  { %5254 = vmatprep.subr.bf16.mxu0 %v9399_v5  ;;  %v3520_v5 = vsub.f32 %v9400_v52, %v8673_v63  ;;  %v7893_v63 = vsub.f32 %v7837_v35, %v8700_v31 }
 0x4ba   :  { %v3521_v41 = vand.u32 4294901760, %v3520_v5  ;;  %v8699_v53 = vand.u32 4294901760, %v7893_v63 }
 0x4bb   :  { %5256 = vmatpush1.bf16.msra.mxu0 %v9402_v2  ;;  %v3527_v2 = vsub.f32 %v9401_v7, %v8674_v61  ;;  %v7898_v61 = vsub.f32 %v7839_v55, %v8685_v59  ;;  %v3534_v59 = vsub.f32 %v7673_v33, %v8690_v4 }
 0x4bc   :  { %5258 = vmatprep.subr.bf16.mxu0 %v9403_v57  ;;  %v3646_v57 = vsub.f32 %v7659_v19, %v8675_v58  ;;  %v8693_v58 = vand.u32 4294901760, %v7871_v46 }
 0x4bd   :  { %9405 = vst [vmem:[#allocation69_spill] sm:$0xff] %v7898_v61  ;;  %v3528_v8 = vand.u32 4294901760, %v3527_v2  ;;  %v8695_v42 = vand.u32 4294901760, %v7898_v61 }
 0x4be   :  { %v7926_v1 = vsub.f32 %v7871_v46, %v8693_v58 }
 0x4bf   :  { %5260 = vmatpush1.bf16.msra.mxu0 %v9404_v9  ;;  %v7907_v9 = vsub.f32 %v7849_v29, %v8686_v14  ;;  %v3541_v14 = vsub.f32 %v7676_v25, %v8688_v40  ;;  %v5303_v5 = vpack.c.bf16 %v3528_v8, %v3521_v41  ;;  %v3555_v62 = vsub.f32 %v7898_v61, %v8695_v42 }
 0x4c0   :  { %5294 = vmatprep.subr.bf16.mxu0 %v5293_v10  ;;  %v3647_v10 = vand.u32 4294901760, %v3646_v57  ;;  %9408 = vst [vmem:[#allocation72_spill] sm:$0xff] %v7926_v1  ;;  %v3535_v57 = vand.u32 4294901760, %v3534_v59  ;;  %v8698_v4 = vand.u32 4294901760, %v7926_v1  ;;  %v3681_v8 = vsub.f32 %v7912_v6, %v8696_v36 }
 0x4c1   :  { %9406 = vst [vmem:[#allocation70_spill] sm:$0xff] %v7907_v9  ;;  %v8694_v43 = vand.u32 4294901760, %v7907_v9  ;;  %v3542_v40 = vand.u32 4294901760, %v3541_v14  ;;  %v3556_v59 = vand.u32 4294901760, %v3555_v62  ;;  %v9410_v61 = vand.u32 4294901760, %v7823_v30 }
 0x4c2   :  { %3329 = vmatmul.mubr.f32.vlgmr.msra.gmra.mrb[2].mxu0 %v9367_v32  ;;  %v7931_v32 = vsub.f32 %v7873_v11, %v8692_v15  ;;  %v5305_v2 = vpack.c.bf16 %v3654_v27, %v3647_v10  ;;  %v3661_v15 = vand.u32 4294901760, %v3660_v49  ;;  %v3562_v14 = vsub.f32 %v7926_v1, %v8698_v4 }
 0x4c3   :  { %5296 = vmatpush3.bf16.msra.mxu0 %v5295_v45  ;;  %v3667_v45 = vsub.f32 %v7867_v3, %v8691_v38  ;;  %v3674_v27 = vsub.f32 %v7907_v9, %v8694_v43  ;;  %v5307_v41 = vpack.c.bf16 %v3542_v40, %v3535_v57  ;;  %v7963_v57 = vld [vmem:[#allocation10 + $0xe8] sm:$0xff] }
 0x4c4   :  { %9409 = vst [vmem:[#allocation73_spill] sm:$0xff] %v7931_v32  ;;  %5298 = vmatprep.subr.bf16.mxu0 %v5297_v37  ;;  %v3548_v37 = vsub.f32 %v7893_v63, %v8699_v53  ;;  %v8697_v38 = vand.u32 4294901760, %v7931_v32  ;;  %v3563_v42 = vand.u32 4294901760, %v3562_v14 }
 0x4c5   :  { %v3668_v58 = vand.u32 4294901760, %v3667_v45  ;;  %v3675_v49 = vand.u32 4294901760, %v3674_v27  ;;  %v3682_v45 = vand.u32 4294901760, %v3681_v8 }
 0x4c7   :  { %5300 = vmatpush3.bf16.msra.mxu0 %v5299_v21  ;;  %v3549_v21 = vand.u32 4294901760, %v3548_v37  ;;  %v5309_v10 = vpack.c.bf16 %v3668_v58, %v3661_v15  ;;  %v5313_v40 = vpack.c.bf16 %v3682_v45, %v3675_v49  ;;  %v3464_v58 = vand.u32 4294901760, %v7963_v57  ;;  %v7967_v15 = vld [vmem:[#allocation10 + $0x60] sm:$0xff]  ;;  %v3351_v45 = vld [vmem:[#allocation10 + $0x70] sm:$0xff] }
 0x4c8   :  { %5302 = vmatprep.subr.bf16.mxu0 %v5301_v47  ;;  %v3569_v47 = vsub.f32 %v7931_v32, %v8697_v38  ;;  %v3413_v27 = vand.u32 4294901760, %v7967_v15 }
 0x4c9   :  { %v5311_v43 = vpack.c.bf16 %v3556_v59, %v3549_v21  ;;  %v3367_v21 = vld [vmem:[#allocation10 + $0xf0] sm:$0xff]  ;;  %v3368_v59 = vld [vmem:[#allocation10 + $0xf8] sm:$0xff] }
 0x4ca   :  { %v3570_v36 = vand.u32 4294901760, %v3569_v47  ;;  %v3470_v49 = vand.u32 4294901760, %v3368_v59 }
 0x4cb   :  { %5304 = vmatpush3.bf16.msra.mxu0 %v5303_v5  ;;  %v7961_v5 = vld [vmem:[#allocation10 + $0xe0] sm:$0xff] }
 0x4cc   :  { %5306 = vmatprep.subr.bf16.mxu0 %v5305_v2  ;;  %v5315_v62 = vpack.c.bf16 %v3570_v36, %v3563_v42  ;;  %v3461_v37 = vand.u32 4294901760, %v7961_v5  ;;  %v3350_v2 = vld [vmem:[#allocation10 + $0x68] sm:$0xff]  ;;  %v7974_v42 = vsub.f32 %v7963_v57, %v3464_v58  ;;  %v3419_v57 = vand.u32 4294901760, %v3351_v45 }
 0x4cd   :  { %v3416_v8 = vand.u32 4294901760, %v3350_v2  ;;  %v7993_v53 = vsub.f32 %v3368_v59, %v3470_v49 }
 0x4ce   :  { %v8708_v47 = vand.u32 4294901760, %v7974_v42  ;;  %v8001_v22 = vsub.f32 %v3351_v45, %v3419_v57 }
 0x4cf   :  { %5308 = vmatpush3.bf16.msra.mxu0 %v5307_v41  ;;  %v7971_v41 = vsub.f32 %v7961_v5, %v3461_v37  ;;  %v7979_v36 = vsub.f32 %v3350_v2, %v3416_v8 }
 0x4d0   :  { %5310 = vmatprep.subr.bf16.mxu0 %v5309_v10  ;;  %v3467_v10 = vand.u32 4294901760, %v3367_v21  ;;  %v3695_v2 = vsub.f32 %v7974_v42, %v8708_v47  ;;  %v8717_v9 = vand.u32 4294901760, %v8001_v22 }
 0x4d1   :  { %v8705_v14 = vand.u32 4294901760, %v7971_v41  ;;  %v8716_v5 = vand.u32 4294901760, %v7979_v36 }
 0x4d2   :  { %v7991_v4 = vsub.f32 %v3367_v21, %v3467_v10  ;;  %v3696_v1 = vand.u32 4294901760, %v3695_v2  ;;  %v8718_v21 = vand.u32 4294901760, %v7993_v53  ;;  %v9413_v2 = vand.u32 4294901760, %v7839_v55 }
 0x4d3   :  { %5312 = vmatpush3.bf16.msra.mxu0 %v5311_v43  ;;  %v7977_v43 = vsub.f32 %v7967_v15, %v3413_v27  ;;  %v3688_v15 = vsub.f32 %v7971_v41, %v8705_v14  ;;  %v3583_v23 = vsub.f32 %v7979_v36, %v8716_v5  ;;  %v9411_v5 = vand.u32 4294901760, %v7825_v51 }
 0x4d4   :  { %5314 = vmatprep.subr.bf16.mxu0 %v5313_v40  ;;  %v3352_v40 = vld [vmem:[#allocation10 + $0x78] sm:$0xff]  ;;  %v3701_v47 = vand.u32 4294901760, %v7991_v4  ;;  %v3590_v51 = vsub.f32 %v8001_v22, %v8717_v9  ;;  %v9417_v9 = vand.u32 4294901760, %v7871_v46  ;;  %v8056_v46 = vpack.c.bf16 %v3470_v49, %v3467_v10  ;;  %v9420_v10 = vld [vmem:[#allocation92_spill] sm:$0xff] }
 0x4d5   :  { %v3422_v38 = vand.u32 4294901760, %v3352_v40  ;;  %v3689_v14 = vand.u32 4294901760, %v3688_v15  ;;  %v3584_v6 = vand.u32 4294901760, %v3583_v23  ;;  %v8013_v45 = vpack.c.bf16 %v9411_v5, %v9410_v61 }
 0x4d6   :  { %v3702_v15 = vsub.f32 %v7991_v4, %v3701_v47  ;;  %v9412_v23 = vand.u32 4294901760, %v7837_v35  ;;  %v3591_v35 = vand.u32 4294901760, %v3590_v51 }
 0x4d7   :  { %5316 = vmatpush3.bf16.msra.mxu0 %v5315_v62  ;;  %v8713_v62 = vand.u32 4294901760, %v7977_v43  ;;  %v8003_v32 = vsub.f32 %v3352_v40, %v3422_v38  ;;  %v5317_v40 = vpack.c.bf16 %v3696_v1, %v3689_v14  ;;  %5278 = vmatprep.subr.bf16.mxu1 %v8013_v45 }
 0x4d8   :  { %v3703_v14 = vand.u32 4294901760, %v3702_v15  ;;  %v8049_v15 = vpack.c.bf16 %v3464_v58, %v3461_v37  ;;  %v5349_v37 = vpack.c.bf16 %v7974_v42, %v7971_v41  ;;  %v5351_v58 = vpack.c.bf16 %v7979_v36, %v7977_v43 }
 0x4d9   :  { %v3576_v31 = vsub.f32 %v7977_v43, %v8713_v62  ;;  %v8025_v62 = vpack.c.bf16 %v9413_v2, %v9412_v23  ;;  %v9414_v61 = vand.u32 4294901760, %v8003_v32  ;;  %5318 = vmatprep.subr.bf16.mxu0 %v5317_v40 }
 0x4db   :  { %v3577_v59 = vand.u32 4294901760, %v3576_v31  ;;  %v3709_v31 = vsub.f32 %v7993_v53, %v8718_v21  ;;  %v3597_v1 = vsub.f32 %v8003_v32, %v9414_v61  ;;  %5280 = vmatpush3.bf16.msra.mxu1 %v8025_v62  ;;  %v9418_v61 = vand.u32 4294901760, %v7873_v11 }
 0x4dc   :  { %v8058_v11 = vpack.c.bf16 %v3422_v38, %v3419_v57  ;;  %v5355_v38 = vpack.c.bf16 %v8003_v32, %v8001_v22  ;;  %v9421_v57 = vld [vmem:[#allocation93_spill] sm:$0xff] }
 0x4dd   :  { %v5319_v30 = vpack.c.bf16 %v3584_v6, %v3577_v59  ;;  %v3710_v5 = vand.u32 4294901760, %v3709_v31  ;;  %v3598_v55 = vand.u32 4294901760, %v3597_v1  ;;  %v9415_v6 = vand.u32 4294901760, %v7849_v29  ;;  %v9419_v29 = vld [vmem:[#allocation64_spill] sm:$0xff] }
 0x4de   :  { %v9416_v59 = vand.u32 4294901760, %v7851_v0  ;;  %v8045_v21 = vpack.c.bf16 %v9418_v61, %v9417_v9  ;;  %v8052_v0 = vpack.c.bf16 %v3416_v8, %v3413_v27  ;;  %v5325_v9 = vpack.c.bf16 %v7604_v28, %v7602_v12  ;;  %v2039_v8 = vld [vmem:[%s8244_s6] sm:$0x3] }
 0x4df   :  { %5320 = vmatpush3.bf16.msra.mxu0 %v5319_v30  ;;  %v5321_v2 = vpack.c.bf16 %v3710_v5, %v3703_v14  ;;  %v5323_v40 = vpack.c.bf16 %v3598_v55, %v3591_v35  ;;  %v5353_v27 = vpack.c.bf16 %v7993_v53, %v7991_v4  ;;  %v2044_v49 = vrot.slane %v2039_v8, %v9420_v10  ;;  %v9423_v10 = vld [vmem:[#allocation66_spill] sm:$0xff] }
 0x4e0   :  { %v8039_v23 = vpack.c.bf16 %v9416_v59, %v9415_v6  ;;  %v2048_v31 = vrot.slane %v2039_v8, %v9421_v57  ;;  %v4258_v4 = vld [vmem:[%s8246_s8] ss:$0 sm:$0xff]  ;;  %s5652_s8 = smov [#allocation11]  }
 0x4e1   :  { %5322 = vmatprep.subr.bf16.mxu0 %v5321_v2  ;;  %s4247_s12 = sshll.u32 %s5652_s8, 4  ;;  %s4248_s12 = int_to_ptr.vmem [resolvable:$true] %s4247_s12 }
 0x4e2   :  { %5282 = vmatprep.subr.bf16.mxu1 %v8039_v23  ;;  %s5612_s13 = scalar_lea.vmem %s4248_s12, 128  ;;  %p5617_p13 = scmp.lt.s32.totalorder %s4248_s12, %s4248_s12 }
 0x4e3   :  { %5284 = vmatpush3.bf16.msra.mxu1 %v8045_v21  ;;  %5324 = vmatpush3.bf16.msra.mxu0 %v5323_v40  ;;  %v9422_v40 = vld [vmem:[#allocation65_spill] sm:$0xff]  ;;  %p5613_p12 = scmp.ne.s32.totalorder %s4248_s12, %s5612_s13  ;;  %p5618_p0 = scmp.lt.s32.totalorder %s5612_s13, %s5612_s13 }
 0x4e4   :  { %5358 = vmatprep.subr.bf16.mxu0 %v9419_v29  ;;  %5286 = vmatprep.subr.bf16.mxu1 %v8049_v15 }
 0x4e5   :  { %p5619_p1 = por %p5618_p0, %p5617_p13 }
 0x4e7   :  { %5288 = vmatpush3.bf16.msra.mxu1 %v8052_v0  ;;  %p5620_p2 = pnand %p5619_p1, %p5613_p12 }
 0x4e8   :  { %5290 = vmatprep.subr.bf16.mxu1 %v8056_v46 }
 0x4eb   :  { %5292 = vmatpush3.bf16.msra.mxu1 %v8058_v11 }
 0x4ec   :  { %5326 = vmatprep.subr.bf16.mxu1 %v5325_v9 }
 0x595   :  { %v3330_v30 = vpop.f32.mrb[2].mxu0 }
 0x596   :  { %v5459_v51 = vadd.f32 %v3330_v30, %v2044_v49  ;;  %v3332_v1 = vpop.f32.mrb[3].mxu0 }
 0x597   :  { %v5460_v14 = vadd.f32 %v3332_v1, %v2048_v31  ;;  %v5327_v31 = vpack.c.bf16 %v9391_v18, %v7606_v24  ;;  %v5331_v1 = vpack.c.bf16 %v9396_v44, %v7618_v54 }
 0x598   :  { %v3335_v5 = vmax.f32 %v5459_v51, 0.0  ;;  %v5329_v51 = vpack.c.bf16 %v9393_v26, %v7610_v13 }
 0x599   :  { %v3336_v35 = vmax.f32 %v5460_v14, 0.0  ;;  %v5333_v14 = vpack.c.bf16 %v7649_v60, %v7641_v17 }
 0x59a   :  { %v8077_v55 = vand.u32 4294901760, %v3335_v5 }
 0x59b   :  { %v8079_v6 = vand.u32 4294901760, %v3336_v35 }
 0x59c   :  { %v8082_v59 = vsub.f32 %v3335_v5, %v8077_v55  ;;  %v5335_v5 = vpack.c.bf16 %v9401_v7, %v9400_v52 }
 0x59d   :  { %v3473_v2 = vsub.f32 %v3336_v35, %v8079_v6  ;;  %3713 = vmatprep.mubr.f32.mxu0 %v8079_v6  ;;  %v5337_v35 = vpack.c.bf16 %v7667_v20, %v7659_v19 }
 0x59e   :  { %v3480_v61 = vand.u32 4294901760, %v8082_v59  ;;  %3715 = vmatmul.mubr.f32.vlgmr.msra.gmra.mrb[4].mxu0 %v8077_v55 }
 0x59f   :  { %5360 = vmatpush3.bf16.msra.mxu0 %v9422_v40  ;;  %v3474_v9 = vand.u32 4294901760, %v3473_v2 }
 0x5a0   :  { %v3481_v8 = vsub.f32 %v8082_v59, %v3480_v61  ;;  %5362 = vmatprep.subr.bf16.mxu0 %v9423_v10 }
 0x5a1   :  { %3957 = vmatprep.mubr.f32.mxu0 %v3474_v9  ;;  %v3475_v49 = vsub.f32 %v3473_v2, %v3474_v9  ;;  %v5341_v9 = vpack.c.bf16 %v7867_v3, %v7862_v16 }
 0x5a2   :  { %v3482_v30 = vand.u32 4294901760, %v3481_v8  ;;  %v9424_v8 = vld [vmem:[#allocation69_spill] sm:$0xff] }
 0x5a3   :  { %5364 = vmatpush3.bf16.msra.mxu0 %v7661_v34  ;;  %v3476_v57 = vand.u32 4294901760, %v3475_v49  ;;  %v5343_v49 = vpack.c.bf16 %v9424_v8, %v7893_v63 }
 0x5a4   :  { %5366 = vmatprep.subr.bf16.mxu0 %v7682_v50 }
 0x5a5   :  { %3477 = vmatprep.mubr.f32.mxu1 %v3476_v57  ;;  %v9425_v57 = vld [vmem:[#allocation70_spill] sm:$0xff] }
 0x5a6   :  { %3483 = vmatmul.mubr.f32.vlgmr.msra.gmra.mrb[4].mxu1 %v3482_v30 }
 0x5a7   :  { %5328 = vmatpush3.bf16.msra.mxu1 %v5327_v31  ;;  %5368 = vmatpush3.bf16.msra.mxu0 %v7689_v56  ;;  %v9426_v31 = vld [vmem:[#allocation71_spill] sm:$0xff] }
 0x5a8   :  { %3850 = vmatprep.mubr.f32.mxu1 %v3473_v2  ;;  %5330 = vmatprep.subr.bf16.mxu1 %v5329_v51  ;;  %v5339_v2 = vpack.c.bf16 %v7676_v25, %v7673_v33  ;;  %v5345_v30 = vpack.c.bf16 %v9426_v31, %v9425_v57  ;;  %v9427_v51 = vld [vmem:[#allocation72_spill] sm:$0xff] }
 0x5a9   :  { %5370 = vmatprep.subr.bf16.mxu0 %v7700_v48 }
 0x5ab   :  { %5332 = vmatpush3.bf16.msra.mxu1 %v5331_v1  ;;  %5372 = vmatpush3.bf16.msra.mxu0 %v7703_v39  ;;  %v9428_v1 = vld [vmem:[#allocation73_spill] sm:$0xff] }
 0x5ac   :  { %5334 = vmatprep.subr.bf16.mxu1 %v5333_v14  ;;  %5374 = vmatprep.subr.bf16.mxu0 %v8013_v45  ;;  %v5347_v14 = vpack.c.bf16 %v9428_v1, %v9427_v51 }
 0x5af   :  { %5336 = vmatpush3.bf16.msra.mxu1 %v5335_v5  ;;  %5376 = vmatpush3.bf16.msra.mxu0 %v8025_v62  ;;  %v9429_v5 = vand.u32 4294901760, %v7602_v12  ;;  %v9433_v12 = vand.u32 4294901760, %v7610_v13  ;;  %v9438_v13 = vand.u32 4294901760, %v7649_v60  ;;  %v9444_v60 = vand.u32 4294901760, %v7676_v25 }
 0x5b0   :  { %5338 = vmatprep.subr.bf16.mxu1 %v5337_v35  ;;  %5378 = vmatprep.subr.bf16.mxu0 %v8039_v23  ;;  %v9430_v35 = vand.u32 4294901760, %v7604_v28  ;;  %v9434_v28 = vand.u32 4294901760, %v9393_v26  ;;  %v9439_v26 = vand.u32 4294901760, %v9400_v52  ;;  %v9445_v52 = vand.u32 4294901760, %v7862_v16 }
 0x5b1   :  { %v9450_v25 = vand.u32 4294901760, %v9426_v31  ;;  %v9451_v16 = vand.u32 4294901760, %v9427_v51 }
 0x5b3   :  { %5340 = vmatpush3.bf16.msra.mxu1 %v5339_v2  ;;  %5380 = vmatpush3.bf16.msra.mxu0 %v8045_v21 }
 0x5b4   :  { %5342 = vmatprep.subr.bf16.mxu1 %v5341_v9  ;;  %5382 = vmatprep.subr.bf16.mxu0 %v8049_v15 }
 0x5b7   :  { %5344 = vmatpush3.bf16.msra.mxu1 %v5343_v49  ;;  %5384 = vmatpush3.bf16.msra.mxu0 %v8052_v0 }
 0x5b8   :  { %5346 = vmatprep.subr.bf16.mxu1 %v5345_v30  ;;  %5386 = vmatprep.subr.bf16.mxu0 %v8056_v46 }
 0x5bb   :  { %5348 = vmatpush3.bf16.msra.mxu1 %v5347_v14  ;;  %5388 = vmatpush3.bf16.msra.mxu0 %v8058_v11 }
 0x5bc   :  { %5350 = vmatprep.subr.bf16.mxu1 %v5349_v37  ;;  %5422 = vmatprep.subr.bf16.mxu0 %v9419_v29  ;;  %v5389_v37 = vpack.c.bf16 %v9430_v35, %v9429_v5  ;;  %v9431_v29 = vand.u32 4294901760, %v7606_v24  ;;  %v9436_v24 = vand.u32 4294901760, %v9396_v44 }
 0x5be   :  { %3961 = vmatmul.mubr.f32.vlgmr.msra.gmra.mrb[6].mxu0 %v3480_v61 }
 0x5bf   :  { %5352 = vmatpush3.bf16.msra.mxu1 %v5351_v58  ;;  %5424 = vmatpush3.bf16.msra.mxu0 %v9422_v40  ;;  %v9432_v58 = vand.u32 4294901760, %v9391_v18 }
 0x5c0   :  { %4231 = vmatprep.mubr.f32.mxu0 %v8079_v6  ;;  %5354 = vmatprep.subr.bf16.mxu1 %v5353_v27  ;;  %v5393_v27 = vpack.c.bf16 %v9434_v28, %v9433_v12 }
 0x5c1   :  { %5426 = vmatprep.subr.bf16.mxu0 %v9423_v10  ;;  %v5391_v61 = vpack.c.bf16 %v9432_v58, %v9431_v29  ;;  %v9455_v10 = vand.u32 4294901760, %v7977_v43 }
 0x5c3   :  { %5356 = vmatpush3.bf16.msra.mxu1 %v5355_v38  ;;  %5428 = vmatpush3.bf16.msra.mxu0 %v7661_v34  ;;  %v9435_v34 = vand.u32 4294901760, %v7618_v54  ;;  %v9441_v54 = vand.u32 4294901760, %v7659_v19  ;;  %v9448_v19 = vand.u32 4294901760, %v9424_v8 }
 0x5c4   :  { %5390 = vmatprep.subr.bf16.mxu1 %v5389_v37  ;;  %5430 = vmatprep.subr.bf16.mxu0 %v7682_v50  ;;  %v9437_v50 = vand.u32 4294901760, %v7641_v17  ;;  %v9443_v17 = vand.u32 4294901760, %v7673_v33  ;;  %v9449_v33 = vand.u32 4294901760, %v9425_v57 }
 0x5c5   :  { %v5395_v38 = vpack.c.bf16 %v9436_v24, %v9435_v34 }
 0x5c6   :  { %3853 = vmatmul.mubr.f32.vlgmr.msra.gmra.mrb[6].mxu1 %v8082_v59  ;;  %v5397_v18 = vpack.c.bf16 %v9438_v13, %v9437_v50 }
 0x5c7   :  { %5392 = vmatpush3.bf16.msra.mxu1 %v5391_v61  ;;  %4127 = vmatprep.mubr.f32.mxu1 %v8079_v6  ;;  %v9440_v6 = vand.u32 4294901760, %v9401_v7 }
 0x5c8   :  { %5432 = vmatpush3.bf16.msra.mxu0 %v7689_v56  ;;  %5394 = vmatprep.subr.bf16.mxu1 %v5393_v27  ;;  %v9442_v56 = vand.u32 4294901760, %v7667_v20  ;;  %v9447_v20 = vand.u32 4294901760, %v7893_v63  ;;  %v9453_v63 = vand.u32 4294901760, %v7971_v41  ;;  %v9458_v41 = vand.u32 4294901760, %v8001_v22 }
 0x5c9   :  { %5434 = vmatprep.subr.bf16.mxu0 %v7700_v48  ;;  %v5399_v59 = vpack.c.bf16 %v9440_v6, %v9439_v26  ;;  %v5403_v48 = vpack.c.bf16 %v9444_v60, %v9443_v17 }
 0x5ca   :  { %v5401_v44 = vpack.c.bf16 %v9442_v56, %v9441_v54 }
 0x5cb   :  { %5396 = vmatpush3.bf16.msra.mxu1 %v5395_v38 }
 0x5cc   :  { %5436 = vmatpush3.bf16.msra.mxu0 %v7703_v39  ;;  %5398 = vmatprep.subr.bf16.mxu1 %v5397_v18  ;;  %v9446_v39 = vand.u32 4294901760, %v7867_v3  ;;  %v9452_v3 = vand.u32 4294901760, %v9428_v1 }
 0x5cd   :  { %5438 = vmatprep.subr.bf16.mxu0 %v8013_v45  ;;  %v5407_v45 = vpack.c.bf16 %v9448_v19, %v9447_v20 }
 0x5ce   :  { %v5405_v7 = vpack.c.bf16 %v9446_v39, %v9445_v52 }
 0x5cf   :  { %5400 = vmatpush3.bf16.msra.mxu1 %v5399_v59 }
 0x5d0   :  { %5440 = vmatpush3.bf16.msra.mxu0 %v8025_v62  ;;  %5402 = vmatprep.subr.bf16.mxu1 %v5401_v44  ;;  %v5409_v62 = vpack.c.bf16 %v9450_v25, %v9449_v33 }
 0x5d1   :  { %5442 = vmatprep.subr.bf16.mxu0 %v8039_v23  ;;  %v5411_v23 = vpack.c.bf16 %v9452_v3, %v9451_v16 }
 0x5d3   :  { %5404 = vmatpush3.bf16.msra.mxu1 %v5403_v48 }
 0x5d4   :  { %5444 = vmatpush3.bf16.msra.mxu0 %v8045_v21  ;;  %5406 = vmatprep.subr.bf16.mxu1 %v5405_v7  ;;  %v9454_v21 = vand.u32 4294901760, %v7974_v42  ;;  %v9459_v42 = vand.u32 4294901760, %v8003_v32 }
 0x5d5   :  { %5446 = vmatprep.subr.bf16.mxu0 %v8049_v15  ;;  %v9456_v15 = vand.u32 4294901760, %v7979_v36 }
 0x5d6   :  { %v5413_v40 = vpack.c.bf16 %v9454_v21, %v9453_v63 }
 0x5d7   :  { %5408 = vmatpush3.bf16.msra.mxu1 %v5407_v45  ;;  %v5415_v2 = vpack.c.bf16 %v9456_v15, %v9455_v10 }
 0x5d8   :  { %5448 = vmatpush3.bf16.msra.mxu0 %v8052_v0  ;;  %5410 = vmatprep.subr.bf16.mxu1 %v5409_v62  ;;  %v9457_v0 = vand.u32 4294901760, %v7993_v53 }
 0x5d9   :  { %5450 = vmatprep.subr.bf16.mxu0 %v8056_v46  ;;  %v5419_v46 = vpack.c.bf16 %v9459_v42, %v9458_v41 }
 0x5da   :  { %v5417_v9 = vpack.c.bf16 %v9457_v0, %v3701_v47 }
 0x5db   :  { %5412 = vmatpush3.bf16.msra.mxu1 %v5411_v23 }
 0x5dc   :  { %5452 = vmatpush3.bf16.msra.mxu0 %v8058_v11  ;;  %5414 = vmatprep.subr.bf16.mxu1 %v5413_v40 }
 0x5df   :  { %4233 = vmatmul.mubr.f32.vlgmr.msra.gmra.mrb[8].mxu0 %v8077_v55  ;;  %5416 = vmatpush3.bf16.msra.mxu1 %v5415_v2 }
 0x5e0   :  { %5418 = vmatprep.subr.bf16.mxu1 %v5417_v9 }
 0x5e3   :  { %5420 = vmatpush3.bf16.msra.mxu1 %v5419_v46 }
 0x5e6   :  { %4129 = vmatmul.mubr.f32.vlgmr.msra.gmra.mrb[8].mxu1 %v8077_v55 }
 0x671   :  { %v4326_v43 = vpop.f32.mrb[4].mxu0 }
 0x672   :  { %v4327_v36 = vpop.f32.mrb[5].mxu0 }
 0x673   :  { %v4328_v11 = vadd.f32 %v4327_v36, %v4326_v43 }
 0x679   :  { %v4291_v8 = vpop.f32.mrb[4].mxu1 }
 0x67a   :  { %v4292_v53 = vpop.f32.mrb[5].mxu1 }
 0x67b   :  { %v4293_v47 = vadd.f32 %v4292_v53, %v4291_v8 }
 0x67d   :  { %v3485_v49 = vadd.f32 %v4293_v47, %v4258_v4 }
 0x67f   :  { %v3717_v57 = vadd.f32 %v4328_v11, %v3485_v49 }
 0x691   :  { %v4396_v22 = vpop.f32.mrb[6].mxu0 }
 0x692   :  { %v4397_v31 = vpop.f32.mrb[7].mxu0 }
 0x693   :  { %v4398_v32 = vadd.f32 %v4397_v31, %v4396_v22 }
 0x699   :  { %v4361_v30 = vpop.f32.mrb[6].mxu1 }
 0x69a   :  { %v4362_v51 = vpop.f32.mrb[7].mxu1 }
 0x69b   :  { %v4363_v1 = vadd.f32 %v4362_v51, %v4361_v30 }
 0x69d   :  { %v3855_v14 = vadd.f32 %v4363_v1, %v3717_v57 }
 0x69f   :  { %v3963_v55 = vadd.f32 %v4398_v32, %v3855_v14 }
 0x6b2   :  { %v4466_v5 = vpop.f32.mrb[8].mxu0 }
 0x6b3   :  { %v4467_v35 = vpop.f32.mrb[9].mxu0 }
 0x6b4   :  { %v4468_v37 = vadd.f32 %v4467_v35, %v4466_v5 }
 0x6b9   :  { %v4431_v29 = vpop.f32.mrb[8].mxu1 }
 0x6ba   :  { %v4432_v58 = vpop.f32.mrb[9].mxu1 }
 0x6bb   :  { %v4433_v61 = vadd.f32 %v4432_v58, %v4431_v29 }
 0x6bd   :  { %v4131_v12 = vadd.f32 %v4433_v61, %v3963_v55 }
 0x6bf   :  { %v4235_v28 = vadd.f32 %v4468_v37, %v4131_v12 }
 0x6c1   :  { %5500 = vtanh.f32 %v4235_v28 }
 0x6cb   :  { %v5501_v27 = vpop.eup %5500 }
 0x6cc   :  { %v4239_v34 = vmul.f32 2.0, %v5501_v27 }
 0x6ce   :  { %4240 = vst [vmem:[#allocation11] sm:$0xff] %v4239_v34 }
 0x6cf   :  { %5623 = shalt.err (!%p5620_p2)
}
 0x6d0   :  { %s5624_s14 = scalar_lea.hbm %s8247_s9, 128 }
 0x6d1   :  { %p5625_p3 = scmp.ne.s32.totalorder %s8247_s9, %s5624_s14  ;;  %p5628_p4 = scmp.lt.u32.totalorder %s5624_s14, %s8247_s9 }
 0x6d3   :  { %p5630_p5 = pnand %p5628_p4, %p5625_p3 }
 0x6d5   :  { %5633 = shalt.err (!%p5630_p5)
}
 0x6d6   :  { %4250 = dma.vmem_to_hbm [thread:$0]  %s4248_s12, 128, %s8247_s9, [#allocation4]  }
 0x6d7   :  { %5640 = dma.done.wait [#allocation4], 128  }
 0x6d8   :  { %5641 = vsyncadd [#allocation4], 4294967168 }
 0x6d9   :  { %4254 = vsyncpa [#allocation3], 1 }
 0x6da   :  { %4255 = vsyncpa [#allocation6], 1 }
 0x6db   :  { %4256 = vsyncpa [#allocation9], 1 }
 0x6dc   :  { %4257 = vsyncpa [#allocation4], 1 }

</bundles_post_ra>
